<compile_context>
chip_gen: v6e
topology: v6e:2x2x1
jax: 0.10.0
libtpu: 0.0.40
codegen_flags: <defaults>
</compile_context>

<pallas_src>
import functools

import jax
import jax.numpy as jnp
from jax import lax
from jax.experimental import pallas as pl
from jax.experimental.pallas import tpu as pltpu

# ------------------------- synthetic config (small shapes) -------------------------
SPECIALTIES = ['primary_care', 'emergency', 'cardiology', 'neurology', 'oncology',
               'pediatrics', 'psychiatry', 'pharmacy', 'radiology', 'surgery',
               'internal_medicine', 'preventive_care']
E = len(SPECIALTIES)          # 12 experts
TOP_K = 3                     # n_experts_per_tok
N_RISK = 4                    # len(risk_categories)
N_RISKS_OUT = 10              # preventive-care risk head output size
B, S, H, I = 2, 8, 32, 64     # batch, seq, hidden_size, intermediate_size
T = B * S
H2, H4 = H // 2, H // 4

PHARMACY = SPECIALTIES.index('pharmacy')            # 7
EMERGENCY = SPECIALTIES.index('emergency')          # 1
PREVENTIVE = SPECIALTIES.index('preventive_care')   # 11

# lane-dense (kernel-facing) padded sizes
LANES = 128
HP = 128                      # hidden padded to full lane width
IP = 128                      # intermediate padded to full lane width
AUX_ROWS = 16                 # one (16,128) tile carries all reduced aux statistics

# rows of the aux-stats tile
(ST_CONF, ST_PHI, ST_NSEL, ST_DRUG, ST_NPH,
 ST_TRI, ST_NEM, ST_RISK, ST_NPC) = range(9)

_KP_ORDER = ('wr', 'br', 'w1', 'b1', 'w2', 'b2', 'wc', 'bc', 'wp1', 'bp1', 'wp2', 'bp2',
             'wd1', 'bd1', 'wd2', 'bd2', 'wd3', 'bd3', 'wt1', 'bt1', 'wt2', 'bt2',
             'wrk1', 'brk1', 'wrk2', 'brk2', 'wrk3', 'brk3')


# ------------------------------- fused Pallas kernel --------------------------------
def _sum11(v):
    """Full reduction of a 2-D array to shape (1, 1) (lane reduce, then sublane reduce)."""
    return jnp.sum(jnp.sum(v, axis=-1, keepdims=True), axis=0, keepdims=True)


def _fused_moe_kernel(
    x_ref, wr_ref, br_ref,
    w1_ref, b1_ref, w2_ref, b2_ref,
    wc_ref, bc_ref, wp1_ref, bp1_ref, wp2_ref, bp2_ref,
    wd1_ref, bd1_ref, wd2_ref, bd2_ref, wd3_ref, bd3_ref,
    wt1_ref, bt1_ref, wt2_ref, bt2_ref,
    wrk1_ref, brk1_ref, wrk2_ref, brk2_ref, wrk3_ref, brk3_ref,
    y_ref, rout_ref, aux_ref,
):
    f32 = jnp.float32
    x = x_ref[...]                                                     # (T, HP) bf16

    # ---- fused router: specialty logits (cols 0..E-1) + urgency logit (col E), one MXU push
    rout = jnp.dot(x, wr_ref[...], preferred_element_type=f32) + br_ref[...]   # (T, 128)
    rout_ref[...] = rout                                               # lane-dense store

    # ---- top-k routing (softmax -> top-3 -> softmax over top-3), computed lane-dense
    lane = lax.broadcasted_iota(jnp.int32, (T, LANES), 1)
    emask = lane < E
    logit_m = jnp.where(emask, rout, -1e30)
    m = jnp.max(logit_m, axis=-1, keepdims=True)
    ex = jnp.exp(logit_m - m)
    probs = ex / jnp.sum(ex, axis=-1, keepdims=True)                   # (T,128); 0 in pad lanes

    # 3rd-largest probability per token (float ties are measure-zero)
    p1 = jnp.max(probs, axis=-1, keepdims=True)
    probs2 = jnp.where(probs >= p1, -1.0, probs)
    p2 = jnp.max(probs2, axis=-1, keepdims=True)
    probs3 = jnp.where(probs2 >= p2, -1.0, probs2)
    p3 = jnp.max(probs3, axis=-1, keepdims=True)
    sel = jnp.logical_and(probs >= p3, emask)                          # (T,128) top-3 mask
    selF = sel.astype(f32)

    # softmax over the selected top-3 probability values (== softmax(topk.values) per token)
    ew = selF * jnp.exp(probs - p1)
    ew = ew / jnp.sum(ew, axis=-1, keepdims=True)                      # (T,128)

    # reference semantics: one scalar MEAN top-k weight per expert applied to its routed tokens
    cnt_e = jnp.sum(selF, axis=0, keepdims=True)                       # (1,128) tokens / expert
    w_e = jnp.sum(ew, axis=0, keepdims=True) / jnp.maximum(cnt_e, 1.0)  # (1,128)
    coef = selF * w_e                                                  # (T,128)

    # ---- experts: FFN + combine + health heads, fully unrolled; accumulate in registers
    acc = jnp.zeros((T, HP), f32)
    conf_sum = jnp.zeros((1, 1), f32)
    phi_sum = jnp.zeros((1, 1), f32)
    drug_sum = jnp.zeros((1, 1), f32)
    tri_sum = jnp.zeros((1, 1), f32)
    risk_sum = jnp.zeros((1, 1), f32)

    for e in range(E):
        # FFN: bf16 MXU operands, f32 accumulation, f32 activations
        h = jnp.dot(x, w1_ref[e], preferred_element_type=f32) + b1_ref[e]       # (T, IP)
        h = jax.nn.gelu(h)
        out = jnp.dot(h.astype(jnp.bfloat16), w2_ref[e],
                      preferred_element_type=f32) + b2_ref[e]                    # (T, HP)

        acc = acc + coef[:, e:e + 1] * out                                       # weighted combine

        sel_e = selF[:, e:e + 1]                                                 # (T, 1)

        # confidence head (H -> 1): multiply + lane-reduce instead of a 1-wide matmul
        conf = jax.nn.sigmoid(
            jnp.sum(out * wc_ref[e], axis=-1, keepdims=True) + bc_ref[e])
        conf_sum = conf_sum + _sum11(conf * sel_e)

        # PHI detector (H -> H/4 -> 1)
        ph = jax.nn.relu(
            jnp.dot(out, wp1_ref[e], preferred_element_type=f32) + bp1_ref[e])   # (T, H4)
        phi = jax.nn.sigmoid(
            jnp.sum(ph * wp2_ref[e], axis=-1, keepdims=True) + bp2_ref[e])
        phi_sum = phi_sum + _sum11(phi * sel_e)

        if e == PHARMACY:     # drug interaction head (H -> H/2 -> H/4 -> 1)
            d = jax.nn.relu(
                jnp.dot(out, wd1_ref[...], preferred_element_type=f32) + bd1_ref[...])
            d = jax.nn.relu(
                jnp.dot(d, wd2_ref[...], preferred_element_type=f32) + bd2_ref[...])
            drug = jax.nn.sigmoid(
                jnp.sum(d * wd3_ref[...], axis=-1, keepdims=True) + bd3_ref[...])
            drug_sum = drug_sum + _sum11(drug * sel_e)

        if e == EMERGENCY:    # triage head (H -> H/2 -> N_RISK, softmax)
            t = jax.nn.relu(
                jnp.dot(out, wt1_ref[...], preferred_element_type=f32) + bt1_ref[...])
            tl = jnp.dot(t, wt2_ref[...], preferred_element_type=f32) + bt2_ref[...]  # (T, 4)
            tl_max = jnp.max(tl, axis=-1, keepdims=True)
            te = jnp.exp(tl - tl_max)
            tri = te / jnp.sum(te, axis=-1, keepdims=True)
            tri_sum = tri_sum + _sum11(tri * sel_e)

        if e == PREVENTIVE:   # risk head (H -> H -> H/2 -> 10, sigmoid)
            r = jax.nn.relu(
                jnp.dot(out, wrk1_ref[...], preferred_element_type=f32) + brk1_ref[...])
            r = jax.nn.relu(
                jnp.dot(r, wrk2_ref[...], preferred_element_type=f32) + brk2_ref[...])
            risks = jax.nn.sigmoid(
                jnp.dot(r, wrk3_ref[...], preferred_element_type=f32) + brk3_ref[...])  # (T,10)
            risk_sum = risk_sum + _sum11(risks * sel_e)

    y_ref[...] = acc                                                   # single lane-dense store

    # ---- reduced aux statistics packed into one (16,128) tile (row i = stat i broadcast)
    n_sel = _sum11(selF)
    n_ph = _sum11(selF[:, PHARMACY:PHARMACY + 1])
    n_em = _sum11(selF[:, EMERGENCY:EMERGENCY + 1])
    n_pc = _sum11(selF[:, PREVENTIVE:PREVENTIVE + 1])
    stats = [conf_sum, phi_sum, n_sel, drug_sum, n_ph, tri_sum, n_em, risk_sum, n_pc]
    row_id = lax.broadcasted_iota(jnp.int32, (AUX_ROWS, LANES), 0)
    aux = jnp.zeros((AUX_ROWS, LANES), f32)
    for i, s_val in enumerate(stats):
        aux = jnp.where(row_id == i, s_val, aux)
    aux_ref[...] = aux


def fused_moe_forward(kp, x_pad):
    args = (x_pad,) + tuple(kp[k] for k in _KP_ORDER)
    in_specs = [pl.BlockSpec(memory_space=pltpu.MemorySpace.VMEM) for _ in args]
    out_specs = tuple(pl.BlockSpec(memory_space=pltpu.MemorySpace.VMEM) for _ in range(3))
    return pl.pallas_call(
        _fused_moe_kernel,
        out_shape=(jax.ShapeDtypeStruct((T, HP), jnp.float32),        # combined expert output
                   jax.ShapeDtypeStruct((T, LANES), jnp.float32),     # router projection
                   jax.ShapeDtypeStruct((AUX_ROWS, LANES), jnp.float32)),  # reduced aux stats
        in_specs=in_specs,
        out_specs=out_specs,
    )(*args)


# ------------------------------ parameter init -------------------------------------
def init_params(key):
    keys = iter(jax.random.split(key, 128))

    def lin(fan_in, fan_out):
        kw, kb = jax.random.split(next(keys))
        s = 1.0 / jnp.sqrt(fan_in)
        w = jax.random.uniform(kw, (fan_in, fan_out), jnp.float32, -s, s)
        b = jax.random.uniform(kb, (fan_out,), jnp.float32, -s, s)
        return w, b

    def lin_stack(n, fan_in, fan_out):
        ws, bs = zip(*[lin(fan_in, fan_out) for _ in range(n)])
        return jnp.stack(ws), jnp.stack(bs)

    p = {}
    w1, b1 = lin_stack(E, H, I); p['w1'], p['b1'] = w1, b1[:, None, :]
    w2, b2 = lin_stack(E, I, H); p['w2'], p['b2'] = w2, b2[:, None, :]
    p['wc'], p['bc'] = lin_stack(E, H, 1)
    p['wp1'], p['bp1'] = lin_stack(E, H, H4)
    p['wp2'], p['bp2'] = lin_stack(E, H4, 1)
    p['wd1'], p['bd1'] = lin(H, H2)
    p['wd2'], p['bd2'] = lin(H2, H4)
    p['wd3'], p['bd3'] = lin(H4, 1)
    p['wt1'], p['bt1'] = lin(H, H2)
    p['wt2'], p['bt2'] = lin(H2, N_RISK)
    p['wrk1'], p['brk1'] = lin(H, H)
    p['wrk2'], p['brk2'] = lin(H, H2)
    p['wrk3'], p['brk3'] = lin(H2, N_RISKS_OUT)
    w_rt, b_rt = lin(H, E); p['w_rt'], p['b_rt'] = w_rt, b_rt[None, :]
    w_urg, b_urg = lin(H, 1); p['w_urg'], p['b_urg'] = w_urg, b_urg[None, :]
    p['w_pf1'], p['b_pf1'] = lin(H, H2)
    p['w_pf2'], p['b_pf2'] = lin(H2, 1)
    p['w_un1'], p['b_un1'] = lin(H, H4)
    p['w_un2'], p['b_un2'] = lin(H4, 1)
    return p


def _pad_to(a, shape):
    return jnp.pad(a, [(0, s - d) for d, s in zip(a.shape, shape)])


def pack_params(p):
    """Kernel-facing layout: zero-padded lane-dense tiles, bf16 MXU operands, row-vector heads.

    Zero padding keeps the math exact: padded input columns are 0, padded weight rows/cols are
    0, and gelu(0) = relu(0) = 0, so padded lanes of every intermediate/output are exactly 0.
    """
    bf16 = jnp.bfloat16
    kp = {}
    # fused router projection: [specialty logits | urgency logit] in one (HP, 128) matrix
    wr = jnp.concatenate([p['w_rt'], p['w_urg']], axis=1)            # (H, E+1)
    br = jnp.concatenate([p['b_rt'], p['b_urg']], axis=1)            # (1, E+1)
    kp['wr'] = _pad_to(wr, (HP, LANES)).astype(bf16)
    kp['br'] = _pad_to(br, (1, LANES))
    # expert FFN
    kp['w1'] = _pad_to(p['w1'], (E, HP, IP)).astype(bf16)
    kp['b1'] = _pad_to(p['b1'], (E, 1, IP))
    kp['w2'] = _pad_to(p['w2'], (E, IP, HP)).astype(bf16)
    kp['b2'] = _pad_to(p['b2'], (E, 1, HP))
    # confidence head (H -> 1) as row vectors (multiply + lane-reduce)
    kp['wc'] = _pad_to(jnp.transpose(p['wc'], (0, 2, 1)), (E, 1, HP))
    kp['bc'] = p['bc'].reshape(E, 1, 1)
    # PHI detector (H -> H/4 -> 1)
    kp['wp1'] = _pad_to(p['wp1'], (E, HP, H4))
    kp['bp1'] = p['bp1'].reshape(E, 1, H4)
    kp['wp2'] = jnp.transpose(p['wp2'], (0, 2, 1))                   # (E, 1, H4)
    kp['bp2'] = p['bp2'].reshape(E, 1, 1)
    # pharmacy drug-interaction head
    kp['wd1'] = _pad_to(p['wd1'], (HP, H2))
    kp['bd1'] = p['bd1'].reshape(1, H2)
    kp['wd2'] = p['wd2']
    kp['bd2'] = p['bd2'].reshape(1, H4)
    kp['wd3'] = p['wd3'].T                                           # (1, H4)
    kp['bd3'] = p['bd3'].reshape(1, 1)
    # emergency triage head
    kp['wt1'] = _pad_to(p['wt1'], (HP, H2))
    kp['bt1'] = p['bt1'].reshape(1, H2)
    kp['wt2'] = p['wt2']
    kp['bt2'] = p['bt2'].reshape(1, N_RISK)
    # preventive-care risk head
    kp['wrk1'] = _pad_to(p['wrk1'], (HP, H))
    kp['brk1'] = p['brk1'].reshape(1, H)
    kp['wrk2'] = p['wrk2']
    kp['brk2'] = p['brk2'].reshape(1, H2)
    kp['wrk3'] = p['wrk3']
    kp['brk3'] = p['brk3'].reshape(1, N_RISKS_OUT)
    return kp


# ------------------------------- forward (glue) -------------------------------------
def health_moe_forward(params, kparams, hidden_states):
    Bx, Sx, Hx = hidden_states.shape
    x = hidden_states.reshape(Bx * Sx, Hx).astype(jnp.float32)
    x_pad = _pad_to(x, (T, HP)).astype(jnp.bfloat16)

    # ---- single fused Pallas kernel: router + routing + 12 experts + combine + aux heads
    y_pad, rout, aux_stats = fused_moe_forward(kparams, x_pad)

    expert_logits = rout[:, :E].reshape(Bx, Sx, E)
    specialty_probs = jax.nn.softmax(expert_logits, axis=-1)          # router's specialty probs
    urgency_score = jax.nn.sigmoid(rout[:, E:E + 1]).reshape(Bx, Sx, 1)

    # expert_usage indices (reported only; routing itself happened in-kernel on the same logits)
    expert_probs = specialty_probs
    _, top_idx = lax.top_k(expert_probs, TOP_K)                       # (B, S, k)

    output = y_pad[:, :H].reshape(Bx, Sx, Hx)

    s = aux_stats[:, 0]
    aux = {
        'specialty_distribution': specialty_probs,
        'urgency_score': urgency_score,
        'expert_usage': top_idx,
        'confidence': s[ST_CONF] / jnp.maximum(s[ST_NSEL], 1.0),
        'phi_probability': s[ST_PHI] / jnp.maximum(s[ST_NSEL], 1.0),
        'drug_interaction_risk': s[ST_DRUG] / jnp.maximum(s[ST_NPH], 1.0),
        'triage_score': s[ST_TRI] / jnp.maximum(s[ST_NEM] * N_RISK, 1.0),
        'health_risks': s[ST_RISK] / jnp.maximum(s[ST_NPC] * N_RISKS_OUT, 1.0),
    }

    # ---- PHI filter (tiny; plain XLA). Reproduces reference broadcasting -> (B,B,S,H).
    pooled = output.mean(axis=1)                                      # (B, H)
    pf = jax.nn.relu(pooled @ params['w_pf1'] + params['b_pf1'])
    phi_score = jax.nn.sigmoid(pf @ params['w_pf2'] + params['b_pf2'])  # (B, 1)
    aux['phi_risk'] = phi_score
    phi_mask = (phi_score > 0.7).astype(jnp.float32)[:, :, None, None]  # (B,1,1,1)
    output = output * (1.0 - phi_mask * 0.8)                           # -> (B, B, S, H)

    # ---- uncertainty estimator (tiny; plain XLA)
    pooled2 = output.mean(axis=1)                                      # (B, S, H)
    u = jax.nn.relu(pooled2 @ params['w_un1'] + params['b_un1'])
    uncertainty = jax.nn.sigmoid(u @ params['w_un2'] + params['b_un2'])  # (B, S, 1)
    aux['uncertainty'] = uncertainty

    return output, aux


# ------------------------------------ main ------------------------------------------
if __name__ == "__main__":
    key = jax.random.PRNGKey(0)
    pkey, xkey = jax.random.split(key)
    params = init_params(pkey)
    kparams = pack_params(params)
    hidden_states = jax.random.normal(xkey, (B, S, H), jnp.float32)

    fwd = jax.jit(functools.partial(health_moe_forward, params, kparams))
    out, aux = fwd(hidden_states)
    jax.block_until_ready(out)
    jax.block_until_ready(aux)

    assert out.shape == (B, B, S, H)   # shape follows reference broadcasting semantics
    print("KERNEL_OK")
</pallas_src>

<mosaic_0001>
module attributes {stable_mosaic.version = 11 : i64} {
  func.func @_fused_moe_kernel(%arg0: memref<16x128xbf16, #tpu.memory_space<vmem>>, %arg1: memref<128x128xbf16, #tpu.memory_space<vmem>>, %arg2: memref<1x128xf32, #tpu.memory_space<vmem>>, %arg3: memref<12x128x128xbf16, #tpu.memory_space<vmem>>, %arg4: memref<12x1x128xf32, #tpu.memory_space<vmem>>, %arg5: memref<12x128x128xbf16, #tpu.memory_space<vmem>>, %arg6: memref<12x1x128xf32, #tpu.memory_space<vmem>>, %arg7: memref<12x1x128xf32, #tpu.memory_space<vmem>>, %arg8: memref<12x1x1xf32, #tpu.memory_space<vmem>>, %arg9: memref<12x128x8xf32, #tpu.memory_space<vmem>>, %arg10: memref<12x1x8xf32, #tpu.memory_space<vmem>>, %arg11: memref<12x1x8xf32, #tpu.memory_space<vmem>>, %arg12: memref<12x1x1xf32, #tpu.memory_space<vmem>>, %arg13: memref<128x16xf32, #tpu.memory_space<vmem>>, %arg14: memref<1x16xf32, #tpu.memory_space<vmem>>, %arg15: memref<16x8xf32, #tpu.memory_space<vmem>>, %arg16: memref<1x8xf32, #tpu.memory_space<vmem>>, %arg17: memref<1x8xf32, #tpu.memory_space<vmem>>, %arg18: memref<1x1xf32, #tpu.memory_space<vmem>>, %arg19: memref<128x16xf32, #tpu.memory_space<vmem>>, %arg20: memref<1x16xf32, #tpu.memory_space<vmem>>, %arg21: memref<16x4xf32, #tpu.memory_space<vmem>>, %arg22: memref<1x4xf32, #tpu.memory_space<vmem>>, %arg23: memref<128x32xf32, #tpu.memory_space<vmem>>, %arg24: memref<1x32xf32, #tpu.memory_space<vmem>>, %arg25: memref<32x16xf32, #tpu.memory_space<vmem>>, %arg26: memref<1x16xf32, #tpu.memory_space<vmem>>, %arg27: memref<16x10xf32, #tpu.memory_space<vmem>>, %arg28: memref<1x10xf32, #tpu.memory_space<vmem>>, %arg29: memref<16x128xf32, #tpu.memory_space<vmem>>, %arg30: memref<16x128xf32, #tpu.memory_space<vmem>>, %arg31: memref<16x128xf32, #tpu.memory_space<vmem>>) attributes {dimension_semantics = [], scalar_prefetch = 0 : i64, scratch_operands = 0 : i64, tpu.core_type = #tpu.core_type<tc>} {
    %c0 = arith.constant 0 : index
    %c0_0 = arith.constant 0 : index
    %0 = vector.load %arg0[%c0, %c0_0] : memref<16x128xbf16, #tpu.memory_space<vmem>>, vector<16x128xbf16>
    %c0_1 = arith.constant 0 : index
    %c0_2 = arith.constant 0 : index
    %1 = vector.load %arg1[%c0_1, %c0_2] : memref<128x128xbf16, #tpu.memory_space<vmem>>, vector<128x128xbf16>
    %cst = arith.constant dense<0.000000e+00> : vector<16x128xf32>
    %2 = tpu.matmul %0, %1, %cst {dimension_numbers = #tpu.dot_dimension_numbers<[1], [0], [0], [1], [0, 0, 1, 1], [], []>} : vector<16x128xbf16>, vector<128x128xbf16>, vector<16x128xf32> -> vector<16x128xf32>
    %c0_3 = arith.constant 0 : index
    %c0_4 = arith.constant 0 : index
    %3 = vector.load %arg2[%c0_3, %c0_4] : memref<1x128xf32, #tpu.memory_space<vmem>>, vector<1x128xf32>
    %4 = vector.broadcast %3 : vector<1x128xf32> to vector<16x128xf32>
    %5 = arith.addf %2, %4 : vector<16x128xf32>
    %c0_5 = arith.constant 0 : index
    %c0_6 = arith.constant 0 : index
    %6 = vector.load %arg30[%c0_5, %c0_6] : memref<16x128xf32, #tpu.memory_space<vmem>>, vector<16x128xf32>
    tpu.vector_store %arg30[%c0_5, %c0_6], %5 {strides = array<i32>} : memref<16x128xf32, #tpu.memory_space<vmem>>, vector<16x128xf32>,
    %7 = tpu.iota {dimensions = array<i32: 1>} : vector<16x128xi32>
    %c12_i32 = arith.constant 12 : i32
    %8 = vector.broadcast %c12_i32 : i32 to vector<16x128xi32>
    %9 = arith.cmpi slt, %7, %8 : vector<16x128xi32>
    %cst_7 = arith.constant -1.000000e+30 : f32
    %10 = vector.broadcast %cst_7 : f32 to vector<16x128xf32>
    %11 = arith.select %9, %5, %10 : vector<16x128xi1>, vector<16x128xf32>
    %cst_8 = arith.constant dense<0xFF800000> : vector<16xf32>
    %12 = vector.multi_reduction <maximumf>, %11, %cst_8 [1] : vector<16x128xf32> to vector<16xf32>
    %13 = vector.shape_cast %12 : vector<16xf32> to vector<16x1xf32>
    %14 = vector.broadcast %13 : vector<16x1xf32> to vector<16x128xf32>
    %15 = arith.subf %11, %14 : vector<16x128xf32>
    %16 = math.exp %15 : vector<16x128xf32>
    %cst_9 = arith.constant dense<0.000000e+00> : vector<16xf32>
    %17 = vector.multi_reduction <add>, %16, %cst_9 [1] : vector<16x128xf32> to vector<16xf32>
    %18 = vector.shape_cast %17 : vector<16xf32> to vector<16x1xf32>
    %19 = vector.broadcast %18 : vector<16x1xf32> to vector<16x128xf32>
    %20 = arith.divf %16, %19 : vector<16x128xf32>
    %cst_10 = arith.constant dense<0xFF800000> : vector<16xf32>
    %21 = vector.multi_reduction <maximumf>, %20, %cst_10 [1] : vector<16x128xf32> to vector<16xf32>
    %22 = vector.shape_cast %21 : vector<16xf32> to vector<16x1xf32>
    %23 = vector.broadcast %22 : vector<16x1xf32> to vector<16x128xf32>
    %24 = arith.cmpf oge, %20, %23 : vector<16x128xf32>
    %cst_11 = arith.constant -1.000000e+00 : f32
    %25 = vector.broadcast %cst_11 : f32 to vector<16x128xf32>
    %26 = arith.select %24, %25, %20 : vector<16x128xi1>, vector<16x128xf32>
    %cst_12 = arith.constant dense<0xFF800000> : vector<16xf32>
    %27 = vector.multi_reduction <maximumf>, %26, %cst_12 [1] : vector<16x128xf32> to vector<16xf32>
    %28 = vector.shape_cast %27 : vector<16xf32> to vector<16x1xf32>
    %29 = vector.broadcast %28 : vector<16x1xf32> to vector<16x128xf32>
    %30 = arith.cmpf oge, %26, %29 : vector<16x128xf32>
    %cst_13 = arith.constant -1.000000e+00 : f32
    %31 = vector.broadcast %cst_13 : f32 to vector<16x128xf32>
    %32 = arith.select %30, %31, %26 : vector<16x128xi1>, vector<16x128xf32>
    %cst_14 = arith.constant dense<0xFF800000> : vector<16xf32>
    %33 = vector.multi_reduction <maximumf>, %32, %cst_14 [1] : vector<16x128xf32> to vector<16xf32>
    %34 = vector.shape_cast %33 : vector<16xf32> to vector<16x1xf32>
    %35 = vector.broadcast %34 : vector<16x1xf32> to vector<16x128xf32>
    %36 = arith.cmpf oge, %20, %35 : vector<16x128xf32>
    %37 = arith.andi %36, %9 : vector<16x128xi1>
    %38 = arith.extui %37 : vector<16x128xi1> to vector<16x128xi32>
    %39 = arith.sitofp %38 : vector<16x128xi32> to vector<16x128xf32>
    %40 = vector.broadcast %22 : vector<16x1xf32> to vector<16x128xf32>
    %41 = arith.subf %20, %40 : vector<16x128xf32>
    %42 = math.exp %41 : vector<16x128xf32>
    %43 = arith.mulf %39, %42 : vector<16x128xf32>
    %cst_15 = arith.constant dense<0.000000e+00> : vector<16xf32>
    %44 = vector.multi_reduction <add>, %43, %cst_15 [1] : vector<16x128xf32> to vector<16xf32>
    %45 = vector.shape_cast %44 : vector<16xf32> to vector<16x1xf32>
    %46 = vector.broadcast %45 : vector<16x1xf32> to vector<16x128xf32>
    %47 = arith.divf %43, %46 : vector<16x128xf32>
    %cst_16 = arith.constant dense<0.000000e+00> : vector<128xf32>
    %48 = vector.multi_reduction <add>, %39, %cst_16 [0] : vector<16x128xf32> to vector<128xf32>
    %49 = vector.shape_cast %48 : vector<128xf32> to vector<1x128xf32>
    %cst_17 = arith.constant dense<0.000000e+00> : vector<128xf32>
    %50 = vector.multi_reduction <add>, %47, %cst_17 [0] : vector<16x128xf32> to vector<128xf32>
    %51 = vector.shape_cast %50 : vector<128xf32> to vector<1x128xf32>
    %cst_18 = arith.constant 1.000000e+00 : f32
    %52 = vector.broadcast %cst_18 : f32 to vector<1x128xf32>
    %53 = arith.maximumf %49, %52 : vector<1x128xf32>
    %54 = arith.divf %51, %53 : vector<1x128xf32>
    %55 = vector.broadcast %54 : vector<1x128xf32> to vector<16x128xf32>
    %56 = arith.mulf %39, %55 : vector<16x128xf32>
    %cst_19 = arith.constant 0.000000e+00 : f32
    %57 = vector.broadcast %cst_19 : f32 to vector<16x128xf32>
    %cst_20 = arith.constant 0.000000e+00 : f32
    %58 = vector.broadcast %cst_20 : f32 to vector<1x1xf32>
    %cst_21 = arith.constant 0.000000e+00 : f32
    %59 = vector.broadcast %cst_21 : f32 to vector<1x1xf32>
    %cst_22 = arith.constant 0.000000e+00 : f32
    %60 = vector.broadcast %cst_22 : f32 to vector<1x1xf32>
    %cst_23 = arith.constant 0.000000e+00 : f32
    %61 = vector.broadcast %cst_23 : f32 to vector<1x1xf32>
    %cst_24 = arith.constant 0.000000e+00 : f32
    %62 = vector.broadcast %cst_24 : f32 to vector<1x1xf32>
    %c0_25 = arith.constant 0 : index
    %c0_26 = arith.constant 0 : index
    %c0_27 = arith.constant 0 : index
    %63 = vector.load %arg3[%c0_25, %c0_26, %c0_27] : memref<12x128x128xbf16, #tpu.memory_space<vmem>>, vector<1x128x128xbf16>
    %64 = vector.shape_cast %63 : vector<1x128x128xbf16> to vector<128x128xbf16>
    %cst_28 = arith.constant dense<0.000000e+00> : vector<16x128xf32>
    %65 = tpu.matmul %0, %64, %cst_28 {dimension_numbers = #tpu.dot_dimension_numbers<[1], [0], [0], [1], [0, 0, 1, 1], [], []>} : vector<16x128xbf16>, vector<128x128xbf16>, vector<16x128xf32> -> vector<16x128xf32>
    %c0_29 = arith.constant 0 : index
    %c0_30 = arith.constant 0 : index
    %c0_31 = arith.constant 0 : index
    %66 = vector.load %arg4[%c0_29, %c0_30, %c0_31] : memref<12x1x128xf32, #tpu.memory_space<vmem>>, vector<1x1x128xf32>
    %67 = vector.shape_cast %66 : vector<1x1x128xf32> to vector<1x128xf32>
    %68 = vector.broadcast %67 : vector<1x128xf32> to vector<16x128xf32>
    %69 = arith.addf %65, %68 : vector<16x128xf32>
    %70 = arith.mulf %69, %69 : vector<16x128xf32>
    %71 = arith.mulf %69, %70 : vector<16x128xf32>
    %cst_32 = arith.constant 4.471500e-02 : f32
    %72 = vector.broadcast %cst_32 : f32 to vector<16x128xf32>
    %73 = arith.mulf %72, %71 : vector<16x128xf32>
    %74 = arith.addf %69, %73 : vector<16x128xf32>
    %cst_33 = arith.constant 0.797884583 : f32
    %75 = vector.broadcast %cst_33 : f32 to vector<16x128xf32>
    %76 = arith.mulf %75, %74 : vector<16x128xf32>
    %77 = math.tanh %76 : vector<16x128xf32>
    %cst_34 = arith.constant 1.000000e+00 : f32
    %78 = vector.broadcast %cst_34 : f32 to vector<16x128xf32>
    %79 = arith.addf %78, %77 : vector<16x128xf32>
    %cst_35 = arith.constant 5.000000e-01 : f32
    %80 = vector.broadcast %cst_35 : f32 to vector<16x128xf32>
    %81 = arith.mulf %80, %79 : vector<16x128xf32>
    %82 = arith.mulf %69, %81 : vector<16x128xf32>
    %83 = arith.truncf %82 : vector<16x128xf32> to vector<16x128xbf16>
    %c0_36 = arith.constant 0 : index
    %c0_37 = arith.constant 0 : index
    %c0_38 = arith.constant 0 : index
    %84 = vector.load %arg5[%c0_36, %c0_37, %c0_38] : memref<12x128x128xbf16, #tpu.memory_space<vmem>>, vector<1x128x128xbf16>
    %85 = vector.shape_cast %84 : vector<1x128x128xbf16> to vector<128x128xbf16>
    %cst_39 = arith.constant dense<0.000000e+00> : vector<16x128xf32>
    %86 = tpu.matmul %83, %85, %cst_39 {dimension_numbers = #tpu.dot_dimension_numbers<[1], [0], [0], [1], [0, 0, 1, 1], [], []>} : vector<16x128xbf16>, vector<128x128xbf16>, vector<16x128xf32> -> vector<16x128xf32>
    %c0_40 = arith.constant 0 : index
    %c0_41 = arith.constant 0 : index
    %c0_42 = arith.constant 0 : index
    %87 = vector.load %arg6[%c0_40, %c0_41, %c0_42] : memref<12x1x128xf32, #tpu.memory_space<vmem>>, vector<1x1x128xf32>
    %88 = vector.shape_cast %87 : vector<1x1x128xf32> to vector<1x128xf32>
    %89 = vector.broadcast %88 : vector<1x128xf32> to vector<16x128xf32>
    %90 = arith.addf %86, %89 : vector<16x128xf32>
    %91 = vector.extract_strided_slice %56 {offsets = [0, 0], sizes = [16, 1], strides = [1, 1]} : vector<16x128xf32> to vector<16x1xf32>
    %92 = vector.broadcast %91 : vector<16x1xf32> to vector<16x128xf32>
    %93 = arith.mulf %92, %90 : vector<16x128xf32>
    %94 = arith.addf %57, %93 : vector<16x128xf32>
    %95 = vector.extract_strided_slice %39 {offsets = [0, 0], sizes = [16, 1], strides = [1, 1]} : vector<16x128xf32> to vector<16x1xf32>
    %c0_43 = arith.constant 0 : index
    %c0_44 = arith.constant 0 : index
    %c0_45 = arith.constant 0 : index
    %96 = vector.load %arg7[%c0_43, %c0_44, %c0_45] : memref<12x1x128xf32, #tpu.memory_space<vmem>>, vector<1x1x128xf32>
    %97 = vector.shape_cast %96 : vector<1x1x128xf32> to vector<1x128xf32>
    %98 = vector.broadcast %97 : vector<1x128xf32> to vector<16x128xf32>
    %99 = arith.mulf %90, %98 : vector<16x128xf32>
    %cst_46 = arith.constant dense<0.000000e+00> : vector<16xf32>
    %100 = vector.multi_reduction <add>, %99, %cst_46 [1] : vector<16x128xf32> to vector<16xf32>
    %101 = vector.shape_cast %100 : vector<16xf32> to vector<16x1xf32>
    %c0_47 = arith.constant 0 : index
    %c0_48 = arith.constant 0 : index
    %c0_49 = arith.constant 0 : index
    %102 = vector.load %arg8[%c0_47, %c0_48, %c0_49] : memref<12x1x1xf32, #tpu.memory_space<vmem>>, vector<1x1x1xf32>
    %103 = vector.shape_cast %102 : vector<1x1x1xf32> to vector<1x1xf32>
    %104 = vector.broadcast %103 : vector<1x1xf32> to vector<16x1xf32>
    %105 = arith.addf %101, %104 : vector<16x1xf32>
    %106 = arith.negf %105 : vector<16x1xf32>
    %107 = math.exp %106 : vector<16x1xf32>
    %cst_50 = arith.constant 1.000000e+00 : f32
    %108 = vector.broadcast %cst_50 : f32 to vector<16x1xf32>
    %109 = arith.addf %108, %107 : vector<16x1xf32>
    %110 = arith.divf %108, %109 : vector<16x1xf32>
    %111 = arith.mulf %110, %95 : vector<16x1xf32>
    %cst_51 = arith.constant dense<0.000000e+00> : vector<16xf32>
    %112 = vector.multi_reduction <add>, %111, %cst_51 [1] : vector<16x1xf32> to vector<16xf32>
    %113 = vector.shape_cast %112 : vector<16xf32> to vector<16x1xf32>
    %cst_52 = arith.constant dense<0.000000e+00> : vector<1xf32>
    %114 = vector.multi_reduction <add>, %113, %cst_52 [0] : vector<16x1xf32> to vector<1xf32>
    %115 = vector.shape_cast %114 : vector<1xf32> to vector<1x1xf32>
    %116 = arith.addf %58, %115 : vector<1x1xf32>
    %c0_53 = arith.constant 0 : index
    %c0_54 = arith.constant 0 : index
    %c0_55 = arith.constant 0 : index
    %117 = vector.load %arg9[%c0_53, %c0_54, %c0_55] : memref<12x128x8xf32, #tpu.memory_space<vmem>>, vector<1x128x8xf32>
    %118 = vector.shape_cast %117 : vector<1x128x8xf32> to vector<128x8xf32>
    %cst_56 = arith.constant dense<0.000000e+00> : vector<16x8xf32>
    %119 = tpu.matmul %90, %118, %cst_56 {dimension_numbers = #tpu.dot_dimension_numbers<[1], [0], [0], [1], [0, 0, 1, 1], [], []>} : vector<16x128xf32>, vector<128x8xf32>, vector<16x8xf32> -> vector<16x8xf32>
    %c0_57 = arith.constant 0 : index
    %c0_58 = arith.constant 0 : index
    %c0_59 = arith.constant 0 : index
    %120 = vector.load %arg10[%c0_57, %c0_58, %c0_59] : memref<12x1x8xf32, #tpu.memory_space<vmem>>, vector<1x1x8xf32>
    %121 = vector.shape_cast %120 : vector<1x1x8xf32> to vector<1x8xf32>
    %122 = vector.broadcast %121 : vector<1x8xf32> to vector<16x8xf32>
    %123 = arith.addf %119, %122 : vector<16x8xf32>
    %cst_60 = arith.constant 0.000000e+00 : f32
    %124 = vector.broadcast %cst_60 : f32 to vector<16x8xf32>
    %125 = arith.maximumf %123, %124 : vector<16x8xf32>
    %c0_61 = arith.constant 0 : index
    %c0_62 = arith.constant 0 : index
    %c0_63 = arith.constant 0 : index
    %126 = vector.load %arg11[%c0_61, %c0_62, %c0_63] : memref<12x1x8xf32, #tpu.memory_space<vmem>>, vector<1x1x8xf32>
    %127 = vector.shape_cast %126 : vector<1x1x8xf32> to vector<1x8xf32>
    %128 = vector.broadcast %127 : vector<1x8xf32> to vector<16x8xf32>
    %129 = arith.mulf %125, %128 : vector<16x8xf32>
    %cst_64 = arith.constant dense<0.000000e+00> : vector<16xf32>
    %130 = vector.multi_reduction <add>, %129, %cst_64 [1] : vector<16x8xf32> to vector<16xf32>
    %131 = vector.shape_cast %130 : vector<16xf32> to vector<16x1xf32>
    %c0_65 = arith.constant 0 : index
    %c0_66 = arith.constant 0 : index
    %c0_67 = arith.constant 0 : index
    %132 = vector.load %arg12[%c0_65, %c0_66, %c0_67] : memref<12x1x1xf32, #tpu.memory_space<vmem>>, vector<1x1x1xf32>
    %133 = vector.shape_cast %132 : vector<1x1x1xf32> to vector<1x1xf32>
    %134 = vector.broadcast %133 : vector<1x1xf32> to vector<16x1xf32>
    %135 = arith.addf %131, %134 : vector<16x1xf32>
    %136 = arith.negf %135 : vector<16x1xf32>
    %137 = math.exp %136 : vector<16x1xf32>
    %cst_68 = arith.constant 1.000000e+00 : f32
    %138 = vector.broadcast %cst_68 : f32 to vector<16x1xf32>
    %139 = arith.addf %138, %137 : vector<16x1xf32>
    %140 = arith.divf %138, %139 : vector<16x1xf32>
    %141 = arith.mulf %140, %95 : vector<16x1xf32>
    %cst_69 = arith.constant dense<0.000000e+00> : vector<16xf32>
    %142 = vector.multi_reduction <add>, %141, %cst_69 [1] : vector<16x1xf32> to vector<16xf32>
    %143 = vector.shape_cast %142 : vector<16xf32> to vector<16x1xf32>
    %cst_70 = arith.constant dense<0.000000e+00> : vector<1xf32>
    %144 = vector.multi_reduction <add>, %143, %cst_70 [0] : vector<16x1xf32> to vector<1xf32>
    %145 = vector.shape_cast %144 : vector<1xf32> to vector<1x1xf32>
    %146 = arith.addf %59, %145 : vector<1x1xf32>
    %c1 = arith.constant 1 : index
    %c0_71 = arith.constant 0 : index
    %c0_72 = arith.constant 0 : index
    %147 = vector.load %arg3[%c1, %c0_71, %c0_72] : memref<12x128x128xbf16, #tpu.memory_space<vmem>>, vector<1x128x128xbf16>
    %148 = vector.shape_cast %147 : vector<1x128x128xbf16> to vector<128x128xbf16>
    %cst_73 = arith.constant dense<0.000000e+00> : vector<16x128xf32>
    %149 = tpu.matmul %0, %148, %cst_73 {dimension_numbers = #tpu.dot_dimension_numbers<[1], [0], [0], [1], [0, 0, 1, 1], [], []>} : vector<16x128xbf16>, vector<128x128xbf16>, vector<16x128xf32> -> vector<16x128xf32>
    %c1_74 = arith.constant 1 : index
    %c0_75 = arith.constant 0 : index
    %c0_76 = arith.constant 0 : index
    %150 = vector.load %arg4[%c1_74, %c0_75, %c0_76] : memref<12x1x128xf32, #tpu.memory_space<vmem>>, vector<1x1x128xf32>
    %151 = vector.shape_cast %150 : vector<1x1x128xf32> to vector<1x128xf32>
    %152 = vector.broadcast %151 : vector<1x128xf32> to vector<16x128xf32>
    %153 = arith.addf %149, %152 : vector<16x128xf32>
    %154 = arith.mulf %153, %153 : vector<16x128xf32>
    %155 = arith.mulf %153, %154 : vector<16x128xf32>
    %cst_77 = arith.constant 4.471500e-02 : f32
    %156 = vector.broadcast %cst_77 : f32 to vector<16x128xf32>
    %157 = arith.mulf %156, %155 : vector<16x128xf32>
    %158 = arith.addf %153, %157 : vector<16x128xf32>
    %cst_78 = arith.constant 0.797884583 : f32
    %159 = vector.broadcast %cst_78 : f32 to vector<16x128xf32>
    %160 = arith.mulf %159, %158 : vector<16x128xf32>
    %161 = math.tanh %160 : vector<16x128xf32>
    %cst_79 = arith.constant 1.000000e+00 : f32
    %162 = vector.broadcast %cst_79 : f32 to vector<16x128xf32>
    %163 = arith.addf %162, %161 : vector<16x128xf32>
    %cst_80 = arith.constant 5.000000e-01 : f32
    %164 = vector.broadcast %cst_80 : f32 to vector<16x128xf32>
    %165 = arith.mulf %164, %163 : vector<16x128xf32>
    %166 = arith.mulf %153, %165 : vector<16x128xf32>
    %167 = arith.truncf %166 : vector<16x128xf32> to vector<16x128xbf16>
    %c1_81 = arith.constant 1 : index
    %c0_82 = arith.constant 0 : index
    %c0_83 = arith.constant 0 : index
    %168 = vector.load %arg5[%c1_81, %c0_82, %c0_83] : memref<12x128x128xbf16, #tpu.memory_space<vmem>>, vector<1x128x128xbf16>
    %169 = vector.shape_cast %168 : vector<1x128x128xbf16> to vector<128x128xbf16>
    %cst_84 = arith.constant dense<0.000000e+00> : vector<16x128xf32>
    %170 = tpu.matmul %167, %169, %cst_84 {dimension_numbers = #tpu.dot_dimension_numbers<[1], [0], [0], [1], [0, 0, 1, 1], [], []>} : vector<16x128xbf16>, vector<128x128xbf16>, vector<16x128xf32> -> vector<16x128xf32>
    %c1_85 = arith.constant 1 : index
    %c0_86 = arith.constant 0 : index
    %c0_87 = arith.constant 0 : index
    %171 = vector.load %arg6[%c1_85, %c0_86, %c0_87] : memref<12x1x128xf32, #tpu.memory_space<vmem>>, vector<1x1x128xf32>
    %172 = vector.shape_cast %171 : vector<1x1x128xf32> to vector<1x128xf32>
    %173 = vector.broadcast %172 : vector<1x128xf32> to vector<16x128xf32>
    %174 = arith.addf %170, %173 : vector<16x128xf32>
    %175 = vector.extract_strided_slice %56 {offsets = [0, 1], sizes = [16, 1], strides = [1, 1]} : vector<16x128xf32> to vector<16x1xf32>
    %176 = vector.broadcast %175 : vector<16x1xf32> to vector<16x128xf32>
    %177 = arith.mulf %176, %174 : vector<16x128xf32>
    %178 = arith.addf %94, %177 : vector<16x128xf32>
    %179 = vector.extract_strided_slice %39 {offsets = [0, 1], sizes = [16, 1], strides = [1, 1]} : vector<16x128xf32> to vector<16x1xf32>
    %c1_88 = arith.constant 1 : index
    %c0_89 = arith.constant 0 : index
    %c0_90 = arith.constant 0 : index
    %180 = vector.load %arg7[%c1_88, %c0_89, %c0_90] : memref<12x1x128xf32, #tpu.memory_space<vmem>>, vector<1x1x128xf32>
    %181 = vector.shape_cast %180 : vector<1x1x128xf32> to vector<1x128xf32>
    %182 = vector.broadcast %181 : vector<1x128xf32> to vector<16x128xf32>
    %183 = arith.mulf %174, %182 : vector<16x128xf32>
    %cst_91 = arith.constant dense<0.000000e+00> : vector<16xf32>
    %184 = vector.multi_reduction <add>, %183, %cst_91 [1] : vector<16x128xf32> to vector<16xf32>
    %185 = vector.shape_cast %184 : vector<16xf32> to vector<16x1xf32>
    %c1_92 = arith.constant 1 : index
    %c0_93 = arith.constant 0 : index
    %c0_94 = arith.constant 0 : index
    %186 = vector.load %arg8[%c1_92, %c0_93, %c0_94] : memref<12x1x1xf32, #tpu.memory_space<vmem>>, vector<1x1x1xf32>
    %187 = vector.shape_cast %186 : vector<1x1x1xf32> to vector<1x1xf32>
    %188 = vector.broadcast %187 : vector<1x1xf32> to vector<16x1xf32>
    %189 = arith.addf %185, %188 : vector<16x1xf32>
    %190 = arith.negf %189 : vector<16x1xf32>
    %191 = math.exp %190 : vector<16x1xf32>
    %cst_95 = arith.constant 1.000000e+00 : f32
    %192 = vector.broadcast %cst_95 : f32 to vector<16x1xf32>
    %193 = arith.addf %192, %191 : vector<16x1xf32>
    %194 = arith.divf %192, %193 : vector<16x1xf32>
    %195 = arith.mulf %194, %179 : vector<16x1xf32>
    %cst_96 = arith.constant dense<0.000000e+00> : vector<16xf32>
    %196 = vector.multi_reduction <add>, %195, %cst_96 [1] : vector<16x1xf32> to vector<16xf32>
    %197 = vector.shape_cast %196 : vector<16xf32> to vector<16x1xf32>
    %cst_97 = arith.constant dense<0.000000e+00> : vector<1xf32>
    %198 = vector.multi_reduction <add>, %197, %cst_97 [0] : vector<16x1xf32> to vector<1xf32>
    %199 = vector.shape_cast %198 : vector<1xf32> to vector<1x1xf32>
    %200 = arith.addf %116, %199 : vector<1x1xf32>
    %c1_98 = arith.constant 1 : index
    %c0_99 = arith.constant 0 : index
    %c0_100 = arith.constant 0 : index
    %201 = vector.load %arg9[%c1_98, %c0_99, %c0_100] : memref<12x128x8xf32, #tpu.memory_space<vmem>>, vector<1x128x8xf32>
    %202 = vector.shape_cast %201 : vector<1x128x8xf32> to vector<128x8xf32>
    %cst_101 = arith.constant dense<0.000000e+00> : vector<16x8xf32>
    %203 = tpu.matmul %174, %202, %cst_101 {dimension_numbers = #tpu.dot_dimension_numbers<[1], [0], [0], [1], [0, 0, 1, 1], [], []>} : vector<16x128xf32>, vector<128x8xf32>, vector<16x8xf32> -> vector<16x8xf32>
    %c1_102 = arith.constant 1 : index
    %c0_103 = arith.constant 0 : index
    %c0_104 = arith.constant 0 : index
    %204 = vector.load %arg10[%c1_102, %c0_103, %c0_104] : memref<12x1x8xf32, #tpu.memory_space<vmem>>, vector<1x1x8xf32>
    %205 = vector.shape_cast %204 : vector<1x1x8xf32> to vector<1x8xf32>
    %206 = vector.broadcast %205 : vector<1x8xf32> to vector<16x8xf32>
    %207 = arith.addf %203, %206 : vector<16x8xf32>
    %cst_105 = arith.constant 0.000000e+00 : f32
    %208 = vector.broadcast %cst_105 : f32 to vector<16x8xf32>
    %209 = arith.maximumf %207, %208 : vector<16x8xf32>
    %c1_106 = arith.constant 1 : index
    %c0_107 = arith.constant 0 : index
    %c0_108 = arith.constant 0 : index
    %210 = vector.load %arg11[%c1_106, %c0_107, %c0_108] : memref<12x1x8xf32, #tpu.memory_space<vmem>>, vector<1x1x8xf32>
    %211 = vector.shape_cast %210 : vector<1x1x8xf32> to vector<1x8xf32>
    %212 = vector.broadcast %211 : vector<1x8xf32> to vector<16x8xf32>
    %213 = arith.mulf %209, %212 : vector<16x8xf32>
    %cst_109 = arith.constant dense<0.000000e+00> : vector<16xf32>
    %214 = vector.multi_reduction <add>, %213, %cst_109 [1] : vector<16x8xf32> to vector<16xf32>
    %215 = vector.shape_cast %214 : vector<16xf32> to vector<16x1xf32>
    %c1_110 = arith.constant 1 : index
    %c0_111 = arith.constant 0 : index
    %c0_112 = arith.constant 0 : index
    %216 = vector.load %arg12[%c1_110, %c0_111, %c0_112] : memref<12x1x1xf32, #tpu.memory_space<vmem>>, vector<1x1x1xf32>
    %217 = vector.shape_cast %216 : vector<1x1x1xf32> to vector<1x1xf32>
    %218 = vector.broadcast %217 : vector<1x1xf32> to vector<16x1xf32>
    %219 = arith.addf %215, %218 : vector<16x1xf32>
    %220 = arith.negf %219 : vector<16x1xf32>
    %221 = math.exp %220 : vector<16x1xf32>
    %cst_113 = arith.constant 1.000000e+00 : f32
    %222 = vector.broadcast %cst_113 : f32 to vector<16x1xf32>
    %223 = arith.addf %222, %221 : vector<16x1xf32>
    %224 = arith.divf %222, %223 : vector<16x1xf32>
    %225 = arith.mulf %224, %179 : vector<16x1xf32>
    %cst_114 = arith.constant dense<0.000000e+00> : vector<16xf32>
    %226 = vector.multi_reduction <add>, %225, %cst_114 [1] : vector<16x1xf32> to vector<16xf32>
    %227 = vector.shape_cast %226 : vector<16xf32> to vector<16x1xf32>
    %cst_115 = arith.constant dense<0.000000e+00> : vector<1xf32>
    %228 = vector.multi_reduction <add>, %227, %cst_115 [0] : vector<16x1xf32> to vector<1xf32>
    %229 = vector.shape_cast %228 : vector<1xf32> to vector<1x1xf32>
    %230 = arith.addf %146, %229 : vector<1x1xf32>
    %c0_116 = arith.constant 0 : index
    %c0_117 = arith.constant 0 : index
    %231 = vector.load %arg19[%c0_116, %c0_117] : memref<128x16xf32, #tpu.memory_space<vmem>>, vector<128x16xf32>
    %cst_118 = arith.constant dense<0.000000e+00> : vector<16x16xf32>
    %232 = tpu.matmul %174, %231, %cst_118 {dimension_numbers = #tpu.dot_dimension_numbers<[1], [0], [0], [1], [0, 0, 1, 1], [], []>} : vector<16x128xf32>, vector<128x16xf32>, vector<16x16xf32> -> vector<16x16xf32>
    %c0_119 = arith.constant 0 : index
    %c0_120 = arith.constant 0 : index
    %233 = vector.load %arg20[%c0_119, %c0_120] : memref<1x16xf32, #tpu.memory_space<vmem>>, vector<1x16xf32>
    %234 = vector.broadcast %233 : vector<1x16xf32> to vector<16x16xf32>
    %235 = arith.addf %232, %234 : vector<16x16xf32>
    %cst_121 = arith.constant 0.000000e+00 : f32
    %236 = vector.broadcast %cst_121 : f32 to vector<16x16xf32>
    %237 = arith.maximumf %235, %236 : vector<16x16xf32>
    %c0_122 = arith.constant 0 : index
    %c0_123 = arith.constant 0 : index
    %238 = vector.load %arg21[%c0_122, %c0_123] : memref<16x4xf32, #tpu.memory_space<vmem>>, vector<16x4xf32>
    %cst_124 = arith.constant dense<0.000000e+00> : vector<16x4xf32>
    %239 = tpu.matmul %237, %238, %cst_124 {dimension_numbers = #tpu.dot_dimension_numbers<[1], [0], [0], [1], [0, 0, 1, 1], [], []>} : vector<16x16xf32>, vector<16x4xf32>, vector<16x4xf32> -> vector<16x4xf32>
    %c0_125 = arith.constant 0 : index
    %c0_126 = arith.constant 0 : index
    %240 = vector.load %arg22[%c0_125, %c0_126] : memref<1x4xf32, #tpu.memory_space<vmem>>, vector<1x4xf32>
    %241 = vector.broadcast %240 : vector<1x4xf32> to vector<16x4xf32>
    %242 = arith.addf %239, %241 : vector<16x4xf32>
    %cst_127 = arith.constant dense<0xFF800000> : vector<16xf32>
    %243 = vector.multi_reduction <maximumf>, %242, %cst_127 [1] : vector<16x4xf32> to vector<16xf32>
    %244 = vector.shape_cast %243 : vector<16xf32> to vector<16x1xf32>
    %245 = vector.broadcast %244 : vector<16x1xf32> to vector<16x4xf32>
    %246 = arith.subf %242, %245 : vector<16x4xf32>
    %247 = math.exp %246 : vector<16x4xf32>
    %cst_128 = arith.constant dense<0.000000e+00> : vector<16xf32>
    %248 = vector.multi_reduction <add>, %247, %cst_128 [1] : vector<16x4xf32> to vector<16xf32>
    %249 = vector.shape_cast %248 : vector<16xf32> to vector<16x1xf32>
    %250 = vector.broadcast %249 : vector<16x1xf32> to vector<16x4xf32>
    %251 = arith.divf %247, %250 : vector<16x4xf32>
    %252 = vector.broadcast %179 : vector<16x1xf32> to vector<16x4xf32>
    %253 = arith.mulf %251, %252 : vector<16x4xf32>
    %cst_129 = arith.constant dense<0.000000e+00> : vector<16xf32>
    %254 = vector.multi_reduction <add>, %253, %cst_129 [1] : vector<16x4xf32> to vector<16xf32>
    %255 = vector.shape_cast %254 : vector<16xf32> to vector<16x1xf32>
    %cst_130 = arith.constant dense<0.000000e+00> : vector<1xf32>
    %256 = vector.multi_reduction <add>, %255, %cst_130 [0] : vector<16x1xf32> to vector<1xf32>
    %257 = vector.shape_cast %256 : vector<1xf32> to vector<1x1xf32>
    %258 = arith.addf %61, %257 : vector<1x1xf32>
    %c2 = arith.constant 2 : index
    %c0_131 = arith.constant 0 : index
    %c0_132 = arith.constant 0 : index
    %259 = vector.load %arg3[%c2, %c0_131, %c0_132] : memref<12x128x128xbf16, #tpu.memory_space<vmem>>, vector<1x128x128xbf16>
    %260 = vector.shape_cast %259 : vector<1x128x128xbf16> to vector<128x128xbf16>
    %cst_133 = arith.constant dense<0.000000e+00> : vector<16x128xf32>
    %261 = tpu.matmul %0, %260, %cst_133 {dimension_numbers = #tpu.dot_dimension_numbers<[1], [0], [0], [1], [0, 0, 1, 1], [], []>} : vector<16x128xbf16>, vector<128x128xbf16>, vector<16x128xf32> -> vector<16x128xf32>
    %c2_134 = arith.constant 2 : index
    %c0_135 = arith.constant 0 : index
    %c0_136 = arith.constant 0 : index
    %262 = vector.load %arg4[%c2_134, %c0_135, %c0_136] : memref<12x1x128xf32, #tpu.memory_space<vmem>>, vector<1x1x128xf32>
    %263 = vector.shape_cast %262 : vector<1x1x128xf32> to vector<1x128xf32>
    %264 = vector.broadcast %263 : vector<1x128xf32> to vector<16x128xf32>
    %265 = arith.addf %261, %264 : vector<16x128xf32>
    %266 = arith.mulf %265, %265 : vector<16x128xf32>
    %267 = arith.mulf %265, %266 : vector<16x128xf32>
    %cst_137 = arith.constant 4.471500e-02 : f32
    %268 = vector.broadcast %cst_137 : f32 to vector<16x128xf32>
    %269 = arith.mulf %268, %267 : vector<16x128xf32>
    %270 = arith.addf %265, %269 : vector<16x128xf32>
    %cst_138 = arith.constant 0.797884583 : f32
    %271 = vector.broadcast %cst_138 : f32 to vector<16x128xf32>
    %272 = arith.mulf %271, %270 : vector<16x128xf32>
    %273 = math.tanh %272 : vector<16x128xf32>
    %cst_139 = arith.constant 1.000000e+00 : f32
    %274 = vector.broadcast %cst_139 : f32 to vector<16x128xf32>
    %275 = arith.addf %274, %273 : vector<16x128xf32>
    %cst_140 = arith.constant 5.000000e-01 : f32
    %276 = vector.broadcast %cst_140 : f32 to vector<16x128xf32>
    %277 = arith.mulf %276, %275 : vector<16x128xf32>
    %278 = arith.mulf %265, %277 : vector<16x128xf32>
    %279 = arith.truncf %278 : vector<16x128xf32> to vector<16x128xbf16>
    %c2_141 = arith.constant 2 : index
    %c0_142 = arith.constant 0 : index
    %c0_143 = arith.constant 0 : index
    %280 = vector.load %arg5[%c2_141, %c0_142, %c0_143] : memref<12x128x128xbf16, #tpu.memory_space<vmem>>, vector<1x128x128xbf16>
    %281 = vector.shape_cast %280 : vector<1x128x128xbf16> to vector<128x128xbf16>
    %cst_144 = arith.constant dense<0.000000e+00> : vector<16x128xf32>
    %282 = tpu.matmul %279, %281, %cst_144 {dimension_numbers = #tpu.dot_dimension_numbers<[1], [0], [0], [1], [0, 0, 1, 1], [], []>} : vector<16x128xbf16>, vector<128x128xbf16>, vector<16x128xf32> -> vector<16x128xf32>
    %c2_145 = arith.constant 2 : index
    %c0_146 = arith.constant 0 : index
    %c0_147 = arith.constant 0 : index
    %283 = vector.load %arg6[%c2_145, %c0_146, %c0_147] : memref<12x1x128xf32, #tpu.memory_space<vmem>>, vector<1x1x128xf32>
    %284 = vector.shape_cast %283 : vector<1x1x128xf32> to vector<1x128xf32>
    %285 = vector.broadcast %284 : vector<1x128xf32> to vector<16x128xf32>
    %286 = arith.addf %282, %285 : vector<16x128xf32>
    %287 = vector.extract_strided_slice %56 {offsets = [0, 2], sizes = [16, 1], strides = [1, 1]} : vector<16x128xf32> to vector<16x1xf32>
    %288 = vector.broadcast %287 : vector<16x1xf32> to vector<16x128xf32>
    %289 = arith.mulf %288, %286 : vector<16x128xf32>
    %290 = arith.addf %178, %289 : vector<16x128xf32>
    %291 = vector.extract_strided_slice %39 {offsets = [0, 2], sizes = [16, 1], strides = [1, 1]} : vector<16x128xf32> to vector<16x1xf32>
    %c2_148 = arith.constant 2 : index
    %c0_149 = arith.constant 0 : index
    %c0_150 = arith.constant 0 : index
    %292 = vector.load %arg7[%c2_148, %c0_149, %c0_150] : memref<12x1x128xf32, #tpu.memory_space<vmem>>, vector<1x1x128xf32>
    %293 = vector.shape_cast %292 : vector<1x1x128xf32> to vector<1x128xf32>
    %294 = vector.broadcast %293 : vector<1x128xf32> to vector<16x128xf32>
    %295 = arith.mulf %286, %294 : vector<16x128xf32>
    %cst_151 = arith.constant dense<0.000000e+00> : vector<16xf32>
    %296 = vector.multi_reduction <add>, %295, %cst_151 [1] : vector<16x128xf32> to vector<16xf32>
    %297 = vector.shape_cast %296 : vector<16xf32> to vector<16x1xf32>
    %c2_152 = arith.constant 2 : index
    %c0_153 = arith.constant 0 : index
    %c0_154 = arith.constant 0 : index
    %298 = vector.load %arg8[%c2_152, %c0_153, %c0_154] : memref<12x1x1xf32, #tpu.memory_space<vmem>>, vector<1x1x1xf32>
    %299 = vector.shape_cast %298 : vector<1x1x1xf32> to vector<1x1xf32>
    %300 = vector.broadcast %299 : vector<1x1xf32> to vector<16x1xf32>
    %301 = arith.addf %297, %300 : vector<16x1xf32>
    %302 = arith.negf %301 : vector<16x1xf32>
    %303 = math.exp %302 : vector<16x1xf32>
    %cst_155 = arith.constant 1.000000e+00 : f32
    %304 = vector.broadcast %cst_155 : f32 to vector<16x1xf32>
    %305 = arith.addf %304, %303 : vector<16x1xf32>
    %306 = arith.divf %304, %305 : vector<16x1xf32>
    %307 = arith.mulf %306, %291 : vector<16x1xf32>
    %cst_156 = arith.constant dense<0.000000e+00> : vector<16xf32>
    %308 = vector.multi_reduction <add>, %307, %cst_156 [1] : vector<16x1xf32> to vector<16xf32>
    %309 = vector.shape_cast %308 : vector<16xf32> to vector<16x1xf32>
    %cst_157 = arith.constant dense<0.000000e+00> : vector<1xf32>
    %310 = vector.multi_reduction <add>, %309, %cst_157 [0] : vector<16x1xf32> to vector<1xf32>
    %311 = vector.shape_cast %310 : vector<1xf32> to vector<1x1xf32>
    %312 = arith.addf %200, %311 : vector<1x1xf32>
    %c2_158 = arith.constant 2 : index
    %c0_159 = arith.constant 0 : index
    %c0_160 = arith.constant 0 : index
    %313 = vector.load %arg9[%c2_158, %c0_159, %c0_160] : memref<12x128x8xf32, #tpu.memory_space<vmem>>, vector<1x128x8xf32>
    %314 = vector.shape_cast %313 : vector<1x128x8xf32> to vector<128x8xf32>
    %cst_161 = arith.constant dense<0.000000e+00> : vector<16x8xf32>
    %315 = tpu.matmul %286, %314, %cst_161 {dimension_numbers = #tpu.dot_dimension_numbers<[1], [0], [0], [1], [0, 0, 1, 1], [], []>} : vector<16x128xf32>, vector<128x8xf32>, vector<16x8xf32> -> vector<16x8xf32>
    %c2_162 = arith.constant 2 : index
    %c0_163 = arith.constant 0 : index
    %c0_164 = arith.constant 0 : index
    %316 = vector.load %arg10[%c2_162, %c0_163, %c0_164] : memref<12x1x8xf32, #tpu.memory_space<vmem>>, vector<1x1x8xf32>
    %317 = vector.shape_cast %316 : vector<1x1x8xf32> to vector<1x8xf32>
    %318 = vector.broadcast %317 : vector<1x8xf32> to vector<16x8xf32>
    %319 = arith.addf %315, %318 : vector<16x8xf32>
    %cst_165 = arith.constant 0.000000e+00 : f32
    %320 = vector.broadcast %cst_165 : f32 to vector<16x8xf32>
    %321 = arith.maximumf %319, %320 : vector<16x8xf32>
    %c2_166 = arith.constant 2 : index
    %c0_167 = arith.constant 0 : index
    %c0_168 = arith.constant 0 : index
    %322 = vector.load %arg11[%c2_166, %c0_167, %c0_168] : memref<12x1x8xf32, #tpu.memory_space<vmem>>, vector<1x1x8xf32>
    %323 = vector.shape_cast %322 : vector<1x1x8xf32> to vector<1x8xf32>
    %324 = vector.broadcast %323 : vector<1x8xf32> to vector<16x8xf32>
    %325 = arith.mulf %321, %324 : vector<16x8xf32>
    %cst_169 = arith.constant dense<0.000000e+00> : vector<16xf32>
    %326 = vector.multi_reduction <add>, %325, %cst_169 [1] : vector<16x8xf32> to vector<16xf32>
    %327 = vector.shape_cast %326 : vector<16xf32> to vector<16x1xf32>
    %c2_170 = arith.constant 2 : index
    %c0_171 = arith.constant 0 : index
    %c0_172 = arith.constant 0 : index
    %328 = vector.load %arg12[%c2_170, %c0_171, %c0_172] : memref<12x1x1xf32, #tpu.memory_space<vmem>>, vector<1x1x1xf32>
    %329 = vector.shape_cast %328 : vector<1x1x1xf32> to vector<1x1xf32>
    %330 = vector.broadcast %329 : vector<1x1xf32> to vector<16x1xf32>
    %331 = arith.addf %327, %330 : vector<16x1xf32>
    %332 = arith.negf %331 : vector<16x1xf32>
    %333 = math.exp %332 : vector<16x1xf32>
    %cst_173 = arith.constant 1.000000e+00 : f32
    %334 = vector.broadcast %cst_173 : f32 to vector<16x1xf32>
    %335 = arith.addf %334, %333 : vector<16x1xf32>
    %336 = arith.divf %334, %335 : vector<16x1xf32>
    %337 = arith.mulf %336, %291 : vector<16x1xf32>
    %cst_174 = arith.constant dense<0.000000e+00> : vector<16xf32>
    %338 = vector.multi_reduction <add>, %337, %cst_174 [1] : vector<16x1xf32> to vector<16xf32>
    %339 = vector.shape_cast %338 : vector<16xf32> to vector<16x1xf32>
    %cst_175 = arith.constant dense<0.000000e+00> : vector<1xf32>
    %340 = vector.multi_reduction <add>, %339, %cst_175 [0] : vector<16x1xf32> to vector<1xf32>
    %341 = vector.shape_cast %340 : vector<1xf32> to vector<1x1xf32>
    %342 = arith.addf %230, %341 : vector<1x1xf32>
    %c3 = arith.constant 3 : index
    %c0_176 = arith.constant 0 : index
    %c0_177 = arith.constant 0 : index
    %343 = vector.load %arg3[%c3, %c0_176, %c0_177] : memref<12x128x128xbf16, #tpu.memory_space<vmem>>, vector<1x128x128xbf16>
    %344 = vector.shape_cast %343 : vector<1x128x128xbf16> to vector<128x128xbf16>
    %cst_178 = arith.constant dense<0.000000e+00> : vector<16x128xf32>
    %345 = tpu.matmul %0, %344, %cst_178 {dimension_numbers = #tpu.dot_dimension_numbers<[1], [0], [0], [1], [0, 0, 1, 1], [], []>} : vector<16x128xbf16>, vector<128x128xbf16>, vector<16x128xf32> -> vector<16x128xf32>
    %c3_179 = arith.constant 3 : index
    %c0_180 = arith.constant 0 : index
    %c0_181 = arith.constant 0 : index
    %346 = vector.load %arg4[%c3_179, %c0_180, %c0_181] : memref<12x1x128xf32, #tpu.memory_space<vmem>>, vector<1x1x128xf32>
    %347 = vector.shape_cast %346 : vector<1x1x128xf32> to vector<1x128xf32>
    %348 = vector.broadcast %347 : vector<1x128xf32> to vector<16x128xf32>
    %349 = arith.addf %345, %348 : vector<16x128xf32>
    %350 = arith.mulf %349, %349 : vector<16x128xf32>
    %351 = arith.mulf %349, %350 : vector<16x128xf32>
    %cst_182 = arith.constant 4.471500e-02 : f32
    %352 = vector.broadcast %cst_182 : f32 to vector<16x128xf32>
    %353 = arith.mulf %352, %351 : vector<16x128xf32>
    %354 = arith.addf %349, %353 : vector<16x128xf32>
    %cst_183 = arith.constant 0.797884583 : f32
    %355 = vector.broadcast %cst_183 : f32 to vector<16x128xf32>
    %356 = arith.mulf %355, %354 : vector<16x128xf32>
    %357 = math.tanh %356 : vector<16x128xf32>
    %cst_184 = arith.constant 1.000000e+00 : f32
    %358 = vector.broadcast %cst_184 : f32 to vector<16x128xf32>
    %359 = arith.addf %358, %357 : vector<16x128xf32>
    %cst_185 = arith.constant 5.000000e-01 : f32
    %360 = vector.broadcast %cst_185 : f32 to vector<16x128xf32>
    %361 = arith.mulf %360, %359 : vector<16x128xf32>
    %362 = arith.mulf %349, %361 : vector<16x128xf32>
    %363 = arith.truncf %362 : vector<16x128xf32> to vector<16x128xbf16>
    %c3_186 = arith.constant 3 : index
    %c0_187 = arith.constant 0 : index
    %c0_188 = arith.constant 0 : index
    %364 = vector.load %arg5[%c3_186, %c0_187, %c0_188] : memref<12x128x128xbf16, #tpu.memory_space<vmem>>, vector<1x128x128xbf16>
    %365 = vector.shape_cast %364 : vector<1x128x128xbf16> to vector<128x128xbf16>
    %cst_189 = arith.constant dense<0.000000e+00> : vector<16x128xf32>
    %366 = tpu.matmul %363, %365, %cst_189 {dimension_numbers = #tpu.dot_dimension_numbers<[1], [0], [0], [1], [0, 0, 1, 1], [], []>} : vector<16x128xbf16>, vector<128x128xbf16>, vector<16x128xf32> -> vector<16x128xf32>
    %c3_190 = arith.constant 3 : index
    %c0_191 = arith.constant 0 : index
    %c0_192 = arith.constant 0 : index
    %367 = vector.load %arg6[%c3_190, %c0_191, %c0_192] : memref<12x1x128xf32, #tpu.memory_space<vmem>>, vector<1x1x128xf32>
    %368 = vector.shape_cast %367 : vector<1x1x128xf32> to vector<1x128xf32>
    %369 = vector.broadcast %368 : vector<1x128xf32> to vector<16x128xf32>
    %370 = arith.addf %366, %369 : vector<16x128xf32>
    %371 = vector.extract_strided_slice %56 {offsets = [0, 3], sizes = [16, 1], strides = [1, 1]} : vector<16x128xf32> to vector<16x1xf32>
    %372 = vector.broadcast %371 : vector<16x1xf32> to vector<16x128xf32>
    %373 = arith.mulf %372, %370 : vector<16x128xf32>
    %374 = arith.addf %290, %373 : vector<16x128xf32>
    %375 = vector.extract_strided_slice %39 {offsets = [0, 3], sizes = [16, 1], strides = [1, 1]} : vector<16x128xf32> to vector<16x1xf32>
    %c3_193 = arith.constant 3 : index
    %c0_194 = arith.constant 0 : index
    %c0_195 = arith.constant 0 : index
    %376 = vector.load %arg7[%c3_193, %c0_194, %c0_195] : memref<12x1x128xf32, #tpu.memory_space<vmem>>, vector<1x1x128xf32>
    %377 = vector.shape_cast %376 : vector<1x1x128xf32> to vector<1x128xf32>
    %378 = vector.broadcast %377 : vector<1x128xf32> to vector<16x128xf32>
    %379 = arith.mulf %370, %378 : vector<16x128xf32>
    %cst_196 = arith.constant dense<0.000000e+00> : vector<16xf32>
    %380 = vector.multi_reduction <add>, %379, %cst_196 [1] : vector<16x128xf32> to vector<16xf32>
    %381 = vector.shape_cast %380 : vector<16xf32> to vector<16x1xf32>
    %c3_197 = arith.constant 3 : index
    %c0_198 = arith.constant 0 : index
    %c0_199 = arith.constant 0 : index
    %382 = vector.load %arg8[%c3_197, %c0_198, %c0_199] : memref<12x1x1xf32, #tpu.memory_space<vmem>>, vector<1x1x1xf32>
    %383 = vector.shape_cast %382 : vector<1x1x1xf32> to vector<1x1xf32>
    %384 = vector.broadcast %383 : vector<1x1xf32> to vector<16x1xf32>
    %385 = arith.addf %381, %384 : vector<16x1xf32>
    %386 = arith.negf %385 : vector<16x1xf32>
    %387 = math.exp %386 : vector<16x1xf32>
    %cst_200 = arith.constant 1.000000e+00 : f32
    %388 = vector.broadcast %cst_200 : f32 to vector<16x1xf32>
    %389 = arith.addf %388, %387 : vector<16x1xf32>
    %390 = arith.divf %388, %389 : vector<16x1xf32>
    %391 = arith.mulf %390, %375 : vector<16x1xf32>
    %cst_201 = arith.constant dense<0.000000e+00> : vector<16xf32>
    %392 = vector.multi_reduction <add>, %391, %cst_201 [1] : vector<16x1xf32> to vector<16xf32>
    %393 = vector.shape_cast %392 : vector<16xf32> to vector<16x1xf32>
    %cst_202 = arith.constant dense<0.000000e+00> : vector<1xf32>
    %394 = vector.multi_reduction <add>, %393, %cst_202 [0] : vector<16x1xf32> to vector<1xf32>
    %395 = vector.shape_cast %394 : vector<1xf32> to vector<1x1xf32>
    %396 = arith.addf %312, %395 : vector<1x1xf32>
    %c3_203 = arith.constant 3 : index
    %c0_204 = arith.constant 0 : index
    %c0_205 = arith.constant 0 : index
    %397 = vector.load %arg9[%c3_203, %c0_204, %c0_205] : memref<12x128x8xf32, #tpu.memory_space<vmem>>, vector<1x128x8xf32>
    %398 = vector.shape_cast %397 : vector<1x128x8xf32> to vector<128x8xf32>
    %cst_206 = arith.constant dense<0.000000e+00> : vector<16x8xf32>
    %399 = tpu.matmul %370, %398, %cst_206 {dimension_numbers = #tpu.dot_dimension_numbers<[1], [0], [0], [1], [0, 0, 1, 1], [], []>} : vector<16x128xf32>, vector<128x8xf32>, vector<16x8xf32> -> vector<16x8xf32>
    %c3_207 = arith.constant 3 : index
    %c0_208 = arith.constant 0 : index
    %c0_209 = arith.constant 0 : index
    %400 = vector.load %arg10[%c3_207, %c0_208, %c0_209] : memref<12x1x8xf32, #tpu.memory_space<vmem>>, vector<1x1x8xf32>
    %401 = vector.shape_cast %400 : vector<1x1x8xf32> to vector<1x8xf32>
    %402 = vector.broadcast %401 : vector<1x8xf32> to vector<16x8xf32>
    %403 = arith.addf %399, %402 : vector<16x8xf32>
    %cst_210 = arith.constant 0.000000e+00 : f32
    %404 = vector.broadcast %cst_210 : f32 to vector<16x8xf32>
    %405 = arith.maximumf %403, %404 : vector<16x8xf32>
    %c3_211 = arith.constant 3 : index
    %c0_212 = arith.constant 0 : index
    %c0_213 = arith.constant 0 : index
    %406 = vector.load %arg11[%c3_211, %c0_212, %c0_213] : memref<12x1x8xf32, #tpu.memory_space<vmem>>, vector<1x1x8xf32>
    %407 = vector.shape_cast %406 : vector<1x1x8xf32> to vector<1x8xf32>
    %408 = vector.broadcast %407 : vector<1x8xf32> to vector<16x8xf32>
    %409 = arith.mulf %405, %408 : vector<16x8xf32>
    %cst_214 = arith.constant dense<0.000000e+00> : vector<16xf32>
    %410 = vector.multi_reduction <add>, %409, %cst_214 [1] : vector<16x8xf32> to vector<16xf32>
    %411 = vector.shape_cast %410 : vector<16xf32> to vector<16x1xf32>
    %c3_215 = arith.constant 3 : index
    %c0_216 = arith.constant 0 : index
    %c0_217 = arith.constant 0 : index
    %412 = vector.load %arg12[%c3_215, %c0_216, %c0_217] : memref<12x1x1xf32, #tpu.memory_space<vmem>>, vector<1x1x1xf32>
    %413 = vector.shape_cast %412 : vector<1x1x1xf32> to vector<1x1xf32>
    %414 = vector.broadcast %413 : vector<1x1xf32> to vector<16x1xf32>
    %415 = arith.addf %411, %414 : vector<16x1xf32>
    %416 = arith.negf %415 : vector<16x1xf32>
    %417 = math.exp %416 : vector<16x1xf32>
    %cst_218 = arith.constant 1.000000e+00 : f32
    %418 = vector.broadcast %cst_218 : f32 to vector<16x1xf32>
    %419 = arith.addf %418, %417 : vector<16x1xf32>
    %420 = arith.divf %418, %419 : vector<16x1xf32>
    %421 = arith.mulf %420, %375 : vector<16x1xf32>
    %cst_219 = arith.constant dense<0.000000e+00> : vector<16xf32>
    %422 = vector.multi_reduction <add>, %421, %cst_219 [1] : vector<16x1xf32> to vector<16xf32>
    %423 = vector.shape_cast %422 : vector<16xf32> to vector<16x1xf32>
    %cst_220 = arith.constant dense<0.000000e+00> : vector<1xf32>
    %424 = vector.multi_reduction <add>, %423, %cst_220 [0] : vector<16x1xf32> to vector<1xf32>
    %425 = vector.shape_cast %424 : vector<1xf32> to vector<1x1xf32>
    %426 = arith.addf %342, %425 : vector<1x1xf32>
    %c4 = arith.constant 4 : index
    %c0_221 = arith.constant 0 : index
    %c0_222 = arith.constant 0 : index
    %427 = vector.load %arg3[%c4, %c0_221, %c0_222] : memref<12x128x128xbf16, #tpu.memory_space<vmem>>, vector<1x128x128xbf16>
    %428 = vector.shape_cast %427 : vector<1x128x128xbf16> to vector<128x128xbf16>
    %cst_223 = arith.constant dense<0.000000e+00> : vector<16x128xf32>
    %429 = tpu.matmul %0, %428, %cst_223 {dimension_numbers = #tpu.dot_dimension_numbers<[1], [0], [0], [1], [0, 0, 1, 1], [], []>} : vector<16x128xbf16>, vector<128x128xbf16>, vector<16x128xf32> -> vector<16x128xf32>
    %c4_224 = arith.constant 4 : index
    %c0_225 = arith.constant 0 : index
    %c0_226 = arith.constant 0 : index
    %430 = vector.load %arg4[%c4_224, %c0_225, %c0_226] : memref<12x1x128xf32, #tpu.memory_space<vmem>>, vector<1x1x128xf32>
    %431 = vector.shape_cast %430 : vector<1x1x128xf32> to vector<1x128xf32>
    %432 = vector.broadcast %431 : vector<1x128xf32> to vector<16x128xf32>
    %433 = arith.addf %429, %432 : vector<16x128xf32>
    %434 = arith.mulf %433, %433 : vector<16x128xf32>
    %435 = arith.mulf %433, %434 : vector<16x128xf32>
    %cst_227 = arith.constant 4.471500e-02 : f32
    %436 = vector.broadcast %cst_227 : f32 to vector<16x128xf32>
    %437 = arith.mulf %436, %435 : vector<16x128xf32>
    %438 = arith.addf %433, %437 : vector<16x128xf32>
    %cst_228 = arith.constant 0.797884583 : f32
    %439 = vector.broadcast %cst_228 : f32 to vector<16x128xf32>
    %440 = arith.mulf %439, %438 : vector<16x128xf32>
    %441 = math.tanh %440 : vector<16x128xf32>
    %cst_229 = arith.constant 1.000000e+00 : f32
    %442 = vector.broadcast %cst_229 : f32 to vector<16x128xf32>
    %443 = arith.addf %442, %441 : vector<16x128xf32>
    %cst_230 = arith.constant 5.000000e-01 : f32
    %444 = vector.broadcast %cst_230 : f32 to vector<16x128xf32>
    %445 = arith.mulf %444, %443 : vector<16x128xf32>
    %446 = arith.mulf %433, %445 : vector<16x128xf32>
    %447 = arith.truncf %446 : vector<16x128xf32> to vector<16x128xbf16>
    %c4_231 = arith.constant 4 : index
    %c0_232 = arith.constant 0 : index
    %c0_233 = arith.constant 0 : index
    %448 = vector.load %arg5[%c4_231, %c0_232, %c0_233] : memref<12x128x128xbf16, #tpu.memory_space<vmem>>, vector<1x128x128xbf16>
    %449 = vector.shape_cast %448 : vector<1x128x128xbf16> to vector<128x128xbf16>
    %cst_234 = arith.constant dense<0.000000e+00> : vector<16x128xf32>
    %450 = tpu.matmul %447, %449, %cst_234 {dimension_numbers = #tpu.dot_dimension_numbers<[1], [0], [0], [1], [0, 0, 1, 1], [], []>} : vector<16x128xbf16>, vector<128x128xbf16>, vector<16x128xf32> -> vector<16x128xf32>
    %c4_235 = arith.constant 4 : index
    %c0_236 = arith.constant 0 : index
    %c0_237 = arith.constant 0 : index
    %451 = vector.load %arg6[%c4_235, %c0_236, %c0_237] : memref<12x1x128xf32, #tpu.memory_space<vmem>>, vector<1x1x128xf32>
    %452 = vector.shape_cast %451 : vector<1x1x128xf32> to vector<1x128xf32>
    %453 = vector.broadcast %452 : vector<1x128xf32> to vector<16x128xf32>
    %454 = arith.addf %450, %453 : vector<16x128xf32>
    %455 = vector.extract_strided_slice %56 {offsets = [0, 4], sizes = [16, 1], strides = [1, 1]} : vector<16x128xf32> to vector<16x1xf32>
    %456 = vector.broadcast %455 : vector<16x1xf32> to vector<16x128xf32>
    %457 = arith.mulf %456, %454 : vector<16x128xf32>
    %458 = arith.addf %374, %457 : vector<16x128xf32>
    %459 = vector.extract_strided_slice %39 {offsets = [0, 4], sizes = [16, 1], strides = [1, 1]} : vector<16x128xf32> to vector<16x1xf32>
    %c4_238 = arith.constant 4 : index
    %c0_239 = arith.constant 0 : index
    %c0_240 = arith.constant 0 : index
    %460 = vector.load %arg7[%c4_238, %c0_239, %c0_240] : memref<12x1x128xf32, #tpu.memory_space<vmem>>, vector<1x1x128xf32>
    %461 = vector.shape_cast %460 : vector<1x1x128xf32> to vector<1x128xf32>
    %462 = vector.broadcast %461 : vector<1x128xf32> to vector<16x128xf32>
    %463 = arith.mulf %454, %462 : vector<16x128xf32>
    %cst_241 = arith.constant dense<0.000000e+00> : vector<16xf32>
    %464 = vector.multi_reduction <add>, %463, %cst_241 [1] : vector<16x128xf32> to vector<16xf32>
    %465 = vector.shape_cast %464 : vector<16xf32> to vector<16x1xf32>
    %c4_242 = arith.constant 4 : index
    %c0_243 = arith.constant 0 : index
    %c0_244 = arith.constant 0 : index
    %466 = vector.load %arg8[%c4_242, %c0_243, %c0_244] : memref<12x1x1xf32, #tpu.memory_space<vmem>>, vector<1x1x1xf32>
    %467 = vector.shape_cast %466 : vector<1x1x1xf32> to vector<1x1xf32>
    %468 = vector.broadcast %467 : vector<1x1xf32> to vector<16x1xf32>
    %469 = arith.addf %465, %468 : vector<16x1xf32>
    %470 = arith.negf %469 : vector<16x1xf32>
    %471 = math.exp %470 : vector<16x1xf32>
    %cst_245 = arith.constant 1.000000e+00 : f32
    %472 = vector.broadcast %cst_245 : f32 to vector<16x1xf32>
    %473 = arith.addf %472, %471 : vector<16x1xf32>
    %474 = arith.divf %472, %473 : vector<16x1xf32>
    %475 = arith.mulf %474, %459 : vector<16x1xf32>
    %cst_246 = arith.constant dense<0.000000e+00> : vector<16xf32>
    %476 = vector.multi_reduction <add>, %475, %cst_246 [1] : vector<16x1xf32> to vector<16xf32>
    %477 = vector.shape_cast %476 : vector<16xf32> to vector<16x1xf32>
    %cst_247 = arith.constant dense<0.000000e+00> : vector<1xf32>
    %478 = vector.multi_reduction <add>, %477, %cst_247 [0] : vector<16x1xf32> to vector<1xf32>
    %479 = vector.shape_cast %478 : vector<1xf32> to vector<1x1xf32>
    %480 = arith.addf %396, %479 : vector<1x1xf32>
    %c4_248 = arith.constant 4 : index
    %c0_249 = arith.constant 0 : index
    %c0_250 = arith.constant 0 : index
    %481 = vector.load %arg9[%c4_248, %c0_249, %c0_250] : memref<12x128x8xf32, #tpu.memory_space<vmem>>, vector<1x128x8xf32>
    %482 = vector.shape_cast %481 : vector<1x128x8xf32> to vector<128x8xf32>
    %cst_251 = arith.constant dense<0.000000e+00> : vector<16x8xf32>
    %483 = tpu.matmul %454, %482, %cst_251 {dimension_numbers = #tpu.dot_dimension_numbers<[1], [0], [0], [1], [0, 0, 1, 1], [], []>} : vector<16x128xf32>, vector<128x8xf32>, vector<16x8xf32> -> vector<16x8xf32>
    %c4_252 = arith.constant 4 : index
    %c0_253 = arith.constant 0 : index
    %c0_254 = arith.constant 0 : index
    %484 = vector.load %arg10[%c4_252, %c0_253, %c0_254] : memref<12x1x8xf32, #tpu.memory_space<vmem>>, vector<1x1x8xf32>
    %485 = vector.shape_cast %484 : vector<1x1x8xf32> to vector<1x8xf32>
    %486 = vector.broadcast %485 : vector<1x8xf32> to vector<16x8xf32>
    %487 = arith.addf %483, %486 : vector<16x8xf32>
    %cst_255 = arith.constant 0.000000e+00 : f32
    %488 = vector.broadcast %cst_255 : f32 to vector<16x8xf32>
    %489 = arith.maximumf %487, %488 : vector<16x8xf32>
    %c4_256 = arith.constant 4 : index
    %c0_257 = arith.constant 0 : index
    %c0_258 = arith.constant 0 : index
    %490 = vector.load %arg11[%c4_256, %c0_257, %c0_258] : memref<12x1x8xf32, #tpu.memory_space<vmem>>, vector<1x1x8xf32>
    %491 = vector.shape_cast %490 : vector<1x1x8xf32> to vector<1x8xf32>
    %492 = vector.broadcast %491 : vector<1x8xf32> to vector<16x8xf32>
    %493 = arith.mulf %489, %492 : vector<16x8xf32>
    %cst_259 = arith.constant dense<0.000000e+00> : vector<16xf32>
    %494 = vector.multi_reduction <add>, %493, %cst_259 [1] : vector<16x8xf32> to vector<16xf32>
    %495 = vector.shape_cast %494 : vector<16xf32> to vector<16x1xf32>
    %c4_260 = arith.constant 4 : index
    %c0_261 = arith.constant 0 : index
    %c0_262 = arith.constant 0 : index
    %496 = vector.load %arg12[%c4_260, %c0_261, %c0_262] : memref<12x1x1xf32, #tpu.memory_space<vmem>>, vector<1x1x1xf32>
    %497 = vector.shape_cast %496 : vector<1x1x1xf32> to vector<1x1xf32>
    %498 = vector.broadcast %497 : vector<1x1xf32> to vector<16x1xf32>
    %499 = arith.addf %495, %498 : vector<16x1xf32>
    %500 = arith.negf %499 : vector<16x1xf32>
    %501 = math.exp %500 : vector<16x1xf32>
    %cst_263 = arith.constant 1.000000e+00 : f32
    %502 = vector.broadcast %cst_263 : f32 to vector<16x1xf32>
    %503 = arith.addf %502, %501 : vector<16x1xf32>
    %504 = arith.divf %502, %503 : vector<16x1xf32>
    %505 = arith.mulf %504, %459 : vector<16x1xf32>
    %cst_264 = arith.constant dense<0.000000e+00> : vector<16xf32>
    %506 = vector.multi_reduction <add>, %505, %cst_264 [1] : vector<16x1xf32> to vector<16xf32>
    %507 = vector.shape_cast %506 : vector<16xf32> to vector<16x1xf32>
    %cst_265 = arith.constant dense<0.000000e+00> : vector<1xf32>
    %508 = vector.multi_reduction <add>, %507, %cst_265 [0] : vector<16x1xf32> to vector<1xf32>
    %509 = vector.shape_cast %508 : vector<1xf32> to vector<1x1xf32>
    %510 = arith.addf %426, %509 : vector<1x1xf32>
    %c5 = arith.constant 5 : index
    %c0_266 = arith.constant 0 : index
    %c0_267 = arith.constant 0 : index
    %511 = vector.load %arg3[%c5, %c0_266, %c0_267] : memref<12x128x128xbf16, #tpu.memory_space<vmem>>, vector<1x128x128xbf16>
    %512 = vector.shape_cast %511 : vector<1x128x128xbf16> to vector<128x128xbf16>
    %cst_268 = arith.constant dense<0.000000e+00> : vector<16x128xf32>
    %513 = tpu.matmul %0, %512, %cst_268 {dimension_numbers = #tpu.dot_dimension_numbers<[1], [0], [0], [1], [0, 0, 1, 1], [], []>} : vector<16x128xbf16>, vector<128x128xbf16>, vector<16x128xf32> -> vector<16x128xf32>
    %c5_269 = arith.constant 5 : index
    %c0_270 = arith.constant 0 : index
    %c0_271 = arith.constant 0 : index
    %514 = vector.load %arg4[%c5_269, %c0_270, %c0_271] : memref<12x1x128xf32, #tpu.memory_space<vmem>>, vector<1x1x128xf32>
    %515 = vector.shape_cast %514 : vector<1x1x128xf32> to vector<1x128xf32>
    %516 = vector.broadcast %515 : vector<1x128xf32> to vector<16x128xf32>
    %517 = arith.addf %513, %516 : vector<16x128xf32>
    %518 = arith.mulf %517, %517 : vector<16x128xf32>
    %519 = arith.mulf %517, %518 : vector<16x128xf32>
    %cst_272 = arith.constant 4.471500e-02 : f32
    %520 = vector.broadcast %cst_272 : f32 to vector<16x128xf32>
    %521 = arith.mulf %520, %519 : vector<16x128xf32>
    %522 = arith.addf %517, %521 : vector<16x128xf32>
    %cst_273 = arith.constant 0.797884583 : f32
    %523 = vector.broadcast %cst_273 : f32 to vector<16x128xf32>
    %524 = arith.mulf %523, %522 : vector<16x128xf32>
    %525 = math.tanh %524 : vector<16x128xf32>
    %cst_274 = arith.constant 1.000000e+00 : f32
    %526 = vector.broadcast %cst_274 : f32 to vector<16x128xf32>
    %527 = arith.addf %526, %525 : vector<16x128xf32>
    %cst_275 = arith.constant 5.000000e-01 : f32
    %528 = vector.broadcast %cst_275 : f32 to vector<16x128xf32>
    %529 = arith.mulf %528, %527 : vector<16x128xf32>
    %530 = arith.mulf %517, %529 : vector<16x128xf32>
    %531 = arith.truncf %530 : vector<16x128xf32> to vector<16x128xbf16>
    %c5_276 = arith.constant 5 : index
    %c0_277 = arith.constant 0 : index
    %c0_278 = arith.constant 0 : index
    %532 = vector.load %arg5[%c5_276, %c0_277, %c0_278] : memref<12x128x128xbf16, #tpu.memory_space<vmem>>, vector<1x128x128xbf16>
    %533 = vector.shape_cast %532 : vector<1x128x128xbf16> to vector<128x128xbf16>
    %cst_279 = arith.constant dense<0.000000e+00> : vector<16x128xf32>
    %534 = tpu.matmul %531, %533, %cst_279 {dimension_numbers = #tpu.dot_dimension_numbers<[1], [0], [0], [1], [0, 0, 1, 1], [], []>} : vector<16x128xbf16>, vector<128x128xbf16>, vector<16x128xf32> -> vector<16x128xf32>
    %c5_280 = arith.constant 5 : index
    %c0_281 = arith.constant 0 : index
    %c0_282 = arith.constant 0 : index
    %535 = vector.load %arg6[%c5_280, %c0_281, %c0_282] : memref<12x1x128xf32, #tpu.memory_space<vmem>>, vector<1x1x128xf32>
    %536 = vector.shape_cast %535 : vector<1x1x128xf32> to vector<1x128xf32>
    %537 = vector.broadcast %536 : vector<1x128xf32> to vector<16x128xf32>
    %538 = arith.addf %534, %537 : vector<16x128xf32>
    %539 = vector.extract_strided_slice %56 {offsets = [0, 5], sizes = [16, 1], strides = [1, 1]} : vector<16x128xf32> to vector<16x1xf32>
    %540 = vector.broadcast %539 : vector<16x1xf32> to vector<16x128xf32>
    %541 = arith.mulf %540, %538 : vector<16x128xf32>
    %542 = arith.addf %458, %541 : vector<16x128xf32>
    %543 = vector.extract_strided_slice %39 {offsets = [0, 5], sizes = [16, 1], strides = [1, 1]} : vector<16x128xf32> to vector<16x1xf32>
    %c5_283 = arith.constant 5 : index
    %c0_284 = arith.constant 0 : index
    %c0_285 = arith.constant 0 : index
    %544 = vector.load %arg7[%c5_283, %c0_284, %c0_285] : memref<12x1x128xf32, #tpu.memory_space<vmem>>, vector<1x1x128xf32>
    %545 = vector.shape_cast %544 : vector<1x1x128xf32> to vector<1x128xf32>
    %546 = vector.broadcast %545 : vector<1x128xf32> to vector<16x128xf32>
    %547 = arith.mulf %538, %546 : vector<16x128xf32>
    %cst_286 = arith.constant dense<0.000000e+00> : vector<16xf32>
    %548 = vector.multi_reduction <add>, %547, %cst_286 [1] : vector<16x128xf32> to vector<16xf32>
    %549 = vector.shape_cast %548 : vector<16xf32> to vector<16x1xf32>
    %c5_287 = arith.constant 5 : index
    %c0_288 = arith.constant 0 : index
    %c0_289 = arith.constant 0 : index
    %550 = vector.load %arg8[%c5_287, %c0_288, %c0_289] : memref<12x1x1xf32, #tpu.memory_space<vmem>>, vector<1x1x1xf32>
    %551 = vector.shape_cast %550 : vector<1x1x1xf32> to vector<1x1xf32>
    %552 = vector.broadcast %551 : vector<1x1xf32> to vector<16x1xf32>
    %553 = arith.addf %549, %552 : vector<16x1xf32>
    %554 = arith.negf %553 : vector<16x1xf32>
    %555 = math.exp %554 : vector<16x1xf32>
    %cst_290 = arith.constant 1.000000e+00 : f32
    %556 = vector.broadcast %cst_290 : f32 to vector<16x1xf32>
    %557 = arith.addf %556, %555 : vector<16x1xf32>
    %558 = arith.divf %556, %557 : vector<16x1xf32>
    %559 = arith.mulf %558, %543 : vector<16x1xf32>
    %cst_291 = arith.constant dense<0.000000e+00> : vector<16xf32>
    %560 = vector.multi_reduction <add>, %559, %cst_291 [1] : vector<16x1xf32> to vector<16xf32>
    %561 = vector.shape_cast %560 : vector<16xf32> to vector<16x1xf32>
    %cst_292 = arith.constant dense<0.000000e+00> : vector<1xf32>
    %562 = vector.multi_reduction <add>, %561, %cst_292 [0] : vector<16x1xf32> to vector<1xf32>
    %563 = vector.shape_cast %562 : vector<1xf32> to vector<1x1xf32>
    %564 = arith.addf %480, %563 : vector<1x1xf32>
    %c5_293 = arith.constant 5 : index
    %c0_294 = arith.constant 0 : index
    %c0_295 = arith.constant 0 : index
    %565 = vector.load %arg9[%c5_293, %c0_294, %c0_295] : memref<12x128x8xf32, #tpu.memory_space<vmem>>, vector<1x128x8xf32>
    %566 = vector.shape_cast %565 : vector<1x128x8xf32> to vector<128x8xf32>
    %cst_296 = arith.constant dense<0.000000e+00> : vector<16x8xf32>
    %567 = tpu.matmul %538, %566, %cst_296 {dimension_numbers = #tpu.dot_dimension_numbers<[1], [0], [0], [1], [0, 0, 1, 1], [], []>} : vector<16x128xf32>, vector<128x8xf32>, vector<16x8xf32> -> vector<16x8xf32>
    %c5_297 = arith.constant 5 : index
    %c0_298 = arith.constant 0 : index
    %c0_299 = arith.constant 0 : index
    %568 = vector.load %arg10[%c5_297, %c0_298, %c0_299] : memref<12x1x8xf32, #tpu.memory_space<vmem>>, vector<1x1x8xf32>
    %569 = vector.shape_cast %568 : vector<1x1x8xf32> to vector<1x8xf32>
    %570 = vector.broadcast %569 : vector<1x8xf32> to vector<16x8xf32>
    %571 = arith.addf %567, %570 : vector<16x8xf32>
    %cst_300 = arith.constant 0.000000e+00 : f32
    %572 = vector.broadcast %cst_300 : f32 to vector<16x8xf32>
    %573 = arith.maximumf %571, %572 : vector<16x8xf32>
    %c5_301 = arith.constant 5 : index
    %c0_302 = arith.constant 0 : index
    %c0_303 = arith.constant 0 : index
    %574 = vector.load %arg11[%c5_301, %c0_302, %c0_303] : memref<12x1x8xf32, #tpu.memory_space<vmem>>, vector<1x1x8xf32>
    %575 = vector.shape_cast %574 : vector<1x1x8xf32> to vector<1x8xf32>
    %576 = vector.broadcast %575 : vector<1x8xf32> to vector<16x8xf32>
    %577 = arith.mulf %573, %576 : vector<16x8xf32>
    %cst_304 = arith.constant dense<0.000000e+00> : vector<16xf32>
    %578 = vector.multi_reduction <add>, %577, %cst_304 [1] : vector<16x8xf32> to vector<16xf32>
    %579 = vector.shape_cast %578 : vector<16xf32> to vector<16x1xf32>
    %c5_305 = arith.constant 5 : index
    %c0_306 = arith.constant 0 : index
    %c0_307 = arith.constant 0 : index
    %580 = vector.load %arg12[%c5_305, %c0_306, %c0_307] : memref<12x1x1xf32, #tpu.memory_space<vmem>>, vector<1x1x1xf32>
    %581 = vector.shape_cast %580 : vector<1x1x1xf32> to vector<1x1xf32>
    %582 = vector.broadcast %581 : vector<1x1xf32> to vector<16x1xf32>
    %583 = arith.addf %579, %582 : vector<16x1xf32>
    %584 = arith.negf %583 : vector<16x1xf32>
    %585 = math.exp %584 : vector<16x1xf32>
    %cst_308 = arith.constant 1.000000e+00 : f32
    %586 = vector.broadcast %cst_308 : f32 to vector<16x1xf32>
    %587 = arith.addf %586, %585 : vector<16x1xf32>
    %588 = arith.divf %586, %587 : vector<16x1xf32>
    %589 = arith.mulf %588, %543 : vector<16x1xf32>
    %cst_309 = arith.constant dense<0.000000e+00> : vector<16xf32>
    %590 = vector.multi_reduction <add>, %589, %cst_309 [1] : vector<16x1xf32> to vector<16xf32>
    %591 = vector.shape_cast %590 : vector<16xf32> to vector<16x1xf32>
    %cst_310 = arith.constant dense<0.000000e+00> : vector<1xf32>
    %592 = vector.multi_reduction <add>, %591, %cst_310 [0] : vector<16x1xf32> to vector<1xf32>
    %593 = vector.shape_cast %592 : vector<1xf32> to vector<1x1xf32>
    %594 = arith.addf %510, %593 : vector<1x1xf32>
    %c6 = arith.constant 6 : index
    %c0_311 = arith.constant 0 : index
    %c0_312 = arith.constant 0 : index
    %595 = vector.load %arg3[%c6, %c0_311, %c0_312] : memref<12x128x128xbf16, #tpu.memory_space<vmem>>, vector<1x128x128xbf16>
    %596 = vector.shape_cast %595 : vector<1x128x128xbf16> to vector<128x128xbf16>
    %cst_313 = arith.constant dense<0.000000e+00> : vector<16x128xf32>
    %597 = tpu.matmul %0, %596, %cst_313 {dimension_numbers = #tpu.dot_dimension_numbers<[1], [0], [0], [1], [0, 0, 1, 1], [], []>} : vector<16x128xbf16>, vector<128x128xbf16>, vector<16x128xf32> -> vector<16x128xf32>
    %c6_314 = arith.constant 6 : index
    %c0_315 = arith.constant 0 : index
    %c0_316 = arith.constant 0 : index
    %598 = vector.load %arg4[%c6_314, %c0_315, %c0_316] : memref<12x1x128xf32, #tpu.memory_space<vmem>>, vector<1x1x128xf32>
    %599 = vector.shape_cast %598 : vector<1x1x128xf32> to vector<1x128xf32>
    %600 = vector.broadcast %599 : vector<1x128xf32> to vector<16x128xf32>
    %601 = arith.addf %597, %600 : vector<16x128xf32>
    %602 = arith.mulf %601, %601 : vector<16x128xf32>
    %603 = arith.mulf %601, %602 : vector<16x128xf32>
    %cst_317 = arith.constant 4.471500e-02 : f32
    %604 = vector.broadcast %cst_317 : f32 to vector<16x128xf32>
    %605 = arith.mulf %604, %603 : vector<16x128xf32>
    %606 = arith.addf %601, %605 : vector<16x128xf32>
    %cst_318 = arith.constant 0.797884583 : f32
    %607 = vector.broadcast %cst_318 : f32 to vector<16x128xf32>
    %608 = arith.mulf %607, %606 : vector<16x128xf32>
    %609 = math.tanh %608 : vector<16x128xf32>
    %cst_319 = arith.constant 1.000000e+00 : f32
    %610 = vector.broadcast %cst_319 : f32 to vector<16x128xf32>
    %611 = arith.addf %610, %609 : vector<16x128xf32>
    %cst_320 = arith.constant 5.000000e-01 : f32
    %612 = vector.broadcast %cst_320 : f32 to vector<16x128xf32>
    %613 = arith.mulf %612, %611 : vector<16x128xf32>
    %614 = arith.mulf %601, %613 : vector<16x128xf32>
    %615 = arith.truncf %614 : vector<16x128xf32> to vector<16x128xbf16>
    %c6_321 = arith.constant 6 : index
    %c0_322 = arith.constant 0 : index
    %c0_323 = arith.constant 0 : index
    %616 = vector.load %arg5[%c6_321, %c0_322, %c0_323] : memref<12x128x128xbf16, #tpu.memory_space<vmem>>, vector<1x128x128xbf16>
    %617 = vector.shape_cast %616 : vector<1x128x128xbf16> to vector<128x128xbf16>
    %cst_324 = arith.constant dense<0.000000e+00> : vector<16x128xf32>
    %618 = tpu.matmul %615, %617, %cst_324 {dimension_numbers = #tpu.dot_dimension_numbers<[1], [0], [0], [1], [0, 0, 1, 1], [], []>} : vector<16x128xbf16>, vector<128x128xbf16>, vector<16x128xf32> -> vector<16x128xf32>
    %c6_325 = arith.constant 6 : index
    %c0_326 = arith.constant 0 : index
    %c0_327 = arith.constant 0 : index
    %619 = vector.load %arg6[%c6_325, %c0_326, %c0_327] : memref<12x1x128xf32, #tpu.memory_space<vmem>>, vector<1x1x128xf32>
    %620 = vector.shape_cast %619 : vector<1x1x128xf32> to vector<1x128xf32>
    %621 = vector.broadcast %620 : vector<1x128xf32> to vector<16x128xf32>
    %622 = arith.addf %618, %621 : vector<16x128xf32>
    %623 = vector.extract_strided_slice %56 {offsets = [0, 6], sizes = [16, 1], strides = [1, 1]} : vector<16x128xf32> to vector<16x1xf32>
    %624 = vector.broadcast %623 : vector<16x1xf32> to vector<16x128xf32>
    %625 = arith.mulf %624, %622 : vector<16x128xf32>
    %626 = arith.addf %542, %625 : vector<16x128xf32>
    %627 = vector.extract_strided_slice %39 {offsets = [0, 6], sizes = [16, 1], strides = [1, 1]} : vector<16x128xf32> to vector<16x1xf32>
    %c6_328 = arith.constant 6 : index
    %c0_329 = arith.constant 0 : index
    %c0_330 = arith.constant 0 : index
    %628 = vector.load %arg7[%c6_328, %c0_329, %c0_330] : memref<12x1x128xf32, #tpu.memory_space<vmem>>, vector<1x1x128xf32>
    %629 = vector.shape_cast %628 : vector<1x1x128xf32> to vector<1x128xf32>
    %630 = vector.broadcast %629 : vector<1x128xf32> to vector<16x128xf32>
    %631 = arith.mulf %622, %630 : vector<16x128xf32>
    %cst_331 = arith.constant dense<0.000000e+00> : vector<16xf32>
    %632 = vector.multi_reduction <add>, %631, %cst_331 [1] : vector<16x128xf32> to vector<16xf32>
    %633 = vector.shape_cast %632 : vector<16xf32> to vector<16x1xf32>
    %c6_332 = arith.constant 6 : index
    %c0_333 = arith.constant 0 : index
    %c0_334 = arith.constant 0 : index
    %634 = vector.load %arg8[%c6_332, %c0_333, %c0_334] : memref<12x1x1xf32, #tpu.memory_space<vmem>>, vector<1x1x1xf32>
    %635 = vector.shape_cast %634 : vector<1x1x1xf32> to vector<1x1xf32>
    %636 = vector.broadcast %635 : vector<1x1xf32> to vector<16x1xf32>
    %637 = arith.addf %633, %636 : vector<16x1xf32>
    %638 = arith.negf %637 : vector<16x1xf32>
    %639 = math.exp %638 : vector<16x1xf32>
    %cst_335 = arith.constant 1.000000e+00 : f32
    %640 = vector.broadcast %cst_335 : f32 to vector<16x1xf32>
    %641 = arith.addf %640, %639 : vector<16x1xf32>
    %642 = arith.divf %640, %641 : vector<16x1xf32>
    %643 = arith.mulf %642, %627 : vector<16x1xf32>
    %cst_336 = arith.constant dense<0.000000e+00> : vector<16xf32>
    %644 = vector.multi_reduction <add>, %643, %cst_336 [1] : vector<16x1xf32> to vector<16xf32>
    %645 = vector.shape_cast %644 : vector<16xf32> to vector<16x1xf32>
    %cst_337 = arith.constant dense<0.000000e+00> : vector<1xf32>
    %646 = vector.multi_reduction <add>, %645, %cst_337 [0] : vector<16x1xf32> to vector<1xf32>
    %647 = vector.shape_cast %646 : vector<1xf32> to vector<1x1xf32>
    %648 = arith.addf %564, %647 : vector<1x1xf32>
    %c6_338 = arith.constant 6 : index
    %c0_339 = arith.constant 0 : index
    %c0_340 = arith.constant 0 : index
    %649 = vector.load %arg9[%c6_338, %c0_339, %c0_340] : memref<12x128x8xf32, #tpu.memory_space<vmem>>, vector<1x128x8xf32>
    %650 = vector.shape_cast %649 : vector<1x128x8xf32> to vector<128x8xf32>
    %cst_341 = arith.constant dense<0.000000e+00> : vector<16x8xf32>
    %651 = tpu.matmul %622, %650, %cst_341 {dimension_numbers = #tpu.dot_dimension_numbers<[1], [0], [0], [1], [0, 0, 1, 1], [], []>} : vector<16x128xf32>, vector<128x8xf32>, vector<16x8xf32> -> vector<16x8xf32>
    %c6_342 = arith.constant 6 : index
    %c0_343 = arith.constant 0 : index
    %c0_344 = arith.constant 0 : index
    %652 = vector.load %arg10[%c6_342, %c0_343, %c0_344] : memref<12x1x8xf32, #tpu.memory_space<vmem>>, vector<1x1x8xf32>
    %653 = vector.shape_cast %652 : vector<1x1x8xf32> to vector<1x8xf32>
    %654 = vector.broadcast %653 : vector<1x8xf32> to vector<16x8xf32>
    %655 = arith.addf %651, %654 : vector<16x8xf32>
    %cst_345 = arith.constant 0.000000e+00 : f32
    %656 = vector.broadcast %cst_345 : f32 to vector<16x8xf32>
    %657 = arith.maximumf %655, %656 : vector<16x8xf32>
    %c6_346 = arith.constant 6 : index
    %c0_347 = arith.constant 0 : index
    %c0_348 = arith.constant 0 : index
    %658 = vector.load %arg11[%c6_346, %c0_347, %c0_348] : memref<12x1x8xf32, #tpu.memory_space<vmem>>, vector<1x1x8xf32>
    %659 = vector.shape_cast %658 : vector<1x1x8xf32> to vector<1x8xf32>
    %660 = vector.broadcast %659 : vector<1x8xf32> to vector<16x8xf32>
    %661 = arith.mulf %657, %660 : vector<16x8xf32>
    %cst_349 = arith.constant dense<0.000000e+00> : vector<16xf32>
    %662 = vector.multi_reduction <add>, %661, %cst_349 [1] : vector<16x8xf32> to vector<16xf32>
    %663 = vector.shape_cast %662 : vector<16xf32> to vector<16x1xf32>
    %c6_350 = arith.constant 6 : index
    %c0_351 = arith.constant 0 : index
    %c0_352 = arith.constant 0 : index
    %664 = vector.load %arg12[%c6_350, %c0_351, %c0_352] : memref<12x1x1xf32, #tpu.memory_space<vmem>>, vector<1x1x1xf32>
    %665 = vector.shape_cast %664 : vector<1x1x1xf32> to vector<1x1xf32>
    %666 = vector.broadcast %665 : vector<1x1xf32> to vector<16x1xf32>
    %667 = arith.addf %663, %666 : vector<16x1xf32>
    %668 = arith.negf %667 : vector<16x1xf32>
    %669 = math.exp %668 : vector<16x1xf32>
    %cst_353 = arith.constant 1.000000e+00 : f32
    %670 = vector.broadcast %cst_353 : f32 to vector<16x1xf32>
    %671 = arith.addf %670, %669 : vector<16x1xf32>
    %672 = arith.divf %670, %671 : vector<16x1xf32>
    %673 = arith.mulf %672, %627 : vector<16x1xf32>
    %cst_354 = arith.constant dense<0.000000e+00> : vector<16xf32>
    %674 = vector.multi_reduction <add>, %673, %cst_354 [1] : vector<16x1xf32> to vector<16xf32>
    %675 = vector.shape_cast %674 : vector<16xf32> to vector<16x1xf32>
    %cst_355 = arith.constant dense<0.000000e+00> : vector<1xf32>
    %676 = vector.multi_reduction <add>, %675, %cst_355 [0] : vector<16x1xf32> to vector<1xf32>
    %677 = vector.shape_cast %676 : vector<1xf32> to vector<1x1xf32>
    %678 = arith.addf %594, %677 : vector<1x1xf32>
    %c7 = arith.constant 7 : index
    %c0_356 = arith.constant 0 : index
    %c0_357 = arith.constant 0 : index
    %679 = vector.load %arg3[%c7, %c0_356, %c0_357] : memref<12x128x128xbf16, #tpu.memory_space<vmem>>, vector<1x128x128xbf16>
    %680 = vector.shape_cast %679 : vector<1x128x128xbf16> to vector<128x128xbf16>
    %cst_358 = arith.constant dense<0.000000e+00> : vector<16x128xf32>
    %681 = tpu.matmul %0, %680, %cst_358 {dimension_numbers = #tpu.dot_dimension_numbers<[1], [0], [0], [1], [0, 0, 1, 1], [], []>} : vector<16x128xbf16>, vector<128x128xbf16>, vector<16x128xf32> -> vector<16x128xf32>
    %c7_359 = arith.constant 7 : index
    %c0_360 = arith.constant 0 : index
    %c0_361 = arith.constant 0 : index
    %682 = vector.load %arg4[%c7_359, %c0_360, %c0_361] : memref<12x1x128xf32, #tpu.memory_space<vmem>>, vector<1x1x128xf32>
    %683 = vector.shape_cast %682 : vector<1x1x128xf32> to vector<1x128xf32>
    %684 = vector.broadcast %683 : vector<1x128xf32> to vector<16x128xf32>
    %685 = arith.addf %681, %684 : vector<16x128xf32>
    %686 = arith.mulf %685, %685 : vector<16x128xf32>
    %687 = arith.mulf %685, %686 : vector<16x128xf32>
    %cst_362 = arith.constant 4.471500e-02 : f32
    %688 = vector.broadcast %cst_362 : f32 to vector<16x128xf32>
    %689 = arith.mulf %688, %687 : vector<16x128xf32>
    %690 = arith.addf %685, %689 : vector<16x128xf32>
    %cst_363 = arith.constant 0.797884583 : f32
    %691 = vector.broadcast %cst_363 : f32 to vector<16x128xf32>
    %692 = arith.mulf %691, %690 : vector<16x128xf32>
    %693 = math.tanh %692 : vector<16x128xf32>
    %cst_364 = arith.constant 1.000000e+00 : f32
    %694 = vector.broadcast %cst_364 : f32 to vector<16x128xf32>
    %695 = arith.addf %694, %693 : vector<16x128xf32>
    %cst_365 = arith.constant 5.000000e-01 : f32
    %696 = vector.broadcast %cst_365 : f32 to vector<16x128xf32>
    %697 = arith.mulf %696, %695 : vector<16x128xf32>
    %698 = arith.mulf %685, %697 : vector<16x128xf32>
    %699 = arith.truncf %698 : vector<16x128xf32> to vector<16x128xbf16>
    %c7_366 = arith.constant 7 : index
    %c0_367 = arith.constant 0 : index
    %c0_368 = arith.constant 0 : index
    %700 = vector.load %arg5[%c7_366, %c0_367, %c0_368] : memref<12x128x128xbf16, #tpu.memory_space<vmem>>, vector<1x128x128xbf16>
    %701 = vector.shape_cast %700 : vector<1x128x128xbf16> to vector<128x128xbf16>
    %cst_369 = arith.constant dense<0.000000e+00> : vector<16x128xf32>
    %702 = tpu.matmul %699, %701, %cst_369 {dimension_numbers = #tpu.dot_dimension_numbers<[1], [0], [0], [1], [0, 0, 1, 1], [], []>} : vector<16x128xbf16>, vector<128x128xbf16>, vector<16x128xf32> -> vector<16x128xf32>
    %c7_370 = arith.constant 7 : index
    %c0_371 = arith.constant 0 : index
    %c0_372 = arith.constant 0 : index
    %703 = vector.load %arg6[%c7_370, %c0_371, %c0_372] : memref<12x1x128xf32, #tpu.memory_space<vmem>>, vector<1x1x128xf32>
    %704 = vector.shape_cast %703 : vector<1x1x128xf32> to vector<1x128xf32>
    %705 = vector.broadcast %704 : vector<1x128xf32> to vector<16x128xf32>
    %706 = arith.addf %702, %705 : vector<16x128xf32>
    %707 = vector.extract_strided_slice %56 {offsets = [0, 7], sizes = [16, 1], strides = [1, 1]} : vector<16x128xf32> to vector<16x1xf32>
    %708 = vector.broadcast %707 : vector<16x1xf32> to vector<16x128xf32>
    %709 = arith.mulf %708, %706 : vector<16x128xf32>
    %710 = arith.addf %626, %709 : vector<16x128xf32>
    %711 = vector.extract_strided_slice %39 {offsets = [0, 7], sizes = [16, 1], strides = [1, 1]} : vector<16x128xf32> to vector<16x1xf32>
    %c7_373 = arith.constant 7 : index
    %c0_374 = arith.constant 0 : index
    %c0_375 = arith.constant 0 : index
    %712 = vector.load %arg7[%c7_373, %c0_374, %c0_375] : memref<12x1x128xf32, #tpu.memory_space<vmem>>, vector<1x1x128xf32>
    %713 = vector.shape_cast %712 : vector<1x1x128xf32> to vector<1x128xf32>
    %714 = vector.broadcast %713 : vector<1x128xf32> to vector<16x128xf32>
    %715 = arith.mulf %706, %714 : vector<16x128xf32>
    %cst_376 = arith.constant dense<0.000000e+00> : vector<16xf32>
    %716 = vector.multi_reduction <add>, %715, %cst_376 [1] : vector<16x128xf32> to vector<16xf32>
    %717 = vector.shape_cast %716 : vector<16xf32> to vector<16x1xf32>
    %c7_377 = arith.constant 7 : index
    %c0_378 = arith.constant 0 : index
    %c0_379 = arith.constant 0 : index
    %718 = vector.load %arg8[%c7_377, %c0_378, %c0_379] : memref<12x1x1xf32, #tpu.memory_space<vmem>>, vector<1x1x1xf32>
    %719 = vector.shape_cast %718 : vector<1x1x1xf32> to vector<1x1xf32>
    %720 = vector.broadcast %719 : vector<1x1xf32> to vector<16x1xf32>
    %721 = arith.addf %717, %720 : vector<16x1xf32>
    %722 = arith.negf %721 : vector<16x1xf32>
    %723 = math.exp %722 : vector<16x1xf32>
    %cst_380 = arith.constant 1.000000e+00 : f32
    %724 = vector.broadcast %cst_380 : f32 to vector<16x1xf32>
    %725 = arith.addf %724, %723 : vector<16x1xf32>
    %726 = arith.divf %724, %725 : vector<16x1xf32>
    %727 = arith.mulf %726, %711 : vector<16x1xf32>
    %cst_381 = arith.constant dense<0.000000e+00> : vector<16xf32>
    %728 = vector.multi_reduction <add>, %727, %cst_381 [1] : vector<16x1xf32> to vector<16xf32>
    %729 = vector.shape_cast %728 : vector<16xf32> to vector<16x1xf32>
    %cst_382 = arith.constant dense<0.000000e+00> : vector<1xf32>
    %730 = vector.multi_reduction <add>, %729, %cst_382 [0] : vector<16x1xf32> to vector<1xf32>
    %731 = vector.shape_cast %730 : vector<1xf32> to vector<1x1xf32>
    %732 = arith.addf %648, %731 : vector<1x1xf32>
    %c7_383 = arith.constant 7 : index
    %c0_384 = arith.constant 0 : index
    %c0_385 = arith.constant 0 : index
    %733 = vector.load %arg9[%c7_383, %c0_384, %c0_385] : memref<12x128x8xf32, #tpu.memory_space<vmem>>, vector<1x128x8xf32>
    %734 = vector.shape_cast %733 : vector<1x128x8xf32> to vector<128x8xf32>
    %cst_386 = arith.constant dense<0.000000e+00> : vector<16x8xf32>
    %735 = tpu.matmul %706, %734, %cst_386 {dimension_numbers = #tpu.dot_dimension_numbers<[1], [0], [0], [1], [0, 0, 1, 1], [], []>} : vector<16x128xf32>, vector<128x8xf32>, vector<16x8xf32> -> vector<16x8xf32>
    %c7_387 = arith.constant 7 : index
    %c0_388 = arith.constant 0 : index
    %c0_389 = arith.constant 0 : index
    %736 = vector.load %arg10[%c7_387, %c0_388, %c0_389] : memref<12x1x8xf32, #tpu.memory_space<vmem>>, vector<1x1x8xf32>
    %737 = vector.shape_cast %736 : vector<1x1x8xf32> to vector<1x8xf32>
    %738 = vector.broadcast %737 : vector<1x8xf32> to vector<16x8xf32>
    %739 = arith.addf %735, %738 : vector<16x8xf32>
    %cst_390 = arith.constant 0.000000e+00 : f32
    %740 = vector.broadcast %cst_390 : f32 to vector<16x8xf32>
    %741 = arith.maximumf %739, %740 : vector<16x8xf32>
    %c7_391 = arith.constant 7 : index
    %c0_392 = arith.constant 0 : index
    %c0_393 = arith.constant 0 : index
    %742 = vector.load %arg11[%c7_391, %c0_392, %c0_393] : memref<12x1x8xf32, #tpu.memory_space<vmem>>, vector<1x1x8xf32>
    %743 = vector.shape_cast %742 : vector<1x1x8xf32> to vector<1x8xf32>
    %744 = vector.broadcast %743 : vector<1x8xf32> to vector<16x8xf32>
    %745 = arith.mulf %741, %744 : vector<16x8xf32>
    %cst_394 = arith.constant dense<0.000000e+00> : vector<16xf32>
    %746 = vector.multi_reduction <add>, %745, %cst_394 [1] : vector<16x8xf32> to vector<16xf32>
    %747 = vector.shape_cast %746 : vector<16xf32> to vector<16x1xf32>
    %c7_395 = arith.constant 7 : index
    %c0_396 = arith.constant 0 : index
    %c0_397 = arith.constant 0 : index
    %748 = vector.load %arg12[%c7_395, %c0_396, %c0_397] : memref<12x1x1xf32, #tpu.memory_space<vmem>>, vector<1x1x1xf32>
    %749 = vector.shape_cast %748 : vector<1x1x1xf32> to vector<1x1xf32>
    %750 = vector.broadcast %749 : vector<1x1xf32> to vector<16x1xf32>
    %751 = arith.addf %747, %750 : vector<16x1xf32>
    %752 = arith.negf %751 : vector<16x1xf32>
    %753 = math.exp %752 : vector<16x1xf32>
    %cst_398 = arith.constant 1.000000e+00 : f32
    %754 = vector.broadcast %cst_398 : f32 to vector<16x1xf32>
    %755 = arith.addf %754, %753 : vector<16x1xf32>
    %756 = arith.divf %754, %755 : vector<16x1xf32>
    %757 = arith.mulf %756, %711 : vector<16x1xf32>
    %cst_399 = arith.constant dense<0.000000e+00> : vector<16xf32>
    %758 = vector.multi_reduction <add>, %757, %cst_399 [1] : vector<16x1xf32> to vector<16xf32>
    %759 = vector.shape_cast %758 : vector<16xf32> to vector<16x1xf32>
    %cst_400 = arith.constant dense<0.000000e+00> : vector<1xf32>
    %760 = vector.multi_reduction <add>, %759, %cst_400 [0] : vector<16x1xf32> to vector<1xf32>
    %761 = vector.shape_cast %760 : vector<1xf32> to vector<1x1xf32>
    %762 = arith.addf %678, %761 : vector<1x1xf32>
    %c0_401 = arith.constant 0 : index
    %c0_402 = arith.constant 0 : index
    %763 = vector.load %arg13[%c0_401, %c0_402] : memref<128x16xf32, #tpu.memory_space<vmem>>, vector<128x16xf32>
    %cst_403 = arith.constant dense<0.000000e+00> : vector<16x16xf32>
    %764 = tpu.matmul %706, %763, %cst_403 {dimension_numbers = #tpu.dot_dimension_numbers<[1], [0], [0], [1], [0, 0, 1, 1], [], []>} : vector<16x128xf32>, vector<128x16xf32>, vector<16x16xf32> -> vector<16x16xf32>
    %c0_404 = arith.constant 0 : index
    %c0_405 = arith.constant 0 : index
    %765 = vector.load %arg14[%c0_404, %c0_405] : memref<1x16xf32, #tpu.memory_space<vmem>>, vector<1x16xf32>
    %766 = vector.broadcast %765 : vector<1x16xf32> to vector<16x16xf32>
    %767 = arith.addf %764, %766 : vector<16x16xf32>
    %cst_406 = arith.constant 0.000000e+00 : f32
    %768 = vector.broadcast %cst_406 : f32 to vector<16x16xf32>
    %769 = arith.maximumf %767, %768 : vector<16x16xf32>
    %c0_407 = arith.constant 0 : index
    %c0_408 = arith.constant 0 : index
    %770 = vector.load %arg15[%c0_407, %c0_408] : memref<16x8xf32, #tpu.memory_space<vmem>>, vector<16x8xf32>
    %cst_409 = arith.constant dense<0.000000e+00> : vector<16x8xf32>
    %771 = tpu.matmul %769, %770, %cst_409 {dimension_numbers = #tpu.dot_dimension_numbers<[1], [0], [0], [1], [0, 0, 1, 1], [], []>} : vector<16x16xf32>, vector<16x8xf32>, vector<16x8xf32> -> vector<16x8xf32>
    %c0_410 = arith.constant 0 : index
    %c0_411 = arith.constant 0 : index
    %772 = vector.load %arg16[%c0_410, %c0_411] : memref<1x8xf32, #tpu.memory_space<vmem>>, vector<1x8xf32>
    %773 = vector.broadcast %772 : vector<1x8xf32> to vector<16x8xf32>
    %774 = arith.addf %771, %773 : vector<16x8xf32>
    %cst_412 = arith.constant 0.000000e+00 : f32
    %775 = vector.broadcast %cst_412 : f32 to vector<16x8xf32>
    %776 = arith.maximumf %774, %775 : vector<16x8xf32>
    %c0_413 = arith.constant 0 : index
    %c0_414 = arith.constant 0 : index
    %777 = vector.load %arg17[%c0_413, %c0_414] : memref<1x8xf32, #tpu.memory_space<vmem>>, vector<1x8xf32>
    %778 = vector.broadcast %777 : vector<1x8xf32> to vector<16x8xf32>
    %779 = arith.mulf %776, %778 : vector<16x8xf32>
    %cst_415 = arith.constant dense<0.000000e+00> : vector<16xf32>
    %780 = vector.multi_reduction <add>, %779, %cst_415 [1] : vector<16x8xf32> to vector<16xf32>
    %781 = vector.shape_cast %780 : vector<16xf32> to vector<16x1xf32>
    %c0_416 = arith.constant 0 : index
    %c0_417 = arith.constant 0 : index
    %782 = vector.load %arg18[%c0_416, %c0_417] : memref<1x1xf32, #tpu.memory_space<vmem>>, vector<1x1xf32>
    %783 = vector.broadcast %782 : vector<1x1xf32> to vector<16x1xf32>
    %784 = arith.addf %781, %783 : vector<16x1xf32>
    %785 = arith.negf %784 : vector<16x1xf32>
    %786 = math.exp %785 : vector<16x1xf32>
    %cst_418 = arith.constant 1.000000e+00 : f32
    %787 = vector.broadcast %cst_418 : f32 to vector<16x1xf32>
    %788 = arith.addf %787, %786 : vector<16x1xf32>
    %789 = arith.divf %787, %788 : vector<16x1xf32>
    %790 = arith.mulf %789, %711 : vector<16x1xf32>
    %cst_419 = arith.constant dense<0.000000e+00> : vector<16xf32>
    %791 = vector.multi_reduction <add>, %790, %cst_419 [1] : vector<16x1xf32> to vector<16xf32>
    %792 = vector.shape_cast %791 : vector<16xf32> to vector<16x1xf32>
    %cst_420 = arith.constant dense<0.000000e+00> : vector<1xf32>
    %793 = vector.multi_reduction <add>, %792, %cst_420 [0] : vector<16x1xf32> to vector<1xf32>
    %794 = vector.shape_cast %793 : vector<1xf32> to vector<1x1xf32>
    %795 = arith.addf %60, %794 : vector<1x1xf32>
    %c8 = arith.constant 8 : index
    %c0_421 = arith.constant 0 : index
    %c0_422 = arith.constant 0 : index
    %796 = vector.load %arg3[%c8, %c0_421, %c0_422] : memref<12x128x128xbf16, #tpu.memory_space<vmem>>, vector<1x128x128xbf16>
    %797 = vector.shape_cast %796 : vector<1x128x128xbf16> to vector<128x128xbf16>
    %cst_423 = arith.constant dense<0.000000e+00> : vector<16x128xf32>
    %798 = tpu.matmul %0, %797, %cst_423 {dimension_numbers = #tpu.dot_dimension_numbers<[1], [0], [0], [1], [0, 0, 1, 1], [], []>} : vector<16x128xbf16>, vector<128x128xbf16>, vector<16x128xf32> -> vector<16x128xf32>
    %c8_424 = arith.constant 8 : index
    %c0_425 = arith.constant 0 : index
    %c0_426 = arith.constant 0 : index
    %799 = vector.load %arg4[%c8_424, %c0_425, %c0_426] : memref<12x1x128xf32, #tpu.memory_space<vmem>>, vector<1x1x128xf32>
    %800 = vector.shape_cast %799 : vector<1x1x128xf32> to vector<1x128xf32>
    %801 = vector.broadcast %800 : vector<1x128xf32> to vector<16x128xf32>
    %802 = arith.addf %798, %801 : vector<16x128xf32>
    %803 = arith.mulf %802, %802 : vector<16x128xf32>
    %804 = arith.mulf %802, %803 : vector<16x128xf32>
    %cst_427 = arith.constant 4.471500e-02 : f32
    %805 = vector.broadcast %cst_427 : f32 to vector<16x128xf32>
    %806 = arith.mulf %805, %804 : vector<16x128xf32>
    %807 = arith.addf %802, %806 : vector<16x128xf32>
    %cst_428 = arith.constant 0.797884583 : f32
    %808 = vector.broadcast %cst_428 : f32 to vector<16x128xf32>
    %809 = arith.mulf %808, %807 : vector<16x128xf32>
    %810 = math.tanh %809 : vector<16x128xf32>
    %cst_429 = arith.constant 1.000000e+00 : f32
    %811 = vector.broadcast %cst_429 : f32 to vector<16x128xf32>
    %812 = arith.addf %811, %810 : vector<16x128xf32>
    %cst_430 = arith.constant 5.000000e-01 : f32
    %813 = vector.broadcast %cst_430 : f32 to vector<16x128xf32>
    %814 = arith.mulf %813, %812 : vector<16x128xf32>
    %815 = arith.mulf %802, %814 : vector<16x128xf32>
    %816 = arith.truncf %815 : vector<16x128xf32> to vector<16x128xbf16>
    %c8_431 = arith.constant 8 : index
    %c0_432 = arith.constant 0 : index
    %c0_433 = arith.constant 0 : index
    %817 = vector.load %arg5[%c8_431, %c0_432, %c0_433] : memref<12x128x128xbf16, #tpu.memory_space<vmem>>, vector<1x128x128xbf16>
    %818 = vector.shape_cast %817 : vector<1x128x128xbf16> to vector<128x128xbf16>
    %cst_434 = arith.constant dense<0.000000e+00> : vector<16x128xf32>
    %819 = tpu.matmul %816, %818, %cst_434 {dimension_numbers = #tpu.dot_dimension_numbers<[1], [0], [0], [1], [0, 0, 1, 1], [], []>} : vector<16x128xbf16>, vector<128x128xbf16>, vector<16x128xf32> -> vector<16x128xf32>
    %c8_435 = arith.constant 8 : index
    %c0_436 = arith.constant 0 : index
    %c0_437 = arith.constant 0 : index
    %820 = vector.load %arg6[%c8_435, %c0_436, %c0_437] : memref<12x1x128xf32, #tpu.memory_space<vmem>>, vector<1x1x128xf32>
    %821 = vector.shape_cast %820 : vector<1x1x128xf32> to vector<1x128xf32>
    %822 = vector.broadcast %821 : vector<1x128xf32> to vector<16x128xf32>
    %823 = arith.addf %819, %822 : vector<16x128xf32>
    %824 = vector.extract_strided_slice %56 {offsets = [0, 8], sizes = [16, 1], strides = [1, 1]} : vector<16x128xf32> to vector<16x1xf32>
    %825 = vector.broadcast %824 : vector<16x1xf32> to vector<16x128xf32>
    %826 = arith.mulf %825, %823 : vector<16x128xf32>
    %827 = arith.addf %710, %826 : vector<16x128xf32>
    %828 = vector.extract_strided_slice %39 {offsets = [0, 8], sizes = [16, 1], strides = [1, 1]} : vector<16x128xf32> to vector<16x1xf32>
    %c8_438 = arith.constant 8 : index
    %c0_439 = arith.constant 0 : index
    %c0_440 = arith.constant 0 : index
    %829 = vector.load %arg7[%c8_438, %c0_439, %c0_440] : memref<12x1x128xf32, #tpu.memory_space<vmem>>, vector<1x1x128xf32>
    %830 = vector.shape_cast %829 : vector<1x1x128xf32> to vector<1x128xf32>
    %831 = vector.broadcast %830 : vector<1x128xf32> to vector<16x128xf32>
    %832 = arith.mulf %823, %831 : vector<16x128xf32>
    %cst_441 = arith.constant dense<0.000000e+00> : vector<16xf32>
    %833 = vector.multi_reduction <add>, %832, %cst_441 [1] : vector<16x128xf32> to vector<16xf32>
    %834 = vector.shape_cast %833 : vector<16xf32> to vector<16x1xf32>
    %c8_442 = arith.constant 8 : index
    %c0_443 = arith.constant 0 : index
    %c0_444 = arith.constant 0 : index
    %835 = vector.load %arg8[%c8_442, %c0_443, %c0_444] : memref<12x1x1xf32, #tpu.memory_space<vmem>>, vector<1x1x1xf32>
    %836 = vector.shape_cast %835 : vector<1x1x1xf32> to vector<1x1xf32>
    %837 = vector.broadcast %836 : vector<1x1xf32> to vector<16x1xf32>
    %838 = arith.addf %834, %837 : vector<16x1xf32>
    %839 = arith.negf %838 : vector<16x1xf32>
    %840 = math.exp %839 : vector<16x1xf32>
    %cst_445 = arith.constant 1.000000e+00 : f32
    %841 = vector.broadcast %cst_445 : f32 to vector<16x1xf32>
    %842 = arith.addf %841, %840 : vector<16x1xf32>
    %843 = arith.divf %841, %842 : vector<16x1xf32>
    %844 = arith.mulf %843, %828 : vector<16x1xf32>
    %cst_446 = arith.constant dense<0.000000e+00> : vector<16xf32>
    %845 = vector.multi_reduction <add>, %844, %cst_446 [1] : vector<16x1xf32> to vector<16xf32>
    %846 = vector.shape_cast %845 : vector<16xf32> to vector<16x1xf32>
    %cst_447 = arith.constant dense<0.000000e+00> : vector<1xf32>
    %847 = vector.multi_reduction <add>, %846, %cst_447 [0] : vector<16x1xf32> to vector<1xf32>
    %848 = vector.shape_cast %847 : vector<1xf32> to vector<1x1xf32>
    %849 = arith.addf %732, %848 : vector<1x1xf32>
    %c8_448 = arith.constant 8 : index
    %c0_449 = arith.constant 0 : index
    %c0_450 = arith.constant 0 : index
    %850 = vector.load %arg9[%c8_448, %c0_449, %c0_450] : memref<12x128x8xf32, #tpu.memory_space<vmem>>, vector<1x128x8xf32>
    %851 = vector.shape_cast %850 : vector<1x128x8xf32> to vector<128x8xf32>
    %cst_451 = arith.constant dense<0.000000e+00> : vector<16x8xf32>
    %852 = tpu.matmul %823, %851, %cst_451 {dimension_numbers = #tpu.dot_dimension_numbers<[1], [0], [0], [1], [0, 0, 1, 1], [], []>} : vector<16x128xf32>, vector<128x8xf32>, vector<16x8xf32> -> vector<16x8xf32>
    %c8_452 = arith.constant 8 : index
    %c0_453 = arith.constant 0 : index
    %c0_454 = arith.constant 0 : index
    %853 = vector.load %arg10[%c8_452, %c0_453, %c0_454] : memref<12x1x8xf32, #tpu.memory_space<vmem>>, vector<1x1x8xf32>
    %854 = vector.shape_cast %853 : vector<1x1x8xf32> to vector<1x8xf32>
    %855 = vector.broadcast %854 : vector<1x8xf32> to vector<16x8xf32>
    %856 = arith.addf %852, %855 : vector<16x8xf32>
    %cst_455 = arith.constant 0.000000e+00 : f32
    %857 = vector.broadcast %cst_455 : f32 to vector<16x8xf32>
    %858 = arith.maximumf %856, %857 : vector<16x8xf32>
    %c8_456 = arith.constant 8 : index
    %c0_457 = arith.constant 0 : index
    %c0_458 = arith.constant 0 : index
    %859 = vector.load %arg11[%c8_456, %c0_457, %c0_458] : memref<12x1x8xf32, #tpu.memory_space<vmem>>, vector<1x1x8xf32>
    %860 = vector.shape_cast %859 : vector<1x1x8xf32> to vector<1x8xf32>
    %861 = vector.broadcast %860 : vector<1x8xf32> to vector<16x8xf32>
    %862 = arith.mulf %858, %861 : vector<16x8xf32>
    %cst_459 = arith.constant dense<0.000000e+00> : vector<16xf32>
    %863 = vector.multi_reduction <add>, %862, %cst_459 [1] : vector<16x8xf32> to vector<16xf32>
    %864 = vector.shape_cast %863 : vector<16xf32> to vector<16x1xf32>
    %c8_460 = arith.constant 8 : index
    %c0_461 = arith.constant 0 : index
    %c0_462 = arith.constant 0 : index
    %865 = vector.load %arg12[%c8_460, %c0_461, %c0_462] : memref<12x1x1xf32, #tpu.memory_space<vmem>>, vector<1x1x1xf32>
    %866 = vector.shape_cast %865 : vector<1x1x1xf32> to vector<1x1xf32>
    %867 = vector.broadcast %866 : vector<1x1xf32> to vector<16x1xf32>
    %868 = arith.addf %864, %867 : vector<16x1xf32>
    %869 = arith.negf %868 : vector<16x1xf32>
    %870 = math.exp %869 : vector<16x1xf32>
    %cst_463 = arith.constant 1.000000e+00 : f32
    %871 = vector.broadcast %cst_463 : f32 to vector<16x1xf32>
    %872 = arith.addf %871, %870 : vector<16x1xf32>
    %873 = arith.divf %871, %872 : vector<16x1xf32>
    %874 = arith.mulf %873, %828 : vector<16x1xf32>
    %cst_464 = arith.constant dense<0.000000e+00> : vector<16xf32>
    %875 = vector.multi_reduction <add>, %874, %cst_464 [1] : vector<16x1xf32> to vector<16xf32>
    %876 = vector.shape_cast %875 : vector<16xf32> to vector<16x1xf32>
    %cst_465 = arith.constant dense<0.000000e+00> : vector<1xf32>
    %877 = vector.multi_reduction <add>, %876, %cst_465 [0] : vector<16x1xf32> to vector<1xf32>
    %878 = vector.shape_cast %877 : vector<1xf32> to vector<1x1xf32>
    %879 = arith.addf %762, %878 : vector<1x1xf32>
    %c9 = arith.constant 9 : index
    %c0_466 = arith.constant 0 : index
    %c0_467 = arith.constant 0 : index
    %880 = vector.load %arg3[%c9, %c0_466, %c0_467] : memref<12x128x128xbf16, #tpu.memory_space<vmem>>, vector<1x128x128xbf16>
    %881 = vector.shape_cast %880 : vector<1x128x128xbf16> to vector<128x128xbf16>
    %cst_468 = arith.constant dense<0.000000e+00> : vector<16x128xf32>
    %882 = tpu.matmul %0, %881, %cst_468 {dimension_numbers = #tpu.dot_dimension_numbers<[1], [0], [0], [1], [0, 0, 1, 1], [], []>} : vector<16x128xbf16>, vector<128x128xbf16>, vector<16x128xf32> -> vector<16x128xf32>
    %c9_469 = arith.constant 9 : index
    %c0_470 = arith.constant 0 : index
    %c0_471 = arith.constant 0 : index
    %883 = vector.load %arg4[%c9_469, %c0_470, %c0_471] : memref<12x1x128xf32, #tpu.memory_space<vmem>>, vector<1x1x128xf32>
    %884 = vector.shape_cast %883 : vector<1x1x128xf32> to vector<1x128xf32>
    %885 = vector.broadcast %884 : vector<1x128xf32> to vector<16x128xf32>
    %886 = arith.addf %882, %885 : vector<16x128xf32>
    %887 = arith.mulf %886, %886 : vector<16x128xf32>
    %888 = arith.mulf %886, %887 : vector<16x128xf32>
    %cst_472 = arith.constant 4.471500e-02 : f32
    %889 = vector.broadcast %cst_472 : f32 to vector<16x128xf32>
    %890 = arith.mulf %889, %888 : vector<16x128xf32>
    %891 = arith.addf %886, %890 : vector<16x128xf32>
    %cst_473 = arith.constant 0.797884583 : f32
    %892 = vector.broadcast %cst_473 : f32 to vector<16x128xf32>
    %893 = arith.mulf %892, %891 : vector<16x128xf32>
    %894 = math.tanh %893 : vector<16x128xf32>
    %cst_474 = arith.constant 1.000000e+00 : f32
    %895 = vector.broadcast %cst_474 : f32 to vector<16x128xf32>
    %896 = arith.addf %895, %894 : vector<16x128xf32>
    %cst_475 = arith.constant 5.000000e-01 : f32
    %897 = vector.broadcast %cst_475 : f32 to vector<16x128xf32>
    %898 = arith.mulf %897, %896 : vector<16x128xf32>
    %899 = arith.mulf %886, %898 : vector<16x128xf32>
    %900 = arith.truncf %899 : vector<16x128xf32> to vector<16x128xbf16>
    %c9_476 = arith.constant 9 : index
    %c0_477 = arith.constant 0 : index
    %c0_478 = arith.constant 0 : index
    %901 = vector.load %arg5[%c9_476, %c0_477, %c0_478] : memref<12x128x128xbf16, #tpu.memory_space<vmem>>, vector<1x128x128xbf16>
    %902 = vector.shape_cast %901 : vector<1x128x128xbf16> to vector<128x128xbf16>
    %cst_479 = arith.constant dense<0.000000e+00> : vector<16x128xf32>
    %903 = tpu.matmul %900, %902, %cst_479 {dimension_numbers = #tpu.dot_dimension_numbers<[1], [0], [0], [1], [0, 0, 1, 1], [], []>} : vector<16x128xbf16>, vector<128x128xbf16>, vector<16x128xf32> -> vector<16x128xf32>
    %c9_480 = arith.constant 9 : index
    %c0_481 = arith.constant 0 : index
    %c0_482 = arith.constant 0 : index
    %904 = vector.load %arg6[%c9_480, %c0_481, %c0_482] : memref<12x1x128xf32, #tpu.memory_space<vmem>>, vector<1x1x128xf32>
    %905 = vector.shape_cast %904 : vector<1x1x128xf32> to vector<1x128xf32>
    %906 = vector.broadcast %905 : vector<1x128xf32> to vector<16x128xf32>
    %907 = arith.addf %903, %906 : vector<16x128xf32>
    %908 = vector.extract_strided_slice %56 {offsets = [0, 9], sizes = [16, 1], strides = [1, 1]} : vector<16x128xf32> to vector<16x1xf32>
    %909 = vector.broadcast %908 : vector<16x1xf32> to vector<16x128xf32>
    %910 = arith.mulf %909, %907 : vector<16x128xf32>
    %911 = arith.addf %827, %910 : vector<16x128xf32>
    %912 = vector.extract_strided_slice %39 {offsets = [0, 9], sizes = [16, 1], strides = [1, 1]} : vector<16x128xf32> to vector<16x1xf32>
    %c9_483 = arith.constant 9 : index
    %c0_484 = arith.constant 0 : index
    %c0_485 = arith.constant 0 : index
    %913 = vector.load %arg7[%c9_483, %c0_484, %c0_485] : memref<12x1x128xf32, #tpu.memory_space<vmem>>, vector<1x1x128xf32>
    %914 = vector.shape_cast %913 : vector<1x1x128xf32> to vector<1x128xf32>
    %915 = vector.broadcast %914 : vector<1x128xf32> to vector<16x128xf32>
    %916 = arith.mulf %907, %915 : vector<16x128xf32>
    %cst_486 = arith.constant dense<0.000000e+00> : vector<16xf32>
    %917 = vector.multi_reduction <add>, %916, %cst_486 [1] : vector<16x128xf32> to vector<16xf32>
    %918 = vector.shape_cast %917 : vector<16xf32> to vector<16x1xf32>
    %c9_487 = arith.constant 9 : index
    %c0_488 = arith.constant 0 : index
    %c0_489 = arith.constant 0 : index
    %919 = vector.load %arg8[%c9_487, %c0_488, %c0_489] : memref<12x1x1xf32, #tpu.memory_space<vmem>>, vector<1x1x1xf32>
    %920 = vector.shape_cast %919 : vector<1x1x1xf32> to vector<1x1xf32>
    %921 = vector.broadcast %920 : vector<1x1xf32> to vector<16x1xf32>
    %922 = arith.addf %918, %921 : vector<16x1xf32>
    %923 = arith.negf %922 : vector<16x1xf32>
    %924 = math.exp %923 : vector<16x1xf32>
    %cst_490 = arith.constant 1.000000e+00 : f32
    %925 = vector.broadcast %cst_490 : f32 to vector<16x1xf32>
    %926 = arith.addf %925, %924 : vector<16x1xf32>
    %927 = arith.divf %925, %926 : vector<16x1xf32>
    %928 = arith.mulf %927, %912 : vector<16x1xf32>
    %cst_491 = arith.constant dense<0.000000e+00> : vector<16xf32>
    %929 = vector.multi_reduction <add>, %928, %cst_491 [1] : vector<16x1xf32> to vector<16xf32>
    %930 = vector.shape_cast %929 : vector<16xf32> to vector<16x1xf32>
    %cst_492 = arith.constant dense<0.000000e+00> : vector<1xf32>
    %931 = vector.multi_reduction <add>, %930, %cst_492 [0] : vector<16x1xf32> to vector<1xf32>
    %932 = vector.shape_cast %931 : vector<1xf32> to vector<1x1xf32>
    %933 = arith.addf %849, %932 : vector<1x1xf32>
    %c9_493 = arith.constant 9 : index
    %c0_494 = arith.constant 0 : index
    %c0_495 = arith.constant 0 : index
    %934 = vector.load %arg9[%c9_493, %c0_494, %c0_495] : memref<12x128x8xf32, #tpu.memory_space<vmem>>, vector<1x128x8xf32>
    %935 = vector.shape_cast %934 : vector<1x128x8xf32> to vector<128x8xf32>
    %cst_496 = arith.constant dense<0.000000e+00> : vector<16x8xf32>
    %936 = tpu.matmul %907, %935, %cst_496 {dimension_numbers = #tpu.dot_dimension_numbers<[1], [0], [0], [1], [0, 0, 1, 1], [], []>} : vector<16x128xf32>, vector<128x8xf32>, vector<16x8xf32> -> vector<16x8xf32>
    %c9_497 = arith.constant 9 : index
    %c0_498 = arith.constant 0 : index
    %c0_499 = arith.constant 0 : index
    %937 = vector.load %arg10[%c9_497, %c0_498, %c0_499] : memref<12x1x8xf32, #tpu.memory_space<vmem>>, vector<1x1x8xf32>
    %938 = vector.shape_cast %937 : vector<1x1x8xf32> to vector<1x8xf32>
    %939 = vector.broadcast %938 : vector<1x8xf32> to vector<16x8xf32>
    %940 = arith.addf %936, %939 : vector<16x8xf32>
    %cst_500 = arith.constant 0.000000e+00 : f32
    %941 = vector.broadcast %cst_500 : f32 to vector<16x8xf32>
    %942 = arith.maximumf %940, %941 : vector<16x8xf32>
    %c9_501 = arith.constant 9 : index
    %c0_502 = arith.constant 0 : index
    %c0_503 = arith.constant 0 : index
    %943 = vector.load %arg11[%c9_501, %c0_502, %c0_503] : memref<12x1x8xf32, #tpu.memory_space<vmem>>, vector<1x1x8xf32>
    %944 = vector.shape_cast %943 : vector<1x1x8xf32> to vector<1x8xf32>
    %945 = vector.broadcast %944 : vector<1x8xf32> to vector<16x8xf32>
    %946 = arith.mulf %942, %945 : vector<16x8xf32>
    %cst_504 = arith.constant dense<0.000000e+00> : vector<16xf32>
    %947 = vector.multi_reduction <add>, %946, %cst_504 [1] : vector<16x8xf32> to vector<16xf32>
    %948 = vector.shape_cast %947 : vector<16xf32> to vector<16x1xf32>
    %c9_505 = arith.constant 9 : index
    %c0_506 = arith.constant 0 : index
    %c0_507 = arith.constant 0 : index
    %949 = vector.load %arg12[%c9_505, %c0_506, %c0_507] : memref<12x1x1xf32, #tpu.memory_space<vmem>>, vector<1x1x1xf32>
    %950 = vector.shape_cast %949 : vector<1x1x1xf32> to vector<1x1xf32>
    %951 = vector.broadcast %950 : vector<1x1xf32> to vector<16x1xf32>
    %952 = arith.addf %948, %951 : vector<16x1xf32>
    %953 = arith.negf %952 : vector<16x1xf32>
    %954 = math.exp %953 : vector<16x1xf32>
    %cst_508 = arith.constant 1.000000e+00 : f32
    %955 = vector.broadcast %cst_508 : f32 to vector<16x1xf32>
    %956 = arith.addf %955, %954 : vector<16x1xf32>
    %957 = arith.divf %955, %956 : vector<16x1xf32>
    %958 = arith.mulf %957, %912 : vector<16x1xf32>
    %cst_509 = arith.constant dense<0.000000e+00> : vector<16xf32>
    %959 = vector.multi_reduction <add>, %958, %cst_509 [1] : vector<16x1xf32> to vector<16xf32>
    %960 = vector.shape_cast %959 : vector<16xf32> to vector<16x1xf32>
    %cst_510 = arith.constant dense<0.000000e+00> : vector<1xf32>
    %961 = vector.multi_reduction <add>, %960, %cst_510 [0] : vector<16x1xf32> to vector<1xf32>
    %962 = vector.shape_cast %961 : vector<1xf32> to vector<1x1xf32>
    %963 = arith.addf %879, %962 : vector<1x1xf32>
    %c10 = arith.constant 10 : index
    %c0_511 = arith.constant 0 : index
    %c0_512 = arith.constant 0 : index
    %964 = vector.load %arg3[%c10, %c0_511, %c0_512] : memref<12x128x128xbf16, #tpu.memory_space<vmem>>, vector<1x128x128xbf16>
    %965 = vector.shape_cast %964 : vector<1x128x128xbf16> to vector<128x128xbf16>
    %cst_513 = arith.constant dense<0.000000e+00> : vector<16x128xf32>
    %966 = tpu.matmul %0, %965, %cst_513 {dimension_numbers = #tpu.dot_dimension_numbers<[1], [0], [0], [1], [0, 0, 1, 1], [], []>} : vector<16x128xbf16>, vector<128x128xbf16>, vector<16x128xf32> -> vector<16x128xf32>
    %c10_514 = arith.constant 10 : index
    %c0_515 = arith.constant 0 : index
    %c0_516 = arith.constant 0 : index
    %967 = vector.load %arg4[%c10_514, %c0_515, %c0_516] : memref<12x1x128xf32, #tpu.memory_space<vmem>>, vector<1x1x128xf32>
    %968 = vector.shape_cast %967 : vector<1x1x128xf32> to vector<1x128xf32>
    %969 = vector.broadcast %968 : vector<1x128xf32> to vector<16x128xf32>
    %970 = arith.addf %966, %969 : vector<16x128xf32>
    %971 = arith.mulf %970, %970 : vector<16x128xf32>
    %972 = arith.mulf %970, %971 : vector<16x128xf32>
    %cst_517 = arith.constant 4.471500e-02 : f32
    %973 = vector.broadcast %cst_517 : f32 to vector<16x128xf32>
    %974 = arith.mulf %973, %972 : vector<16x128xf32>
    %975 = arith.addf %970, %974 : vector<16x128xf32>
    %cst_518 = arith.constant 0.797884583 : f32
    %976 = vector.broadcast %cst_518 : f32 to vector<16x128xf32>
    %977 = arith.mulf %976, %975 : vector<16x128xf32>
    %978 = math.tanh %977 : vector<16x128xf32>
    %cst_519 = arith.constant 1.000000e+00 : f32
    %979 = vector.broadcast %cst_519 : f32 to vector<16x128xf32>
    %980 = arith.addf %979, %978 : vector<16x128xf32>
    %cst_520 = arith.constant 5.000000e-01 : f32
    %981 = vector.broadcast %cst_520 : f32 to vector<16x128xf32>
    %982 = arith.mulf %981, %980 : vector<16x128xf32>
    %983 = arith.mulf %970, %982 : vector<16x128xf32>
    %984 = arith.truncf %983 : vector<16x128xf32> to vector<16x128xbf16>
    %c10_521 = arith.constant 10 : index
    %c0_522 = arith.constant 0 : index
    %c0_523 = arith.constant 0 : index
    %985 = vector.load %arg5[%c10_521, %c0_522, %c0_523] : memref<12x128x128xbf16, #tpu.memory_space<vmem>>, vector<1x128x128xbf16>
    %986 = vector.shape_cast %985 : vector<1x128x128xbf16> to vector<128x128xbf16>
    %cst_524 = arith.constant dense<0.000000e+00> : vector<16x128xf32>
    %987 = tpu.matmul %984, %986, %cst_524 {dimension_numbers = #tpu.dot_dimension_numbers<[1], [0], [0], [1], [0, 0, 1, 1], [], []>} : vector<16x128xbf16>, vector<128x128xbf16>, vector<16x128xf32> -> vector<16x128xf32>
    %c10_525 = arith.constant 10 : index
    %c0_526 = arith.constant 0 : index
    %c0_527 = arith.constant 0 : index
    %988 = vector.load %arg6[%c10_525, %c0_526, %c0_527] : memref<12x1x128xf32, #tpu.memory_space<vmem>>, vector<1x1x128xf32>
    %989 = vector.shape_cast %988 : vector<1x1x128xf32> to vector<1x128xf32>
    %990 = vector.broadcast %989 : vector<1x128xf32> to vector<16x128xf32>
    %991 = arith.addf %987, %990 : vector<16x128xf32>
    %992 = vector.extract_strided_slice %56 {offsets = [0, 10], sizes = [16, 1], strides = [1, 1]} : vector<16x128xf32> to vector<16x1xf32>
    %993 = vector.broadcast %992 : vector<16x1xf32> to vector<16x128xf32>
    %994 = arith.mulf %993, %991 : vector<16x128xf32>
    %995 = arith.addf %911, %994 : vector<16x128xf32>
    %996 = vector.extract_strided_slice %39 {offsets = [0, 10], sizes = [16, 1], strides = [1, 1]} : vector<16x128xf32> to vector<16x1xf32>
    %c10_528 = arith.constant 10 : index
    %c0_529 = arith.constant 0 : index
    %c0_530 = arith.constant 0 : index
    %997 = vector.load %arg7[%c10_528, %c0_529, %c0_530] : memref<12x1x128xf32, #tpu.memory_space<vmem>>, vector<1x1x128xf32>
    %998 = vector.shape_cast %997 : vector<1x1x128xf32> to vector<1x128xf32>
    %999 = vector.broadcast %998 : vector<1x128xf32> to vector<16x128xf32>
    %1000 = arith.mulf %991, %999 : vector<16x128xf32>
    %cst_531 = arith.constant dense<0.000000e+00> : vector<16xf32>
    %1001 = vector.multi_reduction <add>, %1000, %cst_531 [1] : vector<16x128xf32> to vector<16xf32>
    %1002 = vector.shape_cast %1001 : vector<16xf32> to vector<16x1xf32>
    %c10_532 = arith.constant 10 : index
    %c0_533 = arith.constant 0 : index
    %c0_534 = arith.constant 0 : index
    %1003 = vector.load %arg8[%c10_532, %c0_533, %c0_534] : memref<12x1x1xf32, #tpu.memory_space<vmem>>, vector<1x1x1xf32>
    %1004 = vector.shape_cast %1003 : vector<1x1x1xf32> to vector<1x1xf32>
    %1005 = vector.broadcast %1004 : vector<1x1xf32> to vector<16x1xf32>
    %1006 = arith.addf %1002, %1005 : vector<16x1xf32>
    %1007 = arith.negf %1006 : vector<16x1xf32>
    %1008 = math.exp %1007 : vector<16x1xf32>
    %cst_535 = arith.constant 1.000000e+00 : f32
    %1009 = vector.broadcast %cst_535 : f32 to vector<16x1xf32>
    %1010 = arith.addf %1009, %1008 : vector<16x1xf32>
    %1011 = arith.divf %1009, %1010 : vector<16x1xf32>
    %1012 = arith.mulf %1011, %996 : vector<16x1xf32>
    %cst_536 = arith.constant dense<0.000000e+00> : vector<16xf32>
    %1013 = vector.multi_reduction <add>, %1012, %cst_536 [1] : vector<16x1xf32> to vector<16xf32>
    %1014 = vector.shape_cast %1013 : vector<16xf32> to vector<16x1xf32>
    %cst_537 = arith.constant dense<0.000000e+00> : vector<1xf32>
    %1015 = vector.multi_reduction <add>, %1014, %cst_537 [0] : vector<16x1xf32> to vector<1xf32>
    %1016 = vector.shape_cast %1015 : vector<1xf32> to vector<1x1xf32>
    %1017 = arith.addf %933, %1016 : vector<1x1xf32>
    %c10_538 = arith.constant 10 : index
    %c0_539 = arith.constant 0 : index
    %c0_540 = arith.constant 0 : index
    %1018 = vector.load %arg9[%c10_538, %c0_539, %c0_540] : memref<12x128x8xf32, #tpu.memory_space<vmem>>, vector<1x128x8xf32>
    %1019 = vector.shape_cast %1018 : vector<1x128x8xf32> to vector<128x8xf32>
    %cst_541 = arith.constant dense<0.000000e+00> : vector<16x8xf32>
    %1020 = tpu.matmul %991, %1019, %cst_541 {dimension_numbers = #tpu.dot_dimension_numbers<[1], [0], [0], [1], [0, 0, 1, 1], [], []>} : vector<16x128xf32>, vector<128x8xf32>, vector<16x8xf32> -> vector<16x8xf32>
    %c10_542 = arith.constant 10 : index
    %c0_543 = arith.constant 0 : index
    %c0_544 = arith.constant 0 : index
    %1021 = vector.load %arg10[%c10_542, %c0_543, %c0_544] : memref<12x1x8xf32, #tpu.memory_space<vmem>>, vector<1x1x8xf32>
    %1022 = vector.shape_cast %1021 : vector<1x1x8xf32> to vector<1x8xf32>
    %1023 = vector.broadcast %1022 : vector<1x8xf32> to vector<16x8xf32>
    %1024 = arith.addf %1020, %1023 : vector<16x8xf32>
    %cst_545 = arith.constant 0.000000e+00 : f32
    %1025 = vector.broadcast %cst_545 : f32 to vector<16x8xf32>
    %1026 = arith.maximumf %1024, %1025 : vector<16x8xf32>
    %c10_546 = arith.constant 10 : index
    %c0_547 = arith.constant 0 : index
    %c0_548 = arith.constant 0 : index
    %1027 = vector.load %arg11[%c10_546, %c0_547, %c0_548] : memref<12x1x8xf32, #tpu.memory_space<vmem>>, vector<1x1x8xf32>
    %1028 = vector.shape_cast %1027 : vector<1x1x8xf32> to vector<1x8xf32>
    %1029 = vector.broadcast %1028 : vector<1x8xf32> to vector<16x8xf32>
    %1030 = arith.mulf %1026, %1029 : vector<16x8xf32>
    %cst_549 = arith.constant dense<0.000000e+00> : vector<16xf32>
    %1031 = vector.multi_reduction <add>, %1030, %cst_549 [1] : vector<16x8xf32> to vector<16xf32>
    %1032 = vector.shape_cast %1031 : vector<16xf32> to vector<16x1xf32>
    %c10_550 = arith.constant 10 : index
    %c0_551 = arith.constant 0 : index
    %c0_552 = arith.constant 0 : index
    %1033 = vector.load %arg12[%c10_550, %c0_551, %c0_552] : memref<12x1x1xf32, #tpu.memory_space<vmem>>, vector<1x1x1xf32>
    %1034 = vector.shape_cast %1033 : vector<1x1x1xf32> to vector<1x1xf32>
    %1035 = vector.broadcast %1034 : vector<1x1xf32> to vector<16x1xf32>
    %1036 = arith.addf %1032, %1035 : vector<16x1xf32>
    %1037 = arith.negf %1036 : vector<16x1xf32>
    %1038 = math.exp %1037 : vector<16x1xf32>
    %cst_553 = arith.constant 1.000000e+00 : f32
    %1039 = vector.broadcast %cst_553 : f32 to vector<16x1xf32>
    %1040 = arith.addf %1039, %1038 : vector<16x1xf32>
    %1041 = arith.divf %1039, %1040 : vector<16x1xf32>
    %1042 = arith.mulf %1041, %996 : vector<16x1xf32>
    %cst_554 = arith.constant dense<0.000000e+00> : vector<16xf32>
    %1043 = vector.multi_reduction <add>, %1042, %cst_554 [1] : vector<16x1xf32> to vector<16xf32>
    %1044 = vector.shape_cast %1043 : vector<16xf32> to vector<16x1xf32>
    %cst_555 = arith.constant dense<0.000000e+00> : vector<1xf32>
    %1045 = vector.multi_reduction <add>, %1044, %cst_555 [0] : vector<16x1xf32> to vector<1xf32>
    %1046 = vector.shape_cast %1045 : vector<1xf32> to vector<1x1xf32>
    %1047 = arith.addf %963, %1046 : vector<1x1xf32>
    %c11 = arith.constant 11 : index
    %c0_556 = arith.constant 0 : index
    %c0_557 = arith.constant 0 : index
    %1048 = vector.load %arg3[%c11, %c0_556, %c0_557] : memref<12x128x128xbf16, #tpu.memory_space<vmem>>, vector<1x128x128xbf16>
    %1049 = vector.shape_cast %1048 : vector<1x128x128xbf16> to vector<128x128xbf16>
    %cst_558 = arith.constant dense<0.000000e+00> : vector<16x128xf32>
    %1050 = tpu.matmul %0, %1049, %cst_558 {dimension_numbers = #tpu.dot_dimension_numbers<[1], [0], [0], [1], [0, 0, 1, 1], [], []>} : vector<16x128xbf16>, vector<128x128xbf16>, vector<16x128xf32> -> vector<16x128xf32>
    %c11_559 = arith.constant 11 : index
    %c0_560 = arith.constant 0 : index
    %c0_561 = arith.constant 0 : index
    %1051 = vector.load %arg4[%c11_559, %c0_560, %c0_561] : memref<12x1x128xf32, #tpu.memory_space<vmem>>, vector<1x1x128xf32>
    %1052 = vector.shape_cast %1051 : vector<1x1x128xf32> to vector<1x128xf32>
    %1053 = vector.broadcast %1052 : vector<1x128xf32> to vector<16x128xf32>
    %1054 = arith.addf %1050, %1053 : vector<16x128xf32>
    %1055 = arith.mulf %1054, %1054 : vector<16x128xf32>
    %1056 = arith.mulf %1054, %1055 : vector<16x128xf32>
    %cst_562 = arith.constant 4.471500e-02 : f32
    %1057 = vector.broadcast %cst_562 : f32 to vector<16x128xf32>
    %1058 = arith.mulf %1057, %1056 : vector<16x128xf32>
    %1059 = arith.addf %1054, %1058 : vector<16x128xf32>
    %cst_563 = arith.constant 0.797884583 : f32
    %1060 = vector.broadcast %cst_563 : f32 to vector<16x128xf32>
    %1061 = arith.mulf %1060, %1059 : vector<16x128xf32>
    %1062 = math.tanh %1061 : vector<16x128xf32>
    %cst_564 = arith.constant 1.000000e+00 : f32
    %1063 = vector.broadcast %cst_564 : f32 to vector<16x128xf32>
    %1064 = arith.addf %1063, %1062 : vector<16x128xf32>
    %cst_565 = arith.constant 5.000000e-01 : f32
    %1065 = vector.broadcast %cst_565 : f32 to vector<16x128xf32>
    %1066 = arith.mulf %1065, %1064 : vector<16x128xf32>
    %1067 = arith.mulf %1054, %1066 : vector<16x128xf32>
    %1068 = arith.truncf %1067 : vector<16x128xf32> to vector<16x128xbf16>
    %c11_566 = arith.constant 11 : index
    %c0_567 = arith.constant 0 : index
    %c0_568 = arith.constant 0 : index
    %1069 = vector.load %arg5[%c11_566, %c0_567, %c0_568] : memref<12x128x128xbf16, #tpu.memory_space<vmem>>, vector<1x128x128xbf16>
    %1070 = vector.shape_cast %1069 : vector<1x128x128xbf16> to vector<128x128xbf16>
    %cst_569 = arith.constant dense<0.000000e+00> : vector<16x128xf32>
    %1071 = tpu.matmul %1068, %1070, %cst_569 {dimension_numbers = #tpu.dot_dimension_numbers<[1], [0], [0], [1], [0, 0, 1, 1], [], []>} : vector<16x128xbf16>, vector<128x128xbf16>, vector<16x128xf32> -> vector<16x128xf32>
    %c11_570 = arith.constant 11 : index
    %c0_571 = arith.constant 0 : index
    %c0_572 = arith.constant 0 : index
    %1072 = vector.load %arg6[%c11_570, %c0_571, %c0_572] : memref<12x1x128xf32, #tpu.memory_space<vmem>>, vector<1x1x128xf32>
    %1073 = vector.shape_cast %1072 : vector<1x1x128xf32> to vector<1x128xf32>
    %1074 = vector.broadcast %1073 : vector<1x128xf32> to vector<16x128xf32>
    %1075 = arith.addf %1071, %1074 : vector<16x128xf32>
    %1076 = vector.extract_strided_slice %56 {offsets = [0, 11], sizes = [16, 1], strides = [1, 1]} : vector<16x128xf32> to vector<16x1xf32>
    %1077 = vector.broadcast %1076 : vector<16x1xf32> to vector<16x128xf32>
    %1078 = arith.mulf %1077, %1075 : vector<16x128xf32>
    %1079 = arith.addf %995, %1078 : vector<16x128xf32>
    %1080 = vector.extract_strided_slice %39 {offsets = [0, 11], sizes = [16, 1], strides = [1, 1]} : vector<16x128xf32> to vector<16x1xf32>
    %c11_573 = arith.constant 11 : index
    %c0_574 = arith.constant 0 : index
    %c0_575 = arith.constant 0 : index
    %1081 = vector.load %arg7[%c11_573, %c0_574, %c0_575] : memref<12x1x128xf32, #tpu.memory_space<vmem>>, vector<1x1x128xf32>
    %1082 = vector.shape_cast %1081 : vector<1x1x128xf32> to vector<1x128xf32>
    %1083 = vector.broadcast %1082 : vector<1x128xf32> to vector<16x128xf32>
    %1084 = arith.mulf %1075, %1083 : vector<16x128xf32>
    %cst_576 = arith.constant dense<0.000000e+00> : vector<16xf32>
    %1085 = vector.multi_reduction <add>, %1084, %cst_576 [1] : vector<16x128xf32> to vector<16xf32>
    %1086 = vector.shape_cast %1085 : vector<16xf32> to vector<16x1xf32>
    %c11_577 = arith.constant 11 : index
    %c0_578 = arith.constant 0 : index
    %c0_579 = arith.constant 0 : index
    %1087 = vector.load %arg8[%c11_577, %c0_578, %c0_579] : memref<12x1x1xf32, #tpu.memory_space<vmem>>, vector<1x1x1xf32>
    %1088 = vector.shape_cast %1087 : vector<1x1x1xf32> to vector<1x1xf32>
    %1089 = vector.broadcast %1088 : vector<1x1xf32> to vector<16x1xf32>
    %1090 = arith.addf %1086, %1089 : vector<16x1xf32>
    %1091 = arith.negf %1090 : vector<16x1xf32>
    %1092 = math.exp %1091 : vector<16x1xf32>
    %cst_580 = arith.constant 1.000000e+00 : f32
    %1093 = vector.broadcast %cst_580 : f32 to vector<16x1xf32>
    %1094 = arith.addf %1093, %1092 : vector<16x1xf32>
    %1095 = arith.divf %1093, %1094 : vector<16x1xf32>
    %1096 = arith.mulf %1095, %1080 : vector<16x1xf32>
    %cst_581 = arith.constant dense<0.000000e+00> : vector<16xf32>
    %1097 = vector.multi_reduction <add>, %1096, %cst_581 [1] : vector<16x1xf32> to vector<16xf32>
    %1098 = vector.shape_cast %1097 : vector<16xf32> to vector<16x1xf32>
    %cst_582 = arith.constant dense<0.000000e+00> : vector<1xf32>
    %1099 = vector.multi_reduction <add>, %1098, %cst_582 [0] : vector<16x1xf32> to vector<1xf32>
    %1100 = vector.shape_cast %1099 : vector<1xf32> to vector<1x1xf32>
    %1101 = arith.addf %1017, %1100 : vector<1x1xf32>
    %c11_583 = arith.constant 11 : index
    %c0_584 = arith.constant 0 : index
    %c0_585 = arith.constant 0 : index
    %1102 = vector.load %arg9[%c11_583, %c0_584, %c0_585] : memref<12x128x8xf32, #tpu.memory_space<vmem>>, vector<1x128x8xf32>
    %1103 = vector.shape_cast %1102 : vector<1x128x8xf32> to vector<128x8xf32>
    %cst_586 = arith.constant dense<0.000000e+00> : vector<16x8xf32>
    %1104 = tpu.matmul %1075, %1103, %cst_586 {dimension_numbers = #tpu.dot_dimension_numbers<[1], [0], [0], [1], [0, 0, 1, 1], [], []>} : vector<16x128xf32>, vector<128x8xf32>, vector<16x8xf32> -> vector<16x8xf32>
    %c11_587 = arith.constant 11 : index
    %c0_588 = arith.constant 0 : index
    %c0_589 = arith.constant 0 : index
    %1105 = vector.load %arg10[%c11_587, %c0_588, %c0_589] : memref<12x1x8xf32, #tpu.memory_space<vmem>>, vector<1x1x8xf32>
    %1106 = vector.shape_cast %1105 : vector<1x1x8xf32> to vector<1x8xf32>
    %1107 = vector.broadcast %1106 : vector<1x8xf32> to vector<16x8xf32>
    %1108 = arith.addf %1104, %1107 : vector<16x8xf32>
    %cst_590 = arith.constant 0.000000e+00 : f32
    %1109 = vector.broadcast %cst_590 : f32 to vector<16x8xf32>
    %1110 = arith.maximumf %1108, %1109 : vector<16x8xf32>
    %c11_591 = arith.constant 11 : index
    %c0_592 = arith.constant 0 : index
    %c0_593 = arith.constant 0 : index
    %1111 = vector.load %arg11[%c11_591, %c0_592, %c0_593] : memref<12x1x8xf32, #tpu.memory_space<vmem>>, vector<1x1x8xf32>
    %1112 = vector.shape_cast %1111 : vector<1x1x8xf32> to vector<1x8xf32>
    %1113 = vector.broadcast %1112 : vector<1x8xf32> to vector<16x8xf32>
    %1114 = arith.mulf %1110, %1113 : vector<16x8xf32>
    %cst_594 = arith.constant dense<0.000000e+00> : vector<16xf32>
    %1115 = vector.multi_reduction <add>, %1114, %cst_594 [1] : vector<16x8xf32> to vector<16xf32>
    %1116 = vector.shape_cast %1115 : vector<16xf32> to vector<16x1xf32>
    %c11_595 = arith.constant 11 : index
    %c0_596 = arith.constant 0 : index
    %c0_597 = arith.constant 0 : index
    %1117 = vector.load %arg12[%c11_595, %c0_596, %c0_597] : memref<12x1x1xf32, #tpu.memory_space<vmem>>, vector<1x1x1xf32>
    %1118 = vector.shape_cast %1117 : vector<1x1x1xf32> to vector<1x1xf32>
    %1119 = vector.broadcast %1118 : vector<1x1xf32> to vector<16x1xf32>
    %1120 = arith.addf %1116, %1119 : vector<16x1xf32>
    %1121 = arith.negf %1120 : vector<16x1xf32>
    %1122 = math.exp %1121 : vector<16x1xf32>
    %cst_598 = arith.constant 1.000000e+00 : f32
    %1123 = vector.broadcast %cst_598 : f32 to vector<16x1xf32>
    %1124 = arith.addf %1123, %1122 : vector<16x1xf32>
    %1125 = arith.divf %1123, %1124 : vector<16x1xf32>
    %1126 = arith.mulf %1125, %1080 : vector<16x1xf32>
    %cst_599 = arith.constant dense<0.000000e+00> : vector<16xf32>
    %1127 = vector.multi_reduction <add>, %1126, %cst_599 [1] : vector<16x1xf32> to vector<16xf32>
    %1128 = vector.shape_cast %1127 : vector<16xf32> to vector<16x1xf32>
    %cst_600 = arith.constant dense<0.000000e+00> : vector<1xf32>
    %1129 = vector.multi_reduction <add>, %1128, %cst_600 [0] : vector<16x1xf32> to vector<1xf32>
    %1130 = vector.shape_cast %1129 : vector<1xf32> to vector<1x1xf32>
    %1131 = arith.addf %1047, %1130 : vector<1x1xf32>
    %c0_601 = arith.constant 0 : index
    %c0_602 = arith.constant 0 : index
    %1132 = vector.load %arg23[%c0_601, %c0_602] : memref<128x32xf32, #tpu.memory_space<vmem>>, vector<128x32xf32>
    %cst_603 = arith.constant dense<0.000000e+00> : vector<16x32xf32>
    %1133 = tpu.matmul %1075, %1132, %cst_603 {dimension_numbers = #tpu.dot_dimension_numbers<[1], [0], [0], [1], [0, 0, 1, 1], [], []>} : vector<16x128xf32>, vector<128x32xf32>, vector<16x32xf32> -> vector<16x32xf32>
    %c0_604 = arith.constant 0 : index
    %c0_605 = arith.constant 0 : index
    %1134 = vector.load %arg24[%c0_604, %c0_605] : memref<1x32xf32, #tpu.memory_space<vmem>>, vector<1x32xf32>
    %1135 = vector.broadcast %1134 : vector<1x32xf32> to vector<16x32xf32>
    %1136 = arith.addf %1133, %1135 : vector<16x32xf32>
    %cst_606 = arith.constant 0.000000e+00 : f32
    %1137 = vector.broadcast %cst_606 : f32 to vector<16x32xf32>
    %1138 = arith.maximumf %1136, %1137 : vector<16x32xf32>
    %c0_607 = arith.constant 0 : index
    %c0_608 = arith.constant 0 : index
    %1139 = vector.load %arg25[%c0_607, %c0_608] : memref<32x16xf32, #tpu.memory_space<vmem>>, vector<32x16xf32>
    %cst_609 = arith.constant dense<0.000000e+00> : vector<16x16xf32>
    %1140 = tpu.matmul %1138, %1139, %cst_609 {dimension_numbers = #tpu.dot_dimension_numbers<[1], [0], [0], [1], [0, 0, 1, 1], [], []>} : vector<16x32xf32>, vector<32x16xf32>, vector<16x16xf32> -> vector<16x16xf32>
    %c0_610 = arith.constant 0 : index
    %c0_611 = arith.constant 0 : index
    %1141 = vector.load %arg26[%c0_610, %c0_611] : memref<1x16xf32, #tpu.memory_space<vmem>>, vector<1x16xf32>
    %1142 = vector.broadcast %1141 : vector<1x16xf32> to vector<16x16xf32>
    %1143 = arith.addf %1140, %1142 : vector<16x16xf32>
    %cst_612 = arith.constant 0.000000e+00 : f32
    %1144 = vector.broadcast %cst_612 : f32 to vector<16x16xf32>
    %1145 = arith.maximumf %1143, %1144 : vector<16x16xf32>
    %c0_613 = arith.constant 0 : index
    %c0_614 = arith.constant 0 : index
    %1146 = vector.load %arg27[%c0_613, %c0_614] : memref<16x10xf32, #tpu.memory_space<vmem>>, vector<16x10xf32>
    %cst_615 = arith.constant dense<0.000000e+00> : vector<16x10xf32>
    %1147 = tpu.matmul %1145, %1146, %cst_615 {dimension_numbers = #tpu.dot_dimension_numbers<[1], [0], [0], [1], [0, 0, 1, 1], [], []>} : vector<16x16xf32>, vector<16x10xf32>, vector<16x10xf32> -> vector<16x10xf32>
    %c0_616 = arith.constant 0 : index
    %c0_617 = arith.constant 0 : index
    %1148 = vector.load %arg28[%c0_616, %c0_617] : memref<1x10xf32, #tpu.memory_space<vmem>>, vector<1x10xf32>
    %1149 = vector.broadcast %1148 : vector<1x10xf32> to vector<16x10xf32>
    %1150 = arith.addf %1147, %1149 : vector<16x10xf32>
    %1151 = arith.negf %1150 : vector<16x10xf32>
    %1152 = math.exp %1151 : vector<16x10xf32>
    %cst_618 = arith.constant 1.000000e+00 : f32
    %1153 = vector.broadcast %cst_618 : f32 to vector<16x10xf32>
    %1154 = arith.addf %1153, %1152 : vector<16x10xf32>
    %1155 = arith.divf %1153, %1154 : vector<16x10xf32>
    %1156 = vector.broadcast %1080 : vector<16x1xf32> to vector<16x10xf32>
    %1157 = arith.mulf %1155, %1156 : vector<16x10xf32>
    %cst_619 = arith.constant dense<0.000000e+00> : vector<16xf32>
    %1158 = vector.multi_reduction <add>, %1157, %cst_619 [1] : vector<16x10xf32> to vector<16xf32>
    %1159 = vector.shape_cast %1158 : vector<16xf32> to vector<16x1xf32>
    %cst_620 = arith.constant dense<0.000000e+00> : vector<1xf32>
    %1160 = vector.multi_reduction <add>, %1159, %cst_620 [0] : vector<16x1xf32> to vector<1xf32>
    %1161 = vector.shape_cast %1160 : vector<1xf32> to vector<1x1xf32>
    %1162 = arith.addf %62, %1161 : vector<1x1xf32>
    %c0_621 = arith.constant 0 : index
    %c0_622 = arith.constant 0 : index
    %1163 = vector.load %arg29[%c0_621, %c0_622] : memref<16x128xf32, #tpu.memory_space<vmem>>, vector<16x128xf32>
    tpu.vector_store %arg29[%c0_621, %c0_622], %1079 {strides = array<i32>} : memref<16x128xf32, #tpu.memory_space<vmem>>, vector<16x128xf32>,
    %cst_623 = arith.constant dense<0.000000e+00> : vector<16xf32>
    %1164 = vector.multi_reduction <add>, %39, %cst_623 [1] : vector<16x128xf32> to vector<16xf32>
    %1165 = vector.shape_cast %1164 : vector<16xf32> to vector<16x1xf32>
    %cst_624 = arith.constant dense<0.000000e+00> : vector<1xf32>
    %1166 = vector.multi_reduction <add>, %1165, %cst_624 [0] : vector<16x1xf32> to vector<1xf32>
    %1167 = vector.shape_cast %1166 : vector<1xf32> to vector<1x1xf32>
    %1168 = vector.extract_strided_slice %39 {offsets = [0, 7], sizes = [16, 1], strides = [1, 1]} : vector<16x128xf32> to vector<16x1xf32>
    %cst_625 = arith.constant dense<0.000000e+00> : vector<16xf32>
    %1169 = vector.multi_reduction <add>, %1168, %cst_625 [1] : vector<16x1xf32> to vector<16xf32>
    %1170 = vector.shape_cast %1169 : vector<16xf32> to vector<16x1xf32>
    %cst_626 = arith.constant dense<0.000000e+00> : vector<1xf32>
    %1171 = vector.multi_reduction <add>, %1170, %cst_626 [0] : vector<16x1xf32> to vector<1xf32>
    %1172 = vector.shape_cast %1171 : vector<1xf32> to vector<1x1xf32>
    %1173 = vector.extract_strided_slice %39 {offsets = [0, 1], sizes = [16, 1], strides = [1, 1]} : vector<16x128xf32> to vector<16x1xf32>
    %cst_627 = arith.constant dense<0.000000e+00> : vector<16xf32>
    %1174 = vector.multi_reduction <add>, %1173, %cst_627 [1] : vector<16x1xf32> to vector<16xf32>
    %1175 = vector.shape_cast %1174 : vector<16xf32> to vector<16x1xf32>
    %cst_628 = arith.constant dense<0.000000e+00> : vector<1xf32>
    %1176 = vector.multi_reduction <add>, %1175, %cst_628 [0] : vector<16x1xf32> to vector<1xf32>
    %1177 = vector.shape_cast %1176 : vector<1xf32> to vector<1x1xf32>
    %1178 = vector.extract_strided_slice %39 {offsets = [0, 11], sizes = [16, 1], strides = [1, 1]} : vector<16x128xf32> to vector<16x1xf32>
    %cst_629 = arith.constant dense<0.000000e+00> : vector<16xf32>
    %1179 = vector.multi_reduction <add>, %1178, %cst_629 [1] : vector<16x1xf32> to vector<16xf32>
    %1180 = vector.shape_cast %1179 : vector<16xf32> to vector<16x1xf32>
    %cst_630 = arith.constant dense<0.000000e+00> : vector<1xf32>
    %1181 = vector.multi_reduction <add>, %1180, %cst_630 [0] : vector<16x1xf32> to vector<1xf32>
    %1182 = vector.shape_cast %1181 : vector<1xf32> to vector<1x1xf32>
    %1183 = tpu.iota {dimensions = array<i32: 0>} : vector<16x128xi32>
    %cst_631 = arith.constant 0.000000e+00 : f32
    %1184 = vector.broadcast %cst_631 : f32 to vector<16x128xf32>
    %c0_i32 = arith.constant 0 : i32
    %1185 = vector.broadcast %c0_i32 : i32 to vector<16x128xi32>
    %1186 = arith.cmpi eq, %1183, %1185 : vector<16x128xi32>
    %1187 = vector.shape_cast %1101 : vector<1x1xf32> to vector<1x1xf32>
    %1188 = vector.broadcast %1187 : vector<1x1xf32> to vector<16x128xf32>
    %1189 = arith.select %1186, %1188, %1184 : vector<16x128xi1>, vector<16x128xf32>
    %c1_i32 = arith.constant 1 : i32
    %1190 = vector.broadcast %c1_i32 : i32 to vector<16x128xi32>
    %1191 = arith.cmpi eq, %1183, %1190 : vector<16x128xi32>
    %1192 = vector.shape_cast %1131 : vector<1x1xf32> to vector<1x1xf32>
    %1193 = vector.broadcast %1192 : vector<1x1xf32> to vector<16x128xf32>
    %1194 = arith.select %1191, %1193, %1189 : vector<16x128xi1>, vector<16x128xf32>
    %c2_i32 = arith.constant 2 : i32
    %1195 = vector.broadcast %c2_i32 : i32 to vector<16x128xi32>
    %1196 = arith.cmpi eq, %1183, %1195 : vector<16x128xi32>
    %1197 = vector.shape_cast %1167 : vector<1x1xf32> to vector<1x1xf32>
    %1198 = vector.broadcast %1197 : vector<1x1xf32> to vector<16x128xf32>
    %1199 = arith.select %1196, %1198, %1194 : vector<16x128xi1>, vector<16x128xf32>
    %c3_i32 = arith.constant 3 : i32
    %1200 = vector.broadcast %c3_i32 : i32 to vector<16x128xi32>
    %1201 = arith.cmpi eq, %1183, %1200 : vector<16x128xi32>
    %1202 = vector.shape_cast %795 : vector<1x1xf32> to vector<1x1xf32>
    %1203 = vector.broadcast %1202 : vector<1x1xf32> to vector<16x128xf32>
    %1204 = arith.select %1201, %1203, %1199 : vector<16x128xi1>, vector<16x128xf32>
    %c4_i32 = arith.constant 4 : i32
    %1205 = vector.broadcast %c4_i32 : i32 to vector<16x128xi32>
    %1206 = arith.cmpi eq, %1183, %1205 : vector<16x128xi32>
    %1207 = vector.shape_cast %1172 : vector<1x1xf32> to vector<1x1xf32>
    %1208 = vector.broadcast %1207 : vector<1x1xf32> to vector<16x128xf32>
    %1209 = arith.select %1206, %1208, %1204 : vector<16x128xi1>, vector<16x128xf32>
    %c5_i32 = arith.constant 5 : i32
    %1210 = vector.broadcast %c5_i32 : i32 to vector<16x128xi32>
    %1211 = arith.cmpi eq, %1183, %1210 : vector<16x128xi32>
    %1212 = vector.shape_cast %258 : vector<1x1xf32> to vector<1x1xf32>
    %1213 = vector.broadcast %1212 : vector<1x1xf32> to vector<16x128xf32>
    %1214 = arith.select %1211, %1213, %1209 : vector<16x128xi1>, vector<16x128xf32>
    %c6_i32 = arith.constant 6 : i32
    %1215 = vector.broadcast %c6_i32 : i32 to vector<16x128xi32>
    %1216 = arith.cmpi eq, %1183, %1215 : vector<16x128xi32>
    %1217 = vector.shape_cast %1177 : vector<1x1xf32> to vector<1x1xf32>
    %1218 = vector.broadcast %1217 : vector<1x1xf32> to vector<16x128xf32>
    %1219 = arith.select %1216, %1218, %1214 : vector<16x128xi1>, vector<16x128xf32>
    %c7_i32 = arith.constant 7 : i32
    %1220 = vector.broadcast %c7_i32 : i32 to vector<16x128xi32>
    %1221 = arith.cmpi eq, %1183, %1220 : vector<16x128xi32>
    %1222 = vector.shape_cast %1162 : vector<1x1xf32> to vector<1x1xf32>
    %1223 = vector.broadcast %1222 : vector<1x1xf32> to vector<16x128xf32>
    %1224 = arith.select %1221, %1223, %1219 : vector<16x128xi1>, vector<16x128xf32>
    %c8_i32 = arith.constant 8 : i32
    %1225 = vector.broadcast %c8_i32 : i32 to vector<16x128xi32>
    %1226 = arith.cmpi eq, %1183, %1225 : vector<16x128xi32>
    %1227 = vector.shape_cast %1182 : vector<1x1xf32> to vector<1x1xf32>
    %1228 = vector.broadcast %1227 : vector<1x1xf32> to vector<16x128xf32>
    %1229 = arith.select %1226, %1228, %1224 : vector<16x128xi1>, vector<16x128xf32>
    %c0_632 = arith.constant 0 : index
    %c0_633 = arith.constant 0 : index
    %1230 = vector.load %arg31[%c0_632, %c0_633] : memref<16x128xf32, #tpu.memory_space<vmem>>, vector<16x128xf32>
    tpu.vector_store %arg31[%c0_632, %c0_633], %1229 {strides = array<i32>} : memref<16x128xf32, #tpu.memory_space<vmem>>, vector<16x128xf32>,
    return
  }
}

</mosaic_0001>

<bundles_post_ra>
// kernel: div.19
= control target key start
LH: loop header
LB: loop body
LE: loop exit
PB: predicated region body
PF: predicated region fallthrough
CT: control target
= control target key end

     0   :  { %vm8_vm0 = vcmask 64512   ;;  %s42_s0 = inlined_call_operand.vmem [shape: f32[16], index: 0, kind: input, shape index: {}]   ;;  %s43_s1 = inlined_call_operand.vmem [shape: f32[2,8], index: 1, kind: output, shape index: {}]  }
   0x1   :  { %v5_v0 = vld [vmem:[%s42_s0] sm:$0x1]  ;;  %s25_s0 = smov 120  }
   0x2   :  { %6 = vst [vmem:[#allocation1] sm:$0x1] %v5_v0 }
   0x9   :  { %v10_v1 = vld [vmem:[#allocation1] sm:$0x1]  }
   0xa   :  { %v7_v2 = vld [vmem:[#allocation1] sm:$0x1]   ;;  %11 = vrot.lane.b32.xlu0 %v10_v1, %s25_s0 }
   0xb   :  { %9 = vst.msk [vmem:[#allocation0] sm:$0x1] %vm8_vm0, %v7_v2  }
  0x7c   :  { %v12_v3 = vpop.permute.xlu0 %11  }
  0x7d   :  { %15 = vst.msk [vmem:[#allocation0 + $0x1] sm:$0x1] %vm8_vm0, %v12_v3  }
  0x84   :  { %v20_v4 = vld [vmem:[#allocation0] sm:$0x3] }
  0x85   :  { %23 = vst [vmem:[%s43_s1] sm:$0x3] %v20_v4 }

// kernel: health_moe_forward.1
= control target key start
LH: loop header
LB: loop body
LE: loop exit
PB: predicated region body
PF: predicated region fallthrough
CT: control target
= control target key end

     0   :  { %s10099_s6 = smov 1   ;;  %s10100_s10 = smov 2   ;;  %s11361_s0 = inlined_call_operand.smem [shape: u32[32], index: -1, kind: input, shape index: {}] }
   0x1   :  { %s10186_s5 = sld [smem:[%s11361_s0]]   ;;  %s10101_s14 = smov 3  }
   0x2   :  { %s10191_s9 = sld [smem:[%s11361_s0 + %s10099_s6]]   ;;  %s10102_s18 = smov 4  }
   0x3   :  { %s10196_s13 = sld [smem:[%s11361_s0 + %s10100_s10]]   ;;  %s10103_s22 = smov 5  }
   0x4   :  { %s10201_s17 = sld [smem:[%s11361_s0 + %s10101_s14]]   ;;  %s10104_s26 = smov 6  }
   0x5   :  { %s10206_s21 = sld [smem:[%s11361_s0 + %s10102_s18]]   ;;  %s10105_s30 = smov 7  }
   0x6   :  { %s10211_s25 = sld [smem:[%s11361_s0 + %s10103_s22]]   ;;  %s10106_s4 = smov 8  }
   0x7   :  { %11394 = sst [smem:[#allocation38_spill]] %s10186_s5  ;;  %s10107_s10 = smov 9  }
   0x8   :  { %11395 = sst [smem:[#allocation39_spill]] %s10191_s9  ;;  %s10108_s15 = smov 10  }
   0x9   :  { %11396 = sst [smem:[#allocation40_spill]] %s10196_s13  ;;  %s10109_s20 = smov 11  }
   0xa   :  { %s10216_s29 = sld [smem:[%s11361_s0 + %s10104_s26]]   ;;  %s10110_s26 = smov 12  }
   0xb   :  { %s10221_s3 = sld [smem:[%s11361_s0 + %s10105_s30]]   ;;  %s10111_s1 = smov 13  }
   0xc   :  { %s10226_s8 = sld [smem:[%s11361_s0 + %s10106_s4]]   ;;  %s10112_s7 = smov 14  }
   0xd   :  { %s10231_s14 = sld [smem:[%s11361_s0 + %s10107_s10]]   ;;  %s10114_s22 = smov 16  }
   0xe   :  { %s10236_s19 = sld [smem:[%s11361_s0 + %s10108_s15]]   ;;  %s10113_s15 = smov 15  }
   0xf   :  { %s10241_s24 = sld [smem:[%s11361_s0 + %s10109_s20]]   ;;  %s10115_s28 = smov 17  }
  0x10   :  { %s10246_s30 = sld [smem:[%s11361_s0 + %s10110_s26]]   ;;  %s10117_s16 = smov 19  }
  0x11   :  { %s10251_s6 = sld [smem:[%s11361_s0 + %s10111_s1]]   ;;  %s10118_s23 = smov 20  }
  0x12   :  { %s10256_s12 = sld [smem:[%s11361_s0 + %s10112_s7]]   ;;  %s10116_s7 = smov 18  }
  0x13   :  { %s10261_s20 = sld [smem:[%s11361_s0 + %s10113_s15]]   ;;  %s10119_s1 = smov 21  }
  0x14   :  { %s10266_s27 = sld [smem:[%s11361_s0 + %s10114_s22]]   ;;  %s10120_s10 = smov 22  }
  0x15   :  { %s10271_s4 = sld [smem:[%s11361_s0 + %s10115_s28]]   ;;  %s10125_s15 = smov 27  }
  0x16   :  { %s10279_s13 = sld [smem:[%s11361_s0 + %s10117_s16]]   ;;  %s10121_s16 = smov 23  }
  0x17   :  { %s10294_s5 = sld [smem:[%s11361_s0 + %s10120_s10]]   ;;  %s10124_s10 = smov 26  }
  0x18   :  { %11397 = sst [smem:[#allocation41_spill]] %s10256_s12 }
  0x19   :  { %s7140_s12 = sld [smem:[%s11361_s0 + %s10116_s7]]  }
  0x1a   :  { %11398 = sst [smem:[#allocation42_spill]] %s10266_s27 }
  0x1b   :  { %11399 = sst [smem:[#allocation43_spill]] %s10271_s4 }
  0x1c   :  { %11400 = sst [smem:[#allocation44_spill]] %s10279_s13 }
  0x1d   :  { %s10284_s27 = sld [smem:[%s11361_s0 + %s10118_s23]]   ;;  %s10122_s23 = smov 24  }
  0x1e   :  { %s10289_s4 = sld [smem:[%s11361_s0 + %s10119_s1]]   ;;  %s10123_s1 = smov 25  }
  0x1f   :  { %11402 = sst [smem:[#allocation46_spill]] %s10294_s5  ;;  %v69_v0 = vstv %s7140_s12  ;;  %s10126_s12 = smov 28  }
  0x20   :  { %s10299_s9 = sld [smem:[%s11361_s0 + %s10121_s16]]   ;;  %70 = vst [vmem:[#allocation2] sm:$0x1] %v69_v0  ;;  %s10128_s5 = smov 30  }
  0x21   :  { %s10309_s7 = sld [smem:[%s11361_s0 + %s10123_s1]]   ;;  %s10127_s1 = smov 29  }
  0x22   :  { %s10314_s16 = sld [smem:[%s11361_s0 + %s10124_s10]]  }
  0x23   :  { %11401 = sst [smem:[#allocation45_spill]] %s10284_s27 }
  0x24   :  { %s10304_s27 = sld [smem:[%s11361_s0 + %s10122_s23]]  }
  0x25   :  { %s10319_s23 = sld [smem:[%s11361_s0 + %s10125_s15]]  }
  0x26   :  { %11403 = sst [smem:[#allocation47_spill]] %s10299_s9  ;;  %s10129_s9 = smov 31  }
  0x27   :  { %11405 = sst [smem:[#allocation49_spill]] %s10309_s7 }
  0x28   :  { %s10324_s28 = sld [smem:[%s11361_s0 + %s10126_s12]]  }
  0x29   :  { %s10329_s7 = sld [smem:[%s11361_s0 + %s10127_s1]]  }
  0x2a   :  { %11404 = sst [smem:[#allocation48_spill]] %s10304_s27 }
  0x2b   :  { %11406 = sst [smem:[#allocation50_spill]] %s10319_s23 }
  0x2c   :  { %s10334_s13 = sld [smem:[%s11361_s0 + %s10128_s5]]  }
  0x2d   :  { %s10339_s23 = sld [smem:[%s11361_s0 + %s10129_s9]]  }
  0x2e   :  { %71 = vsyncpa [#allocation4], 0 }
  0x2f   :  { %72 = vsyncpa [#allocation6], 0 }
  0x30   :  { %73 = vsyncpa [#allocation9], 0 }
  0x31   :  { %74 = vsyncpa [#allocation12], 0 }
  0x32   :  { %75 = vsyncpa [#allocation15], 0 }
  0x33   :  { %76 = vsyncpa [#allocation18], 0 }
  0x34   :  { %77 = vsyncpa [#allocation21], 0 }
  0x35   :  { %78 = vsyncpa [#allocation24], 0 }
  0x36   :  { %79 = vsyncpa [#allocation27], 0  ;;  %s10130_s27 = smov [#allocation5]  }
  0x37   :  { %s103_s12 = sshll.u32 %s10130_s27, 4  ;;  %s104_s12 = int_to_ptr.vmem [resolvable:$true] %s103_s12 }
  0x38   :  { %s9749_s22 = scalar_lea.vmem %s104_s12, 192  ;;  %p9754_p1 = scmp.lt.s32.totalorder %s104_s12, %s104_s12 }
  0x39   :  { %p9750_p0 = scmp.ne.s32.totalorder %s104_s12, %s9749_s22  ;;  %p9755_p2 = scmp.lt.s32.totalorder %s9749_s22, %s9749_s22 }
  0x3b   :  { %p9756_p3 = por %p9755_p2, %p9754_p1 }
  0x3d   :  { %p9757_p4 = pnand %p9756_p3, %p9750_p0 }
  0x3f   :  { %9760 = shalt.err (!%p9757_p4)
}
  0x40   :  { %s10131_s0 = smov 16   ;;  %s10132_s26 = smov 1  }
  0x41   :  { %109 = dma.hbm_to_vmem [thread:$0]  %s10206_s21, 192, %s104_s12, [#allocation6], %s10131_s0, %s10131_s0, %s10132_s26  }
  0x42   :  { %s10133_s1 = smov [#allocation8]   ;;  %s10134_s5 = smov [#allocation11]  }
  0x43   :  { %s127_s2 = sshll.u32 %s10133_s1, 4  ;;  %s151_s10 = sshll.u32 %s10134_s5, 4  ;;  %s128_s2 = int_to_ptr.vmem [resolvable:$true] %s127_s2  ;;  %s152_s10 = int_to_ptr.vmem [resolvable:$true] %s151_s10 }
  0x44   :  { %s9769_s11 = scalar_lea.vmem %s128_s2, 192  ;;  %p9774_p6 = scmp.lt.s32.totalorder %s128_s2, %s128_s2 }
  0x45   :  { %p9770_p5 = scmp.ne.s32.totalorder %s128_s2, %s9769_s11  ;;  %p9775_p7 = scmp.lt.s32.totalorder %s9769_s11, %s9769_s11 }
  0x47   :  { %p9776_p8 = por %p9775_p7, %p9774_p6 }
  0x49   :  { %p9777_p9 = pnand %p9776_p8, %p9770_p5 }
  0x4b   :  { %9780 = shalt.err (!%p9777_p9)
}
  0x4c   :  { %133 = dma.hbm_to_vmem [thread:$0]  %s10216_s29, 192, %s128_s2, [#allocation9], %s10131_s0, %s10131_s0, %s10132_s26  }
  0x4d   :  { %s9789_s9 = scalar_lea.vmem %s152_s10, 192  ;;  %p9794_p11 = scmp.lt.s32.totalorder %s152_s10, %s152_s10 }
  0x4e   :  { %p9790_p10 = scmp.ne.s32.totalorder %s152_s10, %s9789_s9  ;;  %p9795_p12 = scmp.lt.s32.totalorder %s9789_s9, %s9789_s9 }
  0x50   :  { %p9796_p13 = por %p9795_p12, %p9794_p11 }
  0x52   :  { %p9797_p0 = pnand %p9796_p13, %p9790_p10 }
  0x54   :  { %9800 = shalt.err (!%p9797_p0)
}
  0x55   :  { %157 = dma.hbm_to_vmem [thread:$0]  %s10226_s8, 192, %s152_s10, [#allocation12], %s10131_s0, %s10131_s0, %s10132_s26  }
  0x56   :  { %s10135_s21 = smov [#allocation14]   ;;  %s10136_s18 = smov [#allocation17]  }
  0x57   :  { %s175_s15 = sshll.u32 %s10135_s21, 4  ;;  %s199_s27 = sshll.u32 %s10136_s18, 4  ;;  %s176_s15 = int_to_ptr.vmem [resolvable:$true] %s175_s15  ;;  %s200_s27 = int_to_ptr.vmem [resolvable:$true] %s199_s27 }
  0x58   :  { %s9809_s12 = scalar_lea.vmem %s176_s15, 192  ;;  %p9814_p2 = scmp.lt.s32.totalorder %s176_s15, %s176_s15 }
  0x59   :  { %p9810_p1 = scmp.ne.s32.totalorder %s176_s15, %s9809_s12  ;;  %p9815_p3 = scmp.lt.s32.totalorder %s9809_s12, %s9809_s12 }
  0x5b   :  { %p9816_p4 = por %p9815_p3, %p9814_p2 }
  0x5d   :  { %p9817_p5 = pnand %p9816_p4, %p9810_p1 }
  0x5f   :  { %9820 = shalt.err (!%p9817_p5)
}
  0x60   :  { %181 = dma.hbm_to_vmem [thread:$0]  %s10236_s19, 192, %s176_s15, [#allocation15], %s10131_s0, %s10131_s0, %s10132_s26  }
  0x61   :  { %s9829_s29 = scalar_lea.vmem %s200_s27, 192  ;;  %p9834_p7 = scmp.lt.s32.totalorder %s200_s27, %s200_s27 }
  0x62   :  { %p9830_p6 = scmp.ne.s32.totalorder %s200_s27, %s9829_s29  ;;  %p9835_p8 = scmp.lt.s32.totalorder %s9829_s29, %s9829_s29 }
  0x64   :  { %p9836_p9 = por %p9835_p8, %p9834_p7 }
  0x66   :  { %p9837_p10 = pnand %p9836_p9, %p9830_p6 }
  0x68   :  { %9840 = shalt.err (!%p9837_p10)
}
  0x69   :  { %205 = dma.hbm_to_vmem [thread:$0]  %s10246_s30, 192, %s200_s27, [#allocation18], %s10131_s0, %s10131_s0, %s10132_s26  }
  0x6a   :  { %s10137_s8 = smov [#allocation20]   ;;  %s10138_s1 = smov [#allocation23]  }
  0x6b   :  { %s225_s22 = sshll.u32 %s10137_s8, 4  ;;  %s257_s2 = sshll.u32 %s10138_s1, 4  ;;  %s226_s22 = int_to_ptr.vmem [resolvable:$true] %s225_s22  ;;  %s258_s2 = int_to_ptr.vmem [resolvable:$true] %s257_s2 }
  0x6c   :  { %s9849_s5 = scalar_lea.vmem %s226_s22, 256  ;;  %p9854_p12 = scmp.lt.s32.totalorder %s226_s22, %s226_s22 }
  0x6d   :  { %p9850_p11 = scmp.ne.s32.totalorder %s226_s22, %s9849_s5  ;;  %p9855_p13 = scmp.lt.s32.totalorder %s9849_s5, %s9849_s5 }
  0x6f   :  { %p9856_p0 = por %p9855_p13, %p9854_p12 }
  0x71   :  { %p9857_p1 = pnand %p9856_p0, %p9850_p11 }
  0x73   :  { %9860 = shalt.err (!%p9857_p1)
}
  0x74   :  { %s10139_s19 = smov 128   ;;  %s10140_s10 = smov 8  }
  0x75   :  { %231 = dma.hbm_to_vmem [thread:$0]  %s10261_s20, 256, %s226_s22, [#allocation21], %s10139_s19, %s10139_s19, %s10140_s10  }
  0x76   :  { %s9869_s30 = scalar_lea.vmem %s258_s2, 256  ;;  %p9874_p3 = scmp.lt.s32.totalorder %s258_s2, %s258_s2 }
  0x77   :  { %p9870_p2 = scmp.ne.s32.totalorder %s258_s2, %s9869_s30  ;;  %p9875_p4 = scmp.lt.s32.totalorder %s9869_s30, %s9869_s30 }
  0x79   :  { %p9876_p5 = por %p9875_p4, %p9874_p3 }
  0x7b   :  { %p9877_p6 = pnand %p9876_p5, %p9870_p2 }
  0x7d   :  { %9880 = shalt.err (!%p9877_p6)
}
  0x7e   :  { %263 = dma.hbm_to_vmem [thread:$0]  %s10289_s4, 256, %s258_s2, [#allocation24], %s10139_s19, %s10139_s19, %s10140_s10  }
  0x7f   :  { %s10141_s11 = smov [#allocation26]   ;;  %s10142_s21 = smov [#allocation3]  }
  0x80   :  { %s288_s9 = sshll.u32 %s10141_s11, 4  ;;  %s91_s15 = sshll.u32 %s10142_s21, 4  ;;  %s289_s9 = int_to_ptr.vmem [resolvable:$true] %s288_s9  ;;  %s92_s15 = int_to_ptr.vmem [resolvable:$true] %s91_s15 }
  0x81   :  { %s9889_s18 = scalar_lea.vmem %s289_s9, 16  ;;  %s9893_s20 = scalar_lea.vmem %s289_s9, 32 }
  0x82   :  { %p9890_p7 = scmp.ne.s32.totalorder %s289_s9, %s9889_s18  ;;  %p9894_p8 = scmp.lt.s32.totalorder %s289_s9, %s289_s9 }
  0x83   :  { %p9895_p9 = scmp.lt.s32.totalorder %s9893_s20, %s9889_s18 }
  0x85   :  { %p9896_p10 = por %p9895_p9, %p9894_p8 }
  0x87   :  { %p9897_p11 = pnand %p9896_p10, %p9890_p7 }
  0x89   :  { %9900 = shalt.err (!%p9897_p11)
}
  0x8a   :  { %291 = dma.hbm_to_vmem [thread:$0]  %s10314_s16, 16, %s289_s9, [#allocation27]  }
  0x8b   :  { %s9909_s27 = scalar_lea.vmem %s92_s15, 12288  ;;  %p9914_p13 = scmp.lt.s32.totalorder %s92_s15, %s92_s15 }
  0x8c   :  { %p9910_p12 = scmp.ne.s32.totalorder %s92_s15, %s9909_s27  ;;  %p9915_p0 = scmp.lt.s32.totalorder %s9909_s27, %s9909_s27 }
  0x8e   :  { %p9916_p1 = por %p9915_p0, %p9914_p13 }
  0x90   :  { %p9917_p2 = pnand %p9916_p1, %p9910_p12 }
  0x92   :  { %9920 = shalt.err (!%p9917_p2)
}
  0x93   :  { %s10143_s4 = smov 64   ;;  %s10144_s12 = smov 4  }
  0x94   :  { %97 = dma.hbm_to_vmem [thread:$0]  %s10201_s17, 12288, %s92_s15, [#allocation4], %s10143_s4, %s10143_s4, %s10144_s12  }
  0x95   :  { %s10145_s29 = smov [#allocation7]   ;;  %s10146_s22 = smov [#allocation10]  }
  0x96   :  { %s115_s8 = sshll.u32 %s10145_s29, 4  ;;  %s139_s1 = sshll.u32 %s10146_s22, 4  ;;  %s116_s8 = int_to_ptr.vmem [resolvable:$true] %s115_s8  ;;  %s140_s1 = int_to_ptr.vmem [resolvable:$true] %s139_s1 }
  0x97   :  { %s9929_s2 = scalar_lea.vmem %s116_s8, 12288  ;;  %p9934_p4 = scmp.lt.s32.totalorder %s116_s8, %s116_s8 }
  0x98   :  { %p9930_p3 = scmp.ne.s32.totalorder %s116_s8, %s9929_s2  ;;  %p9935_p5 = scmp.lt.s32.totalorder %s9929_s2, %s9929_s2 }
  0x9a   :  { %p9936_p6 = por %p9935_p5, %p9934_p4 }
  0x9c   :  { %p9937_p7 = pnand %p9936_p6, %p9930_p3 }
  0x9e   :  { %9940 = shalt.err (!%p9937_p7)
}
  0x9f   :  { %121 = dma.hbm_to_vmem [thread:$0]  %s10211_s25, 12288, %s116_s8, [#allocation6], %s10143_s4, %s10143_s4, %s10144_s12  }
  0xa0   :  { %s9949_s16 = scalar_lea.vmem %s140_s1, 192  ;;  %p9954_p9 = scmp.lt.s32.totalorder %s140_s1, %s140_s1 }
  0xa1   :  { %p9950_p8 = scmp.ne.s32.totalorder %s140_s1, %s9949_s16  ;;  %p9955_p10 = scmp.lt.s32.totalorder %s9949_s16, %s9949_s16 }
  0xa3   :  { %p9956_p11 = por %p9955_p10, %p9954_p9 }
  0xa5   :  { %p9957_p12 = pnand %p9956_p11, %p9950_p8 }
  0xa7   :  { %9960 = shalt.err (!%p9957_p12)
}
  0xa8   :  { %145 = dma.hbm_to_vmem [thread:$0]  %s10221_s3, 192, %s140_s1, [#allocation9], %s10131_s0, %s10131_s0, %s10132_s26  }
  0xa9   :  { %s10147_s17 = smov [#allocation13]   ;;  %s10148_s30 = smov [#allocation16]  }
  0xaa   :  { %s163_s5 = sshll.u32 %s10147_s17, 4  ;;  %s187_s11 = sshll.u32 %s10148_s30, 4  ;;  %s164_s5 = int_to_ptr.vmem [resolvable:$true] %s163_s5  ;;  %s188_s11 = int_to_ptr.vmem [resolvable:$true] %s187_s11 }
  0xab   :  { %s9969_s9 = scalar_lea.vmem %s164_s5, 24576  ;;  %p9974_p0 = scmp.lt.s32.totalorder %s164_s5, %s164_s5 }
  0xac   :  { %p9970_p13 = scmp.ne.s32.totalorder %s164_s5, %s9969_s9  ;;  %p9975_p1 = scmp.lt.s32.totalorder %s9969_s9, %s9969_s9 }
  0xae   :  { %p9976_p2 = por %p9975_p1, %p9974_p0 }
  0xb0   :  { %p9977_p3 = pnand %p9976_p2, %p9970_p13 }
  0xb2   :  { %9980 = shalt.err (!%p9977_p3)
}
  0xb3   :  { %169 = dma.hbm_to_vmem [thread:$0]  %s10231_s14, 24576, %s164_s5, [#allocation12], %s10139_s19, %s10139_s19, %s10140_s10  }
  0xb4   :  { %s9989_s25 = scalar_lea.vmem %s188_s11, 192  ;;  %p9994_p5 = scmp.lt.s32.totalorder %s188_s11, %s188_s11 }
  0xb5   :  { %p9990_p4 = scmp.ne.s32.totalorder %s188_s11, %s9989_s25  ;;  %p9995_p6 = scmp.lt.s32.totalorder %s9989_s25, %s9989_s25 }
  0xb7   :  { %p9996_p7 = por %p9995_p6, %p9994_p5 }
  0xb9   :  { %p9997_p8 = pnand %p9996_p7, %p9990_p4 }
  0xbb   :  { %10000 = shalt.err (!%p9997_p8)
}
  0xbc   :  { %193 = dma.hbm_to_vmem [thread:$0]  %s10241_s24, 192, %s188_s11, [#allocation15], %s10131_s0, %s10131_s0, %s10132_s26  }
  0xbd   :  { %s10149_s3 = smov [#allocation19]   ;;  %s10150_s15 = smov [#allocation22]  }
  0xbe   :  { %s211_s21 = sshll.u32 %s10149_s3, 4  ;;  %s243_s18 = sshll.u32 %s10150_s15, 4  ;;  %s212_s21 = int_to_ptr.vmem [resolvable:$true] %s211_s21  ;;  %s244_s18 = int_to_ptr.vmem [resolvable:$true] %s243_s18 }
  0xbf   :  { %s10009_s20 = scalar_lea.vmem %s212_s21, 2048  ;;  %p10014_p10 = scmp.lt.s32.totalorder %s212_s21, %s212_s21 }
  0xc0   :  { %p10010_p9 = scmp.ne.s32.totalorder %s212_s21, %s10009_s20  ;;  %p10015_p11 = scmp.lt.s32.totalorder %s10009_s20, %s10009_s20 }
  0xc2   :  { %p10016_p12 = por %p10015_p11, %p10014_p10 }
  0xc4   :  { %p10017_p13 = pnand %p10016_p12, %p10010_p9 }
  0xc6   :  { %10020 = shalt.err (!%p10017_p13)
}
  0xc7   :  { %217 = dma.hbm_to_vmem [thread:$0]  %s10251_s6, 2048, %s212_s21, [#allocation18], %s10139_s19, %s10139_s19, %s10140_s10  }
  0xc8   :  { %s10029_s14 = scalar_lea.vmem %s244_s18, 2048  ;;  %p10034_p1 = scmp.lt.s32.totalorder %s244_s18, %s244_s18 }
  0xc9   :  { %p10030_p0 = scmp.ne.s32.totalorder %s244_s18, %s10029_s14  ;;  %p10035_p2 = scmp.lt.s32.totalorder %s10029_s14, %s10029_s14 }
  0xcb   :  { %p10036_p3 = por %p10035_p2, %p10034_p1 }
  0xcd   :  { %p10037_p4 = pnand %p10036_p3, %p10030_p0 }
  0xcf   :  { %10040 = shalt.err (!%p10037_p4)
}
  0xd0   :  { %s11407_s24 = sld [smem:[#allocation44_spill]]  ;;  %s10151_s0 = smov [#allocation25]  }
  0xd1   :  { %s271_s26 = sshll.u32 %s10151_s0, 4  ;;  %s10152_s27 = smov [#allocation28]   ;;  %s272_s26 = int_to_ptr.vmem [resolvable:$true] %s271_s26 }
  0xd2   :  { %s297_s4 = sshll.u32 %s10152_s27, 4  ;;  %s10049_s12 = scalar_lea.vmem %s272_s26, 2048  ;;  %s298_s4 = int_to_ptr.vmem [resolvable:$true] %s297_s4 }
  0xd3   :  { %p10050_p5 = scmp.ne.s32.totalorder %s272_s26, %s10049_s12  ;;  %p10054_p6 = scmp.lt.s32.totalorder %s272_s26, %s272_s26 }
  0xd4   :  { %p10055_p7 = scmp.lt.s32.totalorder %s10049_s12, %s10049_s12 }
  0xd6   :  { %249 = dma.hbm_to_vmem [thread:$0]  %s11407_s24, 2048, %s244_s18, [#allocation21], %s10139_s19, %s10139_s19, %s10140_s10  }
  0xd7   :  { %p10056_p8 = por %p10055_p7, %p10054_p6 }
  0xd9   :  { %p10057_p9 = pnand %p10056_p8, %p10050_p5 }
  0xdb   :  { %10060 = shalt.err (!%p10057_p9)
}
  0xdc   :  { %s11408_s6 = sld [smem:[#allocation47_spill]]  ;;  %s10069_s29 = scalar_lea.vmem %s298_s4, 256 }
  0xdd   :  { %p10070_p10 = scmp.ne.s32.totalorder %s298_s4, %s10069_s29  ;;  %p10074_p11 = scmp.lt.s32.totalorder %s298_s4, %s298_s4 }
  0xde   :  { %p10075_p12 = scmp.lt.s32.totalorder %s10069_s29, %s10069_s29 }
  0xe0   :  { %p10076_p13 = por %p10075_p12, %p10074_p11 }
  0xe2   :  { %277 = dma.hbm_to_vmem [thread:$0]  %s11408_s6, 2048, %s272_s26, [#allocation24], %s10139_s19, %s10139_s19, %s10140_s10  }
  0xe3   :  { %p10077_p0 = pnand %p10076_p13, %p10070_p10 }
  0xe5   :  { %10080 = shalt.err (!%p10077_p0)
}
  0xe6   :  { %s11409_s8 = sld [smem:[#allocation50_spill]] }
  0xec   :  { %303 = dma.hbm_to_vmem [thread:$0]  %s11409_s8, 256, %s298_s4, [#allocation27], %s10139_s19, %s10139_s19, %s10140_s10  }
  0xed   :  { %10081 = dma.done.wait [#allocation4], 12288  }
  0xee   :  { %10082 = vsyncadd [#allocation4], 4294955008 }
  0xef   :  { %10083 = dma.done.wait [#allocation6], 12480  }
  0xf0   :  { %10084 = vsyncadd [#allocation6], 4294954816 }
  0xf1   :  { %10085 = dma.done.wait [#allocation9], 384  }
  0xf2   :  { %10086 = vsyncadd [#allocation9], 4294966912 }
  0xf3   :  { %10087 = dma.done.wait [#allocation12], 24768  }
  0xf4   :  { %10088 = vsyncadd [#allocation12], 4294942528 }
  0xf5   :  { %10089 = dma.done.wait [#allocation15], 384  }
  0xf6   :  { %10090 = vsyncadd [#allocation15], 4294966912 }
  0xf7   :  { %10091 = dma.done.wait [#allocation18], 2240  }
  0xf8   :  { %10092 = vsyncadd [#allocation18], 4294965056 }
  0xf9   :  { %10093 = dma.done.wait [#allocation21], 2304  }
  0xfa   :  { %10094 = vsyncadd [#allocation21], 4294964992 }
  0xfb   :  { %10095 = dma.done.wait [#allocation24], 2304  }
  0xfc   :  { %10096 = vsyncadd [#allocation24], 4294964992 }
  0xfd   :  { %10097 = dma.done.wait [#allocation27], 272  }
  0xfe   :  { %10098 = vsyncadd [#allocation27], 4294967024  ;;  %s11410_s22 = sld [smem:[#allocation39_spill]]  ;;  %v11372_v1 = vmov 0.0   ;;  %vm10154_vm0 = vmmov 0   ;;  %v9256_v3 = vld [vmem:[#allocation3 + $0x38] sm:$0xff]   ;;  %v11365_v27 = vlaneseq }
  0xff   :  { %8024 = vmatprep.subr.bf16.mxu0 %v11372_v1  ;;  %8044 = vmatprep.subr.bf16.mxu1 %v11372_v1  ;;  %v9258_v5 = vld [vmem:[#allocation3 + $0x30] sm:$0xff]   ;;  %v9260_v7 = vld [vmem:[#allocation3 + $0x28] sm:$0xff]   ;;  %v9262_v9 = vld [vmem:[#allocation3 + $0x20] sm:$0xff]   ;;  %s11411_s19 = sld [smem:[#allocation38_spill]]  ;;  %vm981_vm2 = vcmask 64512   ;;  %vm1603_vm7 = vcmask 130048  }
 0x100   :  { %8040 = vmatprep.mubr.msk.bf16.mxu0 %vm10154_vm0, %v11372_v1  ;;  %8060 = vmatprep.mubr.msk.bf16.mxu1 %vm10154_vm0, %v11372_v1  ;;  %v9264_v11 = vld [vmem:[#allocation3 + $0x18] sm:$0xff]   ;;  %v9266_v13 = vld [vmem:[#allocation3 + $0x10] sm:$0xff]   ;;  %v9268_v15 = vld [vmem:[#allocation3 + $0x8] sm:$0xff]   ;;  %s11412_s10 = sld [smem:[#allocation40_spill]]  ;;  %v10445_v28 = vand.u32 127, %v11365_v27  ;;  %s10156_s1 = smov 127  }
 0x101   :  { %8045 = vmatpush3.bf16.msra.mxu1 %v9256_v3  ;;  %v9270_v17 = vld [vmem:[#allocation3] sm:$0xff]   ;;  %v9274_v21 = vld [vmem:[#allocation7 + $0x28] sm:$0xff]   ;;  %v9275_v22 = vld [vmem:[#allocation7 + $0x20] sm:$0xff]   ;;  %s10157_s2 = smov 126   ;;  %s10158_s16 = smov 125   ;;  %vm861_vm12 = vcmask 7168  }
 0x102   :  { %8046 = vmatprep.subr.bf16.mxu1 %v11372_v1  ;;  %v9272_v19 = vld [vmem:[#allocation7 + $0x38] sm:$0xff]   ;;  %v9273_v20 = vld [vmem:[#allocation7 + $0x30] sm:$0xff]   ;;  %v9278_v25 = vld [vmem:[#allocation7 + $0x8] sm:$0xff]   ;;  %vm482_vm1 = vcmp.lt.s32.totalorder %v10445_v28, 12  ;;  %s10159_s17 = smov 124   ;;  %s10160_s5 = smov 123  }
 0x103   :  { %v9276_v23 = vld [vmem:[#allocation7 + $0x18] sm:$0xff]   ;;  %v9277_v24 = vld [vmem:[#allocation7 + $0x10] sm:$0xff]   ;;  %v9279_v26 = vld [vmem:[#allocation7] sm:$0xff]   ;;  %s10161_s30 = smov 122   ;;  %s10162_s11 = smov 121   ;;  %vm1685_vm13 = vcmask 31744  }
 0x104   :  { %v9255_v2 = vld [vmem:[%s11410_s22 + $0x38] sm:$0xff]   ;;  %v9257_v4 = vld [vmem:[%s11410_s22 + $0x30] sm:$0xff]   ;;  %v9259_v6 = vld [vmem:[%s11410_s22 + $0x28] sm:$0xff]   ;;  %s10163_s9 = smov 120   ;;  %s10164_s25 = smov 119   ;;  %vm7011_vm14 = vcmask 15368  }
 0x105   :  { %8025 = vmatpush3.bf16.msra.mxu0 %v9255_v2  ;;  %8047 = vmatpush3.bf16.msra.mxu1 %v9258_v5  ;;  %v9261_v8 = vld [vmem:[%s11410_s22 + $0x20] sm:$0xff]   ;;  %v9263_v10 = vld [vmem:[%s11410_s22 + $0x18] sm:$0xff]   ;;  %v9265_v12 = vld [vmem:[%s11410_s22 + $0x10] sm:$0xff]   ;;  %s10165_s3 = smov 118   ;;  %s11414_s21 = sld [smem:[#allocation46_spill]]  ;;  %vm6775_vm15 = vcmask 261120  }
 0x106   :  { %8026 = vmatprep.subr.bf16.mxu0 %v11372_v1  ;;  %8048 = vmatprep.subr.bf16.mxu1 %v11372_v1  ;;  %v9267_v14 = vld [vmem:[%s11410_s22 + $0x8] sm:$0xff]   ;;  %v9269_v16 = vld [vmem:[%s11410_s22] sm:$0xff]   ;;  %v9281_v5 = vld [vmem:[#allocation3 + $0x70] sm:$0xff]   ;;  %s11425_s15 = sld [smem:[#allocation41_spill]]  ;;  %s10177_s24 = smov 117  }
 0x107   :  { %v10428_v18 = vld [vmem:[%s11411_s19] sm:$0xff]   ;;  %v887_v63 = vld [vmem:[#allocation13 + $0x78] sm:$0xff]  ;;  %s11426_s18 = sld [smem:[#allocation42_spill]] }
 0x108   :  { %v7154_v29 = vld [vmem:[%s11412_s10] ss:$0 sm:$0xff]  ;;  %v7166_v30 = vld [vmem:[#allocation5] ss:$0 sm:$0xff]  ;;  %s11427_s20 = sld [smem:[#allocation43_spill]] }
 0x109   :  { %8027 = vmatpush3.bf16.msra.mxu0 %v9257_v4  ;;  %8049 = vmatpush3.bf16.msra.mxu1 %v9260_v7  ;;  %v886_v0 = vld [vmem:[#allocation13 + $0x70] sm:$0xff]  ;;  %v9280_v2 = vld [vmem:[#allocation3 + $0x78] sm:$0xff]   ;;  %v883_v7 = vld [vmem:[#allocation13 + $0x58] sm:$0xff]  ;;  %s11431_s14 = sld [smem:[#allocation49_spill]] }
 0x10a   :  { %8028 = vmatprep.subr.bf16.mxu0 %v11372_v1  ;;  %8050 = vmatprep.subr.bf16.mxu1 %v11372_v1  ;;  %v885_v4 = vld [vmem:[#allocation13 + $0x68] sm:$0xff]  ;;  %s11448_s0 = sld [smem:[#allocation48_spill]] }
 0x10d   :  { %8029 = vmatpush3.bf16.msra.mxu0 %v9259_v6  ;;  %8051 = vmatpush3.bf16.msra.mxu1 %v9262_v9  ;;  %v884_v6 = vld [vmem:[#allocation13 + $0x60] sm:$0xff]  ;;  %v882_v9 = vld [vmem:[#allocation13 + $0x50] sm:$0xff] }
 0x10e   :  { %8030 = vmatprep.subr.bf16.mxu0 %v11372_v1  ;;  %8052 = vmatprep.subr.bf16.mxu1 %v11372_v1 }
 0x111   :  { %8031 = vmatpush3.bf16.msra.mxu0 %v9261_v8  ;;  %8053 = vmatpush3.bf16.msra.mxu1 %v9264_v11  ;;  %v9282_v8 = vld [vmem:[#allocation3 + $0x68] sm:$0xff]   ;;  %v9283_v11 = vld [vmem:[#allocation3 + $0x60] sm:$0xff]  }
 0x112   :  { %8032 = vmatprep.subr.bf16.mxu0 %v11372_v1  ;;  %8054 = vmatprep.subr.bf16.mxu1 %v11372_v1 }
 0x115   :  { %8033 = vmatpush3.bf16.msra.mxu0 %v9263_v10  ;;  %8055 = vmatpush3.bf16.msra.mxu1 %v9266_v13  ;;  %v881_v10 = vld [vmem:[#allocation13 + $0x48] sm:$0xff]  ;;  %v879_v13 = vld [vmem:[#allocation13 + $0x38] sm:$0xff] }
 0x116   :  { %8034 = vmatprep.subr.bf16.mxu0 %v11372_v1  ;;  %8056 = vmatprep.subr.bf16.mxu1 %v11372_v1 }
 0x119   :  { %8035 = vmatpush3.bf16.msra.mxu0 %v9265_v12  ;;  %8057 = vmatpush3.bf16.msra.mxu1 %v9268_v15  ;;  %v880_v12 = vld [vmem:[#allocation13 + $0x40] sm:$0xff]  ;;  %v878_v15 = vld [vmem:[#allocation13 + $0x30] sm:$0xff] }
 0x11a   :  { %8036 = vmatprep.subr.bf16.mxu0 %v11372_v1  ;;  %8058 = vmatprep.subr.bf16.mxu1 %v11372_v1 }
 0x11d   :  { %8037 = vmatpush3.bf16.msra.mxu0 %v9267_v14  ;;  %8059 = vmatpush3.bf16.msra.mxu1 %v9270_v17  ;;  %v9284_v14 = vld [vmem:[#allocation3 + $0x58] sm:$0xff]   ;;  %v9285_v17 = vld [vmem:[#allocation3 + $0x50] sm:$0xff]  }
 0x11e   :  { %8038 = vmatprep.subr.bf16.mxu0 %v11372_v1  ;;  %8084 = vmatprep.subr.mxu1 %v887_v63 }
 0x120   :  { %8061 = vmatmul.mubr.bf16.vlgmr.msra.gmra.mxu1 %v10428_v18 }
 0x121   :  { %8039 = vmatpush3.bf16.msra.mxu0 %v9269_v16  ;;  %8085 = vmatpush3.msra.mxu1 %v887_v63  ;;  %v877_v16 = vld [vmem:[#allocation13 + $0x28] sm:$0xff] }
 0x122   :  { %8064 = vmatprep.subr.bf16.mxu0 %v11372_v1  ;;  %8086 = vmatprep.subr.mxu1 %v886_v0 }
 0x123   :  { %8087 = vmatpush3.msra.mxu1 %v886_v0 }
 0x124   :  { %8041 = vmatmul.mubr.bf16.vlgmr.msra.gmra.mxu0 %v10428_v18  ;;  %8088 = vmatprep.subr.mxu1 %v885_v4 }
 0x125   :  { %8080 = vmatprep.mubr.msk.bf16.mxu0 %vm10154_vm0, %v11372_v1  ;;  %8065 = vmatpush3.bf16.msra.mxu0 %v9272_v19  ;;  %v876_v19 = vld [vmem:[#allocation13 + $0x20] sm:$0xff] }
 0x126   :  { %8066 = vmatprep.subr.bf16.mxu0 %v11372_v1  ;;  %8089 = vmatpush3.msra.mxu1 %v885_v4 }
 0x127   :  { %8090 = vmatprep.subr.mxu1 %v884_v6 }
 0x128   :  { %8091 = vmatpush3.msra.mxu1 %v884_v6 }
 0x129   :  { %8067 = vmatpush3.bf16.msra.mxu0 %v9273_v20  ;;  %8092 = vmatprep.subr.mxu1 %v883_v7  ;;  %v875_v20 = vld [vmem:[#allocation13 + $0x18] sm:$0xff] }
 0x12a   :  { %8068 = vmatprep.subr.bf16.mxu0 %v11372_v1  ;;  %8093 = vmatpush3.msra.mxu1 %v883_v7 }
 0x12b   :  { %8094 = vmatprep.subr.mxu1 %v882_v9 }
 0x12c   :  { %8095 = vmatpush3.msra.mxu1 %v882_v9 }
 0x12d   :  { %8069 = vmatpush3.bf16.msra.mxu0 %v9274_v21  ;;  %8096 = vmatprep.subr.mxu1 %v881_v10  ;;  %v9286_v21 = vld [vmem:[#allocation3 + $0x48] sm:$0xff]  }
 0x12e   :  { %8070 = vmatprep.subr.bf16.mxu0 %v11372_v1  ;;  %8097 = vmatpush3.msra.mxu1 %v881_v10 }
 0x12f   :  { %8098 = vmatprep.subr.mxu1 %v880_v12 }
 0x130   :  { %8099 = vmatpush3.msra.mxu1 %v880_v12 }
 0x131   :  { %8071 = vmatpush3.bf16.msra.mxu0 %v9275_v22  ;;  %8100 = vmatprep.subr.mxu1 %v879_v13  ;;  %v9287_v22 = vld [vmem:[#allocation3 + $0x40] sm:$0xff]  }
 0x132   :  { %8072 = vmatprep.subr.bf16.mxu0 %v11372_v1  ;;  %8101 = vmatpush3.msra.mxu1 %v879_v13 }
 0x133   :  { %8102 = vmatprep.subr.mxu1 %v878_v15 }
 0x134   :  { %8103 = vmatpush3.msra.mxu1 %v878_v15 }
 0x135   :  { %8073 = vmatpush3.bf16.msra.mxu0 %v9276_v23  ;;  %8104 = vmatprep.subr.mxu1 %v877_v16  ;;  %v874_v23 = vld [vmem:[#allocation13 + $0x10] sm:$0xff] }
 0x136   :  { %8074 = vmatprep.subr.bf16.mxu0 %v11372_v1  ;;  %8105 = vmatpush3.msra.mxu1 %v877_v16 }
 0x137   :  { %8106 = vmatprep.subr.mxu1 %v876_v19 }
 0x138   :  { %8107 = vmatpush3.msra.mxu1 %v876_v19 }
 0x139   :  { %8075 = vmatpush3.bf16.msra.mxu0 %v9277_v24  ;;  %8108 = vmatprep.subr.mxu1 %v875_v20  ;;  %v873_v24 = vld [vmem:[#allocation13 + $0x8] sm:$0xff] }
 0x13a   :  { %8076 = vmatprep.subr.bf16.mxu0 %v11372_v1  ;;  %8109 = vmatpush3.msra.mxu1 %v875_v20 }
 0x13b   :  { %8110 = vmatprep.subr.mxu1 %v874_v23 }
 0x13c   :  { %8111 = vmatpush3.msra.mxu1 %v874_v23  ;;  %v1509_v23 = vld [vmem:[#allocation22 + $0x78] sm:$0xff] }
 0x13d   :  { %8077 = vmatpush3.bf16.msra.mxu0 %v9278_v25  ;;  %8112 = vmatprep.subr.mxu1 %v873_v24  ;;  %v872_v25 = vld [vmem:[#allocation13] sm:$0xff] }
 0x13e   :  { %8078 = vmatprep.subr.bf16.mxu0 %v11372_v1  ;;  %8113 = vmatpush3.msra.mxu1 %v873_v24  ;;  %v1356_v24 = vld [vmem:[#allocation13 + $0xf8] sm:$0xff] }
 0x13f   :  { %8114 = vmatprep.subr.mxu1 %v872_v25 }
 0x140   :  { %8115 = vmatpush3.msra.mxu1 %v872_v25  ;;  %v1508_v25 = vld [vmem:[#allocation22 + $0x70] sm:$0xff] }
 0x141   :  { %8079 = vmatpush3.bf16.msra.mxu0 %v9279_v26  ;;  %8139 = vmatprep.subr.bf16.mxu1 %v11372_v1 }
 0x142   :  { %8119 = vmatprep.subr.bf16.mxu0 %v11372_v1 }
 0x1e0   :  { %v671_v33 = vpop.f32.mrf.mxu1 }
 0x1e1   :  { %v672_v34 = vadd.f32 %v7166_v30, %v671_v33 }
 0x1e2   :  { %v8062_v36 = vpop.f32.mrf.mxu1 }
 0x1e3   :  { %v678_v38 = vmul.f32 %v672_v34, %v672_v34 }
 0x1e4   :  { %v471_v31 = vpop.f32.mrf.mxu0  ;;  %v674_v40 = vpop.f32.mrf.mxu1 }
 0x1e5   :  { %v472_v32 = vadd.f32 %v7154_v29, %v471_v31  ;;  %v680_v42 = vmul.f32 %v678_v38, %v672_v34  ;;  %v675_v43 = vadd.f32 %v7166_v30, %v674_v40  ;;  %v7184_v38 = vld [vmem:[#allocation10] ss:$0 sm:$0xff] }
 0x1e6   :  { %v8042_v35 = vpop.f32.mrf.mxu0  ;;  %v8063_v45 = vpop.f32.mrf.mxu1 }
 0x1e7   :  { %478 = vst [vmem:[%s10334_s13] sm:$0xff] %v472_v32  ;;  %v10452_v37 = vsel %vm482_vm1, %v472_v32, -1e+30  ;;  %v682_v47 = vmul.f32 0.044715, %v680_v42  ;;  %v679_v48 = vmul.f32 %v675_v43, %v675_v43  ;;  %v7175_v35 = vld [vmem:[#allocation8] ss:$0 sm:$0xff] }
 0x1e8   :  { %485 = vmax.xlane.f32.xlu0 %v10452_v37  ;;  %v474_v39 = vpop.f32.mrf.mxu0  ;;  %v9288_v42 = vld [vmem:[#allocation7 + $0x78] sm:$0xff]  }
 0x1e9   :  { %v475_v41 = vadd.f32 %v7154_v29, %v474_v39  ;;  %v684_v49 = vadd.f32 %v682_v47, %v672_v34  ;;  %v681_v50 = vmul.f32 %v679_v48, %v675_v43  ;;  %v9290_v47 = vld [vmem:[#allocation7 + $0x68] sm:$0xff]   ;;  %v9291_v48 = vld [vmem:[#allocation7 + $0x60] sm:$0xff]  }
 0x1ea   :  { %v8043_v44 = vpop.f32.mrf.mxu0 }
 0x1eb   :  { %479 = vst [vmem:[%s10334_s13 + $0x8] sm:$0xff] %v475_v41  ;;  %v10458_v46 = vsel %vm482_vm1, %v475_v41, -1e+30  ;;  %v686_v51 = vmul.f32 0.7978846, %v684_v49  ;;  %v9292_v49 = vld [vmem:[#allocation7 + $0x58] sm:$0xff]  }
 0x1ec   :  { %487 = vmax.xlane.f32.xlu0 %v10458_v46  ;;  %v683_v52 = vmul.f32 0.044715, %v681_v50  ;;  %v9293_v50 = vld [vmem:[#allocation7 + $0x50] sm:$0xff]   ;;  %s11413_s13 = sld [smem:[#allocation45_spill]] }
 0x1ed   :  { %9456 = vtanh.f32 %v686_v51  ;;  %v9294_v51 = vld [vmem:[#allocation7 + $0x48] sm:$0xff]  }
 0x1ee   :  { %v685_v53 = vadd.f32 %v683_v52, %v675_v43  ;;  %v7193_v52 = vld [vmem:[#allocation5 + $0x1] ss:$0 sm:$0xff] }
 0x1f0   :  { %v687_v54 = vmul.f32 0.7978846, %v685_v53 }
 0x1f2   :  { %9458 = vtanh.f32 %v687_v54  ;;  %v9295_v54 = vld [vmem:[#allocation7 + $0x40] sm:$0xff]  }
 0x1fa   :  { %v9457_v55 = vpop.eup %9456 }
 0x1fb   :  { %v690_v56 = vadd.f32 1.0, %v9457_v55 }
 0x1fd   :  { %v692_v58 = vmul.f32 0.5, %v690_v56 }
 0x1ff   :  { %v9459_v57 = vpop.eup %9458  ;;  %v694_v61 = vmul.f32 %v692_v58, %v672_v34 }
 0x200   :  { %v691_v59 = vadd.f32 1.0, %v9459_v57 }
 0x202   :  { %v693_v60 = vmul.f32 0.5, %v691_v59 }
 0x204   :  { %v695_v62 = vmul.f32 %v693_v60, %v675_v43 }
 0x206   :  { %v696_v3 = vpack.c.bf16 %v695_v62, %v694_v61 }
 0x208   :  { %8081 = vmatmul.mubr.bf16.vlgmr.msra.gmra.mxu0 %v696_v3 }
 0x209   :  { %8120 = vmatpush3.bf16.msra.mxu0 %v9280_v2  ;;  %8135 = vmatprep.mubr.msk.bf16.mxu0 %vm10154_vm0, %v11372_v1 }
 0x20a   :  { %8121 = vmatprep.subr.bf16.mxu0 %v11372_v1 }
 0x20d   :  { %8122 = vmatpush3.bf16.msra.mxu0 %v9281_v5 }
 0x20e   :  { %8123 = vmatprep.subr.bf16.mxu0 %v11372_v1 }
 0x211   :  { %8124 = vmatpush3.bf16.msra.mxu0 %v9282_v8 }
 0x212   :  { %8125 = vmatprep.subr.bf16.mxu0 %v11372_v1 }
 0x215   :  { %8126 = vmatpush3.bf16.msra.mxu0 %v9283_v11 }
 0x216   :  { %8127 = vmatprep.subr.bf16.mxu0 %v11372_v1 }
 0x219   :  { %8128 = vmatpush3.bf16.msra.mxu0 %v9284_v14 }
 0x21a   :  { %8129 = vmatprep.subr.bf16.mxu0 %v11372_v1 }
 0x21d   :  { %8130 = vmatpush3.bf16.msra.mxu0 %v9285_v17 }
 0x21e   :  { %8131 = vmatprep.subr.bf16.mxu0 %v11372_v1 }
 0x221   :  { %8132 = vmatpush3.bf16.msra.mxu0 %v9286_v21 }
 0x222   :  { %8133 = vmatprep.subr.bf16.mxu0 %v11372_v1 }
 0x225   :  { %8134 = vmatpush3.bf16.msra.mxu0 %v9287_v22 }
 0x226   :  { %8159 = vmatprep.subr.mxu0 %v1356_v24 }
 0x228   :  { %8136 = vmatmul.mubr.bf16.vlgmr.msra.gmra.mxu0 %v10428_v18 }
 0x229   :  { %8160 = vmatpush3.msra.mxu0 %v1356_v24 }
 0x271   :  { %v486_v26 = vpop.xlane.xlu0 %485 }
 0x272   :  { %v489_v29 = vsub.f32 %v10452_v37, %v486_v26  ;;  %v1355_v26 = vld [vmem:[#allocation13 + $0xf0] sm:$0xff] }
 0x273   :  { %8161 = vmatprep.subr.mxu0 %v1355_v26 }
 0x274   :  { %v491_v30 = vmul.f32 1.442695, %v489_v29  ;;  %v1507_v29 = vld [vmem:[#allocation22 + $0x68] sm:$0xff]  ;;  %8162 = vmatpush3.msra.mxu0 %v1355_v26 }
 0x275   :  { %v488_v31 = vpop.xlane.xlu0 %487 }
 0x276   :  { %9460 = vpow2.f32 %v491_v30  ;;  %v490_v32 = vsub.f32 %v10458_v46, %v488_v31  ;;  %v9289_v46 = vld [vmem:[#allocation7 + $0x70] sm:$0xff]   ;;  %v1506_v31 = vld [vmem:[#allocation22 + $0x60] sm:$0xff] }
 0x277   :  { %v1354_v30 = vld [vmem:[#allocation13 + $0xe8] sm:$0xff] }
 0x278   :  { %v493_v18 = vmul.f32 1.442695, %v490_v32  ;;  %v1353_v32 = vld [vmem:[#allocation13 + $0xe0] sm:$0xff]  ;;  %8163 = vmatprep.subr.mxu0 %v1354_v30 }
 0x279   :  { %8164 = vmatpush3.msra.mxu0 %v1354_v30  ;;  %v9298_v30 = vld [vmem:[#allocation3 + $0xa8] sm:$0xff]  }
 0x27a   :  { %9462 = vpow2.f32 %v493_v18  ;;  %v1505_v18 = vld [vmem:[#allocation22 + $0x58] sm:$0xff]  ;;  %8165 = vmatprep.subr.mxu0 %v1353_v32 }
 0x27b   :  { %8166 = vmatpush3.msra.mxu0 %v1353_v32  ;;  %v9300_v32 = vld [vmem:[#allocation3 + $0x98] sm:$0xff]  }
 0x283   :  { %v10474_v33 = vpop.eup %9460 }
 0x284   :  { %495 = vadd.xlane.f32.xlu1 %v10474_v33 }
 0x287   :  { %v10477_v34 = vpop.eup %9462 }
 0x288   :  { %497 = vadd.xlane.f32.xlu1 %v10477_v34 }
 0x2c8   :  { %v802_v36 = vpop.f32.mrf.mxu0 }
 0x2c9   :  { %v10480_v39 = vadd.f32 %v7175_v35, %v802_v36  ;;  %v1503_v36 = vld [vmem:[#allocation22 + $0x48] sm:$0xff] }
 0x2ca   :  { %v8082_v37 = vpop.f32.mrf.mxu0 }
 0x2cb   :  { %8116 = vmatprep.mubr.f32.mxu1 %v10480_v39  ;;  %v830_v40 = vmul.f32 %v7184_v38, %v10480_v39  ;;  %v1502_v37 = vld [vmem:[#allocation22 + $0x40] sm:$0xff] }
 0x2cc   :  { %v805_v41 = vpop.f32.mrf.mxu0 }
 0x2cd   :  { %v10484_v43 = vadd.f32 %v7175_v35, %v805_v41  ;;  %832 = vadd.xlane.f32.xlu1 %v830_v40  ;;  %v1351_v35 = vld [vmem:[#allocation13 + $0xd0] sm:$0xff]  ;;  %v1349_v40 = vld [vmem:[#allocation13 + $0xc0] sm:$0xff] }
 0x2ce   :  { %v8083_v44 = vpop.f32.mrf.mxu0  ;;  %v1501_v41 = vld [vmem:[#allocation22 + $0x38] sm:$0xff] }
 0x2cf   :  { %8117 = vmatmul.mubr.f32.vlgmr.msra.gmra.mxu1 %v10484_v43  ;;  %v831_v45 = vmul.f32 %v7184_v38, %v10484_v43  ;;  %v1350_v38 = vld [vmem:[#allocation13 + $0xc8] sm:$0xff] }
 0x2d0   :  { %8140 = vmatpush3.bf16.msra.mxu1 %v9288_v42  ;;  %8155 = vmatprep.mubr.msk.bf16.mxu1 %vm10154_vm0, %v11372_v1  ;;  %v1348_v42 = vld [vmem:[#allocation13 + $0xb8] sm:$0xff]  ;;  %v1500_v44 = vld [vmem:[#allocation22 + $0x30] sm:$0xff] }
 0x2d1   :  { %834 = vadd.xlane.f32.xlu0 %v831_v45  ;;  %8141 = vmatprep.subr.bf16.mxu1 %v11372_v1  ;;  %v1347_v45 = vld [vmem:[#allocation13 + $0xb0] sm:$0xff] }
 0x2d4   :  { %8142 = vmatpush3.bf16.msra.mxu1 %v9289_v46  ;;  %v1499_v46 = vld [vmem:[#allocation22 + $0x28] sm:$0xff] }
 0x2d5   :  { %8143 = vmatprep.subr.bf16.mxu1 %v11372_v1 }
 0x2d8   :  { %8144 = vmatpush3.bf16.msra.mxu1 %v9290_v47  ;;  %v1346_v47 = vld [vmem:[#allocation13 + $0xa8] sm:$0xff] }
 0x2d9   :  { %8145 = vmatprep.subr.bf16.mxu1 %v11372_v1 }
 0x2dc   :  { %8146 = vmatpush3.bf16.msra.mxu1 %v9291_v48  ;;  %v1498_v48 = vld [vmem:[#allocation22 + $0x20] sm:$0xff] }
 0x2dd   :  { %8147 = vmatprep.subr.bf16.mxu1 %v11372_v1 }
 0x2e0   :  { %8148 = vmatpush3.bf16.msra.mxu1 %v9292_v49  ;;  %v1345_v49 = vld [vmem:[#allocation13 + $0xa0] sm:$0xff] }
 0x2e1   :  { %8149 = vmatprep.subr.bf16.mxu1 %v11372_v1 }
 0x2e4   :  { %8150 = vmatpush3.bf16.msra.mxu1 %v9293_v50  ;;  %v1497_v50 = vld [vmem:[#allocation22 + $0x18] sm:$0xff] }
 0x2e5   :  { %8151 = vmatprep.subr.bf16.mxu1 %v11372_v1 }
 0x2e8   :  { %v1130_v53 = vpop.f32.mrf.mxu0  ;;  %8152 = vmatpush3.bf16.msra.mxu1 %v9294_v51  ;;  %v1344_v51 = vld [vmem:[#allocation13 + $0x98] sm:$0xff] }
 0x2e9   :  { %v1131_v55 = vadd.f32 %v7193_v52, %v1130_v53  ;;  %8153 = vmatprep.subr.bf16.mxu1 %v11372_v1  ;;  %v1343_v53 = vld [vmem:[#allocation13 + $0x90] sm:$0xff] }
 0x2ea   :  { %v8137_v56 = vpop.f32.mrf.mxu0 }
 0x2eb   :  { %v1137_v57 = vmul.f32 %v1131_v55, %v1131_v55  ;;  %v1494_v56 = vld [vmem:[#allocation22] sm:$0xff] }
 0x2ec   :  { %v1133_v58 = vpop.f32.mrf.mxu0  ;;  %8154 = vmatpush3.bf16.msra.mxu1 %v9295_v54  ;;  %v1495_v54 = vld [vmem:[#allocation22 + $0x8] sm:$0xff] }
 0x2ed   :  { %v1139_v59 = vmul.f32 %v1137_v57, %v1131_v55  ;;  %v1134_v60 = vadd.f32 %v7193_v52, %v1133_v58  ;;  %8194 = vmatprep.subr.mxu1 %v1509_v23  ;;  %v1496_v52 = vld [vmem:[#allocation22 + $0x10] sm:$0xff]  ;;  %v7188_v58 = vld [vmem:[#allocation14] ss:$0 sm:$0xff] }
 0x2ee   :  { %v8138_v61 = vpop.f32.mrf.mxu0  ;;  %v1341_v57 = vld [vmem:[#allocation13 + $0x80] sm:$0xff] }
 0x2ef   :  { %v1141_v62 = vmul.f32 0.044715, %v1139_v59  ;;  %v1138_v63 = vmul.f32 %v1134_v60, %v1134_v60 }
 0x2f1   :  { %v1143_v0 = vadd.f32 %v1141_v62, %v1131_v55  ;;  %v1140_v2 = vmul.f32 %v1138_v63, %v1134_v60  ;;  %v7189_v62 = vld [vmem:[#allocation16] ss:$0 sm:$0xff] }
 0x2f3   :  { %v1145_v3 = vmul.f32 0.7978846, %v1143_v0  ;;  %v1142_v4 = vmul.f32 0.044715, %v1140_v2 }
 0x2f5   :  { %9464 = vtanh.f32 %v1145_v3  ;;  %v1144_v5 = vadd.f32 %v1142_v4, %v1134_v60 }
 0x2f7   :  { %v1146_v6 = vmul.f32 0.7978846, %v1144_v5 }
 0x2f9   :  { %9466 = vtanh.f32 %v1146_v6 }
 0x302   :  { %v9465_v7 = vpop.eup %9464 }
 0x303   :  { %v1149_v8 = vadd.f32 1.0, %v9465_v7 }
 0x305   :  { %v1151_v10 = vmul.f32 0.5, %v1149_v8 }
 0x306   :  { %v9467_v9 = vpop.eup %9466 }
 0x307   :  { %v1150_v11 = vadd.f32 1.0, %v9467_v9  ;;  %v1153_v14 = vmul.f32 %v1151_v10, %v1131_v55  ;;  %v1342_v55 = vld [vmem:[#allocation13 + $0x88] sm:$0xff] }
 0x309   :  { %v1152_v12 = vmul.f32 0.5, %v1150_v11 }
 0x30b   :  { %v1154_v15 = vmul.f32 %v1152_v12, %v1134_v60 }
 0x30d   :  { %v496_v13 = vpop.xlane.xlu1 %495  ;;  %v1155_v17 = vpack.c.bf16 %v1154_v15, %v1153_v14  ;;  %v7211_v15 = vld [vmem:[#allocation10 + $0x1] ss:$0 sm:$0xff] }
 0x30e   :  { %9468 = vrcp.f32 %v496_v13  ;;  %v7202_v13 = vld [vmem:[#allocation8 + $0x1] ss:$0 sm:$0xff] }
 0x30f   :  { %8156 = vmatmul.mubr.bf16.vlgmr.msra.gmra.mxu1 %v1155_v17 }
 0x310   :  { %8195 = vmatpush3.msra.mxu1 %v1509_v23  ;;  %v9296_v23 = vld [vmem:[#allocation3 + $0xb8] sm:$0xff]  }
 0x311   :  { %v498_v16 = vpop.xlane.xlu1 %497  ;;  %8196 = vmatprep.subr.mxu1 %v1508_v25 }
 0x312   :  { %9470 = vrcp.f32 %v498_v16  ;;  %8197 = vmatpush3.msra.mxu1 %v1508_v25 }
 0x313   :  { %8198 = vmatprep.subr.mxu1 %v1507_v29 }
 0x314   :  { %8199 = vmatpush3.msra.mxu1 %v1507_v29  ;;  %v9297_v29 = vld [vmem:[#allocation3 + $0xb0] sm:$0xff]  }
 0x315   :  { %8200 = vmatprep.subr.mxu1 %v1506_v31 }
 0x316   :  { %8201 = vmatpush3.msra.mxu1 %v1506_v31  ;;  %v9299_v31 = vld [vmem:[#allocation3 + $0xa0] sm:$0xff]  }
 0x317   :  { %8202 = vmatprep.subr.mxu1 %v1505_v18 }
 0x318   :  { %8203 = vmatpush3.msra.mxu1 %v1505_v18  ;;  %v9301_v18 = vld [vmem:[#allocation3 + $0x90] sm:$0xff]  }
 0x31b   :  { %v9469_v19 = vpop.eup %9468 }
 0x31c   :  { %v10498_v20 = vmul.f32 %v9469_v19, %v10474_v33  ;;  %v1352_v33 = vld [vmem:[#allocation13 + $0xd8] sm:$0xff] }
 0x31d   :  { %8167 = vmatprep.subr.mxu0 %v1352_v33 }
 0x31e   :  { %503 = vmax.xlane.f32.xlu0 %v10498_v20  ;;  %8168 = vmatpush3.msra.mxu0 %v1352_v33  ;;  %v9302_v33 = vld [vmem:[#allocation3 + $0x88] sm:$0xff]  }
 0x31f   :  { %v9471_v21 = vpop.eup %9470  ;;  %8169 = vmatprep.subr.mxu0 %v1351_v35 }
 0x320   :  { %v10502_v22 = vmul.f32 %v9471_v21, %v10477_v34  ;;  %v1504_v34 = vld [vmem:[#allocation22 + $0x50] sm:$0xff]  ;;  %8170 = vmatpush3.msra.mxu0 %v1351_v35  ;;  %v10542_v35 = vld [vmem:[%s11411_s19] sm:$0xff]  }
 0x321   :  { %8204 = vmatprep.subr.mxu1 %v1504_v34  ;;  %8171 = vmatprep.subr.mxu0 %v1350_v38 }
 0x322   :  { %505 = vmax.xlane.f32.xlu1 %v10502_v22  ;;  %8205 = vmatpush3.msra.mxu1 %v1504_v34  ;;  %v9303_v34 = vld [vmem:[#allocation3 + $0x80] sm:$0xff]  }
 0x323   :  { %8206 = vmatprep.subr.mxu1 %v1503_v36  ;;  %8172 = vmatpush3.msra.mxu0 %v1350_v38  ;;  %v1594_v38 = vld [vmem:[#allocation23] sm:$0xff] }
 0x324   :  { %8207 = vmatpush3.msra.mxu1 %v1503_v36  ;;  %8173 = vmatprep.subr.mxu0 %v1349_v40  ;;  %v1595_v36 = vld [vmem:[#allocation23 + $0x8] sm:$0xff] }
 0x325   :  { %8208 = vmatprep.subr.mxu1 %v1502_v37  ;;  %8174 = vmatpush3.msra.mxu0 %v1349_v40 }
 0x326   :  { %8209 = vmatpush3.msra.mxu1 %v1502_v37  ;;  %8175 = vmatprep.subr.mxu0 %v1348_v42 }
 0x327   :  { %8210 = vmatprep.subr.mxu1 %v1501_v41  ;;  %8176 = vmatpush3.msra.mxu0 %v1348_v42 }
 0x328   :  { %8211 = vmatpush3.msra.mxu1 %v1501_v41  ;;  %8177 = vmatprep.subr.mxu0 %v1347_v45 }
 0x329   :  { %8212 = vmatprep.subr.mxu1 %v1500_v44  ;;  %8178 = vmatpush3.msra.mxu0 %v1347_v45 }
 0x32a   :  { %8213 = vmatpush3.msra.mxu1 %v1500_v44  ;;  %8179 = vmatprep.subr.mxu0 %v1346_v47 }
 0x32b   :  { %8214 = vmatprep.subr.mxu1 %v1499_v46  ;;  %8180 = vmatpush3.msra.mxu0 %v1346_v47  ;;  %v7215_v47 = vld [vmem:[#allocation14 + $0x1] ss:$0 sm:$0xff] }
 0x32c   :  { %8215 = vmatpush3.msra.mxu1 %v1499_v46  ;;  %8181 = vmatprep.subr.mxu0 %v1345_v49  ;;  %v11371_v46 = vmov 1  }
 0x32d   :  { %8216 = vmatprep.subr.mxu1 %v1498_v48  ;;  %8182 = vmatpush3.msra.mxu0 %v1345_v49 }
 0x32e   :  { %8217 = vmatpush3.msra.mxu1 %v1498_v48  ;;  %8183 = vmatprep.subr.mxu0 %v1344_v51  ;;  %v7220_v48 = vld [vmem:[%s11413_s13] ss:$0 sm:$0xff] }
 0x32f   :  { %8218 = vmatprep.subr.mxu1 %v1497_v50  ;;  %8184 = vmatpush3.msra.mxu0 %v1344_v51 }
 0x330   :  { %8219 = vmatpush3.msra.mxu1 %v1497_v50  ;;  %8185 = vmatprep.subr.mxu0 %v1343_v53 }
 0x331   :  { %8220 = vmatprep.subr.mxu1 %v1496_v52  ;;  %8186 = vmatpush3.msra.mxu0 %v1343_v53 }
 0x332   :  { %8221 = vmatpush3.msra.mxu1 %v1496_v52  ;;  %8187 = vmatprep.subr.mxu0 %v1342_v55 }
 0x333   :  { %8222 = vmatprep.subr.mxu1 %v1495_v54  ;;  %8188 = vmatpush3.msra.mxu0 %v1342_v55  ;;  %v7216_v55 = vld [vmem:[#allocation16 + $0x1] ss:$0 sm:$0xff] }
 0x334   :  { %8223 = vmatpush3.msra.mxu1 %v1495_v54  ;;  %8189 = vmatprep.subr.mxu0 %v1341_v57 }
 0x335   :  { %8224 = vmatprep.subr.mxu1 %v1494_v56  ;;  %8190 = vmatpush3.msra.mxu0 %v1341_v57 }
 0x336   :  { %8225 = vmatpush3.msra.mxu1 %v1494_v56  ;;  %8229 = vmatprep.subr.mxu0 %v1595_v36 }
 0x337   :  { %8236 = vmatprep.subr.bf16.mxu1 %v11372_v1  ;;  %9165 = vset.pattern.permute.xlu0 %v11371_v46 }
 0x338   :  { %9217 = vset.pattern.permute.xlu1 %v11371_v46 }
 0x356   :  { %v10510_v8 = vpop.xlane.xlu1 %832 }
 0x35a   :  { %v10508_v7 = vpop.xlane.xlu0 %834 }
 0x38f   :  { %v8118_v59 = vpop.f32.mrf.mxu1 }
 0x390   :  { %v967_v60 = vadd.f32 %v8118_v59, %v7188_v58 }
 0x391   :  { %v961_v61 = vpop.f32.mrf.mxu1 }
 0x392   :  { %v971_v63 = vmax.f32 %v967_v60, 0.0  ;;  %v962_v0 = vadd.f32 %v7188_v58, %v961_v61 }
 0x394   :  { %v970_v2 = vmax.f32 %v962_v0, 0.0  ;;  %v980_v3 = vmul.f32 %v7189_v62, %v971_v63 }
 0x396   :  { %v985_v4 = vsel %vm981_vm2, %v980_v3, 0.0  ;;  %v979_v5 = vmul.f32 %v7189_v62, %v970_v2  ;;  %v9304_v62 = vld [vmem:[#allocation7 + $0xb8] sm:$0xff]  }
 0x397   :  { %986 = vadd.xlane.f32.xlu1 %v985_v4  ;;  %v9305_v4 = vld [vmem:[#allocation7 + $0xb0] sm:$0xff]  }
 0x398   :  { %v982_v6 = vsel %vm981_vm2, %v979_v5, 0.0  ;;  %v9306_v5 = vld [vmem:[#allocation7 + $0xa8] sm:$0xff]  }
 0x39b   :  { %983 = vadd.xlane.f32.xlu1 %v982_v6  ;;  %v9307_v6 = vld [vmem:[#allocation7 + $0xa0] sm:$0xff]  }
 0x3a7   :  { %v10512_v9 = vpop.xlane.xlu0 %503 }
 0x3a8   :  { %vm507_vm3 = vcmp.ge.f32.partialorder %v10498_v20, %v10512_v9 }
 0x3a9   :  { %v509_v10 = vsel %vm507_vm3, -1.0, %v10498_v20 }
 0x3aa   :  { %511 = vmax.xlane.f32.xlu0 %v509_v10 }
 0x3ab   :  { %v10517_v11 = vpop.xlane.xlu1 %505 }
 0x3ac   :  { %vm508_vm4 = vcmp.ge.f32.partialorder %v10502_v22, %v10517_v11  ;;  %v532_v28 = vsub.f32 %v10502_v22, %v10517_v11 }
 0x3ad   :  { %v510_v12 = vsel %vm508_vm4, -1.0, %v10502_v22 }
 0x3ae   :  { %513 = vmax.xlane.f32.xlu1 %v510_v12 }
 0x3cf   :  { %v1263_v14 = vpop.f32.mrf.mxu1 }
 0x3d0   :  { %v10522_v16 = vadd.f32 %v7202_v13, %v1263_v14  ;;  %v9309_v14 = vld [vmem:[#allocation7 + $0x90] sm:$0xff]  }
 0x3d1   :  { %v8157_v17 = vpop.f32.mrf.mxu1 }
 0x3d2   :  { %8191 = vmatprep.mubr.f32.mxu0 %v10522_v16  ;;  %8226 = vmatprep.mubr.f32.mxu1 %v10522_v16  ;;  %v1290_v19 = vmul.f32 %v7211_v15, %v10522_v16  ;;  %v7224_v17 = vld [vmem:[#allocation5 + $0x2] ss:$0 sm:$0xff] }
 0x3d3   :  { %v1266_v21 = vpop.f32.mrf.mxu1 }
 0x3d4   :  { %v10527_v24 = vadd.f32 %v7202_v13, %v1266_v21  ;;  %1292 = vadd.xlane.f32.xlu1 %v1290_v19 }
 0x3d5   :  { %v8158_v25 = vpop.f32.mrf.mxu1 }
 0x3d6   :  { %8192 = vmatmul.mubr.f32.vlgmr.msra.gmra.mxu0 %v10527_v24  ;;  %8227 = vmatmul.mubr.f32.vlgmr.msra.gmra.mxu1 %v10527_v24  ;;  %v1291_v26 = vmul.f32 %v7211_v15, %v10527_v24  ;;  %v9310_v15 = vld [vmem:[#allocation7 + $0x88] sm:$0xff]  }
 0x3d7   :  { %8237 = vmatpush3.bf16.msra.mxu1 %v9296_v23  ;;  %8252 = vmatprep.mubr.msk.bf16.mxu1 %vm10154_vm0, %v11372_v1 }
 0x3d8   :  { %1294 = vadd.xlane.f32.xlu1 %v1291_v26  ;;  %8238 = vmatprep.subr.bf16.mxu1 %v11372_v1 }
 0x3d9   :  { %8230 = vmatpush3.msra.mxu0 %v1595_v36 }
 0x3da   :  { %8231 = vmatprep.subr.mxu0 %v1594_v38 }
 0x3db   :  { %8239 = vmatpush3.bf16.msra.mxu1 %v9297_v29  ;;  %8232 = vmatpush3.msra.mxu0 %v1594_v38 }
 0x3dc   :  { %8240 = vmatprep.subr.bf16.mxu1 %v11372_v1  ;;  %8256 = vmatprep.subr.bf16.mxu0 %v11372_v1 }
 0x3df   :  { %8241 = vmatpush3.bf16.msra.mxu1 %v9298_v30 }
 0x3e0   :  { %8242 = vmatprep.subr.bf16.mxu1 %v11372_v1 }
 0x3e3   :  { %8243 = vmatpush3.bf16.msra.mxu1 %v9299_v31 }
 0x3e4   :  { %8244 = vmatprep.subr.bf16.mxu1 %v11372_v1 }
 0x3e7   :  { %8245 = vmatpush3.bf16.msra.mxu1 %v9300_v32 }
 0x3e8   :  { %8246 = vmatprep.subr.bf16.mxu1 %v11372_v1 }
 0x3eb   :  { %8247 = vmatpush3.bf16.msra.mxu1 %v9301_v18 }
 0x3ec   :  { %8248 = vmatprep.subr.bf16.mxu1 %v11372_v1 }
 0x3ef   :  { %8249 = vmatpush3.bf16.msra.mxu1 %v9302_v33 }
 0x3f0   :  { %8250 = vmatprep.subr.bf16.mxu1 %v11372_v1 }
 0x3f3   :  { %8251 = vmatpush3.bf16.msra.mxu1 %v9303_v34 }
 0x3f6   :  { %8253 = vmatmul.mubr.bf16.vlgmr.msra.gmra.mxu1 %v10542_v35 }
 0x420   :  { %v10546_v37 = vpop.xlane.xlu1 %986 }
 0x424   :  { %v10548_v40 = vpop.xlane.xlu1 %983 }
 0x433   :  { %v512_v41 = vpop.xlane.xlu0 %511 }
 0x434   :  { %vm515_vm5 = vcmp.ge.f32.partialorder %v509_v10, %v512_v41 }
 0x435   :  { %v517_v42 = vsel %vm515_vm5, -1.0, %v509_v10  ;;  %v531_v10 = vsub.f32 %v10498_v20, %v10512_v9  ;;  %v9311_v9 = vld [vmem:[#allocation7 + $0x80] sm:$0xff]  }
 0x436   :  { %519 = vmax.xlane.f32.xlu0 %v517_v42 }
 0x437   :  { %v514_v44 = vpop.xlane.xlu1 %513  ;;  %v533_v13 = vmul.f32 1.442695, %v531_v10  ;;  %v9319_v10 = vld [vmem:[#allocation3 + $0xc0] sm:$0xff]  }
 0x438   :  { %vm516_vm6 = vcmp.ge.f32.partialorder %v510_v12, %v514_v44 }
 0x439   :  { %v518_v45 = vsel %vm516_vm6, -1.0, %v510_v12  ;;  %v9308_v12 = vld [vmem:[#allocation7 + $0x98] sm:$0xff]   ;;  %9472 = vpow2.f32 %v533_v13 }
 0x43a   :  { %521 = vmax.xlane.f32.xlu1 %v518_v45  ;;  %v2062_v13 = vld [vmem:[#allocation13 + $0x170] sm:$0xff] }
 0x446   :  { %v9473_v38 = vpop.eup %9472 }
 0x45d   :  { %v10567_v19 = vpop.xlane.xlu1 %1292 }
 0x461   :  { %v10570_v30 = vpop.xlane.xlu1 %1294 }
 0x496   :  { %v8193_v49 = vpop.f32.mrf.mxu0  ;;  %v8228_v50 = vpop.f32.mrf.mxu1 }
 0x497   :  { %v1437_v51 = vadd.f32 %v8193_v49, %v7215_v47  ;;  %v1589_v52 = vadd.f32 %v8228_v50, %v7220_v48 }
 0x498   :  { %v1431_v53 = vpop.f32.mrf.mxu0  ;;  %v1583_v54 = vpop.f32.mrf.mxu1 }
 0x499   :  { %v1441_v56 = vmax.f32 %v1437_v51, 0.0  ;;  %v1432_v57 = vadd.f32 %v7215_v47, %v1431_v53  ;;  %v1584_v58 = vadd.f32 %v7220_v48, %v1583_v54  ;;  %v1593_v63 = vmax.f32 %v1589_v52, 0.0 }
 0x49b   :  { %v1440_v59 = vmax.f32 %v1432_v57, 0.0  ;;  %v1592_v60 = vmax.f32 %v1584_v58, 0.0  ;;  %v1451_v61 = vmul.f32 %v7216_v55, %v1441_v56  ;;  %v535_v56 = vmul.f32 1.442695, %v532_v28 }
 0x49d   :  { %8233 = vmatprep.mubr.msk.f32.mxu0 %vm1603_vm7, %v1592_v60  ;;  %v1455_v0 = vsel %vm981_vm2, %v1451_v61, 0.0  ;;  %v1450_v2 = vmul.f32 %v7216_v55, %v1440_v59 }
 0x49e   :  { %8234 = vmatmul.mubr.msk.f32.vlgmr.msra.gmra.mxu0 %vm1603_vm7, %v1593_v63  ;;  %1456 = vadd.xlane.f32.xlu1 %v1455_v0  ;;  %v9313_v0 = vld [vmem:[#allocation3 + $0xf0] sm:$0xff]  }
 0x49f   :  { %v1452_v3 = vsel %vm981_vm2, %v1450_v2, 0.0  ;;  %8257 = vmatpush3.bf16.msra.mxu0 %v9304_v62  ;;  %8272 = vmatprep.mubr.msk.bf16.mxu0 %vm10154_vm0, %v11372_v1  ;;  %v9312_v62 = vld [vmem:[#allocation3 + $0xf8] sm:$0xff]   ;;  %v9315_v2 = vld [vmem:[#allocation3 + $0xe0] sm:$0xff]  }
 0x4a0   :  { %1453 = vadd.xlane.f32.xlu0 %v1452_v3  ;;  %8258 = vmatprep.subr.bf16.mxu0 %v11372_v1 }
 0x4a3   :  { %8259 = vmatpush3.bf16.msra.mxu0 %v9305_v4  ;;  %v9316_v4 = vld [vmem:[#allocation3 + $0xd8] sm:$0xff]  }
 0x4a4   :  { %8260 = vmatprep.subr.bf16.mxu0 %v11372_v1 }
 0x4a7   :  { %8261 = vmatpush3.bf16.msra.mxu0 %v9306_v5  ;;  %v9317_v5 = vld [vmem:[#allocation3 + $0xd0] sm:$0xff]  }
 0x4a8   :  { %8262 = vmatprep.subr.bf16.mxu0 %v11372_v1 }
 0x4ab   :  { %8263 = vmatpush3.bf16.msra.mxu0 %v9307_v6  ;;  %v9318_v6 = vld [vmem:[#allocation3 + $0xc8] sm:$0xff]  }
 0x4ac   :  { %8264 = vmatprep.subr.bf16.mxu0 %v11372_v1 }
 0x4af   :  { %8265 = vmatpush3.bf16.msra.mxu0 %v9308_v12  ;;  %v2063_v12 = vld [vmem:[#allocation13 + $0x178] sm:$0xff] }
 0x4b0   :  { %8266 = vmatprep.subr.bf16.mxu0 %v11372_v1  ;;  %8276 = vmatprep.subr.mxu1 %v2063_v12 }
 0x4b1   :  { %8277 = vmatpush3.msra.mxu1 %v2063_v12 }
 0x4b2   :  { %8278 = vmatprep.subr.mxu1 %v2062_v13 }
 0x4b3   :  { %8267 = vmatpush3.bf16.msra.mxu0 %v9309_v14  ;;  %8279 = vmatpush3.msra.mxu1 %v2062_v13  ;;  %v2061_v14 = vld [vmem:[#allocation13 + $0x168] sm:$0xff] }
 0x4b4   :  { %8268 = vmatprep.subr.bf16.mxu0 %v11372_v1  ;;  %8280 = vmatprep.subr.mxu1 %v2061_v14 }
 0x4b5   :  { %8281 = vmatpush3.msra.mxu1 %v2061_v14 }
 0x4b6   :  { %v1839_v21 = vpop.f32.mrf.mxu1 }
 0x4b7   :  { %v1840_v23 = vadd.f32 %v7224_v17, %v1839_v21  ;;  %8269 = vmatpush3.bf16.msra.mxu0 %v9310_v15  ;;  %v2060_v15 = vld [vmem:[#allocation13 + $0x160] sm:$0xff]  ;;  %v2058_v21 = vld [vmem:[#allocation13 + $0x150] sm:$0xff] }
 0x4b8   :  { %v8254_v25 = vpop.f32.mrf.mxu1  ;;  %8270 = vmatprep.subr.bf16.mxu0 %v11372_v1  ;;  %8282 = vmatprep.subr.mxu1 %v2060_v15 }
 0x4b9   :  { %v1846_v26 = vmul.f32 %v1840_v23, %v1840_v23  ;;  %8283 = vmatpush3.msra.mxu1 %v2060_v15  ;;  %v2055_v25 = vld [vmem:[#allocation13 + $0x138] sm:$0xff] }
 0x4ba   :  { %v1842_v29 = vpop.f32.mrf.mxu1 }
 0x4bb   :  { %v1848_v31 = vmul.f32 %v1846_v26, %v1840_v23  ;;  %v1843_v32 = vadd.f32 %v7224_v17, %v1842_v29  ;;  %8271 = vmatpush3.bf16.msra.mxu0 %v9311_v9  ;;  %v2059_v17 = vld [vmem:[#allocation13 + $0x158] sm:$0xff]  ;;  %v2056_v9 = vld [vmem:[#allocation13 + $0x140] sm:$0xff]  ;;  %v2054_v26 = vld [vmem:[#allocation13 + $0x130] sm:$0xff]  ;;  %v11367_v29 = vmov 0  }
 0x4bc   :  { %v8255_v33 = vpop.f32.mrf.mxu1  ;;  %8311 = vmatprep.subr.bf16.mxu0 %v11372_v1  ;;  %8284 = vmatprep.subr.mxu1 %v2059_v17 }
 0x4bd   :  { %v1850_v34 = vmul.f32 0.044715, %v1848_v31  ;;  %v1847_v36 = vmul.f32 %v1843_v32, %v1843_v32  ;;  %8285 = vmatpush3.msra.mxu1 %v2059_v17  ;;  %v2053_v31 = vld [vmem:[#allocation13 + $0x128] sm:$0xff]  ;;  %v2050_v33 = vld [vmem:[#allocation13 + $0x110] sm:$0xff] }
 0x4be   :  { %8286 = vmatprep.subr.mxu1 %v2058_v21 }
 0x4bf   :  { %v520_v18 = vpop.xlane.xlu0 %519  ;;  %v1852_v42 = vadd.f32 %v1850_v34, %v1840_v23  ;;  %v1849_v44 = vmul.f32 %v1847_v36, %v1843_v32  ;;  %8287 = vmatpush3.msra.mxu1 %v2058_v21  ;;  %v2049_v34 = vld [vmem:[#allocation13 + $0x108] sm:$0xff]  ;;  %v2048_v36 = vld [vmem:[#allocation13 + $0x100] sm:$0xff] }
 0x4c0   :  { %vm523_vm8 = vcmp.ge.f32.partialorder %v10498_v20, %v520_v18  ;;  %v2051_v18 = vld [vmem:[#allocation13 + $0x118] sm:$0xff] }
 0x4c1   :  { %vm525_vm9 = vmand %vm523_vm8, %vm482_vm1  ;;  %v1854_v20 = vmul.f32 0.7978846, %v1852_v42  ;;  %v1851_v48 = vmul.f32 0.044715, %v1849_v44  ;;  %vm7021_vm8 = vcmask 97368  }
 0x4c2   :  { %v10577_v41 = vsel %vm525_vm9, 1.0, %v11372_v1  ;;  %vm6971_vm9 = vcmask 80896  }
 0x4c3   :  { %v522_v45 = vpop.xlane.xlu1 %521  ;;  %v10580_v47 = vmul.f32 %v9473_v38, %v10577_v41  ;;  %9474 = vtanh.f32 %v1854_v20  ;;  %v1853_v50 = vadd.f32 %v1851_v48, %v1843_v32  ;;  %v7217_v38 = vld [vmem:[#allocation17 + $0x1] ss:$0 sm:$0xff] }
 0x4c4   :  { %vm524_vm10 = vcmp.ge.f32.partialorder %v10502_v22, %v522_v45  ;;  %v9314_v22 = vld [vmem:[#allocation3 + $0xe8] sm:$0xff]  }
 0x4c5   :  { %vm526_vm11 = vmand %vm524_vm10, %vm482_vm1  ;;  %539 = vadd.xlane.f32.xlu0 %v10580_v47  ;;  %v1855_v52 = vmul.f32 0.7978846, %v1853_v50 }
 0x4c6   :  { %v10587_v49 = vsel %vm526_vm11, 1.0, %v11372_v1 }
 0x4c7   :  { %v10591_v51 = vpack.i.bf16 %v10587_v49, %v10577_v41  ;;  %9476 = vtanh.f32 %v1855_v52 }
 0x4c8   :  { %9478 = vpow2.f32 %v535_v56 }
 0x4c9   :  { %9161 = vrot.lane.b32.xlu1 %v10591_v51, %s10156_s1 }
 0x4d0   :  { %v9475_v53 = vpop.eup %9474 }
 0x4d1   :  { %v1858_v54 = vadd.f32 1.0, %v9475_v53 }
 0x4d3   :  { %v1860_v57 = vmul.f32 0.5, %v1858_v54 }
 0x4d4   :  { %v9477_v55 = vpop.eup %9476 }
 0x4d5   :  { %v1859_v58 = vadd.f32 1.0, %v9477_v55  ;;  %v1862_v60 = vmul.f32 %v1860_v57, %v1840_v23  ;;  %v9479_v11 = vpop.eup %9478  ;;  %v2057_v23 = vld [vmem:[#allocation13 + $0x148] sm:$0xff] }
 0x4d6   :  { %v10607_v3 = vmul.f32 %v9479_v11, %v10587_v49  ;;  %8288 = vmatprep.subr.mxu1 %v2057_v23 }
 0x4d7   :  { %v1861_v59 = vmul.f32 0.5, %v1859_v58  ;;  %8289 = vmatpush3.msra.mxu1 %v2057_v23 }
 0x4d8   :  { %8290 = vmatprep.subr.mxu1 %v2056_v9 }
 0x4d9   :  { %v1863_v61 = vmul.f32 %v1861_v59, %v1843_v32  ;;  %8291 = vmatpush3.msra.mxu1 %v2056_v9  ;;  %v2052_v32 = vld [vmem:[#allocation13 + $0x120] sm:$0xff] }
 0x4da   :  { %8292 = vmatprep.subr.mxu1 %v2055_v25 }
 0x4db   :  { %9167 = vperm.xlu0 %9165, %v10591_v51   ;;  %v1864_v63 = vpack.c.bf16 %v1863_v61, %v1862_v60  ;;  %8293 = vmatpush3.msra.mxu1 %v2055_v25 }
 0x4dc   :  { %8294 = vmatprep.subr.mxu1 %v2054_v26 }
 0x4dd   :  { %8273 = vmatmul.mubr.bf16.vlgmr.msra.gmra.mxu0 %v1864_v63  ;;  %8295 = vmatpush3.msra.mxu1 %v2054_v26 }
 0x4de   :  { %8312 = vmatpush3.bf16.msra.mxu0 %v9312_v62  ;;  %8327 = vmatprep.mubr.msk.bf16.mxu0 %vm10154_vm0, %v11372_v1 }
 0x4df   :  { %9172 = vrot.lane.b32.xlu0 %v10591_v51, %s10157_s2  ;;  %8313 = vmatprep.subr.bf16.mxu0 %v11372_v1 }
 0x4e0   :  { %9216 = vset.pattern.permute.xlu0 %v11367_v29  ;;  %8296 = vmatprep.subr.mxu1 %v2053_v31  ;;  %v9344_v29 = vld [vmem:[#allocation3 + $0x178] sm:$0xff]  }
 0x4e1   :  { %8297 = vmatpush3.msra.mxu1 %v2053_v31 }
 0x4e2   :  { %8314 = vmatpush3.bf16.msra.mxu0 %v9313_v0  ;;  %8298 = vmatprep.subr.mxu1 %v2052_v32 }
 0x4e3   :  { %9177 = vrot.lane.b32.xlu0 %v10591_v51, %s10158_s16  ;;  %8315 = vmatprep.subr.bf16.mxu0 %v11372_v1 }
 0x4e4   :  { %8299 = vmatpush3.msra.mxu1 %v2052_v32 }
 0x4e5   :  { %8300 = vmatprep.subr.mxu1 %v2051_v18 }
 0x4e6   :  { %8316 = vmatpush3.bf16.msra.mxu0 %v9314_v22  ;;  %8301 = vmatpush3.msra.mxu1 %v2051_v18  ;;  %v7221_v22 = vld [vmem:[%s11414_s21] ss:$0 sm:$0xff] }
 0x4e7   :  { %9182 = vrot.lane.b32.xlu0 %v10591_v51, %s10159_s17  ;;  %8317 = vmatprep.subr.bf16.mxu0 %v11372_v1 }
 0x4e8   :  { %8302 = vmatprep.subr.mxu1 %v2050_v33 }
 0x4e9   :  { %8303 = vmatpush3.msra.mxu1 %v2050_v33 }
 0x4ea   :  { %8318 = vmatpush3.bf16.msra.mxu0 %v9315_v2  ;;  %8304 = vmatprep.subr.mxu1 %v2049_v34 }
 0x4eb   :  { %9187 = vrot.lane.b32.xlu0 %v10591_v51, %s10160_s5  ;;  %8319 = vmatprep.subr.bf16.mxu0 %v11372_v1 }
 0x4ec   :  { %8305 = vmatpush3.msra.mxu1 %v2049_v34 }
 0x4ed   :  { %541 = vadd.xlane.f32.xlu1 %v10607_v3  ;;  %8306 = vmatprep.subr.mxu1 %v2048_v36 }
 0x4ee   :  { %8320 = vmatpush3.bf16.msra.mxu0 %v9316_v4  ;;  %8307 = vmatpush3.msra.mxu1 %v2048_v36 }
 0x4ef   :  { %9192 = vrot.lane.b32.xlu0 %v10591_v51, %s10161_s30  ;;  %8321 = vmatprep.subr.bf16.mxu0 %v11372_v1 }
 0x4f0   :  { %8331 = vmatprep.subr.bf16.mxu1 %v11372_v1 }
 0x4f2   :  { %8322 = vmatpush3.bf16.msra.mxu0 %v9317_v5 }
 0x4f3   :  { %9197 = vrot.lane.b32.xlu0 %v10591_v51, %s10162_s11  ;;  %8323 = vmatprep.subr.bf16.mxu0 %v11372_v1 }
 0x4f6   :  { %8324 = vmatpush3.bf16.msra.mxu0 %v9318_v6 }
 0x4f7   :  { %9202 = vrot.lane.b32.xlu0 %v10591_v51, %s10163_s9  ;;  %8325 = vmatprep.subr.bf16.mxu0 %v11372_v1 }
 0x4fa   :  { %8326 = vmatpush3.bf16.msra.mxu0 %v9319_v10  ;;  %v547_v10 = vadd.f32 %v10587_v49, %v10577_v41 }
 0x4fb   :  { %9207 = vrot.lane.b32.xlu0 %v10591_v51, %s10164_s25 }
 0x4fc   :  { %v548_v13 = vrot.slane %v547_v10, 4 }
 0x4fd   :  { %8328 = vmatmul.mubr.bf16.vlgmr.msra.gmra.mxu0 %v10542_v35 }
 0x4fe   :  { %v549_v14 = vadd.f32 %v548_v13, %v547_v10  ;;  %v10171_v10 = vmov 6  }
 0x4ff   :  { %9212 = vrot.lane.b32.xlu0 %v10591_v51, %s10165_s3 }
 0x500   :  { %v550_v17 = vrot.slane %v549_v14, 2 }
 0x502   :  { %v551_v23 = vadd.f32 %v550_v17, %v549_v14  ;;  %v11366_v14 = vmov 7  }
 0x504   :  { %v552_v9 = vrot.slane %v551_v23, 1 }
 0x506   :  { %v553_v25 = vadd.f32 %v552_v9, %v551_v23  ;;  %v9325_v23 = vld [vmem:[#allocation7 + $0xd0] sm:$0xff]  }
 0x507   :  { %v7251_v9 = vld [vmem:[#allocation5 + $0x3] ss:$0 sm:$0xff] }
 0x508   :  { %v561_v31 = vmax.f32 %v553_v25, 1.0  ;;  %v10174_v25 = vmov 9  }
 0x527   :  { %v1457_v42 = vpop.xlane.xlu1 %1456 }
 0x528   :  { %v1467_v44 = vadd.f32 %v7217_v38, %v1457_v42 }
 0x529   :  { %v1454_v45 = vpop.xlane.xlu0 %1453 }
 0x52a   :  { %v7219_v20 = vmul.f32 -1.442695, %v1467_v44  ;;  %v1466_v48 = vadd.f32 %v7217_v38, %v1454_v45 }
 0x52c   :  { %9480 = vpow2.f32 %v7219_v20  ;;  %v7218_v50 = vmul.f32 -1.442695, %v1466_v48 }
 0x52e   :  { %9482 = vpow2.f32 %v7218_v50 }
 0x539   :  { %v9481_v52 = vpop.eup %9480 }
 0x53a   :  { %v1475_v53 = vadd.f32 1.0, %v9481_v52 }
 0x53b   :  { %v9483_v28 = vpop.eup %9482  ;;  %v10622_v55 = vpop.permute.xlu1 %9161 }
 0x53c   :  { %9484 = vrcp.f32 %v1475_v53  ;;  %v1474_v54 = vadd.f32 1.0, %v9483_v28  ;;  %v11370_v56 = vunpack.i.h.bf16 %v10622_v55  ;;  %v11369_v59 = vunpack.i.l.bf16 %v10622_v55  ;;  %v7233_v53 = vld [vmem:[#allocation8 + $0x2] ss:$0 sm:$0xff] }
 0x53e   :  { %9486 = vrcp.f32 %v1474_v54 }
 0x549   :  { %v9485_v57 = vpop.eup %9484 }
 0x54a   :  { %v1481_v58 = vmul.f32 %v9485_v57, %v11370_v56  ;;  %v10168_v57 = vmov 3  }
 0x54b   :  { %v9487_v60 = vpop.eup %9486 }
 0x54c   :  { %v1480_v61 = vmul.f32 %v9487_v60, %v11369_v59  ;;  %v1485_v62 = vsel %vm861_vm12, %v1481_v58, 0.0  ;;  %v9349_v59 = vld [vmem:[#allocation3 + $0x150] sm:$0xff]  }
 0x54e   :  { %v1484_v63 = vsel %vm861_vm12, %v1480_v61, 0.0  ;;  %v540_v15 = vpop.xlane.xlu0 %539  ;;  %v9320_v61 = vld [vmem:[#allocation7 + $0xf8] sm:$0xff]  }
 0x54f   :  { %v10632_v0 = vadd.f32 %v1485_v62, %v1484_v63  ;;  %9488 = vrcp.f32 %v540_v15  ;;  %v9324_v15 = vld [vmem:[#allocation7 + $0xd8] sm:$0xff]  }
 0x556   :  { %v10677_v13 = vpop.permute.xlu0 %9167 }
 0x55a   :  { %v10683_v17 = vpop.permute.xlu0 %9172 }
 0x55c   :  { %v9489_v26 = vpop.eup %9488 }
 0x55d   :  { %v544_v18 = vmul.f32 %v9489_v26, %v10580_v47 }
 0x55e   :  { %v8235_v11 = vpop.f32.mrf.mxu0  ;;  %v10689_v26 = vpop.permute.xlu0 %9177 }
 0x55f   :  { %v10635_v2 = vadd.f32 %v8235_v11, %v7221_v22  ;;  %v9321_v11 = vld [vmem:[#allocation7 + $0xf0] sm:$0xff]  }
 0x560   :  { %v1676_v4 = vpop.f32.mrf.mxu0 }
 0x561   :  { %v10637_v5 = vadd.f32 %v7221_v22, %v1676_v4  ;;  %v1689_v6 = vsel %vm1685_vm13, %v10635_v2, -inf  ;;  %v10169_v22 = vmov 4   ;;  %v10170_v4 = vmov 5  }
 0x562   :  { %1690 = vmax.xlane.f32.xlu0 %v1689_v6  ;;  %v9322_v6 = vld [vmem:[#allocation7 + $0xe8] sm:$0xff]  }
 0x563   :  { %v1686_v12 = vsel %vm1685_vm13, %v10637_v5, -inf }
 0x566   :  { %1687 = vmax.xlane.f32.xlu0 %v1686_v12  ;;  %v9323_v12 = vld [vmem:[#allocation7 + $0xe0] sm:$0xff]  }
 0x576   :  { %v542_v21 = vpop.xlane.xlu1 %541 }
 0x577   :  { %9490 = vrcp.f32 %v542_v21  ;;  %v10173_v21 = vmov 8  }
 0x578   :  { %9492 = vrcp.f32 %v561_v31 }
 0x584   :  { %v9491_v32 = vpop.eup %9490 }
 0x585   :  { %v546_v33 = vmul.f32 %v9491_v32, %v10607_v3  ;;  %v9493_v48 = vpop.eup %9492  ;;  %v10167_v3 = vmov 2  }
 0x587   :  { %v554_v34 = vadd.f32 %v546_v33, %v544_v18  ;;  %v9326_v33 = vld [vmem:[#allocation7 + $0xc8] sm:$0xff]  }
 0x589   :  { %v555_v36 = vrot.slane %v554_v34, 4 }
 0x58b   :  { %v556_v38 = vadd.f32 %v555_v36, %v554_v34 }
 0x58d   :  { %v557_v42 = vrot.slane %v556_v38, 2 }
 0x58f   :  { %v558_v44 = vadd.f32 %v557_v42, %v556_v38  ;;  %v10175_v38 = vmov 10  }
 0x591   :  { %v559_v45 = vrot.slane %v558_v44, 1 }
 0x593   :  { %v560_v20 = vadd.f32 %v559_v45, %v558_v44  ;;  %v10695_v45 = vpop.permute.xlu0 %9182 }
 0x595   :  { %v563_v50 = vmul.f32 %v9493_v48, %v560_v20  ;;  %v9327_v48 = vld [vmem:[#allocation7 + $0xc0] sm:$0xff]  }
 0x597   :  { %v10648_v52 = vmul.f32 %v10577_v41, %v563_v50  ;;  %v10653_v47 = vmul.f32 %v10587_v49, %v563_v50 }
 0x599   :  { %1271 = vperm.xlu1 %9217, %v10648_v52   ;;  %811 = vperm.xlu0 %9216, %v10648_v52  }
 0x59d   :  { %9219 = vset.pattern.permute.xlu1 %v10167_v3  ;;  %9218 = vset.pattern.permute.xlu0 %v11371_v46  ;;  %v1972_v28 = vpop.f32.mrf.mxu0 }
 0x59e   :  { %1980 = vperm.xlu1 %9219, %v10648_v52   ;;  %1275 = vperm.xlu0 %9218, %v10653_v47   ;;  %v10658_v54 = vadd.f32 %v7233_v53, %v1972_v28 }
 0x59f   :  { %v8274_v58 = vpop.f32.mrf.mxu0 }
 0x5a0   :  { %8308 = vmatprep.mubr.f32.mxu1 %v10658_v54 }
 0x5a1   :  { %v1975_v60 = vpop.f32.mrf.mxu0 }
 0x5a2   :  { %9221 = vset.pattern.permute.xlu1 %v10168_v57  ;;  %9220 = vset.pattern.permute.xlu0 %v10167_v3  ;;  %v10663_v62 = vadd.f32 %v7233_v53, %v1975_v60  ;;  %v10701_v60 = vpop.permute.xlu0 %9187 }
 0x5a3   :  { %2449 = vperm.xlu1 %9221, %v10648_v52   ;;  %1984 = vperm.xlu0 %9220, %v10653_v47   ;;  %v8275_v63 = vpop.f32.mrf.mxu0 }
 0x5a4   :  { %8309 = vmatmul.mubr.f32.vlgmr.msra.gmra.mxu1 %v10663_v62 }
 0x5a5   :  { %8332 = vmatpush3.bf16.msra.mxu1 %v9320_v61  ;;  %8347 = vmatprep.mubr.msk.bf16.mxu1 %vm10154_vm0, %v11372_v1 }
 0x5a6   :  { %8333 = vmatprep.subr.bf16.mxu1 %v11372_v1 }
 0x5a7   :  { %9223 = vset.pattern.permute.xlu1 %v10169_v22  ;;  %9222 = vset.pattern.permute.xlu0 %v10168_v57 }
 0x5a8   :  { %2918 = vperm.xlu1 %9223, %v10648_v52   ;;  %2453 = vperm.xlu0 %9222, %v10653_v47  }
 0x5a9   :  { %8334 = vmatpush3.bf16.msra.mxu1 %v9321_v11 }
 0x5aa   :  { %8335 = vmatprep.subr.bf16.mxu1 %v11372_v1 }
 0x5ac   :  { %9225 = vset.pattern.permute.xlu1 %v10170_v4  ;;  %9224 = vset.pattern.permute.xlu0 %v10169_v22  ;;  %v10703_v22 = vpop.permute.xlu0 %9192 }
 0x5ad   :  { %3387 = vperm.xlu1 %9225, %v10648_v52   ;;  %2922 = vperm.xlu0 %9224, %v10653_v47  }
 0x5ae   :  { %8336 = vmatpush3.bf16.msra.mxu1 %v9322_v6 }
 0x5af   :  { %8337 = vmatprep.subr.bf16.mxu1 %v11372_v1 }
 0x5b0   :  { %v10705_v11 = vpop.permute.xlu0 %9197 }
 0x5b1   :  { %9227 = vset.pattern.permute.xlu1 %v10171_v10  ;;  %9226 = vset.pattern.permute.xlu0 %v10170_v4 }
 0x5b2   :  { %3856 = vperm.xlu1 %9227, %v10648_v52   ;;  %3391 = vperm.xlu0 %9226, %v10653_v47  }
 0x5b3   :  { %8338 = vmatpush3.bf16.msra.mxu1 %v9323_v12 }
 0x5b4   :  { %8339 = vmatprep.subr.bf16.mxu1 %v11372_v1  ;;  %v10707_v12 = vpop.permute.xlu0 %9202 }
 0x5b6   :  { %9229 = vset.pattern.permute.xlu1 %v11366_v14  ;;  %9228 = vset.pattern.permute.xlu0 %v10171_v10 }
 0x5b7   :  { %4325 = vperm.xlu1 %9229, %v10648_v52   ;;  %3860 = vperm.xlu0 %9228, %v10653_v47  }
 0x5b8   :  { %8340 = vmatpush3.bf16.msra.mxu1 %v9324_v15 }
 0x5b9   :  { %8341 = vmatprep.subr.bf16.mxu1 %v11372_v1 }
 0x5bb   :  { %9231 = vset.pattern.permute.xlu1 %v10173_v21  ;;  %9230 = vset.pattern.permute.xlu0 %v11366_v14 }
 0x5bc   :  { %5036 = vperm.xlu1 %9231, %v10648_v52   ;;  %4329 = vperm.xlu0 %9230, %v10653_v47  }
 0x5bd   :  { %v2308_v31 = vpop.f32.mrf.mxu0  ;;  %8342 = vmatpush3.bf16.msra.mxu1 %v9325_v23 }
 0x5be   :  { %v2309_v32 = vadd.f32 %v7251_v9, %v2308_v31  ;;  %8343 = vmatprep.subr.bf16.mxu1 %v11372_v1  ;;  %v10709_v31 = vpop.permute.xlu0 %9207 }
 0x5bf   :  { %v8329_v18 = vpop.f32.mrf.mxu0 }
 0x5c0   :  { %9233 = vset.pattern.permute.xlu1 %v10174_v25  ;;  %9232 = vset.pattern.permute.xlu0 %v10173_v21  ;;  %v2315_v34 = vmul.f32 %v2309_v32, %v2309_v32  ;;  %v9328_v18 = vld [vmem:[#allocation3 + $0x138] sm:$0xff]  }
 0x5c1   :  { %5505 = vperm.xlu1 %9233, %v10648_v52   ;;  %5040 = vperm.xlu0 %9232, %v10653_v47   ;;  %v2311_v36 = vpop.f32.mrf.mxu0 }
 0x5c2   :  { %v2317_v42 = vmul.f32 %v2315_v34, %v2309_v32  ;;  %v2312_v44 = vadd.f32 %v7251_v9, %v2311_v36  ;;  %8344 = vmatpush3.bf16.msra.mxu1 %v9326_v33  ;;  %v7242_v34 = vld [vmem:[#allocation10 + $0x2] ss:$0 sm:$0xff] }
 0x5c3   :  { %v8330_v20 = vpop.f32.mrf.mxu0  ;;  %8345 = vmatprep.subr.bf16.mxu1 %v11372_v1  ;;  %v2000_v36 = vmul.f32 %v7242_v34, %v10663_v62 }
 0x5c4   :  { %v2319_v50 = vmul.f32 0.044715, %v2317_v42  ;;  %v2316_v3 = vmul.f32 %v2312_v44, %v2312_v44  ;;  %v1999_v42 = vmul.f32 %v7242_v34, %v10658_v54  ;;  %v2524_v34 = vld [vmem:[#allocation13 + $0x1b8] sm:$0xff] }
 0x5c5   :  { %9235 = vset.pattern.permute.xlu1 %v10175_v38  ;;  %9234 = vset.pattern.permute.xlu0 %v10174_v25 }
 0x5c6   :  { %5974 = vperm.xlu1 %9235, %v10648_v52   ;;  %5509 = vperm.xlu0 %9234, %v10653_v47   ;;  %v2321_v53 = vadd.f32 %v2319_v50, %v2309_v32  ;;  %v2318_v28 = vmul.f32 %v2316_v3, %v2312_v44  ;;  %v9331_v50 = vld [vmem:[#allocation3 + $0x120] sm:$0xff]  }
 0x5c7   :  { %8346 = vmatpush3.bf16.msra.mxu1 %v9327_v48 }
 0x5c8   :  { %v2323_v57 = vmul.f32 0.7978846, %v2321_v53  ;;  %v2320_v58 = vmul.f32 0.044715, %v2318_v28  ;;  %8386 = vmatprep.subr.bf16.mxu1 %v11372_v1 }
 0x5ca   :  { %9236 = vset.pattern.permute.xlu0 %v10175_v38  ;;  %9494 = vtanh.f32 %v2323_v57  ;;  %v2322_v61 = vadd.f32 %v2320_v58, %v2312_v44  ;;  %v9329_v38 = vld [vmem:[#allocation3 + $0x130] sm:$0xff]   ;;  %v9332_v57 = vld [vmem:[#allocation3 + $0x118] sm:$0xff]  }
 0x5cb   :  { %5978 = vperm.xlu0 %9236, %v10653_v47  }
 0x5cc   :  { %v2324_v63 = vmul.f32 0.7978846, %v2322_v61  ;;  %v9333_v61 = vld [vmem:[#allocation3 + $0x110] sm:$0xff]  }
 0x5ce   :  { %9496 = vtanh.f32 %v2324_v63 }
 0x5d7   :  { %v9495_v4 = vpop.eup %9494 }
 0x5d8   :  { %v2327_v6 = vadd.f32 1.0, %v9495_v4  ;;  %v9335_v4 = vld [vmem:[#allocation3 + $0x100] sm:$0xff]  }
 0x5da   :  { %v2329_v15 = vmul.f32 0.5, %v2327_v6 }
 0x5db   :  { %v9497_v10 = vpop.eup %9496 }
 0x5dc   :  { %v2328_v21 = vadd.f32 1.0, %v9497_v10  ;;  %v2331_v9 = vmul.f32 %v2329_v15, %v2309_v32  ;;  %v10716_v32 = vpop.permute.xlu0 %9212  ;;  %v2532_v15 = vld [vmem:[#allocation13 + $0x1f8] sm:$0xff] }
 0x5dd   :  { %8351 = vmatprep.subr.mxu0 %v2532_v15 }
 0x5de   :  { %v2330_v23 = vmul.f32 0.5, %v2328_v21  ;;  %8352 = vmatpush3.msra.mxu0 %v2532_v15  ;;  %v2531_v21 = vld [vmem:[#allocation13 + $0x1f0] sm:$0xff]  ;;  %v7247_v15 = vld [vmem:[#allocation16 + $0x2] ss:$0 sm:$0xff] }
 0x5df   :  { %8353 = vmatprep.subr.mxu0 %v2531_v21 }
 0x5e0   :  { %v2332_v25 = vmul.f32 %v2330_v23, %v2312_v44  ;;  %v9330_v44 = vld [vmem:[#allocation3 + $0x128] sm:$0xff]   ;;  %8354 = vmatpush3.msra.mxu0 %v2531_v21  ;;  %v2530_v23 = vld [vmem:[#allocation13 + $0x1e8] sm:$0xff] }
 0x5e1   :  { %8355 = vmatprep.subr.mxu0 %v2530_v23 }
 0x5e2   :  { %v2333_v33 = vpack.c.bf16 %v2332_v25, %v2331_v9  ;;  %8356 = vmatpush3.msra.mxu0 %v2530_v23  ;;  %v2529_v9 = vld [vmem:[#allocation13 + $0x1e0] sm:$0xff]  ;;  %v2528_v25 = vld [vmem:[#allocation13 + $0x1d8] sm:$0xff] }
 0x5e3   :  { %8357 = vmatprep.subr.mxu0 %v2529_v9 }
 0x5e4   :  { %8348 = vmatmul.mubr.bf16.vlgmr.msra.gmra.mxu1 %v2333_v33  ;;  %8358 = vmatpush3.msra.mxu0 %v2529_v9  ;;  %v2526_v33 = vld [vmem:[#allocation13 + $0x1c8] sm:$0xff] }
 0x5e5   :  { %8387 = vmatpush3.bf16.msra.mxu1 %v9328_v18  ;;  %8402 = vmatprep.mubr.msk.bf16.mxu1 %vm10154_vm0, %v11372_v1  ;;  %v2527_v18 = vld [vmem:[#allocation13 + $0x1d0] sm:$0xff] }
 0x5e6   :  { %8388 = vmatprep.subr.bf16.mxu1 %v11372_v1  ;;  %8359 = vmatprep.subr.mxu0 %v2528_v25 }
 0x5e7   :  { %8360 = vmatpush3.msra.mxu0 %v2528_v25 }
 0x5e8   :  { %8361 = vmatprep.subr.mxu0 %v2527_v18 }
 0x5e9   :  { %8389 = vmatpush3.bf16.msra.mxu1 %v9329_v38  ;;  %8362 = vmatpush3.msra.mxu0 %v2527_v18  ;;  %v2522_v38 = vld [vmem:[#allocation13 + $0x1a8] sm:$0xff] }
 0x5ea   :  { %2003 = vadd.xlane.f32.xlu1 %v2000_v36  ;;  %2001 = vadd.xlane.f32.xlu0 %v1999_v42  ;;  %v2523_v36 = vld [vmem:[#allocation13 + $0x1b0] sm:$0xff]  ;;  %v2521_v42 = vld [vmem:[#allocation13 + $0x1a0] sm:$0xff] }
 0x5eb   :  { %8390 = vmatprep.subr.bf16.mxu1 %v11372_v1  ;;  %v1691_v20 = vpop.xlane.xlu0 %1690  ;;  %8363 = vmatprep.subr.mxu0 %v2526_v33 }
 0x5ec   :  { %v1693_v48 = vsub.f32 %v10635_v2, %v1691_v20  ;;  %v9334_v2 = vld [vmem:[#allocation3 + $0x108] sm:$0xff]   ;;  %8364 = vmatpush3.msra.mxu0 %v2526_v33  ;;  %v2519_v20 = vld [vmem:[#allocation13 + $0x190] sm:$0xff] }
 0x5ed   :  { %8391 = vmatpush3.bf16.msra.mxu1 %v9330_v44  ;;  %v2520_v44 = vld [vmem:[#allocation13 + $0x198] sm:$0xff] }
 0x5ee   :  { %v1696_v3 = vmul.f32 1.442695, %v1693_v48  ;;  %8392 = vmatprep.subr.bf16.mxu1 %v11372_v1  ;;  %v2518_v48 = vld [vmem:[#allocation13 + $0x188] sm:$0xff] }
 0x5ef   :  { %v1688_v53 = vpop.xlane.xlu0 %1687 }
 0x5f0   :  { %9498 = vpow2.f32 %v1696_v3  ;;  %v1692_v28 = vsub.f32 %v10637_v5, %v1688_v53 }
 0x5f1   :  { %8393 = vmatpush3.bf16.msra.mxu1 %v9331_v50  ;;  %v2517_v50 = vld [vmem:[#allocation13 + $0x180] sm:$0xff] }
 0x5f2   :  { %v1694_v58 = vmul.f32 1.442695, %v1692_v28  ;;  %8394 = vmatprep.subr.bf16.mxu1 %v11372_v1 }
 0x5f4   :  { %9500 = vpow2.f32 %v1694_v58 }
 0x5f5   :  { %8395 = vmatpush3.bf16.msra.mxu1 %v9332_v57 }
 0x5f6   :  { %8396 = vmatprep.subr.bf16.mxu1 %v11372_v1 }
 0x5f9   :  { %8397 = vmatpush3.bf16.msra.mxu1 %v9333_v61 }
 0x5fa   :  { %8398 = vmatprep.subr.bf16.mxu1 %v11372_v1 }
 0x5fd   :  { %v10725_v63 = vpop.eup %9498  ;;  %8399 = vmatpush3.bf16.msra.mxu1 %v9334_v2  ;;  %v7246_v2 = vld [vmem:[#allocation14 + $0x2] ss:$0 sm:$0xff] }
 0x5fe   :  { %8400 = vmatprep.subr.bf16.mxu1 %v11372_v1  ;;  %v1701_v5 = vsel %vm1685_vm13, %v10725_v63, 0.0 }
 0x5ff   :  { %1702 = vadd.xlane.f32.xlu0 %v1701_v5 }
 0x601   :  { %v10730_v6 = vpop.eup %9500  ;;  %8401 = vmatpush3.bf16.msra.mxu1 %v9335_v4 }
 0x602   :  { %v1698_v10 = vsel %vm1685_vm13, %v10730_v6, 0.0 }
 0x603   :  { %1699 = vadd.xlane.f32.xlu0 %v1698_v10 }
 0x604   :  { %8403 = vmatmul.mubr.bf16.vlgmr.msra.gmra.mxu1 %v10542_v35  ;;  %v2525_v35 = vld [vmem:[#allocation13 + $0x1c0] sm:$0xff] }
 0x605   :  { %8365 = vmatprep.subr.mxu0 %v2525_v35 }
 0x606   :  { %8366 = vmatpush3.msra.mxu0 %v2525_v35 }
 0x607   :  { %8367 = vmatprep.subr.mxu0 %v2524_v34 }
 0x608   :  { %8368 = vmatpush3.msra.mxu0 %v2524_v34 }
 0x609   :  { %8369 = vmatprep.subr.mxu0 %v2523_v36 }
 0x60a   :  { %8370 = vmatpush3.msra.mxu0 %v2523_v36 }
 0x60b   :  { %8371 = vmatprep.subr.mxu0 %v2522_v38 }
 0x60c   :  { %8372 = vmatpush3.msra.mxu0 %v2522_v38 }
 0x60d   :  { %8373 = vmatprep.subr.mxu0 %v2521_v42 }
 0x60e   :  { %8374 = vmatpush3.msra.mxu0 %v2521_v42 }
 0x60f   :  { %8375 = vmatprep.subr.mxu0 %v2520_v44 }
 0x610   :  { %8376 = vmatpush3.msra.mxu0 %v2520_v44 }
 0x611   :  { %8377 = vmatprep.subr.mxu0 %v2519_v20 }
 0x612   :  { %8378 = vmatpush3.msra.mxu0 %v2519_v20 }
 0x613   :  { %8379 = vmatprep.subr.mxu0 %v2518_v48 }
 0x614   :  { %8380 = vmatpush3.msra.mxu0 %v2518_v48  ;;  %v812_v3 = vpop.permute.xlu0 %811 }
 0x615   :  { %8381 = vmatprep.subr.mxu0 %v2517_v50 }
 0x616   :  { %8382 = vmatpush3.msra.mxu0 %v2517_v50 }
 0x617   :  { %8406 = vmatprep.subr.bf16.mxu0 %v11372_v1 }
 0x619   :  { %v10736_v53 = vpop.permute.xlu0 %1275 }
 0x61e   :  { %v10738_v28 = vpop.permute.xlu0 %1984 }
 0x623   :  { %v10740_v57 = vpop.permute.xlu0 %2453 }
 0x628   :  { %v10742_v58 = vpop.permute.xlu0 %2922 }
 0x62d   :  { %v10744_v61 = vpop.permute.xlu0 %3391 }
 0x62e   :  { %11415 = vst [vmem:[#allocation51_spill] sm:$0xff] %v10744_v61 }
 0x632   :  { %v10746_v9 = vpop.permute.xlu0 %3860 }
 0x633   :  { %11416 = vst [vmem:[#allocation52_spill] sm:$0xff] %v10746_v9  ;;  %v2988_v9 = vld [vmem:[#allocation13 + $0x210] sm:$0xff] }
 0x637   :  { %v10749_v34 = vpop.permute.xlu0 %4329 }
 0x638   :  { %11417 = vst [vmem:[#allocation53_spill] sm:$0xff] %v10749_v34 }
 0x63c   :  { %v10752_v38 = vpop.permute.xlu0 %5040 }
 0x63d   :  { %11418 = vst [vmem:[#allocation54_spill] sm:$0xff] %v10752_v38 }
 0x641   :  { %v10754_v42 = vpop.permute.xlu0 %5509 }
 0x642   :  { %11419 = vst [vmem:[#allocation55_spill] sm:$0xff] %v10754_v42 }
 0x646   :  { %v10756_v44 = vpop.permute.xlu0 %5978 }
 0x647   :  { %11420 = vst [vmem:[#allocation56_spill] sm:$0xff] %v10756_v44 }
 0x664   :  { %v8310_v4 = vpop.f32.mrf.mxu1 }
 0x665   :  { %v2144_v5 = vadd.f32 %v8310_v4, %v7246_v2  ;;  %v9170_v4 = vunpack.i.h.bf16 %v10677_v13 }
 0x666   :  { %v2138_v10 = vpop.f32.mrf.mxu1 }
 0x667   :  { %v2148_v21 = vmax.f32 %v2144_v5, 0.0  ;;  %v2139_v23 = vadd.f32 %v7246_v2, %v2138_v10 }
 0x669   :  { %v2147_v25 = vmax.f32 %v2139_v23, 0.0  ;;  %v2158_v18 = vmul.f32 %v7247_v15, %v2148_v21  ;;  %v1272_v21 = vpop.permute.xlu1 %1271  ;;  %v9169_v23 = vunpack.i.l.bf16 %v10677_v13 }
 0x66b   :  { %v2162_v33 = vsel %vm981_vm2, %v2158_v18, 0.0  ;;  %v2157_v35 = vmul.f32 %v7247_v15, %v2147_v25 }
 0x66c   :  { %2163 = vadd.xlane.f32.xlu1 %v2162_v33 }
 0x66d   :  { %v2159_v36 = vsel %vm981_vm2, %v2157_v35, 0.0 }
 0x670   :  { %2160 = vadd.xlane.f32.xlu1 %v2159_v36  ;;  %v1981_v36 = vpop.permute.xlu1 %1980 }
 0x673   :  { %v10758_v20 = vpop.xlane.xlu0 %2001 }
 0x688   :  { %v1703_v48 = vpop.xlane.xlu0 %1702 }
 0x689   :  { %9502 = vrcp.f32 %v1703_v48  ;;  %v1278_v48 = vmul.f32 %v1272_v21, %v10522_v16  ;;  %v9340_v21 = vld [vmem:[#allocation7 + $0x118] sm:$0xff]  }
 0x68c   :  { %v1700_v50 = vpop.xlane.xlu0 %1699 }
 0x68d   :  { %9504 = vrcp.f32 %v1700_v50  ;;  %v819_v50 = vmul.f32 %v812_v3, %v10480_v39  ;;  %v9337_v3 = vld [vmem:[#allocation7 + $0x130] sm:$0xff]  }
 0x68f   :  { %v1280_v13 = vadd.f32 %v1278_v48, %v819_v50  ;;  %v7278_v48 = vld [vmem:[#allocation5 + $0x4] ss:$0 sm:$0xff] }
 0x696   :  { %v9503_v2 = vpop.eup %9502 }
 0x697   :  { %v1707_v5 = vmul.f32 %v9503_v2, %v10725_v63  ;;  %v7260_v63 = vld [vmem:[#allocation8 + $0x3] ss:$0 sm:$0xff]  ;;  %v1987_v2 = vmul.f32 %v1981_v36, %v10658_v54  ;;  %v9342_v36 = vld [vmem:[#allocation7 + $0x108] sm:$0xff]  }
 0x699   :  { %v1717_v10 = vmul.f32 %v9170_v4, %v1707_v5  ;;  %v7269_v5 = vld [vmem:[#allocation10 + $0x3] ss:$0 sm:$0xff] }
 0x69a   :  { %v9505_v15 = vpop.eup %9504 }
 0x69b   :  { %v1721_v25 = vsel %vm1685_vm13, %v1717_v10, 0.0  ;;  %v1705_v18 = vmul.f32 %v9505_v15, %v10730_v6  ;;  %v2450_v10 = vpop.permute.xlu1 %2449  ;;  %v1989_v6 = vadd.f32 %v1987_v2, %v1280_v13 }
 0x69c   :  { %1722 = vadd.xlane.f32.xlu1 %v1721_v25 }
 0x69d   :  { %v1716_v33 = vmul.f32 %v9169_v23, %v1705_v18  ;;  %v9336_v18 = vld [vmem:[#allocation7 + $0x138] sm:$0xff]  }
 0x69f   :  { %v1718_v35 = vsel %vm1685_vm13, %v1716_v33, 0.0 }
 0x6a0   :  { %1719 = vadd.xlane.f32.xlu1 %v1718_v35  ;;  %v9341_v35 = vld [vmem:[#allocation7 + $0x110] sm:$0xff]  }
 0x6a4   :  { %v2441_v4 = vpop.f32.mrf.mxu1 }
 0x6a5   :  { %v2442_v27 = vadd.f32 %v7260_v63, %v2441_v4 }
 0x6a6   :  { %v8349_v14 = vpop.f32.mrf.mxu1 }
 0x6a7   :  { %v2456_v15 = vmul.f32 %v2450_v10, %v2442_v27  ;;  %8383 = vmatprep.mubr.f32.mxu0 %v2442_v27  ;;  %v2468_v23 = vmul.f32 %v7269_v5, %v2442_v27  ;;  %v9338_v27 = vld [vmem:[#allocation7 + $0x128] sm:$0xff]   ;;  %v9339_v14 = vld [vmem:[#allocation7 + $0x120] sm:$0xff]   ;;  %v10784_v10 = vpop.permute.xlu1 %2918 }
 0x6a8   :  { %v2444_v25 = vpop.f32.mrf.mxu1 }
 0x6a9   :  { %v10769_v33 = vadd.f32 %v2456_v15, %v1989_v6  ;;  %v10771_v16 = vadd.f32 %v7260_v63, %v2444_v25  ;;  %2470 = vadd.xlane.f32.xlu0 %v2468_v23  ;;  %v9343_v63 = vld [vmem:[#allocation7 + $0x100] sm:$0xff]  }
 0x6aa   :  { %v8350_v39 = vpop.f32.mrf.mxu1 }
 0x6ab   :  { %8384 = vmatmul.mubr.f32.vlgmr.msra.gmra.mxu0 %v10771_v16  ;;  %v2469_v54 = vmul.f32 %v7269_v5, %v10771_v16 }
 0x6ac   :  { %8407 = vmatpush3.bf16.msra.mxu0 %v9336_v18  ;;  %8422 = vmatprep.mubr.msk.bf16.mxu0 %vm10154_vm0, %v11372_v1 }
 0x6ad   :  { %2472 = vadd.xlane.f32.xlu1 %v2469_v54  ;;  %8408 = vmatprep.subr.bf16.mxu0 %v11372_v1 }
 0x6b0   :  { %8409 = vmatpush3.bf16.msra.mxu0 %v9337_v3  ;;  %v10787_v3 = vpop.permute.xlu1 %3387 }
 0x6b1   :  { %8410 = vmatprep.subr.bf16.mxu0 %v11372_v1 }
 0x6b4   :  { %8411 = vmatpush3.bf16.msra.mxu0 %v9338_v27 }
 0x6b5   :  { %8412 = vmatprep.subr.bf16.mxu0 %v11372_v1 }
 0x6b8   :  { %8413 = vmatpush3.bf16.msra.mxu0 %v9339_v14 }
 0x6b9   :  { %8414 = vmatprep.subr.bf16.mxu0 %v11372_v1 }
 0x6bc   :  { %8415 = vmatpush3.bf16.msra.mxu0 %v9340_v21 }
 0x6bd   :  { %8416 = vmatprep.subr.bf16.mxu0 %v11372_v1 }
 0x6c0   :  { %8417 = vmatpush3.bf16.msra.mxu0 %v9341_v35 }
 0x6c1   :  { %8418 = vmatprep.subr.bf16.mxu0 %v11372_v1 }
 0x6c4   :  { %v2777_v50 = vpop.f32.mrf.mxu1  ;;  %8419 = vmatpush3.bf16.msra.mxu0 %v9342_v36  ;;  %v10789_v36 = vpop.permute.xlu1 %3856 }
 0x6c5   :  { %v2778_v2 = vadd.f32 %v7278_v48, %v2777_v50  ;;  %8420 = vmatprep.subr.bf16.mxu0 %v11372_v1 }
 0x6c6   :  { %v8404_v4 = vpop.f32.mrf.mxu1 }
 0x6c7   :  { %v2784_v5 = vmul.f32 %v2778_v2, %v2778_v2 }
 0x6c8   :  { %v2780_v13 = vpop.f32.mrf.mxu1  ;;  %8421 = vmatpush3.bf16.msra.mxu0 %v9343_v63  ;;  %v10791_v50 = vpop.permute.xlu1 %4325 }
 0x6c9   :  { %v2786_v6 = vmul.f32 %v2784_v5, %v2778_v2  ;;  %v2781_v15 = vadd.f32 %v7278_v48, %v2780_v13  ;;  %8461 = vmatprep.subr.bf16.mxu0 %v11372_v1  ;;  %v7190_v48 = vld [vmem:[#allocation17] ss:$0 sm:$0xff] }
 0x6ca   :  { %v8405_v23 = vpop.f32.mrf.mxu1  ;;  %v996_v5 = vadd.f32 %v7190_v48, %v10546_v37  ;;  %v995_v13 = vadd.f32 %v7190_v48, %v10548_v40  ;;  %v9345_v37 = vld [vmem:[#allocation3 + $0x170] sm:$0xff]   ;;  %v9346_v48 = vld [vmem:[#allocation3 + $0x168] sm:$0xff]  }
 0x6cb   :  { %v2788_v25 = vmul.f32 0.044715, %v2786_v6  ;;  %v2785_v18 = vmul.f32 %v2781_v15, %v2781_v15 }
 0x6cc   :  { %v10795_v6 = vpop.permute.xlu1 %5036 }
 0x6cd   :  { %v2790_v39 = vadd.f32 %v2788_v25, %v2778_v2  ;;  %v2787_v54 = vmul.f32 %v2785_v18, %v2781_v15 }
 0x6cf   :  { %v2792_v27 = vmul.f32 0.7978846, %v2790_v39  ;;  %v2789_v14 = vmul.f32 0.044715, %v2787_v54  ;;  %v7192_v39 = vmul.f32 -1.442695, %v996_v5 }
 0x6d0   :  { %v7191_v54 = vmul.f32 -1.442695, %v995_v13 }
 0x6d1   :  { %9506 = vtanh.f32 %v2792_v27  ;;  %v2791_v21 = vadd.f32 %v2789_v14, %v2781_v15  ;;  %v10797_v14 = vpop.permute.xlu1 %5505 }
 0x6d3   :  { %v2793_v35 = vmul.f32 0.7978846, %v2791_v21 }
 0x6d5   :  { %9508 = vtanh.f32 %v2793_v35  ;;  %v10801_v40 = vpop.permute.xlu1 %5974 }
 0x6d6   :  { %9510 = vpow2.f32 %v7192_v39 }
 0x6d7   :  { %9512 = vpow2.f32 %v7191_v54 }
 0x6de   :  { %v9507_v63 = vpop.eup %9506 }
 0x6df   :  { %v2796_v4 = vadd.f32 1.0, %v9507_v63 }
 0x6e1   :  { %v2798_v25 = vmul.f32 0.5, %v2796_v4  ;;  %v10804_v4 = vpop.xlane.xlu1 %2003 }
 0x6e2   :  { %v9509_v23 = vpop.eup %9508 }
 0x6e3   :  { %v2797_v18 = vadd.f32 1.0, %v9509_v23  ;;  %v2800_v21 = vmul.f32 %v2798_v25, %v2778_v2  ;;  %v7248_v2 = vld [vmem:[#allocation17 + $0x2] ss:$0 sm:$0xff]  ;;  %v9511_v5 = vpop.eup %9510 }
 0x6e4   :  { %v9513_v13 = vpop.eup %9512  ;;  %v3001_v25 = vld [vmem:[#allocation13 + $0x278] sm:$0xff]  ;;  %v1004_v39 = vadd.f32 1.0, %v9511_v5  ;;  %v2996_v5 = vld [vmem:[#allocation13 + $0x250] sm:$0xff] }
 0x6e5   :  { %v2799_v27 = vmul.f32 0.5, %v2797_v18  ;;  %v3000_v18 = vld [vmem:[#allocation13 + $0x270] sm:$0xff]  ;;  %8426 = vmatprep.subr.mxu1 %v3001_v25 }
 0x6e6   :  { %8427 = vmatpush3.msra.mxu1 %v3001_v25  ;;  %v9351_v25 = vld [vmem:[#allocation3 + $0x140] sm:$0xff]  }
 0x6e7   :  { %v2801_v35 = vmul.f32 %v2799_v27, %v2781_v15  ;;  %v9347_v15 = vld [vmem:[#allocation3 + $0x160] sm:$0xff]   ;;  %v9348_v27 = vld [vmem:[#allocation3 + $0x158] sm:$0xff]   ;;  %8428 = vmatprep.subr.mxu1 %v3000_v18 }
 0x6e8   :  { %8429 = vmatpush3.msra.mxu1 %v3000_v18  ;;  %v2993_v18 = vld [vmem:[#allocation13 + $0x238] sm:$0xff] }
 0x6e9   :  { %v2802_v63 = vpack.c.bf16 %v2801_v35, %v2800_v21  ;;  %v1003_v21 = vadd.f32 1.0, %v9513_v13  ;;  %v9350_v13 = vld [vmem:[#allocation3 + $0x148] sm:$0xff]  }
 0x6eb   :  { %8423 = vmatmul.mubr.bf16.vlgmr.msra.gmra.mxu0 %v2802_v63  ;;  %v2999_v63 = vld [vmem:[#allocation13 + $0x268] sm:$0xff] }
 0x6ec   :  { %8462 = vmatpush3.bf16.msra.mxu0 %v9344_v29  ;;  %8477 = vmatprep.mubr.msk.bf16.mxu0 %vm10154_vm0, %v11372_v1 }
 0x6ed   :  { %8463 = vmatprep.subr.bf16.mxu0 %v11372_v1  ;;  %8430 = vmatprep.subr.mxu1 %v2999_v63 }
 0x6ee   :  { %8431 = vmatpush3.msra.mxu1 %v2999_v63 }
 0x6f0   :  { %8464 = vmatpush3.bf16.msra.mxu0 %v9345_v37 }
 0x6f1   :  { %8465 = vmatprep.subr.bf16.mxu0 %v11372_v1 }
 0x6f4   :  { %8466 = vmatpush3.bf16.msra.mxu0 %v9346_v48  ;;  %v2998_v48 = vld [vmem:[#allocation13 + $0x260] sm:$0xff] }
 0x6f5   :  { %8467 = vmatprep.subr.bf16.mxu0 %v11372_v1  ;;  %v2164_v29 = vpop.xlane.xlu1 %2163  ;;  %8432 = vmatprep.subr.mxu1 %v2998_v48 }
 0x6f6   :  { %v2174_v23 = vadd.f32 %v7248_v2, %v2164_v29  ;;  %8433 = vmatpush3.msra.mxu1 %v2998_v48  ;;  %v10814_v48 = vld [vmem:[%s11411_s19] sm:$0xff]  }
 0x6f8   :  { %8468 = vmatpush3.bf16.msra.mxu0 %v9347_v15  ;;  %v7250_v54 = vmul.f32 -1.442695, %v2174_v23  ;;  %v2997_v15 = vld [vmem:[#allocation13 + $0x258] sm:$0xff]  ;;  %v2994_v23 = vld [vmem:[#allocation13 + $0x240] sm:$0xff] }
 0x6f9   :  { %8469 = vmatprep.subr.bf16.mxu0 %v11372_v1  ;;  %v2161_v35 = vpop.xlane.xlu1 %2160  ;;  %8434 = vmatprep.subr.mxu1 %v2997_v15 }
 0x6fa   :  { %9514 = vpow2.f32 %v7250_v54  ;;  %v2173_v37 = vadd.f32 %v7248_v2, %v2161_v35  ;;  %8435 = vmatpush3.msra.mxu1 %v2997_v15  ;;  %v2995_v2 = vld [vmem:[#allocation13 + $0x248] sm:$0xff] }
 0x6fb   :  { %9516 = vrcp.f32 %v1004_v39  ;;  %8436 = vmatprep.subr.mxu1 %v2996_v5 }
 0x6fc   :  { %8470 = vmatpush3.bf16.msra.mxu0 %v9348_v27  ;;  %v7249_v29 = vmul.f32 -1.442695, %v2173_v37  ;;  %9518 = vrcp.f32 %v1003_v21  ;;  %8437 = vmatpush3.msra.mxu1 %v2996_v5  ;;  %v2991_v21 = vld [vmem:[#allocation13 + $0x228] sm:$0xff] }
 0x6fd   :  { %8471 = vmatprep.subr.bf16.mxu0 %v11372_v1  ;;  %8438 = vmatprep.subr.mxu1 %v2995_v2 }
 0x6fe   :  { %9520 = vpow2.f32 %v7249_v29  ;;  %8439 = vmatpush3.msra.mxu1 %v2995_v2  ;;  %v2990_v29 = vld [vmem:[#allocation13 + $0x220] sm:$0xff] }
 0x6ff   :  { %8440 = vmatprep.subr.mxu1 %v2994_v23 }
 0x700   :  { %8472 = vmatpush3.bf16.msra.mxu0 %v9349_v59  ;;  %8441 = vmatpush3.msra.mxu1 %v2994_v23  ;;  %v2992_v59 = vld [vmem:[#allocation13 + $0x230] sm:$0xff] }
 0x701   :  { %8473 = vmatprep.subr.bf16.mxu0 %v11372_v1  ;;  %8442 = vmatprep.subr.mxu1 %v2993_v18 }
 0x702   :  { %8443 = vmatpush3.msra.mxu1 %v2993_v18  ;;  %v1487_v18 = vrot.slane %v10632_v0, 4 }
 0x703   :  { %8444 = vmatprep.subr.mxu1 %v2992_v59 }
 0x704   :  { %8474 = vmatpush3.bf16.msra.mxu0 %v9350_v13  ;;  %8445 = vmatpush3.msra.mxu1 %v2992_v59  ;;  %v2989_v13 = vld [vmem:[#allocation13 + $0x218] sm:$0xff] }
 0x705   :  { %8475 = vmatprep.subr.bf16.mxu0 %v11372_v1  ;;  %8446 = vmatprep.subr.mxu1 %v2991_v21 }
 0x706   :  { %8447 = vmatpush3.msra.mxu1 %v2991_v21 }
 0x707   :  { %v9515_v39 = vpop.eup %9514  ;;  %8448 = vmatprep.subr.mxu1 %v2990_v29 }
 0x708   :  { %v2182_v54 = vadd.f32 1.0, %v9515_v39  ;;  %8476 = vmatpush3.bf16.msra.mxu0 %v9351_v25  ;;  %v9517_v27 = vpop.eup %9516  ;;  %8449 = vmatpush3.msra.mxu1 %v2990_v29 }
 0x709   :  { %v9519_v35 = vpop.eup %9518  ;;  %v1010_v63 = vmul.f32 %v9517_v27, %v10587_v49  ;;  %8450 = vmatprep.subr.mxu1 %v2989_v13  ;;  %v11374_v27 = vunpack.i.h.bf16 %v10683_v17 }
 0x70a   :  { %9522 = vrcp.f32 %v2182_v54  ;;  %v1009_v15 = vmul.f32 %v9519_v35, %v10577_v41  ;;  %8451 = vmatpush3.msra.mxu1 %v2989_v13  ;;  %v1488_v54 = vadd.f32 %v1487_v18, %v10632_v0  ;;  %v11375_v35 = vunpack.i.l.bf16 %v10683_v17 }
 0x70b   :  { %v9521_v37 = vpop.eup %9520  ;;  %8478 = vmatmul.mubr.bf16.vlgmr.msra.gmra.mxu0 %v10814_v48  ;;  %v1014_v2 = vsel %vm861_vm12, %v1010_v63, 0.0  ;;  %8452 = vmatprep.subr.mxu1 %v2988_v9 }
 0x70c   :  { %v2181_v5 = vadd.f32 1.0, %v9521_v37  ;;  %v1013_v23 = vsel %vm861_vm12, %v1009_v15, 0.0  ;;  %v1489_v29 = vrot.slane %v1488_v54, 2  ;;  %8453 = vmatpush3.msra.mxu1 %v2988_v9 }
 0x70d   :  { %v1015_v25 = vadd.f32 %v1014_v2, %v1013_v23 }
 0x70e   :  { %9524 = vrcp.f32 %v2181_v5  ;;  %v1490_v23 = vadd.f32 %v1489_v29, %v1488_v54  ;;  %v11422_v29 = vmov 0.0  }
 0x70f   :  { %v1016_v39 = vrot.slane %v1015_v25, 4 }
 0x711   :  { %v1017_v21 = vadd.f32 %v1016_v39, %v1015_v25  ;;  %v1491_v25 = vrot.slane %v1490_v23, 1 }
 0x713   :  { %v1018_v5 = vrot.slane %v1017_v21, 2 }
 0x715   :  { %v1019_v18 = vadd.f32 %v1018_v5, %v1017_v21  ;;  %v2987_v21 = vld [vmem:[#allocation13 + $0x208] sm:$0xff] }
 0x716   :  { %8454 = vmatprep.subr.mxu1 %v2987_v21 }
 0x717   :  { %v9523_v59 = vpop.eup %9522  ;;  %v1020_v46 = vrot.slane %v1019_v18, 1  ;;  %8455 = vmatpush3.msra.mxu1 %v2987_v21  ;;  %v9352_v21 = vld [vmem:[#allocation7 + $0x178] sm:$0xff]  }
 0x718   :  { %v2188_v63 = vmul.f32 %v9523_v59, %v11374_v27  ;;  %v1492_v59 = vadd.f32 %v1491_v25, %v1490_v23 }
 0x719   :  { %v1021_v42 = vadd.f32 %v1020_v46, %v1019_v18 }
 0x71a   :  { %v2192_v13 = vsel %vm861_vm12, %v2188_v63, 0.0 }
 0x71b   :  { %v9525_v37 = vpop.eup %9524 }
 0x71c   :  { %v2187_v15 = vmul.f32 %v9525_v37, %v11375_v35  ;;  %v1493_v35 = vadd.f32 %v1492_v59, %v1021_v42 }
 0x71e   :  { %v2191_v2 = vsel %vm861_vm12, %v2187_v15, 0.0 }
 0x71f   :  { %v2193_v0 = vadd.f32 %v2192_v13, %v2191_v2  ;;  %v7287_v2 = vld [vmem:[#allocation8 + $0x4] ss:$0 sm:$0xff] }
 0x721   :  { %v2194_v56 = vrot.slane %v2193_v0, 4 }
 0x723   :  { %v2195_v39 = vadd.f32 %v2194_v56, %v2193_v0  ;;  %v2986_v56 = vld [vmem:[#allocation13 + $0x200] sm:$0xff]  ;;  %v7296_v0 = vld [vmem:[#allocation10 + $0x4] ss:$0 sm:$0xff] }
 0x724   :  { %8456 = vmatprep.subr.mxu1 %v2986_v56 }
 0x725   :  { %v2196_v1 = vrot.slane %v2195_v39, 2  ;;  %v1723_v44 = vpop.xlane.xlu1 %1722  ;;  %8457 = vmatpush3.msra.mxu1 %v2986_v56 }
 0x726   :  { %8481 = vmatprep.subr.bf16.mxu1 %v11422_v29 }
 0x727   :  { %v2197_v27 = vadd.f32 %v2196_v1, %v2195_v39  ;;  %v7273_v1 = vld [vmem:[#allocation14 + $0x3] ss:$0 sm:$0xff] }
 0x729   :  { %v2198_v38 = vrot.slane %v2197_v27, 1  ;;  %v1720_v34 = vpop.xlane.xlu1 %1719 }
 0x72a   :  { %v10830_v37 = vadd.f32 %v1723_v44, %v1720_v34  ;;  %v7274_v44 = vld [vmem:[#allocation16 + $0x3] ss:$0 sm:$0xff] }
 0x72b   :  { %v2199_v63 = vadd.f32 %v2198_v38, %v2197_v27 }
 0x72c   :  { %11421 = vst [vmem:[#allocation57_spill] sm:$0xff] %v10830_v37 }
 0x72d   :  { %v10832_v54 = vadd.f32 %v2199_v63, %v1493_v35 }
 0x76b   :  { %v8385_v46 = vpop.f32.mrf.mxu0 }
 0x76c   :  { %v2613_v15 = vadd.f32 %v8385_v46, %v7273_v1 }
 0x76d   :  { %v2607_v34 = vpop.f32.mrf.mxu0 }
 0x76e   :  { %v2617_v42 = vmax.f32 %v2613_v15, 0.0  ;;  %v2608_v38 = vadd.f32 %v7273_v1, %v2607_v34  ;;  %v9353_v34 = vld [vmem:[#allocation7 + $0x170] sm:$0xff]  }
 0x770   :  { %v2616_v27 = vmax.f32 %v2608_v38, 0.0  ;;  %v2627_v5 = vmul.f32 %v7274_v44, %v2617_v42  ;;  %v9357_v42 = vld [vmem:[#allocation7 + $0x150] sm:$0xff]   ;;  %v9358_v38 = vld [vmem:[#allocation7 + $0x148] sm:$0xff]  }
 0x772   :  { %v2631_v35 = vsel %vm981_vm2, %v2627_v5, 0.0  ;;  %v2626_v9 = vmul.f32 %v7274_v44, %v2616_v27  ;;  %v9356_v44 = vld [vmem:[#allocation7 + $0x158] sm:$0xff]  }
 0x773   :  { %2632 = vadd.xlane.f32.xlu1 %v2631_v35  ;;  %v7305_v27 = vld [vmem:[#allocation5 + $0x5] ss:$0 sm:$0xff]  ;;  %v9359_v35 = vld [vmem:[#allocation7 + $0x140] sm:$0xff]  }
 0x774   :  { %v2628_v13 = vsel %vm981_vm2, %v2626_v9, 0.0 }
 0x777   :  { %2629 = vadd.xlane.f32.xlu1 %v2628_v13 }
 0x7ab   :  { %v2910_v23 = vpop.f32.mrf.mxu0 }
 0x7ac   :  { %v2911_v18 = vadd.f32 %v7287_v2, %v2910_v23 }
 0x7ad   :  { %v8424_v25 = vpop.f32.mrf.mxu0 }
 0x7ae   :  { %v2925_v39 = vmul.f32 %v10784_v10, %v2911_v18  ;;  %8458 = vmatprep.mubr.f32.mxu1 %v2911_v18  ;;  %v2937_v59 = vmul.f32 %v7296_v0, %v2911_v18  ;;  %v9354_v10 = vld [vmem:[#allocation7 + $0x168] sm:$0xff]  }
 0x7af   :  { %v2913_v63 = vpop.f32.mrf.mxu0 }
 0x7b0   :  { %v10839_v56 = vadd.f32 %v2925_v39, %v10769_v33  ;;  %v10841_v1 = vadd.f32 %v7287_v2, %v2913_v63  ;;  %2939 = vadd.xlane.f32.xlu0 %v2937_v59  ;;  %v9355_v33 = vld [vmem:[#allocation7 + $0x160] sm:$0xff]  }
 0x7b1   :  { %v8425_v46 = vpop.f32.mrf.mxu0 }
 0x7b2   :  { %8459 = vmatmul.mubr.f32.vlgmr.msra.gmra.mxu1 %v10841_v1  ;;  %v2938_v15 = vmul.f32 %v7296_v0, %v10841_v1 }
 0x7b3   :  { %8482 = vmatpush3.bf16.msra.mxu1 %v9352_v21  ;;  %8497 = vmatprep.mubr.msk.bf16.mxu1 %vm10154_vm0, %v11422_v29 }
 0x7b4   :  { %2941 = vadd.xlane.f32.xlu1 %v2938_v15  ;;  %8483 = vmatprep.subr.bf16.mxu1 %v11422_v29 }
 0x7b7   :  { %8484 = vmatpush3.bf16.msra.mxu1 %v9353_v34 }
 0x7b8   :  { %8485 = vmatprep.subr.bf16.mxu1 %v11422_v29 }
 0x7bb   :  { %8486 = vmatpush3.bf16.msra.mxu1 %v9354_v10 }
 0x7bc   :  { %8487 = vmatprep.subr.bf16.mxu1 %v11422_v29 }
 0x7bf   :  { %8488 = vmatpush3.bf16.msra.mxu1 %v9355_v33 }
 0x7c0   :  { %8489 = vmatprep.subr.bf16.mxu1 %v11422_v29 }
 0x7c3   :  { %8490 = vmatpush3.bf16.msra.mxu1 %v9356_v44 }
 0x7c4   :  { %8491 = vmatprep.subr.bf16.mxu1 %v11422_v29 }
 0x7c7   :  { %8492 = vmatpush3.bf16.msra.mxu1 %v9357_v42 }
 0x7c8   :  { %8493 = vmatprep.subr.bf16.mxu1 %v11422_v29 }
 0x7cb   :  { %v3246_v5 = vpop.f32.mrf.mxu0  ;;  %8494 = vmatpush3.bf16.msra.mxu1 %v9358_v38 }
 0x7cc   :  { %v3247_v9 = vadd.f32 %v7305_v27, %v3246_v5  ;;  %8495 = vmatprep.subr.bf16.mxu1 %v11422_v29 }
 0x7cd   :  { %v8479_v13 = vpop.f32.mrf.mxu0 }
 0x7ce   :  { %v3253_v2 = vmul.f32 %v3247_v9, %v3247_v9 }
 0x7cf   :  { %v3249_v23 = vpop.f32.mrf.mxu0  ;;  %8496 = vmatpush3.bf16.msra.mxu1 %v9359_v35 }
 0x7d0   :  { %v3255_v0 = vmul.f32 %v3253_v2, %v3247_v9  ;;  %v3250_v18 = vadd.f32 %v7305_v27, %v3249_v23  ;;  %8536 = vmatprep.subr.bf16.mxu1 %v11422_v29  ;;  %v9360_v2 = vld [vmem:[#allocation3 + $0x1b8] sm:$0xff]  }
 0x7d1   :  { %v8480_v25 = vpop.f32.mrf.mxu0 }
 0x7d2   :  { %v3257_v39 = vmul.f32 0.044715, %v3255_v0  ;;  %v3254_v59 = vmul.f32 %v3250_v18, %v3250_v18  ;;  %v9361_v0 = vld [vmem:[#allocation3 + $0x1b0] sm:$0xff]   ;;  %v9362_v25 = vld [vmem:[#allocation3 + $0x1a8] sm:$0xff]  }
 0x7d4   :  { %v3259_v63 = vadd.f32 %v3257_v39, %v3247_v9  ;;  %v3256_v21 = vmul.f32 %v3254_v59, %v3250_v18  ;;  %v10858_v39 = vpop.xlane.xlu1 %2472  ;;  %v7275_v59 = vld [vmem:[#allocation17 + $0x3] ss:$0 sm:$0xff] }
 0x7d6   :  { %v3261_v46 = vmul.f32 0.7978846, %v3259_v63  ;;  %v3258_v15 = vmul.f32 0.044715, %v3256_v21  ;;  %v3470_v21 = vld [vmem:[#allocation13 + $0x2f8] sm:$0xff] }
 0x7d7   :  { %8501 = vmatprep.subr.mxu0 %v3470_v21 }
 0x7d8   :  { %9526 = vtanh.f32 %v3261_v46  ;;  %v3260_v34 = vadd.f32 %v3258_v15, %v3250_v18  ;;  %v3469_v46 = vld [vmem:[#allocation13 + $0x2f0] sm:$0xff]  ;;  %8502 = vmatpush3.msra.mxu0 %v3470_v21 }
 0x7d9   :  { %8503 = vmatprep.subr.mxu0 %v3469_v46 }
 0x7da   :  { %v3262_v10 = vmul.f32 0.7978846, %v3260_v34  ;;  %v9364_v34 = vld [vmem:[#allocation3 + $0x198] sm:$0xff]   ;;  %8504 = vmatpush3.msra.mxu0 %v3469_v46  ;;  %v3459_v46 = vld [vmem:[#allocation13 + $0x2a0] sm:$0xff] }
 0x7dc   :  { %9528 = vtanh.f32 %v3262_v10 }
 0x7e5   :  { %v9527_v33 = vpop.eup %9526 }
 0x7e6   :  { %v3265_v44 = vadd.f32 1.0, %v9527_v33  ;;  %v3468_v33 = vld [vmem:[#allocation13 + $0x2e8] sm:$0xff] }
 0x7e7   :  { %8505 = vmatprep.subr.mxu0 %v3468_v33 }
 0x7e8   :  { %v3267_v38 = vmul.f32 0.5, %v3265_v44  ;;  %8506 = vmatpush3.msra.mxu0 %v3468_v33  ;;  %v11377_v33 = vunpack.i.h.bf16 %v10689_v26 }
 0x7e9   :  { %v9529_v42 = vpop.eup %9528 }
 0x7ea   :  { %v3266_v5 = vadd.f32 1.0, %v9529_v42  ;;  %v3269_v27 = vmul.f32 %v3267_v38, %v3247_v9  ;;  %v9363_v9 = vld [vmem:[#allocation3 + $0x1a0] sm:$0xff]   ;;  %v3467_v42 = vld [vmem:[#allocation13 + $0x2e0] sm:$0xff] }
 0x7eb   :  { %8507 = vmatprep.subr.mxu0 %v3467_v42 }
 0x7ec   :  { %v3268_v35 = vmul.f32 0.5, %v3266_v5  ;;  %v9365_v5 = vld [vmem:[#allocation3 + $0x190] sm:$0xff]   ;;  %8508 = vmatpush3.msra.mxu0 %v3467_v42 }
 0x7ee   :  { %v3270_v13 = vmul.f32 %v3268_v35, %v3250_v18  ;;  %v3466_v35 = vld [vmem:[#allocation13 + $0x2d8] sm:$0xff] }
 0x7ef   :  { %8509 = vmatprep.subr.mxu0 %v3466_v35 }
 0x7f0   :  { %v3271_v23 = vpack.c.bf16 %v3270_v13, %v3269_v27  ;;  %v3465_v27 = vld [vmem:[#allocation13 + $0x2d0] sm:$0xff]  ;;  %v9366_v13 = vld [vmem:[#allocation3 + $0x188] sm:$0xff]   ;;  %8510 = vmatpush3.msra.mxu0 %v3466_v35 }
 0x7f1   :  { %8511 = vmatprep.subr.mxu0 %v3465_v27 }
 0x7f2   :  { %8498 = vmatmul.mubr.bf16.vlgmr.msra.gmra.mxu1 %v3271_v23  ;;  %8512 = vmatpush3.msra.mxu0 %v3465_v27  ;;  %v3463_v23 = vld [vmem:[#allocation13 + $0x2c0] sm:$0xff] }
 0x7f3   :  { %8537 = vmatpush3.bf16.msra.mxu1 %v9360_v2  ;;  %8552 = vmatprep.mubr.msk.bf16.mxu1 %vm10154_vm0, %v11422_v29  ;;  %v3464_v2 = vld [vmem:[#allocation13 + $0x2c8] sm:$0xff] }
 0x7f4   :  { %8538 = vmatprep.subr.bf16.mxu1 %v11422_v29  ;;  %8513 = vmatprep.subr.mxu0 %v3464_v2 }
 0x7f5   :  { %8514 = vmatpush3.msra.mxu0 %v3464_v2 }
 0x7f6   :  { %8515 = vmatprep.subr.mxu0 %v3463_v23 }
 0x7f7   :  { %8539 = vmatpush3.bf16.msra.mxu1 %v9361_v0  ;;  %v9367_v0 = vld [vmem:[#allocation3 + $0x180] sm:$0xff]   ;;  %8516 = vmatpush3.msra.mxu0 %v3463_v23 }
 0x7f8   :  { %8540 = vmatprep.subr.bf16.mxu1 %v11422_v29 }
 0x7fb   :  { %8541 = vmatpush3.bf16.msra.mxu1 %v9362_v25  ;;  %v3462_v25 = vld [vmem:[#allocation13 + $0x2b8] sm:$0xff] }
 0x7fc   :  { %8542 = vmatprep.subr.bf16.mxu1 %v11422_v29  ;;  %v2633_v18 = vpop.xlane.xlu1 %2632  ;;  %8517 = vmatprep.subr.mxu0 %v3462_v25 }
 0x7fd   :  { %v2643_v63 = vadd.f32 %v7275_v59, %v2633_v18  ;;  %8518 = vmatpush3.msra.mxu0 %v3462_v25 }
 0x7ff   :  { %8543 = vmatpush3.bf16.msra.mxu1 %v9363_v9  ;;  %v7277_v15 = vmul.f32 -1.442695, %v2643_v63  ;;  %v3461_v9 = vld [vmem:[#allocation13 + $0x2b0] sm:$0xff]  ;;  %v3460_v63 = vld [vmem:[#allocation13 + $0x2a8] sm:$0xff] }
 0x800   :  { %8544 = vmatprep.subr.bf16.mxu1 %v11422_v29  ;;  %v2630_v10 = vpop.xlane.xlu1 %2629  ;;  %8519 = vmatprep.subr.mxu0 %v3461_v9 }
 0x801   :  { %9530 = vpow2.f32 %v7277_v15  ;;  %v2642_v44 = vadd.f32 %v7275_v59, %v2630_v10  ;;  %8520 = vmatpush3.msra.mxu0 %v3461_v9 }
 0x802   :  { %8521 = vmatprep.subr.mxu0 %v3460_v63 }
 0x803   :  { %8545 = vmatpush3.bf16.msra.mxu1 %v9364_v34  ;;  %v7276_v38 = vmul.f32 -1.442695, %v2642_v44  ;;  %8522 = vmatpush3.msra.mxu0 %v3460_v63  ;;  %v3458_v34 = vld [vmem:[#allocation13 + $0x298] sm:$0xff]  ;;  %v11376_v44 = vunpack.i.l.bf16 %v10689_v26 }
 0x804   :  { %8546 = vmatprep.subr.bf16.mxu1 %v11422_v29  ;;  %8523 = vmatprep.subr.mxu0 %v3459_v46 }
 0x805   :  { %9532 = vpow2.f32 %v7276_v38  ;;  %8524 = vmatpush3.msra.mxu0 %v3459_v46  ;;  %v3455_v46 = vld [vmem:[#allocation13 + $0x280] sm:$0xff] }
 0x806   :  { %8525 = vmatprep.subr.mxu0 %v3458_v34 }
 0x807   :  { %8547 = vmatpush3.bf16.msra.mxu1 %v9365_v5  ;;  %8526 = vmatpush3.msra.mxu0 %v3458_v34 }
 0x808   :  { %8548 = vmatprep.subr.bf16.mxu1 %v11422_v29 }
 0x80b   :  { %8549 = vmatpush3.bf16.msra.mxu1 %v9366_v13 }
 0x80c   :  { %8550 = vmatprep.subr.bf16.mxu1 %v11422_v29 }
 0x80e   :  { %v9531_v59 = vpop.eup %9530 }
 0x80f   :  { %v2651_v18 = vadd.f32 1.0, %v9531_v59  ;;  %8551 = vmatpush3.bf16.msra.mxu1 %v9367_v0 }
 0x811   :  { %9534 = vrcp.f32 %v2651_v18  ;;  %v3457_v18 = vld [vmem:[#allocation13 + $0x290] sm:$0xff] }
 0x812   :  { %v9533_v21 = vpop.eup %9532  ;;  %8553 = vmatmul.mubr.bf16.vlgmr.msra.gmra.mxu1 %v10814_v48  ;;  %8527 = vmatprep.subr.mxu0 %v3457_v18 }
 0x813   :  { %v2650_v15 = vadd.f32 1.0, %v9533_v21  ;;  %8528 = vmatpush3.msra.mxu0 %v3457_v18  ;;  %v3456_v21 = vld [vmem:[#allocation13 + $0x288] sm:$0xff] }
 0x814   :  { %8529 = vmatprep.subr.mxu0 %v3456_v21 }
 0x815   :  { %9536 = vrcp.f32 %v2650_v15  ;;  %8530 = vmatpush3.msra.mxu0 %v3456_v21  ;;  %v7300_v15 = vld [vmem:[#allocation14 + $0x4] ss:$0 sm:$0xff] }
 0x816   :  { %8531 = vmatprep.subr.mxu0 %v3455_v46 }
 0x817   :  { %8532 = vmatpush3.msra.mxu0 %v3455_v46 }
 0x818   :  { %8556 = vmatprep.subr.bf16.mxu0 %v11422_v29 }
 0x81e   :  { %v9535_v10 = vpop.eup %9534 }
 0x81f   :  { %v2657_v42 = vmul.f32 %v9535_v10, %v11377_v33  ;;  %v9376_v33 = vld [vmem:[#allocation3 + $0x1f8] sm:$0xff]  }
 0x821   :  { %v2661_v35 = vsel %vm861_vm12, %v2657_v42, 0.0 }
 0x822   :  { %v9537_v38 = vpop.eup %9536 }
 0x823   :  { %v2656_v5 = vmul.f32 %v9537_v38, %v11376_v44  ;;  %v7301_v38 = vld [vmem:[#allocation16 + $0x4] ss:$0 sm:$0xff] }
 0x825   :  { %v2660_v27 = vsel %vm861_vm12, %v2656_v5, 0.0 }
 0x826   :  { %v2662_v13 = vadd.f32 %v2661_v35, %v2660_v27 }
 0x828   :  { %v2663_v2 = vrot.slane %v2662_v13, 4 }
 0x82a   :  { %v2664_v23 = vadd.f32 %v2663_v2, %v2662_v13 }
 0x82c   :  { %v2665_v0 = vrot.slane %v2664_v23, 2 }
 0x82e   :  { %v2666_v25 = vadd.f32 %v2665_v0, %v2664_v23  ;;  %v7314_v0 = vld [vmem:[#allocation8 + $0x5] ss:$0 sm:$0xff] }
 0x830   :  { %v2667_v59 = vrot.slane %v2666_v25, 1 }
 0x832   :  { %v2668_v9 = vadd.f32 %v2667_v59, %v2666_v25  ;;  %v7323_v59 = vld [vmem:[#allocation10 + $0x5] ss:$0 sm:$0xff] }
 0x834   :  { %v10876_v63 = vadd.f32 %v2668_v9, %v10832_v54 }
 0x872   :  { %v8460_v34 = vpop.f32.mrf.mxu1 }
 0x873   :  { %v3082_v10 = vadd.f32 %v8460_v34, %v7300_v15 }
 0x874   :  { %v3076_v42 = vpop.f32.mrf.mxu1 }
 0x875   :  { %v3086_v5 = vmax.f32 %v3082_v10, 0.0  ;;  %v3077_v35 = vadd.f32 %v7300_v15, %v3076_v42  ;;  %v9368_v15 = vld [vmem:[#allocation7 + $0x1b8] sm:$0xff]  }
 0x877   :  { %v3085_v27 = vmax.f32 %v3077_v35, 0.0  ;;  %v3096_v13 = vmul.f32 %v7301_v38, %v3086_v5  ;;  %v9369_v35 = vld [vmem:[#allocation7 + $0x1b0] sm:$0xff]  }
 0x879   :  { %v3100_v54 = vsel %vm981_vm2, %v3096_v13, 0.0  ;;  %v3095_v2 = vmul.f32 %v7301_v38, %v3085_v27  ;;  %v9372_v27 = vld [vmem:[#allocation7 + $0x198] sm:$0xff]   ;;  %v9373_v13 = vld [vmem:[#allocation7 + $0x190] sm:$0xff]  }
 0x87a   :  { %3101 = vadd.xlane.f32.xlu1 %v3100_v54  ;;  %v9374_v54 = vld [vmem:[#allocation7 + $0x188] sm:$0xff]  }
 0x87b   :  { %v3097_v23 = vsel %vm981_vm2, %v3095_v2, 0.0  ;;  %v7332_v2 = vld [vmem:[#allocation5 + $0x6] ss:$0 sm:$0xff] }
 0x87e   :  { %3098 = vadd.xlane.f32.xlu1 %v3097_v23 }
 0x8b2   :  { %v3379_v25 = vpop.f32.mrf.mxu1 }
 0x8b3   :  { %v3380_v9 = vadd.f32 %v7314_v0, %v3379_v25 }
 0x8b4   :  { %v8499_v18 = vpop.f32.mrf.mxu1 }
 0x8b5   :  { %v3394_v21 = vmul.f32 %v10787_v3, %v3380_v9  ;;  %8533 = vmatprep.mubr.f32.mxu0 %v3380_v9  ;;  %v3406_v46 = vmul.f32 %v7323_v59, %v3380_v9  ;;  %v9370_v3 = vld [vmem:[#allocation7 + $0x1a8] sm:$0xff]  }
 0x8b6   :  { %v3382_v34 = vpop.f32.mrf.mxu1 }
 0x8b7   :  { %v10883_v10 = vadd.f32 %v3394_v21, %v10839_v56  ;;  %v10885_v42 = vadd.f32 %v7314_v0, %v3382_v34  ;;  %3408 = vadd.xlane.f32.xlu0 %v3406_v46  ;;  %v9371_v56 = vld [vmem:[#allocation7 + $0x1a0] sm:$0xff]  }
 0x8b8   :  { %v8500_v38 = vpop.f32.mrf.mxu1  ;;  %v9375_v0 = vld [vmem:[#allocation7 + $0x180] sm:$0xff]  }
 0x8b9   :  { %8534 = vmatmul.mubr.f32.vlgmr.msra.gmra.mxu0 %v10885_v42  ;;  %v3407_v5 = vmul.f32 %v7323_v59, %v10885_v42 }
 0x8ba   :  { %8557 = vmatpush3.bf16.msra.mxu0 %v9368_v15  ;;  %8572 = vmatprep.mubr.msk.bf16.mxu0 %vm10154_vm0, %v11422_v29 }
 0x8bb   :  { %3410 = vadd.xlane.f32.xlu1 %v3407_v5  ;;  %8558 = vmatprep.subr.bf16.mxu0 %v11422_v29 }
 0x8be   :  { %8559 = vmatpush3.bf16.msra.mxu0 %v9369_v35 }
 0x8bf   :  { %8560 = vmatprep.subr.bf16.mxu0 %v11422_v29 }
 0x8c2   :  { %8561 = vmatpush3.bf16.msra.mxu0 %v9370_v3 }
 0x8c3   :  { %8562 = vmatprep.subr.bf16.mxu0 %v11422_v29 }
 0x8c6   :  { %8563 = vmatpush3.bf16.msra.mxu0 %v9371_v56 }
 0x8c7   :  { %8564 = vmatprep.subr.bf16.mxu0 %v11422_v29 }
 0x8ca   :  { %8565 = vmatpush3.bf16.msra.mxu0 %v9372_v27 }
 0x8cb   :  { %8566 = vmatprep.subr.bf16.mxu0 %v11422_v29 }
 0x8ce   :  { %8567 = vmatpush3.bf16.msra.mxu0 %v9373_v13 }
 0x8cf   :  { %8568 = vmatprep.subr.bf16.mxu0 %v11422_v29 }
 0x8d2   :  { %v3715_v23 = vpop.f32.mrf.mxu1  ;;  %8569 = vmatpush3.bf16.msra.mxu0 %v9374_v54 }
 0x8d3   :  { %v3716_v25 = vadd.f32 %v7332_v2, %v3715_v23  ;;  %8570 = vmatprep.subr.bf16.mxu0 %v11422_v29 }
 0x8d4   :  { %v8554_v59 = vpop.f32.mrf.mxu1 }
 0x8d5   :  { %v3722_v9 = vmul.f32 %v3716_v25, %v3716_v25 }
 0x8d6   :  { %v3718_v18 = vpop.f32.mrf.mxu1  ;;  %8571 = vmatpush3.bf16.msra.mxu0 %v9375_v0 }
 0x8d7   :  { %v3724_v21 = vmul.f32 %v3722_v9, %v3716_v25  ;;  %v3719_v46 = vadd.f32 %v7332_v2, %v3718_v18  ;;  %8611 = vmatprep.subr.bf16.mxu0 %v11422_v29 }
 0x8d8   :  { %v8555_v34 = vpop.f32.mrf.mxu1 }
 0x8d9   :  { %v3726_v15 = vmul.f32 0.044715, %v3724_v21  ;;  %v3723_v38 = vmul.f32 %v3719_v46, %v3719_v46  ;;  %v9377_v21 = vld [vmem:[#allocation3 + $0x1f0] sm:$0xff]  }
 0x8db   :  { %v3728_v5 = vadd.f32 %v3726_v15, %v3716_v25  ;;  %v3725_v35 = vmul.f32 %v3723_v38, %v3719_v46  ;;  %v9378_v15 = vld [vmem:[#allocation3 + $0x1e8] sm:$0xff]   ;;  %v10902_v38 = vpop.xlane.xlu1 %2941 }
 0x8dd   :  { %v3730_v3 = vmul.f32 0.7978846, %v3728_v5  ;;  %v3727_v56 = vmul.f32 0.044715, %v3725_v35  ;;  %v7302_v5 = vld [vmem:[#allocation17 + $0x4] ss:$0 sm:$0xff] }
 0x8de   :  { %v3938_v35 = vld [vmem:[#allocation13 + $0x370] sm:$0xff] }
 0x8df   :  { %9538 = vtanh.f32 %v3730_v3  ;;  %v3729_v27 = vadd.f32 %v3727_v56, %v3719_v46  ;;  %v9380_v56 = vld [vmem:[#allocation3 + $0x1d8] sm:$0xff]  }
 0x8e1   :  { %v3731_v13 = vmul.f32 0.7978846, %v3729_v27 }
 0x8e3   :  { %9540 = vtanh.f32 %v3731_v13  ;;  %v3937_v13 = vld [vmem:[#allocation13 + $0x368] sm:$0xff] }
 0x8ec   :  { %v9539_v54 = vpop.eup %9538 }
 0x8ed   :  { %v3734_v23 = vadd.f32 1.0, %v9539_v54 }
 0x8ef   :  { %v3736_v44 = vmul.f32 0.5, %v3734_v23  ;;  %v3936_v23 = vld [vmem:[#allocation13 + $0x360] sm:$0xff] }
 0x8f0   :  { %v9541_v59 = vpop.eup %9540 }
 0x8f1   :  { %v3735_v0 = vadd.f32 1.0, %v9541_v59  ;;  %v3738_v2 = vmul.f32 %v3736_v44, %v3716_v25  ;;  %v9379_v44 = vld [vmem:[#allocation3 + $0x1e0] sm:$0xff]  }
 0x8f3   :  { %v3737_v9 = vmul.f32 0.5, %v3735_v0  ;;  %v9381_v0 = vld [vmem:[#allocation3 + $0x1d0] sm:$0xff]  }
 0x8f5   :  { %v3739_v18 = vmul.f32 %v3737_v9, %v3719_v46  ;;  %v3935_v9 = vld [vmem:[#allocation13 + $0x358] sm:$0xff] }
 0x8f7   :  { %v3740_v34 = vpack.c.bf16 %v3739_v18, %v3738_v2  ;;  %v3934_v2 = vld [vmem:[#allocation13 + $0x350] sm:$0xff]  ;;  %v9382_v18 = vld [vmem:[#allocation3 + $0x1c8] sm:$0xff]  }
 0x8f9   :  { %8573 = vmatmul.mubr.bf16.vlgmr.msra.gmra.mxu0 %v3740_v34  ;;  %v3933_v34 = vld [vmem:[#allocation13 + $0x348] sm:$0xff] }
 0x8fa   :  { %8612 = vmatpush3.bf16.msra.mxu0 %v9376_v33  ;;  %8627 = vmatprep.mubr.msk.bf16.mxu0 %vm10154_vm0, %v11422_v29  ;;  %v3939_v33 = vld [vmem:[#allocation13 + $0x378] sm:$0xff] }
 0x8fb   :  { %8613 = vmatprep.subr.bf16.mxu0 %v11422_v29  ;;  %8576 = vmatprep.subr.mxu1 %v3939_v33 }
 0x8fc   :  { %8577 = vmatpush3.msra.mxu1 %v3939_v33  ;;  %v3929_v33 = vld [vmem:[#allocation13 + $0x328] sm:$0xff] }
 0x8fd   :  { %8578 = vmatprep.subr.mxu1 %v3938_v35 }
 0x8fe   :  { %8614 = vmatpush3.bf16.msra.mxu0 %v9377_v21  ;;  %8579 = vmatpush3.msra.mxu1 %v3938_v35  ;;  %v3932_v21 = vld [vmem:[#allocation13 + $0x340] sm:$0xff] }
 0x8ff   :  { %8615 = vmatprep.subr.bf16.mxu0 %v11422_v29  ;;  %8580 = vmatprep.subr.mxu1 %v3937_v13 }
 0x900   :  { %8581 = vmatpush3.msra.mxu1 %v3937_v13 }
 0x901   :  { %8582 = vmatprep.subr.mxu1 %v3936_v23 }
 0x902   :  { %8616 = vmatpush3.bf16.msra.mxu0 %v9378_v15  ;;  %8583 = vmatpush3.msra.mxu1 %v3936_v23  ;;  %v9383_v15 = vld [vmem:[#allocation3 + $0x1c0] sm:$0xff]   ;;  %v11378_v23 = vunpack.i.l.bf16 %v10695_v45 }
 0x903   :  { %8617 = vmatprep.subr.bf16.mxu0 %v11422_v29  ;;  %v3102_v25 = vpop.xlane.xlu1 %3101  ;;  %8584 = vmatprep.subr.mxu1 %v3935_v9 }
 0x904   :  { %v3112_v46 = vadd.f32 %v7302_v5, %v3102_v25  ;;  %8585 = vmatpush3.msra.mxu1 %v3935_v9  ;;  %v3930_v25 = vld [vmem:[#allocation13 + $0x330] sm:$0xff] }
 0x905   :  { %8586 = vmatprep.subr.mxu1 %v3934_v2 }
 0x906   :  { %8618 = vmatpush3.bf16.msra.mxu0 %v9379_v44  ;;  %v7304_v3 = vmul.f32 -1.442695, %v3112_v46  ;;  %8587 = vmatpush3.msra.mxu1 %v3934_v2 }
 0x907   :  { %8619 = vmatprep.subr.bf16.mxu0 %v11422_v29  ;;  %v3099_v27 = vpop.xlane.xlu1 %3098  ;;  %8588 = vmatprep.subr.mxu1 %v3933_v34 }
 0x908   :  { %9542 = vpow2.f32 %v7304_v3  ;;  %v3111_v54 = vadd.f32 %v7302_v5, %v3099_v27  ;;  %8589 = vmatpush3.msra.mxu1 %v3933_v34  ;;  %v3931_v5 = vld [vmem:[#allocation13 + $0x338] sm:$0xff]  ;;  %v3928_v3 = vld [vmem:[#allocation13 + $0x320] sm:$0xff] }
 0x909   :  { %8590 = vmatprep.subr.mxu1 %v3932_v21  ;;  %v3927_v27 = vld [vmem:[#allocation13 + $0x318] sm:$0xff] }
 0x90a   :  { %8620 = vmatpush3.bf16.msra.mxu0 %v9380_v56  ;;  %v7303_v59 = vmul.f32 -1.442695, %v3111_v54  ;;  %8591 = vmatpush3.msra.mxu1 %v3932_v21  ;;  %v11379_v54 = vunpack.i.h.bf16 %v10695_v45 }
 0x90b   :  { %8621 = vmatprep.subr.bf16.mxu0 %v11422_v29  ;;  %8592 = vmatprep.subr.mxu1 %v3931_v5 }
 0x90c   :  { %9544 = vpow2.f32 %v7303_v59  ;;  %8593 = vmatpush3.msra.mxu1 %v3931_v5 }
 0x90d   :  { %8594 = vmatprep.subr.mxu1 %v3930_v25 }
 0x90e   :  { %8622 = vmatpush3.bf16.msra.mxu0 %v9381_v0  ;;  %8595 = vmatpush3.msra.mxu1 %v3930_v25 }
 0x90f   :  { %8623 = vmatprep.subr.bf16.mxu0 %v11422_v29  ;;  %8596 = vmatprep.subr.mxu1 %v3929_v33 }
 0x910   :  { %8597 = vmatpush3.msra.mxu1 %v3929_v33 }
 0x911   :  { %8598 = vmatprep.subr.mxu1 %v3928_v3 }
 0x912   :  { %8624 = vmatpush3.bf16.msra.mxu0 %v9382_v18  ;;  %8599 = vmatpush3.msra.mxu1 %v3928_v3  ;;  %v3924_v3 = vld [vmem:[#allocation13 + $0x300] sm:$0xff] }
 0x913   :  { %8625 = vmatprep.subr.bf16.mxu0 %v11422_v29  ;;  %8600 = vmatprep.subr.mxu1 %v3927_v27 }
 0x914   :  { %8601 = vmatpush3.msra.mxu1 %v3927_v27 }
 0x915   :  { %v9543_v44 = vpop.eup %9542 }
 0x916   :  { %v3120_v46 = vadd.f32 1.0, %v9543_v44  ;;  %8626 = vmatpush3.bf16.msra.mxu0 %v9383_v15 }
 0x918   :  { %9546 = vrcp.f32 %v3120_v46  ;;  %v3926_v46 = vld [vmem:[#allocation13 + $0x310] sm:$0xff] }
 0x919   :  { %v9545_v35 = vpop.eup %9544  ;;  %8628 = vmatmul.mubr.bf16.vlgmr.msra.gmra.mxu0 %v10814_v48  ;;  %8602 = vmatprep.subr.mxu1 %v3926_v46 }
 0x91a   :  { %v3119_v56 = vadd.f32 1.0, %v9545_v35  ;;  %8603 = vmatpush3.msra.mxu1 %v3926_v46  ;;  %v3925_v35 = vld [vmem:[#allocation13 + $0x308] sm:$0xff] }
 0x91b   :  { %8604 = vmatprep.subr.mxu1 %v3925_v35 }
 0x91c   :  { %9548 = vrcp.f32 %v3119_v56  ;;  %8605 = vmatpush3.msra.mxu1 %v3925_v35  ;;  %v7327_v56 = vld [vmem:[#allocation14 + $0x5] ss:$0 sm:$0xff] }
 0x91d   :  { %8606 = vmatprep.subr.mxu1 %v3924_v3 }
 0x91e   :  { %8607 = vmatpush3.msra.mxu1 %v3924_v3 }
 0x91f   :  { %8631 = vmatprep.subr.bf16.mxu1 %v11422_v29 }
 0x925   :  { %v9547_v13 = vpop.eup %9546 }
 0x926   :  { %v3126_v59 = vmul.f32 %v9547_v13, %v11379_v54 }
 0x928   :  { %v3130_v9 = vsel %vm861_vm12, %v3126_v59, 0.0 }
 0x929   :  { %v9549_v48 = vpop.eup %9548 }
 0x92a   :  { %v3125_v0 = vmul.f32 %v9549_v48, %v11378_v23  ;;  %v7328_v48 = vld [vmem:[#allocation16 + $0x5] ss:$0 sm:$0xff] }
 0x92c   :  { %v3129_v2 = vsel %vm861_vm12, %v3125_v0, 0.0 }
 0x92d   :  { %v3131_v18 = vadd.f32 %v3130_v9, %v3129_v2 }
 0x92f   :  { %v3132_v34 = vrot.slane %v3131_v18, 4 }
 0x931   :  { %v3133_v21 = vadd.f32 %v3132_v34, %v3131_v18 }
 0x933   :  { %v3134_v15 = vrot.slane %v3133_v21, 2 }
 0x935   :  { %v3135_v5 = vadd.f32 %v3134_v15, %v3133_v21  ;;  %v7341_v15 = vld [vmem:[#allocation8 + $0x6] ss:$0 sm:$0xff] }
 0x937   :  { %v3136_v44 = vrot.slane %v3135_v5, 1 }
 0x939   :  { %v3137_v25 = vadd.f32 %v3136_v44, %v3135_v5  ;;  %v7350_v44 = vld [vmem:[#allocation10 + $0x6] ss:$0 sm:$0xff] }
 0x93b   :  { %v10920_v33 = vadd.f32 %v3137_v25, %v10876_v63 }
 0x979   :  { %v8535_v27 = vpop.f32.mrf.mxu0 }
 0x97a   :  { %v3551_v13 = vadd.f32 %v8535_v27, %v7327_v56 }
 0x97b   :  { %v3545_v59 = vpop.f32.mrf.mxu0 }
 0x97c   :  { %v3555_v0 = vmax.f32 %v3551_v13, 0.0  ;;  %v3546_v9 = vadd.f32 %v7327_v56, %v3545_v59  ;;  %v9384_v56 = vld [vmem:[#allocation7 + $0x1f8] sm:$0xff]  }
 0x97e   :  { %v3554_v2 = vmax.f32 %v3546_v9, 0.0  ;;  %v3565_v18 = vmul.f32 %v7328_v48, %v3555_v0  ;;  %v9385_v9 = vld [vmem:[#allocation7 + $0x1f0] sm:$0xff]  }
 0x980   :  { %v3569_v63 = vsel %vm981_vm2, %v3565_v18, 0.0  ;;  %v3564_v34 = vmul.f32 %v7328_v48, %v3554_v2  ;;  %v9388_v2 = vld [vmem:[#allocation7 + $0x1d8] sm:$0xff]   ;;  %v9389_v18 = vld [vmem:[#allocation7 + $0x1d0] sm:$0xff]  }
 0x981   :  { %3570 = vadd.xlane.f32.xlu1 %v3569_v63  ;;  %v9390_v63 = vld [vmem:[#allocation7 + $0x1c8] sm:$0xff]  }
 0x982   :  { %v3566_v21 = vsel %vm981_vm2, %v3564_v34, 0.0  ;;  %v7359_v34 = vld [vmem:[#allocation5 + $0x7] ss:$0 sm:$0xff] }
 0x985   :  { %3567 = vadd.xlane.f32.xlu1 %v3566_v21 }
 0x9b9   :  { %v3848_v5 = vpop.f32.mrf.mxu0 }
 0x9ba   :  { %v3849_v25 = vadd.f32 %v7341_v15, %v3848_v5 }
 0x9bb   :  { %v8574_v46 = vpop.f32.mrf.mxu0 }
 0x9bc   :  { %v3863_v35 = vmul.f32 %v10789_v36, %v3849_v25  ;;  %8608 = vmatprep.mubr.f32.mxu1 %v3849_v25  ;;  %v3875_v3 = vmul.f32 %v7350_v44, %v3849_v25  ;;  %v9386_v36 = vld [vmem:[#allocation7 + $0x1e8] sm:$0xff]  }
 0x9bd   :  { %v3851_v27 = vpop.f32.mrf.mxu0 }
 0x9be   :  { %v10927_v13 = vadd.f32 %v3863_v35, %v10883_v10  ;;  %v10929_v59 = vadd.f32 %v7341_v15, %v3851_v27  ;;  %3877 = vadd.xlane.f32.xlu0 %v3875_v3  ;;  %v9387_v10 = vld [vmem:[#allocation7 + $0x1e0] sm:$0xff]  }
 0x9bf   :  { %v8575_v48 = vpop.f32.mrf.mxu0  ;;  %v9391_v15 = vld [vmem:[#allocation7 + $0x1c0] sm:$0xff]  }
 0x9c0   :  { %11423 = vst [vmem:[#allocation58_spill] sm:$0xff] %v10929_v59  ;;  %8609 = vmatmul.mubr.f32.vlgmr.msra.gmra.mxu1 %v10929_v59  ;;  %v3876_v0 = vmul.f32 %v7350_v44, %v10929_v59 }
 0x9c1   :  { %8632 = vmatpush3.bf16.msra.mxu1 %v9384_v56  ;;  %8647 = vmatprep.mubr.msk.bf16.mxu1 %vm10154_vm0, %v11422_v29 }
 0x9c2   :  { %3879 = vadd.xlane.f32.xlu1 %v3876_v0  ;;  %8633 = vmatprep.subr.bf16.mxu1 %v11422_v29 }
 0x9c5   :  { %8634 = vmatpush3.bf16.msra.mxu1 %v9385_v9 }
 0x9c6   :  { %8635 = vmatprep.subr.bf16.mxu1 %v11422_v29 }
 0x9c9   :  { %8636 = vmatpush3.bf16.msra.mxu1 %v9386_v36 }
 0x9ca   :  { %8637 = vmatprep.subr.bf16.mxu1 %v11422_v29 }
 0x9cd   :  { %8638 = vmatpush3.bf16.msra.mxu1 %v9387_v10 }
 0x9ce   :  { %8639 = vmatprep.subr.bf16.mxu1 %v11422_v29 }
 0x9d1   :  { %8640 = vmatpush3.bf16.msra.mxu1 %v9388_v2 }
 0x9d2   :  { %8641 = vmatprep.subr.bf16.mxu1 %v11422_v29 }
 0x9d5   :  { %8642 = vmatpush3.bf16.msra.mxu1 %v9389_v18 }
 0x9d6   :  { %8643 = vmatprep.subr.bf16.mxu1 %v11422_v29 }
 0x9d9   :  { %v4184_v21 = vpop.f32.mrf.mxu0  ;;  %8644 = vmatpush3.bf16.msra.mxu1 %v9390_v63 }
 0x9da   :  { %v4185_v5 = vadd.f32 %v7359_v34, %v4184_v21  ;;  %8645 = vmatprep.subr.bf16.mxu1 %v11422_v29 }
 0x9db   :  { %v8629_v44 = vpop.f32.mrf.mxu0 }
 0x9dc   :  { %v4191_v25 = vmul.f32 %v4185_v5, %v4185_v5 }
 0x9dd   :  { %v4187_v46 = vpop.f32.mrf.mxu0  ;;  %8646 = vmatpush3.bf16.msra.mxu1 %v9391_v15 }
 0x9de   :  { %v4193_v35 = vmul.f32 %v4191_v25, %v4185_v5  ;;  %v4188_v3 = vadd.f32 %v7359_v34, %v4187_v46  ;;  %v10942_v46 = vpop.xlane.xlu1 %3410 }
 0x9df   :  { %v8630_v27 = vpop.f32.mrf.mxu0 }
 0x9e0   :  { %v4195_v56 = vmul.f32 0.044715, %v4193_v35  ;;  %v4192_v48 = vmul.f32 %v4188_v3, %v4188_v3  ;;  %v7329_v35 = vld [vmem:[#allocation17 + $0x5] ss:$0 sm:$0xff] }
 0x9e2   :  { %v4197_v0 = vadd.f32 %v4195_v56, %v4185_v5  ;;  %v4194_v9 = vmul.f32 %v4192_v48, %v4188_v3  ;;  %v4408_v48 = vld [vmem:[#allocation13 + $0x3f8] sm:$0xff] }
 0x9e3   :  { %8651 = vmatprep.subr.mxu0 %v4408_v48 }
 0x9e4   :  { %v4199_v36 = vmul.f32 0.7978846, %v4197_v0  ;;  %v4196_v10 = vmul.f32 0.044715, %v4194_v9  ;;  %v4561_v0 = vld [vmem:[#allocation19 + $0x78] sm:$0xff]  ;;  %v4407_v9 = vld [vmem:[#allocation13 + $0x3f0] sm:$0xff]  ;;  %8652 = vmatpush3.msra.mxu0 %v4408_v48 }
 0x9e5   :  { %8686 = vmatprep.subr.mxu1 %v4561_v0  ;;  %8653 = vmatprep.subr.mxu0 %v4407_v9  ;;  %v4553_v48 = vld [vmem:[#allocation19 + $0x38] sm:$0xff] }
 0x9e6   :  { %9550 = vtanh.f32 %v4199_v36  ;;  %v4198_v2 = vadd.f32 %v4196_v10, %v4188_v3  ;;  %v4560_v10 = vld [vmem:[#allocation19 + $0x70] sm:$0xff]  ;;  %8654 = vmatpush3.msra.mxu0 %v4407_v9 }
 0x9e7   :  { %v4399_v9 = vld [vmem:[#allocation13 + $0x3b0] sm:$0xff] }
 0x9e8   :  { %v4200_v18 = vmul.f32 0.7978846, %v4198_v2 }
 0x9ea   :  { %9552 = vtanh.f32 %v4200_v18 }
 0x9f3   :  { %v9551_v63 = vpop.eup %9550 }
 0x9f4   :  { %v4203_v21 = vadd.f32 1.0, %v9551_v63  ;;  %v4404_v63 = vld [vmem:[#allocation13 + $0x3d8] sm:$0xff] }
 0x9f6   :  { %v4205_v44 = vmul.f32 0.5, %v4203_v21  ;;  %v4557_v21 = vld [vmem:[#allocation19 + $0x58] sm:$0xff] }
 0x9f7   :  { %v9553_v23 = vpop.eup %9552 }
 0x9f8   :  { %v4204_v54 = vadd.f32 1.0, %v9553_v23  ;;  %v4207_v15 = vmul.f32 %v4205_v44, %v4185_v5  ;;  %v4559_v23 = vld [vmem:[#allocation19 + $0x68] sm:$0xff]  ;;  %v4405_v5 = vld [vmem:[#allocation13 + $0x3e0] sm:$0xff] }
 0x9f9   :  { %v4403_v44 = vld [vmem:[#allocation13 + $0x3d0] sm:$0xff] }
 0x9fa   :  { %v4206_v37 = vmul.f32 0.5, %v4204_v54  ;;  %v4406_v54 = vld [vmem:[#allocation13 + $0x3e8] sm:$0xff] }
 0x9fb   :  { %8655 = vmatprep.subr.mxu0 %v4406_v54 }
 0x9fc   :  { %v4208_v25 = vmul.f32 %v4206_v37, %v4188_v3  ;;  %v4558_v3 = vld [vmem:[#allocation19 + $0x60] sm:$0xff]  ;;  %8656 = vmatpush3.msra.mxu0 %v4406_v54  ;;  %v4551_v54 = vld [vmem:[#allocation19 + $0x28] sm:$0xff] }
 0x9fd   :  { %8657 = vmatprep.subr.mxu0 %v4405_v5 }
 0x9fe   :  { %v4209_v34 = vpack.c.bf16 %v4208_v25, %v4207_v15  ;;  %8658 = vmatpush3.msra.mxu0 %v4405_v5  ;;  %v4556_v15 = vld [vmem:[#allocation19 + $0x50] sm:$0xff]  ;;  %v4402_v25 = vld [vmem:[#allocation13 + $0x3c8] sm:$0xff] }
 0x9ff   :  { %8659 = vmatprep.subr.mxu0 %v4404_v63  ;;  %v4550_v5 = vld [vmem:[#allocation19 + $0x20] sm:$0xff] }
 0xa00   :  { %8648 = vmatmul.mubr.bf16.vlgmr.msra.gmra.mxu1 %v4209_v34  ;;  %8660 = vmatpush3.msra.mxu0 %v4404_v63  ;;  %v4555_v34 = vld [vmem:[#allocation19 + $0x48] sm:$0xff]  ;;  %v4549_v63 = vld [vmem:[#allocation19 + $0x18] sm:$0xff] }
 0xa01   :  { %8687 = vmatpush3.msra.mxu1 %v4561_v0  ;;  %8661 = vmatprep.subr.mxu0 %v4403_v44 }
 0xa02   :  { %8688 = vmatprep.subr.mxu1 %v4560_v10  ;;  %8662 = vmatpush3.msra.mxu0 %v4403_v44  ;;  %v11384_v44 = vunpack.i.h.bf16 %v10701_v60 }
 0xa03   :  { %8689 = vmatpush3.msra.mxu1 %v4560_v10  ;;  %8663 = vmatprep.subr.mxu0 %v4402_v25 }
 0xa04   :  { %8690 = vmatprep.subr.mxu1 %v4559_v23  ;;  %8664 = vmatpush3.msra.mxu0 %v4402_v25 }
 0xa05   :  { %8691 = vmatpush3.msra.mxu1 %v4559_v23 }
 0xa06   :  { %8692 = vmatprep.subr.mxu1 %v4558_v3 }
 0xa07   :  { %8693 = vmatpush3.msra.mxu1 %v4558_v3 }
 0xa08   :  { %8694 = vmatprep.subr.mxu1 %v4557_v21 }
 0xa09   :  { %8695 = vmatpush3.msra.mxu1 %v4557_v21 }
 0xa0a   :  { %v3571_v27 = vpop.xlane.xlu1 %3570  ;;  %8696 = vmatprep.subr.mxu1 %v4556_v15 }
 0xa0b   :  { %v3581_v56 = vadd.f32 %v7329_v35, %v3571_v27  ;;  %8697 = vmatpush3.msra.mxu1 %v4556_v15  ;;  %v4554_v27 = vld [vmem:[#allocation19 + $0x40] sm:$0xff]  ;;  %v11382_v15 = vunpack.i.l.bf16 %v10701_v60 }
 0xa0c   :  { %8698 = vmatprep.subr.mxu1 %v4555_v34 }
 0xa0d   :  { %v7331_v36 = vmul.f32 -1.442695, %v3581_v56  ;;  %8699 = vmatpush3.msra.mxu1 %v4555_v34  ;;  %v4400_v56 = vld [vmem:[#allocation13 + $0x3b8] sm:$0xff] }
 0xa0e   :  { %v3568_v2 = vpop.xlane.xlu1 %3567  ;;  %8700 = vmatprep.subr.mxu1 %v4554_v27 }
 0xa0f   :  { %9554 = vpow2.f32 %v7331_v36  ;;  %v3580_v37 = vadd.f32 %v7329_v35, %v3568_v2  ;;  %v4401_v35 = vld [vmem:[#allocation13 + $0x3c0] sm:$0xff]  ;;  %8701 = vmatpush3.msra.mxu1 %v4554_v27  ;;  %v4552_v36 = vld [vmem:[#allocation19 + $0x30] sm:$0xff]  ;;  %v4398_v2 = vld [vmem:[#allocation13 + $0x3a8] sm:$0xff] }
 0xa10   :  { %8665 = vmatprep.subr.mxu0 %v4401_v35  ;;  %8702 = vmatprep.subr.mxu1 %v4553_v48 }
 0xa11   :  { %v7330_v18 = vmul.f32 -1.442695, %v3580_v37  ;;  %8666 = vmatpush3.msra.mxu0 %v4401_v35  ;;  %8703 = vmatpush3.msra.mxu1 %v4553_v48  ;;  %v4397_v37 = vld [vmem:[#allocation13 + $0x3a0] sm:$0xff] }
 0xa12   :  { %8667 = vmatprep.subr.mxu0 %v4400_v56  ;;  %8704 = vmatprep.subr.mxu1 %v4552_v36 }
 0xa13   :  { %9556 = vpow2.f32 %v7330_v18  ;;  %8668 = vmatpush3.msra.mxu0 %v4400_v56  ;;  %8705 = vmatpush3.msra.mxu1 %v4552_v36  ;;  %v4396_v18 = vld [vmem:[#allocation13 + $0x398] sm:$0xff] }
 0xa14   :  { %8669 = vmatprep.subr.mxu0 %v4399_v9  ;;  %8706 = vmatprep.subr.mxu1 %v4551_v54 }
 0xa15   :  { %8670 = vmatpush3.msra.mxu0 %v4399_v9  ;;  %8707 = vmatpush3.msra.mxu1 %v4551_v54  ;;  %v4395_v54 = vld [vmem:[#allocation13 + $0x390] sm:$0xff] }
 0xa16   :  { %8671 = vmatprep.subr.mxu0 %v4398_v2  ;;  %8708 = vmatprep.subr.mxu1 %v4550_v5 }
 0xa17   :  { %8672 = vmatpush3.msra.mxu0 %v4398_v2  ;;  %8709 = vmatpush3.msra.mxu1 %v4550_v5  ;;  %v4394_v5 = vld [vmem:[#allocation13 + $0x388] sm:$0xff] }
 0xa18   :  { %8673 = vmatprep.subr.mxu0 %v4397_v37  ;;  %8710 = vmatprep.subr.mxu1 %v4549_v63 }
 0xa19   :  { %8674 = vmatpush3.msra.mxu0 %v4397_v37  ;;  %8711 = vmatpush3.msra.mxu1 %v4549_v63  ;;  %v4393_v63 = vld [vmem:[#allocation13 + $0x380] sm:$0xff] }
 0xa1a   :  { %8675 = vmatprep.subr.mxu0 %v4396_v18 }
 0xa1b   :  { %8676 = vmatpush3.msra.mxu0 %v4396_v18 }
 0xa1c   :  { %v9555_v0 = vpop.eup %9554  ;;  %8677 = vmatprep.subr.mxu0 %v4395_v54 }
 0xa1d   :  { %v3589_v10 = vadd.f32 1.0, %v9555_v0  ;;  %8678 = vmatpush3.msra.mxu0 %v4395_v54  ;;  %v7368_v54 = vld [vmem:[#allocation8 + $0x7] ss:$0 sm:$0xff] }
 0xa1e   :  { %8679 = vmatprep.subr.mxu0 %v4394_v5 }
 0xa1f   :  { %9558 = vrcp.f32 %v3589_v10  ;;  %8680 = vmatpush3.msra.mxu0 %v4394_v5 }
 0xa20   :  { %v9557_v23 = vpop.eup %9556  ;;  %8681 = vmatprep.subr.mxu0 %v4393_v63 }
 0xa21   :  { %v3588_v3 = vadd.f32 1.0, %v9557_v23  ;;  %v4548_v23 = vld [vmem:[#allocation19 + $0x10] sm:$0xff]  ;;  %8682 = vmatpush3.msra.mxu0 %v4393_v63 }
 0xa22   :  { %8712 = vmatprep.subr.mxu1 %v4548_v23 }
 0xa23   :  { %9560 = vrcp.f32 %v3588_v3  ;;  %8713 = vmatpush3.msra.mxu1 %v4548_v23  ;;  %v4547_v3 = vld [vmem:[#allocation19 + $0x8] sm:$0xff] }
 0xa24   :  { %8714 = vmatprep.subr.mxu1 %v4547_v3 }
 0xa25   :  { %8715 = vmatpush3.msra.mxu1 %v4547_v3 }
 0xa2c   :  { %v9559_v21 = vpop.eup %9558 }
 0xa2d   :  { %v3595_v25 = vmul.f32 %v9559_v21, %v11384_v44  ;;  %v4546_v21 = vld [vmem:[#allocation19] sm:$0xff]  ;;  %v7382_v44 = vld [vmem:[#allocation16 + $0x7] ss:$0 sm:$0xff] }
 0xa2e   :  { %8716 = vmatprep.subr.mxu1 %v4546_v21 }
 0xa2f   :  { %v3599_v27 = vsel %vm861_vm12, %v3595_v25, 0.0  ;;  %8717 = vmatpush3.msra.mxu1 %v4546_v21  ;;  %v7354_v25 = vld [vmem:[#allocation14 + $0x6] ss:$0 sm:$0xff] }
 0xa30   :  { %v9561_v34 = vpop.eup %9560  ;;  %8748 = vmatprep.subr.bf16.mxu1 %v11422_v29 }
 0xa31   :  { %v3594_v35 = vmul.f32 %v9561_v34, %v11382_v15 }
 0xa33   :  { %v3598_v56 = vsel %vm861_vm12, %v3594_v35, 0.0 }
 0xa34   :  { %v3600_v48 = vadd.f32 %v3599_v27, %v3598_v56  ;;  %v7355_v56 = vld [vmem:[#allocation16 + $0x6] ss:$0 sm:$0xff] }
 0xa36   :  { %v3601_v0 = vrot.slane %v3600_v48, 4 }
 0xa38   :  { %v3602_v9 = vadd.f32 %v3601_v0, %v3600_v48 }
 0xa3a   :  { %v3603_v36 = vrot.slane %v3602_v9, 2 }
 0xa3c   :  { %v3604_v10 = vadd.f32 %v3603_v36, %v3602_v9 }
 0xa3e   :  { %v3605_v2 = vrot.slane %v3604_v10, 1 }
 0xa40   :  { %v3606_v37 = vadd.f32 %v3605_v2, %v3604_v10 }
 0xa42   :  { %v10953_v18 = vadd.f32 %v3606_v37, %v10920_v33  ;;  %v7377_v37 = vld [vmem:[#allocation10 + $0x7] ss:$0 sm:$0xff] }
 0xa80   :  { %v8610_v34 = vpop.f32.mrf.mxu1 }
 0xa81   :  { %v4020_v35 = vadd.f32 %v8610_v34, %v7354_v25 }
 0xa82   :  { %v4014_v27 = vpop.f32.mrf.mxu1 }
 0xa83   :  { %v4024_v48 = vmax.f32 %v4020_v35, 0.0  ;;  %v4015_v33 = vadd.f32 %v7354_v25, %v4014_v27 }
 0xa85   :  { %v4023_v0 = vmax.f32 %v4015_v33, 0.0  ;;  %v4034_v9 = vmul.f32 %v7355_v56, %v4024_v48  ;;  %v4646_v48 = vld [vmem:[#allocation20] sm:$0xff]  ;;  %v10969_v33 = vpop.xlane.xlu1 %3879 }
 0xa87   :  { %v4038_v36 = vsel %vm981_vm2, %v4034_v9, 0.0  ;;  %v4033_v10 = vmul.f32 %v7355_v56, %v4023_v0 }
 0xa88   :  { %4039 = vadd.xlane.f32.xlu1 %v4038_v36 }
 0xa89   :  { %v4035_v2 = vsel %vm981_vm2, %v4033_v10, 0.0 }
 0xa8c   :  { %4036 = vadd.xlane.f32.xlu1 %v4035_v2 }
 0xac0   :  { %v4317_v23 = vpop.f32.mrf.mxu1 }
 0xac1   :  { %v4318_v5 = vadd.f32 %v7368_v54, %v4317_v23 }
 0xac2   :  { %v8649_v3 = vpop.f32.mrf.mxu1 }
 0xac3   :  { %v4332_v63 = vmul.f32 %v10791_v50, %v4318_v5  ;;  %8683 = vmatprep.mubr.f32.mxu0 %v4318_v5  ;;  %8718 = vmatprep.mubr.f32.mxu1 %v4318_v5  ;;  %v4344_v21 = vmul.f32 %v7377_v37, %v4318_v5  ;;  %v4647_v50 = vld [vmem:[#allocation20 + $0x8] sm:$0xff] }
 0xac4   :  { %v4320_v25 = vpop.f32.mrf.mxu1  ;;  %8721 = vmatprep.subr.mxu0 %v4647_v50 }
 0xac5   :  { %v10959_v34 = vadd.f32 %v7368_v54, %v4320_v25  ;;  %4346 = vadd.xlane.f32.xlu0 %v4344_v21  ;;  %v10962_v35 = vadd.f32 %v4332_v63, %v10927_v13  ;;  %v7356_v13 = vld [vmem:[#allocation17 + $0x6] ss:$0 sm:$0xff]  ;;  %v11381_v21 = vunpack.i.h.bf16 %v10703_v22  ;;  %v11383_v25 = vunpack.i.l.bf16 %v10703_v22 }
 0xac6   :  { %v8650_v27 = vpop.f32.mrf.mxu1 }
 0xac7   :  { %11424 = vst [vmem:[#allocation59_spill] sm:$0xff] %v10959_v34  ;;  %8684 = vmatmul.mubr.f32.vlgmr.msra.gmra.mxu0 %v10959_v34  ;;  %8719 = vmatmul.mubr.f32.vlgmr.msra.gmra.mxu1 %v10959_v34  ;;  %v4345_v56 = vmul.f32 %v7377_v37, %v10959_v34  ;;  %v7390_v34 = vld [vmem:[%s11427_s20] ss:$0 sm:$0xff] }
 0xac8   :  { %8764 = vmatprep.mubr.msk.bf16.mxu1 %vm10154_vm0, %v11422_v29  ;;  %8722 = vmatpush3.msra.mxu0 %v4647_v50 }
 0xac9   :  { %4348 = vadd.xlane.f32.xlu1 %v4345_v56  ;;  %8723 = vmatprep.subr.mxu0 %v4646_v48 }
 0xaca   :  { %8724 = vmatpush3.msra.mxu0 %v4646_v48 }
 0xacb   :  { %8728 = vmatprep.subr.bf16.mxu0 %v11422_v29 }
 0xb11   :  { %v4040_v0 = vpop.xlane.xlu1 %4039 }
 0xb12   :  { %v4050_v9 = vadd.f32 %v7356_v13, %v4040_v0 }
 0xb14   :  { %v7358_v36 = vmul.f32 -1.442695, %v4050_v9 }
 0xb15   :  { %v4037_v10 = vpop.xlane.xlu1 %4036 }
 0xb16   :  { %9562 = vpow2.f32 %v7358_v36  ;;  %v4049_v2 = vadd.f32 %v7356_v13, %v4037_v10 }
 0xb18   :  { %v7357_v54 = vmul.f32 -1.442695, %v4049_v2 }
 0xb1a   :  { %9564 = vpow2.f32 %v7357_v54 }
 0xb23   :  { %v9563_v23 = vpop.eup %9562 }
 0xb24   :  { %v4058_v37 = vadd.f32 1.0, %v9563_v23 }
 0xb26   :  { %9566 = vrcp.f32 %v4058_v37 }
 0xb27   :  { %v9565_v5 = vpop.eup %9564 }
 0xb28   :  { %v4057_v3 = vadd.f32 1.0, %v9565_v5  ;;  %v7381_v5 = vld [vmem:[#allocation14 + $0x7] ss:$0 sm:$0xff] }
 0xb2a   :  { %9568 = vrcp.f32 %v4057_v3  ;;  %v7386_v3 = vld [vmem:[%s11425_s15] ss:$0 sm:$0xff] }
 0xb33   :  { %v9567_v63 = vpop.eup %9566 }
 0xb34   :  { %v4064_v27 = vmul.f32 %v9567_v63, %v11381_v21 }
 0xb36   :  { %v4068_v48 = vsel %vm861_vm12, %v4064_v27, 0.0 }
 0xb37   :  { %v9569_v56 = vpop.eup %9568 }
 0xb38   :  { %v4063_v50 = vmul.f32 %v9569_v56, %v11383_v25 }
 0xb3a   :  { %v4067_v13 = vsel %vm861_vm12, %v4063_v50, 0.0 }
 0xb3b   :  { %v4069_v0 = vadd.f32 %v4068_v48, %v4067_v13 }
 0xb3d   :  { %v4070_v9 = vrot.slane %v4069_v0, 4 }
 0xb3f   :  { %v4071_v36 = vadd.f32 %v4070_v9, %v4069_v0 }
 0xb41   :  { %v4072_v10 = vrot.slane %v4071_v36, 2 }
 0xb43   :  { %v4073_v2 = vadd.f32 %v4072_v10, %v4071_v36  ;;  %v9392_v36 = vld [vmem:[#allocation3 + $0x238] sm:$0xff]  }
 0xb45   :  { %v4074_v54 = vrot.slane %v4073_v2, 1 }
 0xb47   :  { %v4075_v23 = vadd.f32 %v4074_v54, %v4073_v2 }
 0xb49   :  { %v10981_v37 = vadd.f32 %v4075_v23, %v10953_v18  ;;  %v9396_v23 = vld [vmem:[#allocation3 + $0x218] sm:$0xff]  }
 0xb87   :  { %v8685_v63 = vpop.f32.mrf.mxu0  ;;  %v8720_v21 = vpop.f32.mrf.mxu1 }
 0xb88   :  { %v4489_v15 = vadd.f32 %v8685_v63, %v7381_v5  ;;  %v4641_v56 = vadd.f32 %v8720_v21, %v7386_v3  ;;  %v9393_v21 = vld [vmem:[#allocation3 + $0x230] sm:$0xff]   ;;  %v9399_v63 = vld [vmem:[#allocation3 + $0x200] sm:$0xff]  }
 0xb89   :  { %v4483_v25 = vpop.f32.mrf.mxu0  ;;  %v4635_v27 = vpop.f32.mrf.mxu1 }
 0xb8a   :  { %v4493_v50 = vmax.f32 %v4489_v15, 0.0  ;;  %v4484_v48 = vadd.f32 %v7381_v5, %v4483_v25  ;;  %v4636_v13 = vadd.f32 %v7386_v3, %v4635_v27  ;;  %v4645_v2 = vmax.f32 %v4641_v56, 0.0  ;;  %v9394_v25 = vld [vmem:[#allocation3 + $0x228] sm:$0xff]   ;;  %v9397_v5 = vld [vmem:[#allocation3 + $0x210] sm:$0xff]   ;;  %v10998_v56 = vld [vmem:[%s11411_s19] sm:$0xff]  }
 0xb8b   :  { %v9398_v3 = vld [vmem:[#allocation3 + $0x208] sm:$0xff]  }
 0xb8c   :  { %v4492_v0 = vmax.f32 %v4484_v48, 0.0  ;;  %v4644_v9 = vmax.f32 %v4636_v13, 0.0  ;;  %v4503_v10 = vmul.f32 %v7382_v44, %v4493_v50  ;;  %v9400_v27 = vld [vmem:[#allocation7 + $0x238] sm:$0xff]   ;;  %v9401_v50 = vld [vmem:[#allocation7 + $0x230] sm:$0xff]   ;;  %v9402_v48 = vld [vmem:[#allocation7 + $0x228] sm:$0xff]  }
 0xb8d   :  { %8749 = vmatpush3.bf16.msra.mxu1 %v9400_v27  ;;  %v9403_v13 = vld [vmem:[#allocation7 + $0x220] sm:$0xff]  }
 0xb8e   :  { %8725 = vmatprep.mubr.msk.f32.mxu0 %vm1603_vm7, %v4644_v9  ;;  %v4507_v18 = vsel %vm981_vm2, %v4503_v10, 0.0  ;;  %v4502_v54 = vmul.f32 %v7382_v44, %v4492_v0  ;;  %v9395_v44 = vld [vmem:[#allocation3 + $0x220] sm:$0xff]   ;;  %8750 = vmatprep.subr.bf16.mxu1 %v11422_v29  ;;  %v9407_v10 = vld [vmem:[#allocation7 + $0x200] sm:$0xff]  }
 0xb8f   :  { %8726 = vmatmul.mubr.msk.f32.vlgmr.msra.gmra.mxu0 %vm1603_vm7, %v4645_v2  ;;  %4508 = vadd.xlane.f32.xlu1 %v4507_v18  ;;  %v9404_v0 = vld [vmem:[#allocation7 + $0x218] sm:$0xff]   ;;  %v9405_v9 = vld [vmem:[#allocation7 + $0x210] sm:$0xff]   ;;  %v11009_v2 = vpop.xlane.xlu1 %4348  ;;  %v7383_v18 = vld [vmem:[#allocation17 + $0x7] ss:$0 sm:$0xff] }
 0xb90   :  { %8729 = vmatpush3.bf16.msra.mxu0 %v9392_v36  ;;  %8744 = vmatprep.mubr.msk.bf16.mxu0 %vm10154_vm0, %v11422_v29  ;;  %v4504_v15 = vsel %vm981_vm2, %v4502_v54, 0.0  ;;  %v9406_v36 = vld [vmem:[#allocation7 + $0x208] sm:$0xff]  }
 0xb91   :  { %8730 = vmatprep.subr.bf16.mxu0 %v11422_v29  ;;  %8751 = vmatpush3.bf16.msra.mxu1 %v9401_v50 }
 0xb92   :  { %8752 = vmatprep.subr.bf16.mxu1 %v11422_v29 }
 0xb93   :  { %4505 = vadd.xlane.f32.xlu1 %v4504_v15 }
 0xb94   :  { %8731 = vmatpush3.bf16.msra.mxu0 %v9393_v21 }
 0xb95   :  { %8732 = vmatprep.subr.bf16.mxu0 %v11422_v29  ;;  %8753 = vmatpush3.bf16.msra.mxu1 %v9402_v48  ;;  %v11012_v48 = vunpack.i.h.bf16 %v10705_v11 }
 0xb96   :  { %8754 = vmatprep.subr.bf16.mxu1 %v11422_v29 }
 0xb98   :  { %8733 = vmatpush3.bf16.msra.mxu0 %v9394_v25 }
 0xb99   :  { %8734 = vmatprep.subr.bf16.mxu0 %v11422_v29  ;;  %8755 = vmatpush3.bf16.msra.mxu1 %v9403_v13  ;;  %v11015_v13 = vunpack.i.l.bf16 %v10705_v11 }
 0xb9a   :  { %8756 = vmatprep.subr.bf16.mxu1 %v11422_v29 }
 0xb9c   :  { %8735 = vmatpush3.bf16.msra.mxu0 %v9395_v44 }
 0xb9d   :  { %8736 = vmatprep.subr.bf16.mxu0 %v11422_v29  ;;  %8757 = vmatpush3.bf16.msra.mxu1 %v9404_v0 }
 0xb9e   :  { %8758 = vmatprep.subr.bf16.mxu1 %v11422_v29 }
 0xba0   :  { %8737 = vmatpush3.bf16.msra.mxu0 %v9396_v23 }
 0xba1   :  { %8738 = vmatprep.subr.bf16.mxu0 %v11422_v29  ;;  %8759 = vmatpush3.bf16.msra.mxu1 %v9405_v9 }
 0xba2   :  { %8760 = vmatprep.subr.bf16.mxu1 %v11422_v29 }
 0xba4   :  { %8739 = vmatpush3.bf16.msra.mxu0 %v9397_v5 }
 0xba5   :  { %8740 = vmatprep.subr.bf16.mxu0 %v11422_v29  ;;  %8761 = vmatpush3.bf16.msra.mxu1 %v9406_v36 }
 0xba6   :  { %8762 = vmatprep.subr.bf16.mxu1 %v11422_v29 }
 0xba8   :  { %8741 = vmatpush3.bf16.msra.mxu0 %v9398_v3 }
 0xba9   :  { %8742 = vmatprep.subr.bf16.mxu0 %v11422_v29  ;;  %8763 = vmatpush3.bf16.msra.mxu1 %v9407_v10 }
 0xbaa   :  { %8803 = vmatprep.subr.bf16.mxu1 %v11422_v29 }
 0xbac   :  { %8743 = vmatpush3.bf16.msra.mxu0 %v9399_v63 }
 0xbaf   :  { %8745 = vmatmul.mubr.bf16.vlgmr.msra.gmra.mxu0 %v10998_v56 }
 0xc18   :  { %v4509_v54 = vpop.xlane.xlu1 %4508 }
 0xc19   :  { %v4519_v21 = vadd.f32 %v7383_v18, %v4509_v54 }
 0xc1b   :  { %v7385_v15 = vmul.f32 -1.442695, %v4519_v21 }
 0xc1c   :  { %v4506_v25 = vpop.xlane.xlu1 %4505 }
 0xc1d   :  { %9570 = vpow2.f32 %v7385_v15  ;;  %v4518_v44 = vadd.f32 %v7383_v18, %v4506_v25 }
 0xc1f   :  { %v7384_v23 = vmul.f32 -1.442695, %v4518_v44 }
 0xc21   :  { %9572 = vpow2.f32 %v7384_v23 }
 0xc2a   :  { %v9571_v5 = vpop.eup %9570 }
 0xc2b   :  { %v4527_v3 = vadd.f32 1.0, %v9571_v5  ;;  %v7387_v5 = vld [vmem:[%s11426_s18] ss:$0 sm:$0xff] }
 0xc2d   :  { %9574 = vrcp.f32 %v4527_v3 }
 0xc2e   :  { %v9573_v63 = vpop.eup %9572 }
 0xc2f   :  { %v4526_v27 = vadd.f32 1.0, %v9573_v63 }
 0xc31   :  { %9576 = vrcp.f32 %v4526_v27 }
 0xc3a   :  { %v9575_v50 = vpop.eup %9574 }
 0xc3b   :  { %v4533_v0 = vmul.f32 %v9575_v50, %v11012_v48 }
 0xc3d   :  { %v4537_v10 = vsel %vm861_vm12, %v4533_v0, 0.0 }
 0xc3e   :  { %v9577_v9 = vpop.eup %9576 }
 0xc3f   :  { %v4532_v36 = vmul.f32 %v9577_v9, %v11015_v13 }
 0xc41   :  { %v4536_v18 = vsel %vm861_vm12, %v4532_v36, 0.0 }
 0xc42   :  { %v4538_v54 = vadd.f32 %v4537_v10, %v4536_v18 }
 0xc44   :  { %v4539_v21 = vrot.slane %v4538_v54, 4 }
 0xc46   :  { %v4540_v15 = vadd.f32 %v4539_v21, %v4538_v54  ;;  %v7394_v54 = vld [vmem:[#allocation5 + $0x8] ss:$0 sm:$0xff] }
 0xc48   :  { %v4541_v25 = vrot.slane %v4540_v15, 2 }
 0xc4a   :  { %v4542_v44 = vadd.f32 %v4541_v25, %v4540_v15 }
 0xc4c   :  { %v4543_v23 = vrot.slane %v4542_v44, 1 }
 0xc4e   :  { %v4544_v3 = vadd.f32 %v4543_v23, %v4542_v44 }
 0xc4f   :  { %v8727_v11 = vpop.f32.mrf.mxu0 }
 0xc50   :  { %v4733_v63 = vadd.f32 %v8727_v11, %v7387_v5  ;;  %v11023_v27 = vadd.f32 %v4544_v3, %v10981_v37 }
 0xc51   :  { %v4727_v50 = vpop.f32.mrf.mxu0 }
 0xc52   :  { %v4737_v9 = vmax.f32 %v4733_v63, 0.0  ;;  %v4728_v59 = vadd.f32 %v7387_v5, %v4727_v50 }
 0xc54   :  { %v4736_v0 = vmax.f32 %v4728_v59, 0.0  ;;  %v4746_v61 = vmul.f32 %v7390_v34, %v4737_v9  ;;  %v5119_v9 = vld [vmem:[#allocation13 + $0x478] sm:$0xff] }
 0xc55   :  { %8768 = vmatprep.subr.mxu0 %v5119_v9 }
 0xc56   :  { %v4750_v36 = vsel %vm981_vm2, %v4746_v61, 0.0  ;;  %v4745_v10 = vmul.f32 %v7390_v34, %v4736_v0  ;;  %v5118_v61 = vld [vmem:[#allocation13 + $0x470] sm:$0xff]  ;;  %8769 = vmatpush3.msra.mxu0 %v5119_v9  ;;  %v5108_v9 = vld [vmem:[#allocation13 + $0x420] sm:$0xff] }
 0xc57   :  { %4751 = vadd.xlane.f32.xlu1 %v4750_v36  ;;  %v5117_v36 = vld [vmem:[#allocation13 + $0x468] sm:$0xff]  ;;  %8770 = vmatprep.subr.mxu0 %v5118_v61 }
 0xc58   :  { %v4747_v18 = vsel %vm981_vm2, %v4745_v10, 0.0  ;;  %8771 = vmatpush3.msra.mxu0 %v5118_v61 }
 0xc59   :  { %8772 = vmatprep.subr.mxu0 %v5117_v36 }
 0xc5a   :  { %8773 = vmatpush3.msra.mxu0 %v5117_v36 }
 0xc5b   :  { %4748 = vadd.xlane.f32.xlu1 %v4747_v18  ;;  %v5116_v18 = vld [vmem:[#allocation13 + $0x460] sm:$0xff] }
 0xc5c   :  { %8774 = vmatprep.subr.mxu0 %v5116_v18 }
 0xc5d   :  { %8775 = vmatpush3.msra.mxu0 %v5116_v18 }
 0xc6f   :  { %v4895_v21 = vpop.f32.mrf.mxu0 }
 0xc70   :  { %v4896_v15 = vadd.f32 %v7394_v54, %v4895_v21 }
 0xc71   :  { %v8746_v25 = vpop.f32.mrf.mxu0 }
 0xc72   :  { %v4902_v44 = vmul.f32 %v4896_v15, %v4896_v15  ;;  %v5114_v25 = vld [vmem:[#allocation13 + $0x450] sm:$0xff] }
 0xc73   :  { %v4898_v37 = vpop.f32.mrf.mxu0 }
 0xc74   :  { %v4904_v23 = vmul.f32 %v4902_v44, %v4896_v15  ;;  %v4899_v3 = vadd.f32 %v7394_v54, %v4898_v37  ;;  %v5115_v54 = vld [vmem:[#allocation13 + $0x458] sm:$0xff]  ;;  %v5113_v44 = vld [vmem:[#allocation13 + $0x448] sm:$0xff]  ;;  %v5112_v37 = vld [vmem:[#allocation13 + $0x440] sm:$0xff] }
 0xc75   :  { %v8747_v11 = vpop.f32.mrf.mxu0  ;;  %8776 = vmatprep.subr.mxu0 %v5115_v54 }
 0xc76   :  { %v4906_v63 = vmul.f32 0.044715, %v4904_v23  ;;  %v4903_v5 = vmul.f32 %v4899_v3, %v4899_v3  ;;  %8777 = vmatpush3.msra.mxu0 %v5115_v54  ;;  %v5111_v23 = vld [vmem:[#allocation13 + $0x438] sm:$0xff] }
 0xc77   :  { %8778 = vmatprep.subr.mxu0 %v5114_v25 }
 0xc78   :  { %v4908_v59 = vadd.f32 %v4906_v63, %v4896_v15  ;;  %v4905_v50 = vmul.f32 %v4903_v5, %v4899_v3  ;;  %8779 = vmatpush3.msra.mxu0 %v5114_v25  ;;  %v5110_v63 = vld [vmem:[#allocation13 + $0x430] sm:$0xff]  ;;  %v9409_v25 = vld [vmem:[#allocation3 + $0x270] sm:$0xff]  }
 0xc79   :  { %8780 = vmatprep.subr.mxu0 %v5113_v44 }
 0xc7a   :  { %v4910_v34 = vmul.f32 0.7978846, %v4908_v59  ;;  %v4907_v0 = vmul.f32 0.044715, %v4905_v50  ;;  %8781 = vmatpush3.msra.mxu0 %v5113_v44  ;;  %v5109_v59 = vld [vmem:[#allocation13 + $0x428] sm:$0xff]  ;;  %v9410_v44 = vld [vmem:[#allocation3 + $0x268] sm:$0xff]  }
 0xc7b   :  { %8782 = vmatprep.subr.mxu0 %v5112_v37 }
 0xc7c   :  { %9578 = vtanh.f32 %v4910_v34  ;;  %v4909_v10 = vadd.f32 %v4907_v0, %v4899_v3  ;;  %8783 = vmatpush3.msra.mxu0 %v5112_v37  ;;  %v5107_v0 = vld [vmem:[#allocation13 + $0x418] sm:$0xff]  ;;  %v9411_v37 = vld [vmem:[#allocation3 + $0x260] sm:$0xff]  }
 0xc7d   :  { %8784 = vmatprep.subr.mxu0 %v5111_v23 }
 0xc7e   :  { %v4911_v21 = vmul.f32 0.7978846, %v4909_v10  ;;  %8785 = vmatpush3.msra.mxu0 %v5111_v23  ;;  %v9414_v23 = vld [vmem:[#allocation3 + $0x248] sm:$0xff]  }
 0xc7f   :  { %8786 = vmatprep.subr.mxu0 %v5110_v63 }
 0xc80   :  { %9580 = vtanh.f32 %v4911_v21  ;;  %8787 = vmatpush3.msra.mxu0 %v5110_v63  ;;  %v9408_v21 = vld [vmem:[#allocation3 + $0x278] sm:$0xff]   ;;  %v5106_v63 = vld [vmem:[#allocation13 + $0x410] sm:$0xff] }
 0xc81   :  { %8788 = vmatprep.subr.mxu0 %v5109_v59 }
 0xc82   :  { %8789 = vmatpush3.msra.mxu0 %v5109_v59  ;;  %v5104_v59 = vld [vmem:[#allocation13 + $0x400] sm:$0xff] }
 0xc83   :  { %8790 = vmatprep.subr.mxu0 %v5108_v9 }
 0xc84   :  { %8791 = vmatpush3.msra.mxu0 %v5108_v9 }
 0xc85   :  { %8792 = vmatprep.subr.mxu0 %v5107_v0 }
 0xc86   :  { %8793 = vmatpush3.msra.mxu0 %v5107_v0 }
 0xc87   :  { %8794 = vmatprep.subr.mxu0 %v5106_v63 }
 0xc88   :  { %8795 = vmatpush3.msra.mxu0 %v5106_v63  ;;  %v7421_v63 = vld [vmem:[#allocation5 + $0x9] ss:$0 sm:$0xff] }
 0xc89   :  { %v9579_v11 = vpop.eup %9578 }
 0xc8a   :  { %v4914_v5 = vadd.f32 1.0, %v9579_v11  ;;  %v9415_v11 = vld [vmem:[#allocation3 + $0x240] sm:$0xff]  }
 0xc8c   :  { %v4916_v61 = vmul.f32 0.5, %v4914_v5  ;;  %v5105_v5 = vld [vmem:[#allocation13 + $0x408] sm:$0xff] }
 0xc8d   :  { %v9581_v50 = vpop.eup %9580  ;;  %8796 = vmatprep.subr.mxu0 %v5105_v5 }
 0xc8e   :  { %v4915_v34 = vadd.f32 1.0, %v9581_v50  ;;  %v4918_v10 = vmul.f32 %v4916_v61, %v4896_v15  ;;  %v9412_v15 = vld [vmem:[#allocation3 + $0x258] sm:$0xff]   ;;  %8797 = vmatpush3.msra.mxu0 %v5105_v5  ;;  %v7403_v50 = vld [vmem:[#allocation8 + $0x8] ss:$0 sm:$0xff]  ;;  %v7412_v61 = vld [vmem:[#allocation10 + $0x8] ss:$0 sm:$0xff] }
 0xc8f   :  { %8798 = vmatprep.subr.mxu0 %v5104_v59 }
 0xc90   :  { %v4917_v36 = vmul.f32 0.5, %v4915_v34  ;;  %8799 = vmatpush3.msra.mxu0 %v5104_v59  ;;  %v9423_v59 = vld [vmem:[#allocation7 + $0x240] sm:$0xff]  }
 0xc91   :  { %8823 = vmatprep.subr.bf16.mxu0 %v11422_v29 }
 0xc92   :  { %v4919_v18 = vmul.f32 %v4917_v36, %v4899_v3  ;;  %v9413_v3 = vld [vmem:[#allocation3 + $0x250] sm:$0xff]  }
 0xc94   :  { %v4920_v54 = vpack.c.bf16 %v4919_v18, %v4918_v10 }
 0xc96   :  { %8765 = vmatmul.mubr.bf16.vlgmr.msra.gmra.mxu1 %v4920_v54 }
 0xc97   :  { %8804 = vmatpush3.bf16.msra.mxu1 %v9408_v21  ;;  %8819 = vmatprep.mubr.msk.bf16.mxu1 %vm10154_vm0, %v11422_v29  ;;  %v9416_v21 = vld [vmem:[#allocation7 + $0x278] sm:$0xff]  }
 0xc98   :  { %8805 = vmatprep.subr.bf16.mxu1 %v11422_v29 }
 0xc9b   :  { %8806 = vmatpush3.bf16.msra.mxu1 %v9409_v25 }
 0xc9c   :  { %8807 = vmatprep.subr.bf16.mxu1 %v11422_v29 }
 0xc9f   :  { %8808 = vmatpush3.bf16.msra.mxu1 %v9410_v44 }
 0xca0   :  { %8809 = vmatprep.subr.bf16.mxu1 %v11422_v29 }
 0xca3   :  { %8810 = vmatpush3.bf16.msra.mxu1 %v9411_v37 }
 0xca4   :  { %8811 = vmatprep.subr.bf16.mxu1 %v11422_v29 }
 0xca7   :  { %8812 = vmatpush3.bf16.msra.mxu1 %v9412_v15  ;;  %v9417_v15 = vld [vmem:[#allocation7 + $0x270] sm:$0xff]  }
 0xca8   :  { %8813 = vmatprep.subr.bf16.mxu1 %v11422_v29 }
 0xcab   :  { %8814 = vmatpush3.bf16.msra.mxu1 %v9413_v3  ;;  %v9420_v3 = vld [vmem:[#allocation7 + $0x258] sm:$0xff]  }
 0xcac   :  { %8815 = vmatprep.subr.bf16.mxu1 %v11422_v29 }
 0xcaf   :  { %8816 = vmatpush3.bf16.msra.mxu1 %v9414_v23  ;;  %v9421_v23 = vld [vmem:[#allocation7 + $0x250] sm:$0xff]  }
 0xcb0   :  { %8817 = vmatprep.subr.bf16.mxu1 %v11422_v29 }
 0xcb3   :  { %8818 = vmatpush3.bf16.msra.mxu1 %v9415_v11  ;;  %v9422_v11 = vld [vmem:[#allocation7 + $0x248] sm:$0xff]  }
 0xcb6   :  { %8820 = vmatmul.mubr.bf16.vlgmr.msra.gmra.mxu1 %v10998_v56 }
 0xd56   :  { %v5028_v9 = vpop.f32.mrf.mxu1 }
 0xd57   :  { %v5029_v34 = vadd.f32 %v7403_v50, %v5028_v9 }
 0xd58   :  { %v8766_v0 = vpop.f32.mrf.mxu1 }
 0xd59   :  { %v5043_v36 = vmul.f32 %v10795_v6, %v5029_v34  ;;  %8800 = vmatprep.mubr.f32.mxu0 %v5029_v34  ;;  %v5055_v10 = vmul.f32 %v7412_v61, %v5029_v34  ;;  %v9418_v6 = vld [vmem:[#allocation7 + $0x268] sm:$0xff]  }
 0xd5a   :  { %v5031_v18 = vpop.f32.mrf.mxu1 }
 0xd5b   :  { %v11041_v54 = vadd.f32 %v5043_v36, %v10962_v35  ;;  %v11043_v25 = vadd.f32 %v7403_v50, %v5031_v18  ;;  %5057 = vadd.xlane.f32.xlu0 %v5055_v10  ;;  %v9419_v35 = vld [vmem:[#allocation7 + $0x260] sm:$0xff]  }
 0xd5c   :  { %v8767_v44 = vpop.f32.mrf.mxu1 }
 0xd5d   :  { %11428 = vst [vmem:[#allocation60_spill] sm:$0xff] %v11043_v25  ;;  %8801 = vmatmul.mubr.f32.vlgmr.msra.gmra.mxu0 %v11043_v25  ;;  %v5056_v37 = vmul.f32 %v7412_v61, %v11043_v25  ;;  %v9424_v25 = vld [vmem:[#allocation3 + $0x2b8] sm:$0xff]  }
 0xd5e   :  { %8824 = vmatpush3.bf16.msra.mxu0 %v9416_v21  ;;  %8839 = vmatprep.mubr.msk.bf16.mxu0 %vm10154_vm0, %v11422_v29 }
 0xd5f   :  { %5059 = vadd.xlane.f32.xlu1 %v5056_v37  ;;  %8825 = vmatprep.subr.bf16.mxu0 %v11422_v29 }
 0xd62   :  { %8826 = vmatpush3.bf16.msra.mxu0 %v9417_v15 }
 0xd63   :  { %8827 = vmatprep.subr.bf16.mxu0 %v11422_v29 }
 0xd66   :  { %8828 = vmatpush3.bf16.msra.mxu0 %v9418_v6 }
 0xd67   :  { %8829 = vmatprep.subr.bf16.mxu0 %v11422_v29 }
 0xd6a   :  { %8830 = vmatpush3.bf16.msra.mxu0 %v9419_v35 }
 0xd6b   :  { %8831 = vmatprep.subr.bf16.mxu0 %v11422_v29 }
 0xd6e   :  { %8832 = vmatpush3.bf16.msra.mxu0 %v9420_v3 }
 0xd6f   :  { %8833 = vmatprep.subr.bf16.mxu0 %v11422_v29 }
 0xd72   :  { %8834 = vmatpush3.bf16.msra.mxu0 %v9421_v23 }
 0xd73   :  { %8835 = vmatprep.subr.bf16.mxu0 %v11422_v29 }
 0xd76   :  { %v5364_v5 = vpop.f32.mrf.mxu1  ;;  %8836 = vmatpush3.bf16.msra.mxu0 %v9422_v11 }
 0xd77   :  { %v5365_v50 = vadd.f32 %v7421_v63, %v5364_v5  ;;  %8837 = vmatprep.subr.bf16.mxu0 %v11422_v29 }
 0xd78   :  { %v8821_v9 = vpop.f32.mrf.mxu1 }
 0xd79   :  { %v5371_v61 = vmul.f32 %v5365_v50, %v5365_v50 }
 0xd7a   :  { %v5367_v34 = vpop.f32.mrf.mxu1  ;;  %8838 = vmatpush3.bf16.msra.mxu0 %v9423_v59 }
 0xd7b   :  { %v5373_v0 = vmul.f32 %v5371_v61, %v5365_v50  ;;  %v5368_v36 = vadd.f32 %v7421_v63, %v5367_v34  ;;  %8878 = vmatprep.subr.bf16.mxu0 %v11422_v29 }
 0xd7c   :  { %v8822_v10 = vpop.f32.mrf.mxu1 }
 0xd7d   :  { %v5375_v18 = vmul.f32 0.044715, %v5373_v0  ;;  %v5372_v21 = vmul.f32 %v5368_v36, %v5368_v36  ;;  %v9425_v0 = vld [vmem:[#allocation3 + $0x2b0] sm:$0xff]  }
 0xd7f   :  { %v5377_v44 = vadd.f32 %v5375_v18, %v5365_v50  ;;  %v5374_v37 = vmul.f32 %v5372_v21, %v5368_v36  ;;  %v9426_v18 = vld [vmem:[#allocation3 + $0x2a8] sm:$0xff]   ;;  %v9427_v21 = vld [vmem:[#allocation3 + $0x2a0] sm:$0xff]  }
 0xd81   :  { %v5379_v15 = vmul.f32 0.7978846, %v5377_v44  ;;  %v5376_v6 = vmul.f32 0.044715, %v5374_v37  ;;  %v9428_v44 = vld [vmem:[#allocation3 + $0x298] sm:$0xff]   ;;  %v5585_v37 = vld [vmem:[#allocation13 + $0x4e0] sm:$0xff] }
 0xd83   :  { %9582 = vtanh.f32 %v5379_v15  ;;  %v5378_v35 = vadd.f32 %v5376_v6, %v5368_v36  ;;  %v9429_v15 = vld [vmem:[#allocation3 + $0x290] sm:$0xff]   ;;  %v5584_v6 = vld [vmem:[#allocation13 + $0x4d8] sm:$0xff] }
 0xd85   :  { %v5380_v3 = vmul.f32 0.7978846, %v5378_v35  ;;  %v5583_v35 = vld [vmem:[#allocation13 + $0x4d0] sm:$0xff] }
 0xd87   :  { %9584 = vtanh.f32 %v5380_v3  ;;  %v9430_v3 = vld [vmem:[#allocation3 + $0x288] sm:$0xff]  }
 0xd90   :  { %v9583_v23 = vpop.eup %9582 }
 0xd91   :  { %v5383_v11 = vadd.f32 1.0, %v9583_v23  ;;  %v5582_v23 = vld [vmem:[#allocation13 + $0x4c8] sm:$0xff] }
 0xd93   :  { %v5385_v9 = vmul.f32 0.5, %v5383_v11  ;;  %v5581_v11 = vld [vmem:[#allocation13 + $0x4c0] sm:$0xff] }
 0xd94   :  { %v9585_v5 = vpop.eup %9584 }
 0xd95   :  { %v5384_v59 = vadd.f32 1.0, %v9585_v5  ;;  %v5387_v63 = vmul.f32 %v5385_v9, %v5365_v50  ;;  %v5588_v50 = vld [vmem:[#allocation13 + $0x4f8] sm:$0xff]  ;;  %v9431_v5 = vld [vmem:[#allocation3 + $0x280] sm:$0xff]  }
 0xd96   :  { %8843 = vmatprep.subr.mxu1 %v5588_v50  ;;  %v5580_v9 = vld [vmem:[#allocation13 + $0x4b8] sm:$0xff] }
 0xd97   :  { %v5386_v61 = vmul.f32 0.5, %v5384_v59  ;;  %8844 = vmatpush3.msra.mxu1 %v5588_v50  ;;  %v5579_v59 = vld [vmem:[#allocation13 + $0x4b0] sm:$0xff] }
 0xd99   :  { %v5388_v34 = vmul.f32 %v5386_v61, %v5368_v36  ;;  %v5587_v36 = vld [vmem:[#allocation13 + $0x4f0] sm:$0xff]  ;;  %v5578_v61 = vld [vmem:[#allocation13 + $0x4a8] sm:$0xff] }
 0xd9a   :  { %8845 = vmatprep.subr.mxu1 %v5587_v36 }
 0xd9b   :  { %v5389_v10 = vpack.c.bf16 %v5388_v34, %v5387_v63  ;;  %8846 = vmatpush3.msra.mxu1 %v5587_v36  ;;  %v5577_v63 = vld [vmem:[#allocation13 + $0x4a0] sm:$0xff]  ;;  %v5576_v34 = vld [vmem:[#allocation13 + $0x498] sm:$0xff] }
 0xd9d   :  { %8840 = vmatmul.mubr.bf16.vlgmr.msra.gmra.mxu0 %v5389_v10  ;;  %v5575_v10 = vld [vmem:[#allocation13 + $0x490] sm:$0xff] }
 0xd9e   :  { %8879 = vmatpush3.bf16.msra.mxu0 %v9424_v25  ;;  %8894 = vmatprep.mubr.msk.bf16.mxu0 %vm10154_vm0, %v11422_v29  ;;  %v5586_v25 = vld [vmem:[#allocation13 + $0x4e8] sm:$0xff] }
 0xd9f   :  { %8880 = vmatprep.subr.bf16.mxu0 %v11422_v29  ;;  %8847 = vmatprep.subr.mxu1 %v5586_v25 }
 0xda0   :  { %8848 = vmatpush3.msra.mxu1 %v5586_v25  ;;  %v7417_v25 = vld [vmem:[#allocation16 + $0x8] ss:$0 sm:$0xff] }
 0xda1   :  { %8849 = vmatprep.subr.mxu1 %v5585_v37 }
 0xda2   :  { %8881 = vmatpush3.bf16.msra.mxu0 %v9425_v0  ;;  %8850 = vmatpush3.msra.mxu1 %v5585_v37  ;;  %v5574_v0 = vld [vmem:[#allocation13 + $0x488] sm:$0xff] }
 0xda3   :  { %8882 = vmatprep.subr.bf16.mxu0 %v11422_v29  ;;  %8851 = vmatprep.subr.mxu1 %v5584_v6 }
 0xda4   :  { %8852 = vmatpush3.msra.mxu1 %v5584_v6 }
 0xda5   :  { %8853 = vmatprep.subr.mxu1 %v5583_v35 }
 0xda6   :  { %8883 = vmatpush3.bf16.msra.mxu0 %v9426_v18  ;;  %8854 = vmatpush3.msra.mxu1 %v5583_v35  ;;  %v5573_v18 = vld [vmem:[#allocation13 + $0x480] sm:$0xff] }
 0xda7   :  { %8884 = vmatprep.subr.bf16.mxu0 %v11422_v29  ;;  %8855 = vmatprep.subr.mxu1 %v5582_v23 }
 0xda8   :  { %8856 = vmatpush3.msra.mxu1 %v5582_v23 }
 0xda9   :  { %8857 = vmatprep.subr.mxu1 %v5581_v11 }
 0xdaa   :  { %8885 = vmatpush3.bf16.msra.mxu0 %v9427_v21  ;;  %8858 = vmatpush3.msra.mxu1 %v5581_v11  ;;  %v7416_v21 = vld [vmem:[#allocation14 + $0x8] ss:$0 sm:$0xff] }
 0xdab   :  { %8886 = vmatprep.subr.bf16.mxu0 %v11422_v29  ;;  %8859 = vmatprep.subr.mxu1 %v5580_v9 }
 0xdac   :  { %8860 = vmatpush3.msra.mxu1 %v5580_v9 }
 0xdad   :  { %8861 = vmatprep.subr.mxu1 %v5579_v59 }
 0xdae   :  { %8887 = vmatpush3.bf16.msra.mxu0 %v9428_v44  ;;  %8862 = vmatpush3.msra.mxu1 %v5579_v59  ;;  %v7439_v59 = vld [vmem:[#allocation10 + $0x9] ss:$0 sm:$0xff] }
 0xdaf   :  { %8888 = vmatprep.subr.bf16.mxu0 %v11422_v29  ;;  %8863 = vmatprep.subr.mxu1 %v5578_v61 }
 0xdb0   :  { %8864 = vmatpush3.msra.mxu1 %v5578_v61 }
 0xdb1   :  { %8865 = vmatprep.subr.mxu1 %v5577_v63 }
 0xdb2   :  { %8889 = vmatpush3.bf16.msra.mxu0 %v9429_v15  ;;  %8866 = vmatpush3.msra.mxu1 %v5577_v63 }
 0xdb3   :  { %8890 = vmatprep.subr.bf16.mxu0 %v11422_v29  ;;  %8867 = vmatprep.subr.mxu1 %v5576_v34 }
 0xdb4   :  { %8868 = vmatpush3.msra.mxu1 %v5576_v34 }
 0xdb5   :  { %8869 = vmatprep.subr.mxu1 %v5575_v10 }
 0xdb6   :  { %8891 = vmatpush3.bf16.msra.mxu0 %v9430_v3  ;;  %8870 = vmatpush3.msra.mxu1 %v5575_v10 }
 0xdb7   :  { %8892 = vmatprep.subr.bf16.mxu0 %v11422_v29  ;;  %8871 = vmatprep.subr.mxu1 %v5574_v0 }
 0xdb8   :  { %8872 = vmatpush3.msra.mxu1 %v5574_v0 }
 0xdb9   :  { %8873 = vmatprep.subr.mxu1 %v5573_v18 }
 0xdba   :  { %8893 = vmatpush3.bf16.msra.mxu0 %v9431_v5  ;;  %8874 = vmatpush3.msra.mxu1 %v5573_v18  ;;  %v7430_v5 = vld [vmem:[#allocation8 + $0x9] ss:$0 sm:$0xff]  ;;  %v9432_v18 = vld [vmem:[#allocation7 + $0x2b8] sm:$0xff]  }
 0xdbb   :  { %8898 = vmatprep.subr.bf16.mxu1 %v11422_v29 }
 0xdbd   :  { %8895 = vmatmul.mubr.bf16.vlgmr.msra.gmra.mxu0 %v10998_v56 }
 0xe1d   :  { %v8802_v50 = vpop.f32.mrf.mxu0 }
 0xe1e   :  { %v5200_v36 = vadd.f32 %v8802_v50, %v7416_v21 }
 0xe1f   :  { %v5194_v44 = vpop.f32.mrf.mxu0 }
 0xe20   :  { %v5204_v37 = vmax.f32 %v5200_v36, 0.0  ;;  %v5195_v15 = vadd.f32 %v7416_v21, %v5194_v44 }
 0xe22   :  { %v5203_v6 = vmax.f32 %v5195_v15, 0.0  ;;  %v5214_v35 = vmul.f32 %v7417_v25, %v5204_v37  ;;  %v9436_v37 = vld [vmem:[#allocation7 + $0x298] sm:$0xff]   ;;  %v9437_v15 = vld [vmem:[#allocation7 + $0x290] sm:$0xff]  }
 0xe24   :  { %v5218_v3 = vsel %vm981_vm2, %v5214_v35, 0.0  ;;  %v5213_v23 = vmul.f32 %v7417_v25, %v5203_v6  ;;  %v9433_v25 = vld [vmem:[#allocation7 + $0x2b0] sm:$0xff]   ;;  %v9438_v6 = vld [vmem:[#allocation7 + $0x288] sm:$0xff]   ;;  %v7448_v35 = vld [vmem:[#allocation5 + $0xa] ss:$0 sm:$0xff] }
 0xe25   :  { %5219 = vadd.xlane.f32.xlu1 %v5218_v3 }
 0xe26   :  { %v5215_v11 = vsel %vm981_vm2, %v5213_v23, 0.0  ;;  %v9439_v23 = vld [vmem:[#allocation7 + $0x280] sm:$0xff]  }
 0xe29   :  { %5216 = vadd.xlane.f32.xlu1 %v5215_v11 }
 0xe5d   :  { %v5497_v9 = vpop.f32.mrf.mxu0 }
 0xe5e   :  { %v5498_v61 = vadd.f32 %v7430_v5, %v5497_v9 }
 0xe5f   :  { %v8841_v63 = vpop.f32.mrf.mxu0 }
 0xe60   :  { %v5512_v34 = vmul.f32 %v10797_v14, %v5498_v61  ;;  %8875 = vmatprep.mubr.f32.mxu1 %v5498_v61  ;;  %v5524_v10 = vmul.f32 %v7439_v59, %v5498_v61  ;;  %v9434_v14 = vld [vmem:[#allocation7 + $0x2a8] sm:$0xff]  }
 0xe61   :  { %v5500_v0 = vpop.f32.mrf.mxu0 }
 0xe62   :  { %v11071_v21 = vadd.f32 %v7430_v5, %v5500_v0  ;;  %5526 = vadd.xlane.f32.xlu0 %v5524_v10  ;;  %v11074_v50 = vadd.f32 %v5512_v34, %v11041_v54  ;;  %v9435_v54 = vld [vmem:[#allocation7 + $0x2a0] sm:$0xff]  }
 0xe63   :  { %v8842_v36 = vpop.f32.mrf.mxu0 }
 0xe64   :  { %11429 = vst [vmem:[#allocation61_spill] sm:$0xff] %v11071_v21  ;;  %8876 = vmatmul.mubr.f32.vlgmr.msra.gmra.mxu1 %v11071_v21  ;;  %v5525_v44 = vmul.f32 %v7439_v59, %v11071_v21 }
 0xe65   :  { %8899 = vmatpush3.bf16.msra.mxu1 %v9432_v18  ;;  %8914 = vmatprep.mubr.msk.bf16.mxu1 %vm10154_vm0, %v11422_v29 }
 0xe66   :  { %5528 = vadd.xlane.f32.xlu1 %v5525_v44  ;;  %8900 = vmatprep.subr.bf16.mxu1 %v11422_v29 }
 0xe69   :  { %8901 = vmatpush3.bf16.msra.mxu1 %v9433_v25 }
 0xe6a   :  { %8902 = vmatprep.subr.bf16.mxu1 %v11422_v29 }
 0xe6d   :  { %8903 = vmatpush3.bf16.msra.mxu1 %v9434_v14 }
 0xe6e   :  { %8904 = vmatprep.subr.bf16.mxu1 %v11422_v29 }
 0xe71   :  { %8905 = vmatpush3.bf16.msra.mxu1 %v9435_v54 }
 0xe72   :  { %8906 = vmatprep.subr.bf16.mxu1 %v11422_v29 }
 0xe75   :  { %8907 = vmatpush3.bf16.msra.mxu1 %v9436_v37 }
 0xe76   :  { %8908 = vmatprep.subr.bf16.mxu1 %v11422_v29 }
 0xe79   :  { %8909 = vmatpush3.bf16.msra.mxu1 %v9437_v15 }
 0xe7a   :  { %8910 = vmatprep.subr.bf16.mxu1 %v11422_v29 }
 0xe7d   :  { %v5833_v3 = vpop.f32.mrf.mxu0  ;;  %8911 = vmatpush3.bf16.msra.mxu1 %v9438_v6 }
 0xe7e   :  { %v5834_v11 = vadd.f32 %v7448_v35, %v5833_v3  ;;  %8912 = vmatprep.subr.bf16.mxu1 %v11422_v29 }
 0xe7f   :  { %v8896_v5 = vpop.f32.mrf.mxu0 }
 0xe80   :  { %v5840_v9 = vmul.f32 %v5834_v11, %v5834_v11 }
 0xe81   :  { %v5836_v59 = vpop.f32.mrf.mxu0  ;;  %8913 = vmatpush3.bf16.msra.mxu1 %v9439_v23 }
 0xe82   :  { %v5842_v61 = vmul.f32 %v5840_v9, %v5834_v11  ;;  %v5837_v63 = vadd.f32 %v7448_v35, %v5836_v59  ;;  %8953 = vmatprep.subr.bf16.mxu1 %v11422_v29  ;;  %v11088_v35 = vpop.xlane.xlu1 %4751 }
 0xe83   :  { %v8897_v34 = vpop.f32.mrf.mxu0 }
 0xe84   :  { %v5844_v10 = vmul.f32 0.044715, %v5842_v61  ;;  %v5841_v0 = vmul.f32 %v5837_v63, %v5837_v63  ;;  %v9440_v61 = vld [vmem:[#allocation3 + $0x2f8] sm:$0xff]  }
 0xe86   :  { %v5846_v18 = vadd.f32 %v5844_v10, %v5834_v11  ;;  %v5843_v36 = vmul.f32 %v5841_v0, %v5837_v63  ;;  %v9441_v10 = vld [vmem:[#allocation3 + $0x2f0] sm:$0xff]   ;;  %v11092_v0 = vpop.xlane.xlu1 %4748 }
 0xe88   :  { %v5848_v44 = vmul.f32 0.7978846, %v5846_v18  ;;  %v5845_v25 = vmul.f32 0.044715, %v5843_v36  ;;  %v9442_v18 = vld [vmem:[#allocation3 + $0x2e8] sm:$0xff]  }
 0xe8a   :  { %9586 = vtanh.f32 %v5848_v44  ;;  %v5847_v14 = vadd.f32 %v5845_v25, %v5837_v63  ;;  %v11095_v36 = vpop.xlane.xlu1 %5059 }
 0xe8c   :  { %v5849_v54 = vmul.f32 0.7978846, %v5847_v14  ;;  %v6057_v14 = vld [vmem:[#allocation13 + $0x578] sm:$0xff] }
 0xe8d   :  { %8918 = vmatprep.subr.mxu0 %v6057_v14 }
 0xe8e   :  { %9588 = vtanh.f32 %v5849_v54  ;;  %v6056_v54 = vld [vmem:[#allocation13 + $0x570] sm:$0xff]  ;;  %8919 = vmatpush3.msra.mxu0 %v6057_v14 }
 0xe8f   :  { %8920 = vmatprep.subr.mxu0 %v6056_v54  ;;  %v6048_v14 = vld [vmem:[#allocation13 + $0x530] sm:$0xff] }
 0xe90   :  { %8921 = vmatpush3.msra.mxu0 %v6056_v54 }
 0xe97   :  { %v9587_v37 = vpop.eup %9586 }
 0xe98   :  { %v5852_v15 = vadd.f32 1.0, %v9587_v37 }
 0xe9a   :  { %v5854_v3 = vmul.f32 0.5, %v5852_v15  ;;  %v9444_v15 = vld [vmem:[#allocation3 + $0x2d8] sm:$0xff]  }
 0xe9b   :  { %v9589_v6 = vpop.eup %9588 }
 0xe9c   :  { %v5853_v23 = vadd.f32 1.0, %v9589_v6  ;;  %v5856_v9 = vmul.f32 %v5854_v3, %v5834_v11  ;;  %v7418_v11 = vld [vmem:[#allocation17 + $0x8] ss:$0 sm:$0xff]  ;;  %v6055_v3 = vld [vmem:[#allocation13 + $0x568] sm:$0xff] }
 0xe9d   :  { %8922 = vmatprep.subr.mxu0 %v6055_v3 }
 0xe9e   :  { %v5855_v5 = vmul.f32 0.5, %v5853_v23  ;;  %8923 = vmatpush3.msra.mxu0 %v6055_v3 }
 0xea0   :  { %v5857_v59 = vmul.f32 %v5855_v5, %v5837_v63  ;;  %v9443_v63 = vld [vmem:[#allocation3 + $0x2e0] sm:$0xff]   ;;  %v6054_v5 = vld [vmem:[#allocation13 + $0x560] sm:$0xff] }
 0xea1   :  { %8924 = vmatprep.subr.mxu0 %v6054_v5 }
 0xea2   :  { %v5858_v34 = vpack.c.bf16 %v5857_v59, %v5856_v9  ;;  %v9445_v59 = vld [vmem:[#allocation3 + $0x2d0] sm:$0xff]   ;;  %8925 = vmatpush3.msra.mxu0 %v6054_v5 }
 0xea4   :  { %8915 = vmatmul.mubr.bf16.vlgmr.msra.gmra.mxu1 %v5858_v34  ;;  %v6052_v34 = vld [vmem:[#allocation13 + $0x550] sm:$0xff] }
 0xea5   :  { %8954 = vmatpush3.bf16.msra.mxu1 %v9440_v61  ;;  %8969 = vmatprep.mubr.msk.bf16.mxu1 %vm10154_vm0, %v11422_v29  ;;  %v6053_v61 = vld [vmem:[#allocation13 + $0x558] sm:$0xff] }
 0xea6   :  { %8955 = vmatprep.subr.bf16.mxu1 %v11422_v29  ;;  %8926 = vmatprep.subr.mxu0 %v6053_v61 }
 0xea7   :  { %8927 = vmatpush3.msra.mxu0 %v6053_v61 }
 0xea8   :  { %8928 = vmatprep.subr.mxu0 %v6052_v34 }
 0xea9   :  { %8956 = vmatpush3.bf16.msra.mxu1 %v9441_v10  ;;  %v9446_v10 = vld [vmem:[#allocation3 + $0x2c8] sm:$0xff]   ;;  %8929 = vmatpush3.msra.mxu0 %v6052_v34 }
 0xeaa   :  { %8957 = vmatprep.subr.bf16.mxu1 %v11422_v29 }
 0xead   :  { %8958 = vmatpush3.bf16.msra.mxu1 %v9442_v18  ;;  %v6051_v18 = vld [vmem:[#allocation13 + $0x548] sm:$0xff] }
 0xeae   :  { %8959 = vmatprep.subr.bf16.mxu1 %v11422_v29  ;;  %v5220_v44 = vpop.xlane.xlu1 %5219  ;;  %8930 = vmatprep.subr.mxu0 %v6051_v18 }
 0xeaf   :  { %v5230_v25 = vadd.f32 %v7418_v11, %v5220_v44  ;;  %8931 = vmatpush3.msra.mxu0 %v6051_v18  ;;  %v6049_v44 = vld [vmem:[#allocation13 + $0x538] sm:$0xff] }
 0xeb1   :  { %8960 = vmatpush3.bf16.msra.mxu1 %v9443_v63  ;;  %v7420_v37 = vmul.f32 -1.442695, %v5230_v25  ;;  %v9447_v63 = vld [vmem:[#allocation3 + $0x2c0] sm:$0xff]  }
 0xeb2   :  { %8961 = vmatprep.subr.bf16.mxu1 %v11422_v29  ;;  %v5217_v6 = vpop.xlane.xlu1 %5216 }
 0xeb3   :  { %9590 = vpow2.f32 %v7420_v37  ;;  %v5229_v23 = vadd.f32 %v7418_v11, %v5217_v6  ;;  %v6050_v11 = vld [vmem:[#allocation13 + $0x540] sm:$0xff]  ;;  %v6047_v37 = vld [vmem:[#allocation13 + $0x528] sm:$0xff] }
 0xeb4   :  { %8932 = vmatprep.subr.mxu0 %v6050_v11  ;;  %v6046_v6 = vld [vmem:[#allocation13 + $0x520] sm:$0xff] }
 0xeb5   :  { %8962 = vmatpush3.bf16.msra.mxu1 %v9444_v15  ;;  %v7419_v9 = vmul.f32 -1.442695, %v5229_v23  ;;  %8933 = vmatpush3.msra.mxu0 %v6050_v11  ;;  %v6045_v23 = vld [vmem:[#allocation13 + $0x518] sm:$0xff] }
 0xeb6   :  { %8963 = vmatprep.subr.bf16.mxu1 %v11422_v29  ;;  %8934 = vmatprep.subr.mxu0 %v6049_v44 }
 0xeb7   :  { %9592 = vpow2.f32 %v7419_v9  ;;  %8935 = vmatpush3.msra.mxu0 %v6049_v44  ;;  %v11389_v9 = vunpack.i.h.bf16 %v10707_v12 }
 0xeb8   :  { %8936 = vmatprep.subr.mxu0 %v6048_v14 }
 0xeb9   :  { %8964 = vmatpush3.bf16.msra.mxu1 %v9445_v59  ;;  %8937 = vmatpush3.msra.mxu0 %v6048_v14  ;;  %v11388_v59 = vunpack.i.l.bf16 %v10707_v12 }
 0xeba   :  { %8965 = vmatprep.subr.bf16.mxu1 %v11422_v29  ;;  %8938 = vmatprep.subr.mxu0 %v6047_v37 }
 0xebb   :  { %8939 = vmatpush3.msra.mxu0 %v6047_v37 }
 0xebc   :  { %8940 = vmatprep.subr.mxu0 %v6046_v6 }
 0xebd   :  { %8966 = vmatpush3.bf16.msra.mxu1 %v9446_v10  ;;  %8941 = vmatpush3.msra.mxu0 %v6046_v6 }
 0xebe   :  { %8967 = vmatprep.subr.bf16.mxu1 %v11422_v29  ;;  %8942 = vmatprep.subr.mxu0 %v6045_v23 }
 0xebf   :  { %8943 = vmatpush3.msra.mxu0 %v6045_v23  ;;  %v6042_v23 = vld [vmem:[#allocation13 + $0x500] sm:$0xff] }
 0xec0   :  { %v9591_v25 = vpop.eup %9590 }
 0xec1   :  { %v5238_v54 = vadd.f32 1.0, %v9591_v25  ;;  %8968 = vmatpush3.bf16.msra.mxu1 %v9447_v63 }
 0xec3   :  { %9594 = vrcp.f32 %v5238_v54 }
 0xec4   :  { %v9593_v15 = vpop.eup %9592  ;;  %8970 = vmatmul.mubr.bf16.vlgmr.msra.gmra.mxu1 %v10998_v56 }
 0xec5   :  { %v5237_v3 = vadd.f32 1.0, %v9593_v15  ;;  %v6044_v15 = vld [vmem:[#allocation13 + $0x510] sm:$0xff] }
 0xec6   :  { %8944 = vmatprep.subr.mxu0 %v6044_v15 }
 0xec7   :  { %9596 = vrcp.f32 %v5237_v3  ;;  %8945 = vmatpush3.msra.mxu0 %v6044_v15  ;;  %v6043_v3 = vld [vmem:[#allocation13 + $0x508] sm:$0xff]  ;;  %v7466_v15 = vld [vmem:[#allocation10 + $0xa] ss:$0 sm:$0xff] }
 0xec8   :  { %8946 = vmatprep.subr.mxu0 %v6043_v3 }
 0xec9   :  { %8947 = vmatpush3.msra.mxu0 %v6043_v3 }
 0xeca   :  { %8948 = vmatprep.subr.mxu0 %v6042_v23 }
 0xecb   :  { %8949 = vmatpush3.msra.mxu0 %v6042_v23 }
 0xecc   :  { %8973 = vmatprep.subr.bf16.mxu0 %v11422_v29 }
 0xed0   :  { %v9595_v5 = vpop.eup %9594 }
 0xed1   :  { %v5244_v61 = vmul.f32 %v9595_v5, %v11389_v9  ;;  %v7443_v5 = vld [vmem:[#allocation14 + $0x9] ss:$0 sm:$0xff] }
 0xed3   :  { %v5248_v10 = vsel %vm861_vm12, %v5244_v61, 0.0 }
 0xed4   :  { %v9597_v56 = vpop.eup %9596 }
 0xed5   :  { %v5243_v34 = vmul.f32 %v9597_v56, %v11388_v59 }
 0xed7   :  { %v5247_v18 = vsel %vm861_vm12, %v5243_v34, 0.0  ;;  %v7444_v34 = vld [vmem:[#allocation16 + $0x9] ss:$0 sm:$0xff] }
 0xed8   :  { %v5249_v11 = vadd.f32 %v5248_v10, %v5247_v18 }
 0xeda   :  { %v5250_v63 = vrot.slane %v5249_v11, 4 }
 0xedc   :  { %v5251_v44 = vadd.f32 %v5250_v63, %v5249_v11 }
 0xede   :  { %v5252_v25 = vrot.slane %v5251_v44, 2 }
 0xee0   :  { %v5253_v14 = vadd.f32 %v5252_v25, %v5251_v44 }
 0xee2   :  { %v5254_v54 = vrot.slane %v5253_v14, 1 }
 0xee4   :  { %v5255_v37 = vadd.f32 %v5254_v54, %v5253_v14  ;;  %v7457_v54 = vld [vmem:[#allocation8 + $0xa] ss:$0 sm:$0xff] }
 0xee6   :  { %v11113_v6 = vadd.f32 %v5255_v37, %v11023_v27 }
 0xf24   :  { %v8877_v61 = vpop.f32.mrf.mxu1 }
 0xf25   :  { %v5669_v56 = vadd.f32 %v8877_v61, %v7443_v5 }
 0xf26   :  { %v5663_v10 = vpop.f32.mrf.mxu1 }
 0xf27   :  { %v5673_v18 = vmax.f32 %v5669_v56, 0.0  ;;  %v5664_v11 = vadd.f32 %v7443_v5, %v5663_v10  ;;  %v9448_v5 = vld [vmem:[#allocation7 + $0x2f8] sm:$0xff]  }
 0xf29   :  { %v5683_v63 = vmul.f32 %v7444_v34, %v5673_v18  ;;  %v5672_v44 = vmax.f32 %v5664_v11, 0.0 }
 0xf2b   :  { %v5682_v27 = vmul.f32 %v7444_v34, %v5672_v44  ;;  %v5687_v25 = vsel %vm981_vm2, %v5683_v63, 0.0  ;;  %v9449_v63 = vld [vmem:[#allocation7 + $0x2f0] sm:$0xff]  }
 0xf2c   :  { %5688 = vadd.xlane.f32.xlu1 %v5687_v25  ;;  %v9453_v44 = vld [vmem:[#allocation7 + $0x2d0] sm:$0xff]   ;;  %v7475_v25 = vld [vmem:[#allocation5 + $0xb] ss:$0 sm:$0xff] }
 0xf2d   :  { %v5684_v14 = vsel %vm981_vm2, %v5682_v27, 0.0  ;;  %v9454_v27 = vld [vmem:[#allocation7 + $0x2c8] sm:$0xff]  }
 0xf30   :  { %5685 = vadd.xlane.f32.xlu1 %v5684_v14 }
 0xf64   :  { %v5966_v37 = vpop.f32.mrf.mxu1 }
 0xf65   :  { %v5967_v3 = vadd.f32 %v7457_v54, %v5966_v37 }
 0xf66   :  { %v8916_v23 = vpop.f32.mrf.mxu1 }
 0xf67   :  { %v5981_v61 = vmul.f32 %v10801_v40, %v5967_v3  ;;  %8950 = vmatprep.mubr.f32.mxu0 %v5967_v3  ;;  %v5993_v59 = vmul.f32 %v7466_v15, %v5967_v3  ;;  %v9450_v40 = vld [vmem:[#allocation7 + $0x2e8] sm:$0xff]  }
 0xf68   :  { %v5969_v56 = vpop.f32.mrf.mxu1 }
 0xf69   :  { %v11119_v10 = vadd.f32 %v7457_v54, %v5969_v56  ;;  %5995 = vadd.xlane.f32.xlu0 %v5993_v59  ;;  %v11122_v34 = vadd.f32 %v5981_v61, %v11074_v50  ;;  %v9451_v50 = vld [vmem:[#allocation7 + $0x2e0] sm:$0xff]   ;;  %v9452_v59 = vld [vmem:[#allocation7 + $0x2d8] sm:$0xff]  }
 0xf6a   :  { %v8917_v18 = vpop.f32.mrf.mxu1  ;;  %v9455_v54 = vld [vmem:[#allocation7 + $0x2c0] sm:$0xff]  }
 0xf6b   :  { %11430 = vst [vmem:[#allocation62_spill] sm:$0xff] %v11119_v10  ;;  %v5994_v11 = vmul.f32 %v7466_v15, %v11119_v10  ;;  %8951 = vmatmul.mubr.f32.vlgmr.msra.gmra.mxu0 %v11119_v10 }
 0xf6c   :  { %8974 = vmatpush3.bf16.msra.mxu0 %v9448_v5  ;;  %8989 = vmatprep.mubr.msk.bf16.mxu0 %vm10154_vm0, %v11422_v29  ;;  %vm7001_vm0 = vcmask 64568  }
 0xf6d   :  { %5997 = vadd.xlane.f32.xlu1 %v5994_v11  ;;  %8975 = vmatprep.subr.bf16.mxu0 %v11422_v29 }
 0xf70   :  { %8976 = vmatpush3.bf16.msra.mxu0 %v9449_v63 }
 0xf71   :  { %8977 = vmatprep.subr.bf16.mxu0 %v11422_v29 }
 0xf74   :  { %8978 = vmatpush3.bf16.msra.mxu0 %v9450_v40 }
 0xf75   :  { %8979 = vmatprep.subr.bf16.mxu0 %v11422_v29 }
 0xf78   :  { %8980 = vmatpush3.bf16.msra.mxu0 %v9451_v50 }
 0xf79   :  { %8981 = vmatprep.subr.bf16.mxu0 %v11422_v29 }
 0xf7c   :  { %8982 = vmatpush3.bf16.msra.mxu0 %v9452_v59 }
 0xf7d   :  { %8983 = vmatprep.subr.bf16.mxu0 %v11422_v29 }
 0xf80   :  { %8984 = vmatpush3.bf16.msra.mxu0 %v9453_v44 }
 0xf81   :  { %8985 = vmatprep.subr.bf16.mxu0 %v11422_v29 }
 0xf84   :  { %v6302_v14 = vpop.f32.mrf.mxu1  ;;  %8986 = vmatpush3.bf16.msra.mxu0 %v9454_v27 }
 0xf85   :  { %v6303_v37 = vadd.f32 %v7475_v25, %v6302_v14  ;;  %8987 = vmatprep.subr.bf16.mxu0 %v11422_v29 }
 0xf86   :  { %v8971_v15 = vpop.f32.mrf.mxu1 }
 0xf87   :  { %v6309_v3 = vmul.f32 %v6303_v37, %v6303_v37 }
 0xf88   :  { %v6305_v23 = vpop.f32.mrf.mxu1  ;;  %8988 = vmatpush3.bf16.msra.mxu0 %v9455_v54 }
 0xf89   :  { %v6311_v61 = vmul.f32 %v6309_v3, %v6303_v37  ;;  %v6306_v56 = vadd.f32 %v7475_v25, %v6305_v23  ;;  %v11135_v23 = vpop.xlane.xlu1 %5528 }
 0xf8a   :  { %v8972_v5 = vpop.f32.mrf.mxu1 }
 0xf8b   :  { %v6313_v18 = vmul.f32 0.044715, %v6311_v61  ;;  %v6310_v11 = vmul.f32 %v6306_v56, %v6306_v56  ;;  %v7445_v61 = vld [vmem:[#allocation17 + $0x9] ss:$0 sm:$0xff] }
 0xf8d   :  { %v6315_v63 = vadd.f32 %v6313_v18, %v6303_v37  ;;  %v6312_v40 = vmul.f32 %v6310_v11, %v6306_v56  ;;  %v6526_v11 = vld [vmem:[#allocation13 + $0x5f8] sm:$0xff] }
 0xf8e   :  { %8993 = vmatprep.subr.mxu1 %v6526_v11 }
 0xf8f   :  { %v6317_v50 = vmul.f32 0.7978846, %v6315_v63  ;;  %v6314_v59 = vmul.f32 0.044715, %v6312_v40  ;;  %v6679_v63 = vld [vmem:[#allocation25 + $0x78] sm:$0xff]  ;;  %v6525_v40 = vld [vmem:[#allocation13 + $0x5f0] sm:$0xff]  ;;  %8994 = vmatpush3.msra.mxu1 %v6526_v11 }
 0xf90   :  { %9028 = vmatprep.subr.mxu0 %v6679_v63  ;;  %8995 = vmatprep.subr.mxu1 %v6525_v40  ;;  %v6671_v11 = vld [vmem:[#allocation25 + $0x38] sm:$0xff] }
 0xf91   :  { %9598 = vtanh.f32 %v6317_v50  ;;  %v6316_v44 = vadd.f32 %v6314_v59, %v6306_v56  ;;  %v6678_v59 = vld [vmem:[#allocation25 + $0x70] sm:$0xff]  ;;  %8996 = vmatpush3.msra.mxu1 %v6525_v40 }
 0xf92   :  { %v6517_v40 = vld [vmem:[#allocation13 + $0x5b0] sm:$0xff] }
 0xf93   :  { %v6318_v27 = vmul.f32 0.7978846, %v6316_v44 }
 0xf95   :  { %9600 = vtanh.f32 %v6318_v27 }
 0xf9e   :  { %v9599_v14 = vpop.eup %9598 }
 0xf9f   :  { %v6321_v9 = vadd.f32 1.0, %v9599_v14  ;;  %v6522_v14 = vld [vmem:[#allocation13 + $0x5d8] sm:$0xff] }
 0xfa1   :  { %v6323_v15 = vmul.f32 0.5, %v6321_v9  ;;  %v6524_v9 = vld [vmem:[#allocation13 + $0x5e8] sm:$0xff] }
 0xfa2   :  { %v9601_v29 = vpop.eup %9600  ;;  %8997 = vmatprep.subr.mxu1 %v6524_v9 }
 0xfa3   :  { %v6322_v10 = vadd.f32 1.0, %v9601_v29  ;;  %v6325_v54 = vmul.f32 %v6323_v15, %v6303_v37  ;;  %v6523_v37 = vld [vmem:[#allocation13 + $0x5e0] sm:$0xff]  ;;  %8998 = vmatpush3.msra.mxu1 %v6524_v9  ;;  %v6521_v15 = vld [vmem:[#allocation13 + $0x5d0] sm:$0xff] }
 0xfa4   :  { %v6675_v29 = vld [vmem:[#allocation25 + $0x58] sm:$0xff]  ;;  %8999 = vmatprep.subr.mxu1 %v6523_v37  ;;  %v6669_v9 = vld [vmem:[#allocation25 + $0x28] sm:$0xff] }
 0xfa5   :  { %v6324_v21 = vmul.f32 0.5, %v6322_v10  ;;  %v6677_v10 = vld [vmem:[#allocation25 + $0x68] sm:$0xff]  ;;  %9000 = vmatpush3.msra.mxu1 %v6523_v37  ;;  %v6668_v37 = vld [vmem:[#allocation25 + $0x20] sm:$0xff] }
 0xfa6   :  { %9001 = vmatprep.subr.mxu1 %v6522_v14 }
 0xfa7   :  { %v6326_v3 = vmul.f32 %v6324_v21, %v6306_v56  ;;  %v6676_v56 = vld [vmem:[#allocation25 + $0x60] sm:$0xff]  ;;  %9002 = vmatpush3.msra.mxu1 %v6522_v14  ;;  %v6667_v14 = vld [vmem:[#allocation25 + $0x18] sm:$0xff] }
 0xfa8   :  { %9003 = vmatprep.subr.mxu1 %v6521_v15 }
 0xfa9   :  { %v6327_v25 = vpack.c.bf16 %v6326_v3, %v6325_v54  ;;  %v6674_v54 = vld [vmem:[#allocation25 + $0x50] sm:$0xff]  ;;  %v6520_v3 = vld [vmem:[#allocation13 + $0x5c8] sm:$0xff]  ;;  %9004 = vmatpush3.msra.mxu1 %v6521_v15  ;;  %v9210_v15 = vunpack.i.h.bf16 %v10709_v31 }
 0xfaa   :  { %9005 = vmatprep.subr.mxu1 %v6520_v3 }
 0xfab   :  { %8990 = vmatmul.mubr.bf16.vlgmr.msra.gmra.mxu0 %v6327_v25  ;;  %v6673_v25 = vld [vmem:[#allocation25 + $0x48] sm:$0xff]  ;;  %9006 = vmatpush3.msra.mxu1 %v6520_v3 }
 0xfac   :  { %9029 = vmatpush3.msra.mxu0 %v6679_v63 }
 0xfad   :  { %9030 = vmatprep.subr.mxu0 %v6678_v59 }
 0xfae   :  { %9031 = vmatpush3.msra.mxu0 %v6678_v59 }
 0xfaf   :  { %9032 = vmatprep.subr.mxu0 %v6677_v10 }
 0xfb0   :  { %9033 = vmatpush3.msra.mxu0 %v6677_v10 }
 0xfb1   :  { %9034 = vmatprep.subr.mxu0 %v6676_v56 }
 0xfb2   :  { %9035 = vmatpush3.msra.mxu0 %v6676_v56 }
 0xfb3   :  { %9036 = vmatprep.subr.mxu0 %v6675_v29 }
 0xfb4   :  { %9037 = vmatpush3.msra.mxu0 %v6675_v29 }
 0xfb5   :  { %v5689_v5 = vpop.xlane.xlu1 %5688  ;;  %9038 = vmatprep.subr.mxu0 %v6674_v54 }
 0xfb6   :  { %v5699_v18 = vadd.f32 %v7445_v61, %v5689_v5  ;;  %9039 = vmatpush3.msra.mxu0 %v6674_v54  ;;  %v6672_v5 = vld [vmem:[#allocation25 + $0x40] sm:$0xff]  ;;  %v11393_v54 = vunpack.i.l.bf16 %v10709_v31 }
 0xfb7   :  { %9040 = vmatprep.subr.mxu0 %v6673_v25 }
 0xfb8   :  { %v7447_v50 = vmul.f32 -1.442695, %v5699_v18  ;;  %9041 = vmatpush3.msra.mxu0 %v6673_v25  ;;  %v6518_v18 = vld [vmem:[#allocation13 + $0x5b8] sm:$0xff] }
 0xfb9   :  { %v5686_v44 = vpop.xlane.xlu1 %5685  ;;  %9042 = vmatprep.subr.mxu0 %v6672_v5 }
 0xfba   :  { %9602 = vpow2.f32 %v7447_v50  ;;  %v5698_v21 = vadd.f32 %v7445_v61, %v5686_v44  ;;  %v6519_v61 = vld [vmem:[#allocation13 + $0x5c0] sm:$0xff]  ;;  %9043 = vmatpush3.msra.mxu0 %v6672_v5  ;;  %v6670_v50 = vld [vmem:[#allocation25 + $0x30] sm:$0xff]  ;;  %v6516_v44 = vld [vmem:[#allocation13 + $0x5a8] sm:$0xff] }
 0xfbb   :  { %9007 = vmatprep.subr.mxu1 %v6519_v61  ;;  %9044 = vmatprep.subr.mxu0 %v6671_v11 }
 0xfbc   :  { %v7446_v27 = vmul.f32 -1.442695, %v5698_v21  ;;  %9008 = vmatpush3.msra.mxu1 %v6519_v61  ;;  %9045 = vmatpush3.msra.mxu0 %v6671_v11  ;;  %v6515_v21 = vld [vmem:[#allocation13 + $0x5a0] sm:$0xff] }
 0xfbd   :  { %9009 = vmatprep.subr.mxu1 %v6518_v18  ;;  %9046 = vmatprep.subr.mxu0 %v6670_v50 }
 0xfbe   :  { %9604 = vpow2.f32 %v7446_v27  ;;  %9010 = vmatpush3.msra.mxu1 %v6518_v18  ;;  %9047 = vmatpush3.msra.mxu0 %v6670_v50  ;;  %v6514_v27 = vld [vmem:[#allocation13 + $0x598] sm:$0xff] }
 0xfbf   :  { %9011 = vmatprep.subr.mxu1 %v6517_v40  ;;  %9048 = vmatprep.subr.mxu0 %v6669_v9 }
 0xfc0   :  { %9012 = vmatpush3.msra.mxu1 %v6517_v40  ;;  %9049 = vmatpush3.msra.mxu0 %v6669_v9  ;;  %v6513_v9 = vld [vmem:[#allocation13 + $0x590] sm:$0xff] }
 0xfc1   :  { %9013 = vmatprep.subr.mxu1 %v6516_v44  ;;  %9050 = vmatprep.subr.mxu0 %v6668_v37 }
 0xfc2   :  { %9014 = vmatpush3.msra.mxu1 %v6516_v44  ;;  %9051 = vmatpush3.msra.mxu0 %v6668_v37  ;;  %v6512_v37 = vld [vmem:[#allocation13 + $0x588] sm:$0xff] }
 0xfc3   :  { %9015 = vmatprep.subr.mxu1 %v6515_v21  ;;  %9052 = vmatprep.subr.mxu0 %v6667_v14 }
 0xfc4   :  { %9016 = vmatpush3.msra.mxu1 %v6515_v21  ;;  %9053 = vmatpush3.msra.mxu0 %v6667_v14  ;;  %v6511_v14 = vld [vmem:[#allocation13 + $0x580] sm:$0xff] }
 0xfc5   :  { %9017 = vmatprep.subr.mxu1 %v6514_v27 }
 0xfc6   :  { %9018 = vmatpush3.msra.mxu1 %v6514_v27 }
 0xfc7   :  { %v9603_v63 = vpop.eup %9602  ;;  %9019 = vmatprep.subr.mxu1 %v6513_v9 }
 0xfc8   :  { %v5707_v59 = vadd.f32 1.0, %v9603_v63  ;;  %9020 = vmatpush3.msra.mxu1 %v6513_v9 }
 0xfc9   :  { %9021 = vmatprep.subr.mxu1 %v6512_v37 }
 0xfca   :  { %9606 = vrcp.f32 %v5707_v59  ;;  %9022 = vmatpush3.msra.mxu1 %v6512_v37  ;;  %v7493_v37 = vld [vmem:[#allocation10 + $0xb] ss:$0 sm:$0xff] }
 0xfcb   :  { %v9605_v10 = vpop.eup %9604  ;;  %9023 = vmatprep.subr.mxu1 %v6511_v14 }
 0xfcc   :  { %v5706_v56 = vadd.f32 1.0, %v9605_v10  ;;  %v6666_v10 = vld [vmem:[#allocation25 + $0x10] sm:$0xff]  ;;  %9024 = vmatpush3.msra.mxu1 %v6511_v14 }
 0xfcd   :  { %9054 = vmatprep.subr.mxu0 %v6666_v10 }
 0xfce   :  { %9608 = vrcp.f32 %v5706_v56  ;;  %9055 = vmatpush3.msra.mxu0 %v6666_v10  ;;  %v6665_v56 = vld [vmem:[#allocation25 + $0x8] sm:$0xff]  ;;  %v7484_v10 = vld [vmem:[#allocation8 + $0xb] ss:$0 sm:$0xff] }
 0xfcf   :  { %9056 = vmatprep.subr.mxu0 %v6665_v56 }
 0xfd0   :  { %9057 = vmatpush3.msra.mxu0 %v6665_v56 }
 0xfd7   :  { %v9607_v29 = vpop.eup %9606 }
 0xfd8   :  { %v5713_v3 = vmul.f32 %v9607_v29, %v9210_v15  ;;  %v6664_v29 = vld [vmem:[#allocation25] sm:$0xff] }
 0xfd9   :  { %9058 = vmatprep.subr.mxu0 %v6664_v29 }
 0xfda   :  { %v5717_v18 = vsel %vm861_vm12, %v5713_v3, 0.0  ;;  %9059 = vmatpush3.msra.mxu0 %v6664_v29  ;;  %v11392_v3 = vmov 11  }
 0xfdb   :  { %v9609_v25 = vpop.eup %9608  ;;  %9237 = vset.pattern.permute.xlu1 %v11392_v3  ;;  %9248 = vset.pattern.permute.xlu0 %v11392_v3 }
 0xfdc   :  { %v5712_v61 = vmul.f32 %v9609_v25, %v11393_v54  ;;  %v7470_v25 = vld [vmem:[#allocation14 + $0xa] ss:$0 sm:$0xff] }
 0xfde   :  { %v5716_v5 = vsel %vm861_vm12, %v5712_v61, 0.0 }
 0xfdf   :  { %v5718_v11 = vadd.f32 %v5717_v18, %v5716_v5 }
 0xfe1   :  { %v5719_v63 = vrot.slane %v5718_v11, 4 }
 0xfe3   :  { %v5720_v40 = vadd.f32 %v5719_v63, %v5718_v11 }
 0xfe5   :  { %v5721_v50 = vrot.slane %v5720_v40, 2 }
 0xfe7   :  { %v5722_v59 = vadd.f32 %v5721_v50, %v5720_v40 }
 0xfe9   :  { %v5723_v44 = vrot.slane %v5722_v59, 1 }
 0xfeb   :  { %v5724_v21 = vadd.f32 %v5723_v44, %v5722_v59 }
 0xfed   :  { %v11146_v27 = vadd.f32 %v5724_v21, %v11113_v6  ;;  %v7471_v6 = vld [vmem:[#allocation16 + $0xa] ss:$0 sm:$0xff] }
0x102b   :  { %v8952_v61 = vpop.f32.mrf.mxu0 }
0x102c   :  { %v6138_v5 = vadd.f32 %v8952_v61, %v7470_v25 }
0x102d   :  { %v6132_v18 = vpop.f32.mrf.mxu0 }
0x102e   :  { %v6142_v11 = vmax.f32 %v6138_v5, 0.0  ;;  %v6133_v63 = vadd.f32 %v7470_v25, %v6132_v18  ;;  %v11432_v18 = vmov 1  }
0x1030   :  { %v6152_v40 = vmul.f32 %v7471_v6, %v6142_v11  ;;  %v6141_v50 = vmax.f32 %v6133_v63, 0.0  ;;  %v7013_v11 = vsel %vm7011_vm14, %v10587_v49, 0.0  ;;  %v7012_v63 = vsel %vm7011_vm14, %v10577_v41, 0.0 }
0x1032   :  { %v6151_v59 = vmul.f32 %v7471_v6, %v6141_v50  ;;  %v6156_v44 = vsel %vm981_vm2, %v6152_v40, 0.0  ;;  %v7014_v40 = vadd.f32 %v7013_v11, %v7012_v63 }
0x1033   :  { %6157 = vadd.xlane.f32.xlu1 %v6156_v44 }
0x1034   :  { %v6153_v9 = vsel %vm981_vm2, %v6151_v59, 0.0  ;;  %v7015_v50 = vrot.slane %v7014_v40, 4 }
0x1036   :  { %v7016_v59 = vadd.f32 %v7015_v50, %v7014_v40  ;;  %v7243_v50 = vld [vmem:[#allocation11 + $0x2] ss:$0 sm:$0xff] }
0x1037   :  { %6154 = vadd.xlane.f32.xlu1 %v6153_v9  ;;  %v6767_v9 = vld [vmem:[%s11431_s14 + $0x18] sm:$0xff] }
0x1038   :  { %v7017_v44 = vrot.slane %v7016_v59, 2  ;;  %9063 = vmatprep.subr.mxu1 %v6767_v9 }
0x106b   :  { %v6435_v21 = vpop.f32.mrf.mxu0 }
0x106c   :  { %v11152_v56 = vadd.f32 %v7484_v10, %v6435_v21  ;;  %v6765_v21 = vld [vmem:[%s11431_s14 + $0x8] sm:$0xff] }
0x106d   :  { %v8991_v14 = vpop.f32.mrf.mxu0 }
0x106e   :  { %9025 = vmatprep.mubr.f32.mxu1 %v11152_v56  ;;  %9060 = vmatprep.mubr.f32.mxu0 %v11152_v56  ;;  %v6462_v29 = vmul.f32 %v7493_v37, %v11152_v56 }
0x106f   :  { %v6438_v25 = vpop.f32.mrf.mxu0 }
0x1070   :  { %v11157_v61 = vadd.f32 %v7484_v10, %v6438_v25  ;;  %6464 = vadd.xlane.f32.xlu1 %v6462_v29  ;;  %v7018_v10 = vadd.f32 %v7017_v44, %v7016_v59  ;;  %v11174_v29 = vpop.xlane.xlu1 %5997  ;;  %v6764_v25 = vld [vmem:[%s11431_s14] sm:$0xff] }
0x1071   :  { %v8992_v5 = vpop.f32.mrf.mxu0 }
0x1072   :  { %9026 = vmatmul.mubr.f32.vlgmr.msra.gmra.mxu1 %v11157_v61  ;;  %9061 = vmatmul.mubr.f32.vlgmr.msra.gmra.mxu0 %v11157_v61  ;;  %v6463_v6 = vmul.f32 %v7493_v37, %v11157_v61  ;;  %v7019_v5 = vrot.slane %v7018_v10, 1 }
0x1073   :  { %9064 = vmatpush3.msra.mxu1 %v6767_v9 }
0x1074   :  { %6466 = vadd.xlane.f32.xlu0 %v6463_v6  ;;  %v7212_v6 = vld [vmem:[#allocation11 + $0x1] ss:$0 sm:$0xff] }
0x1075   :  { %v1305_v63 = vadd.f32 %v7212_v6, %v10570_v30 }
0x1077   :  { %v7214_v9 = vmul.f32 -1.442695, %v1305_v63 }
0x1081   :  { %9239 = vperm.xlu1 %9237, %v10591_v51  }
0x1085   :  { %9244 = vrot.lane.b32.xlu1 %v10591_v51, %s10177_s24  ;;  %v7185_v51 = vld [vmem:[#allocation11] ss:$0 sm:$0xff] }
0x1086   :  { %v843_v37 = vadd.f32 %v7185_v51, %v10510_v8  ;;  %v844_v14 = vadd.f32 %v7185_v51, %v10508_v7  ;;  %v7020_v8 = vadd.f32 %v7019_v5, %v7018_v10  ;;  %v2014_v7 = vadd.f32 %v7243_v50, %v10804_v4 }
0x1088   :  { %v7186_v11 = vmul.f32 -1.442695, %v843_v37  ;;  %v7187_v40 = vmul.f32 -1.442695, %v844_v14  ;;  %v2471_v37 = vpop.xlane.xlu0 %2470  ;;  %v7245_v30 = vmul.f32 -1.442695, %v2014_v7 }
0x108a   :  { %6443 = vperm.xlu0 %9248, %v10648_v52   ;;  %v6766_v52 = vld [vmem:[%s11431_s14 + $0x10] sm:$0xff]  ;;  %9610 = vpow2.f32 %v7186_v11 }
0x108b   :  { %9065 = vmatprep.subr.mxu1 %v6766_v52  ;;  %9612 = vpow2.f32 %v7187_v40  ;;  %v1304_v40 = vadd.f32 %v7212_v6, %v10567_v19 }
0x108c   :  { %9066 = vmatpush3.msra.mxu1 %v6766_v52  ;;  %v2940_v10 = vpop.xlane.xlu0 %2939 }
0x108d   :  { %9067 = vmatprep.subr.mxu1 %v6765_v21 }
0x108e   :  { %9252 = vset.pattern.permute.xlu0 %v11432_v18  ;;  %9068 = vmatpush3.msra.mxu1 %v6765_v21  ;;  %v7472_v18 = vld [vmem:[#allocation17 + $0xa] ss:$0 sm:$0xff]  ;;  %v2013_v21 = vadd.f32 %v7243_v50, %v10758_v20  ;;  %v7270_v20 = vld [vmem:[#allocation11 + $0x3] ss:$0 sm:$0xff] }
0x108f   :  { %9069 = vmatprep.subr.mxu1 %v6764_v25  ;;  %v2483_v7 = vadd.f32 %v7270_v20, %v10858_v39 }
0x1090   :  { %9070 = vmatpush3.msra.mxu1 %v6764_v25  ;;  %v3409_v4 = vpop.xlane.xlu0 %3408 }
0x1091   :  { %v7272_v6 = vmul.f32 -1.442695, %v2483_v7 }
0x1094   :  { %v3878_v50 = vpop.xlane.xlu0 %3877 }
0x1097   :  { %v9611_v5 = vpop.eup %9610 }
0x1098   :  { %v9613_v11 = vpop.eup %9612 }
0x10a9   :  { %6988 = vadd.xlane.f32.xlu0 %v10577_v41 }
0x10bc   :  { %v6158_v59 = vpop.xlane.xlu1 %6157 }
0x10bd   :  { %v6168_v44 = vadd.f32 %v7472_v18, %v6158_v59  ;;  %v7244_v59 = vmul.f32 -1.442695, %v2013_v21 }
0x10bf   :  { %v7474_v51 = vmul.f32 -1.442695, %v6168_v44  ;;  %7082 = vperm.xlu0 %9252, %v7020_v8  }
0x10c0   :  { %v6155_v52 = vpop.xlane.xlu1 %6154 }
0x10c1   :  { %9614 = vpow2.f32 %v7474_v51  ;;  %v6167_v25 = vadd.f32 %v7472_v18, %v6155_v52  ;;  %v851_v18 = vadd.f32 1.0, %v9611_v5  ;;  %v2482_v51 = vadd.f32 %v7270_v20, %v2471_v37  ;;  %v7297_v52 = vld [vmem:[#allocation11 + $0x4] ss:$0 sm:$0xff]  ;;  %v7351_v20 = vld [vmem:[#allocation11 + $0x6] ss:$0 sm:$0xff] }
0x10c2   :  { %9616 = vpow2.f32 %v7214_v9  ;;  %v852_v9 = vadd.f32 1.0, %v9613_v11  ;;  %v2951_v5 = vadd.f32 %v7297_v52, %v2940_v10  ;;  %v3889_v10 = vadd.f32 %v7351_v20, %v3878_v50 }
0x10c3   :  { %v7473_v14 = vmul.f32 -1.442695, %v6167_v25  ;;  %9254 = vset.pattern.permute.xlu0 %v11392_v3  ;;  %v7213_v25 = vmul.f32 -1.442695, %v1304_v40  ;;  %v7271_v54 = vmul.f32 -1.442695, %v2482_v51 }
0x10c5   :  { %9618 = vpow2.f32 %v7473_v14  ;;  %v4347_v14 = vpop.xlane.xlu0 %4346 }
0x10c6   :  { %9620 = vpow2.f32 %v7245_v30  ;;  %v2952_v30 = vadd.f32 %v7297_v52, %v10902_v38  ;;  %v7413_v52 = vld [vmem:[#allocation11 + $0x8] ss:$0 sm:$0xff] }
0x10c7   :  { %9622 = vpow2.f32 %v7244_v59 }
0x10c8   :  { %v7299_v39 = vmul.f32 -1.442695, %v2952_v30 }
0x10c9   :  { %v5058_v40 = vpop.xlane.xlu0 %5057 }
0x10ce   :  { %v9615_v63 = vpop.eup %9614 }
0x10cf   :  { %v6176_v44 = vadd.f32 1.0, %v9615_v63  ;;  %v9617_v8 = vpop.eup %9616  ;;  %v7324_v63 = vld [vmem:[#allocation11 + $0x5] ss:$0 sm:$0xff] }
0x10d0   :  { %v1313_v59 = vadd.f32 1.0, %v9617_v8  ;;  %v3421_v37 = vadd.f32 %v7324_v63, %v10942_v46  ;;  %v3890_v8 = vadd.f32 %v7351_v20, %v10969_v33  ;;  %v7352_v33 = vmul.f32 -1.442695, %v3889_v10 }
0x10d1   :  { %9624 = vrcp.f32 %v6176_v44  ;;  %v3420_v44 = vadd.f32 %v7324_v63, %v3409_v4  ;;  %v5070_v4 = vadd.f32 %v7413_v52, %v11095_v36  ;;  %v9215_v63 = vunpack.i.h.bf16 %v10716_v32 }
0x10d2   :  { %v9619_v21 = vpop.eup %9618  ;;  %9626 = vrcp.f32 %v851_v18  ;;  %v7298_v18 = vmul.f32 -1.442695, %v2951_v5  ;;  %v7353_v30 = vmul.f32 -1.442695, %v3890_v8  ;;  %v7467_v5 = vld [vmem:[#allocation11 + $0xa] ss:$0 sm:$0xff]  ;;  %v9214_v36 = vunpack.i.l.bf16 %v10716_v32 }
0x10d3   :  { %v6175_v3 = vadd.f32 1.0, %v9619_v21  ;;  %v9621_v19 = vpop.eup %9620  ;;  %9628 = vrcp.f32 %v852_v9  ;;  %v7378_v9 = vld [vmem:[#allocation11 + $0x7] ss:$0 sm:$0xff]  ;;  %v5527_v21 = vpop.xlane.xlu0 %5526  ;;  %v7325_v46 = vmul.f32 -1.442695, %v3420_v44  ;;  %v6008_v20 = vadd.f32 %v7467_v5, %v11174_v29 }
0x10d4   :  { %v9623_v11 = vpop.eup %9622  ;;  %v2022_v38 = vadd.f32 1.0, %v9621_v19  ;;  %v4359_v51 = vadd.f32 %v7378_v9, %v11009_v2  ;;  %v5069_v19 = vadd.f32 %v7413_v52, %v5058_v40 }
0x10d5   :  { %9630 = vrcp.f32 %v6175_v3  ;;  %v2021_v7 = vadd.f32 1.0, %v9623_v11  ;;  %v7326_v3 = vmul.f32 -1.442695, %v3421_v37  ;;  %v7415_v37 = vmul.f32 -1.442695, %v5070_v4 }
0x10d6   :  { %9632 = vpow2.f32 %v7213_v25  ;;  %v4358_v25 = vadd.f32 %v7378_v9, %v4347_v14  ;;  %v7469_v29 = vmul.f32 -1.442695, %v6008_v20 }
0x10d7   :  { %9634 = vrcp.f32 %v1313_v59  ;;  %v7440_v59 = vld [vmem:[#allocation11 + $0x9] ss:$0 sm:$0xff]  ;;  %v5996_v2 = vpop.xlane.xlu0 %5995 }
0x10d8   :  { %9636 = vpow2.f32 %v7272_v6  ;;  %v5539_v50 = vadd.f32 %v7440_v59, %v11135_v23  ;;  %v7379_v11 = vmul.f32 -1.442695, %v4358_v25  ;;  %v5538_v14 = vadd.f32 %v7440_v59, %v5527_v21 }
0x10d9   :  { %9638 = vpow2.f32 %v7271_v54  ;;  %v7380_v54 = vmul.f32 -1.442695, %v4359_v51  ;;  %v6007_v23 = vadd.f32 %v7467_v5, %v5996_v2 }
0x10da   :  { %9640 = vpow2.f32 %v7299_v39  ;;  %v7442_v8 = vmul.f32 -1.442695, %v5539_v50 }
0x10db   :  { %9642 = vrcp.f32 %v2022_v38  ;;  %v7414_v38 = vmul.f32 -1.442695, %v5069_v19  ;;  %v7468_v52 = vmul.f32 -1.442695, %v6007_v23 }
0x10dc   :  { %9644 = vpow2.f32 %v7298_v18 }
0x10dd   :  { %9646 = vrcp.f32 %v2021_v7  ;;  %v7441_v7 = vmul.f32 -1.442695, %v5538_v14 }
0x10de   :  { %v9625_v6 = vpop.eup %9624  ;;  %9648 = vpow2.f32 %v7326_v3 }
0x10df   :  { %9650 = vpow2.f32 %v7325_v46  ;;  %v11190_v39 = vpop.eup %9626  ;;  %v6182_v44 = vmul.f32 %v9625_v6, %v9215_v63 }
0x10e0   :  { %9652 = vpow2.f32 %v7353_v30  ;;  %v11194_v40 = vpop.eup %9628 }
0x10e1   :  { %9654 = vpow2.f32 %v7352_v33  ;;  %v6186_v46 = vsel %vm861_vm12, %v6182_v44, 0.0 }
0x10e2   :  { %v9631_v18 = vpop.eup %9630  ;;  %9656 = vpow2.f32 %v7380_v54 }
0x10e3   :  { %v9633_v9 = vpop.eup %9632  ;;  %9658 = vpow2.f32 %v7379_v11  ;;  %v6181_v10 = vmul.f32 %v9631_v18, %v9214_v36 }
0x10e4   :  { %v11200_v3 = vpop.eup %9634  ;;  %9660 = vpow2.f32 %v7415_v37  ;;  %v1312_v30 = vadd.f32 1.0, %v9633_v9 }
0x10e5   :  { %v9637_v51 = vpop.eup %9636  ;;  %9662 = vpow2.f32 %v7414_v38  ;;  %v6185_v21 = vsel %vm861_vm12, %v6181_v10, 0.0 }
0x10e6   :  { %v9639_v25 = vpop.eup %9638  ;;  %9664 = vpow2.f32 %v7442_v8  ;;  %v6187_v4 = vadd.f32 %v6186_v46, %v6185_v21  ;;  %v2491_v19 = vadd.f32 1.0, %v9637_v51 }
0x10e7   :  { %v9641_v59 = vpop.eup %9640  ;;  %9666 = vpow2.f32 %v7441_v7  ;;  %v2490_v50 = vadd.f32 1.0, %v9639_v25 }
0x10e8   :  { %v9643_v33 = vpop.eup %9642  ;;  %9668 = vpow2.f32 %v7469_v29  ;;  %v6188_v6 = vrot.slane %v6187_v4, 4  ;;  %v2960_v2 = vadd.f32 1.0, %v9641_v59 }
0x10e9   :  { %v9645_v54 = vpop.eup %9644  ;;  %9670 = vpow2.f32 %v7468_v52 }
0x10ea   :  { %v9647_v5 = vpop.eup %9646  ;;  %9672 = vrcp.f32 %v1312_v30  ;;  %v6189_v11 = vadd.f32 %v6188_v6, %v6187_v4  ;;  %v2959_v20 = vadd.f32 1.0, %v9645_v54 }
0x10eb   :  { %v9649_v14 = vpop.eup %9648  ;;  %9674 = vrcp.f32 %v2491_v19 }
0x10ec   :  { %v9651_v37 = vpop.eup %9650  ;;  %v6190_v38 = vrot.slane %v6189_v11, 2  ;;  %9676 = vrcp.f32 %v2490_v50  ;;  %v3429_v18 = vadd.f32 1.0, %v9649_v14  ;;  %v858_v14 = vmul.f32 %v11194_v40, %v10587_v49 }
0x10ed   :  { %v9653_v23 = vpop.eup %9652  ;;  %9678 = vrcp.f32 %v2960_v2  ;;  %v3428_v7 = vadd.f32 1.0, %v9651_v37  ;;  %v11435_v40 = vunpack.i.h.bf16 %v10683_v17 }
0x10ee   :  { %v9655_v44 = vpop.eup %9654  ;;  %v6191_v8 = vadd.f32 %v6190_v38, %v6189_v11  ;;  %9680 = vrcp.f32 %v2959_v20  ;;  %v3898_v29 = vadd.f32 1.0, %v9653_v23  ;;  %v857_v38 = vmul.f32 %v11190_v39, %v10577_v41 }
0x10ef   :  { %v9657_v9 = vpop.eup %9656  ;;  %v3897_v21 = vadd.f32 1.0, %v9655_v44  ;;  %9682 = vrcp.f32 %v3429_v18  ;;  %v11433_v23 = vunpack.i.h.bf16 %v10622_v55  ;;  %v7494_v18 = vld [vmem:[#allocation11 + $0xb] ss:$0 sm:$0xff] }
0x10f0   :  { %v9659_v10 = vpop.eup %9658  ;;  %v6192_v51 = vrot.slane %v6191_v8, 1  ;;  %v4367_v25 = vadd.f32 1.0, %v9657_v9  ;;  %9684 = vrcp.f32 %v3428_v7 }
0x10f1   :  { %v9661_v52 = vpop.eup %9660  ;;  %v4366_v59 = vadd.f32 1.0, %v9659_v10  ;;  %9686 = vrcp.f32 %v3898_v29  ;;  %v1327_v44 = vmul.f32 %v11200_v3, %v11433_v23  ;;  %v2034_v29 = vmul.f32 %v9643_v33, %v11435_v40 }
0x10f2   :  { %v9663_v46 = vpop.eup %9662  ;;  %v6193_v30 = vadd.f32 %v6192_v51, %v6191_v8  ;;  %v5078_v6 = vadd.f32 1.0, %v9661_v52  ;;  %9688 = vrcp.f32 %v3897_v21  ;;  %v11434_v8 = vunpack.i.l.bf16 %v10622_v55 }
0x10f3   :  { %v9665_v4 = vpop.eup %9664  ;;  %v5077_v2 = vadd.f32 1.0, %v9663_v46  ;;  %9690 = vrcp.f32 %v4367_v25  ;;  %v11436_v51 = vunpack.i.l.bf16 %v10683_v17  ;;  %v863_v3 = vsel %vm861_vm12, %v858_v14, 0.0 }
0x10f4   :  { %v9667_v19 = vpop.eup %9666  ;;  %v11205_v54 = vadd.f32 %v6193_v30, %v11146_v27  ;;  %v5547_v37 = vadd.f32 1.0, %v9665_v4  ;;  %9692 = vrcp.f32 %v4366_v59  ;;  %v862_v55 = vsel %vm861_vm12, %v857_v38, 0.0 }
0x10f5   :  { %v9669_v50 = vpop.eup %9668  ;;  %v5546_v27 = vadd.f32 1.0, %v9667_v19  ;;  %9694 = vrcp.f32 %v5078_v6  ;;  %v2033_v52 = vmul.f32 %v9647_v5, %v11436_v51  ;;  %v1331_v4 = vsel %vm861_vm12, %v1327_v44, 0.0 }
0x10f6   :  { %v9671_v11 = vpop.eup %9670  ;;  %v6016_v7 = vadd.f32 1.0, %v9669_v50  ;;  %9696 = vrcp.f32 %v5077_v2  ;;  %v11437_v33 = vunpack.i.h.bf16 %v10689_v26  ;;  %v864_v6 = vadd.f32 %v863_v3, %v862_v55 }
0x10f7   :  { %v9673_v20 = vpop.eup %9672  ;;  %v6015_v39 = vadd.f32 1.0, %v9671_v11  ;;  %9698 = vrcp.f32 %v5547_v37  ;;  %v2038_v50 = vsel %vm861_vm12, %v2034_v29, 0.0  ;;  %v2037_v2 = vsel %vm861_vm12, %v2033_v52, 0.0 }
0x10f8   :  { %v1326_v9 = vmul.f32 %v9673_v20, %v11434_v8  ;;  %v9675_v10 = vpop.eup %9674  ;;  %9700 = vrcp.f32 %v5546_v27  ;;  %v11438_v14 = vunpack.i.l.bf16 %v10689_v26  ;;  %v11439_v20 = vunpack.i.h.bf16 %v10695_v45 }
0x10f9   :  { %v6465_v21 = vpop.xlane.xlu1 %6464  ;;  %v9677_v46 = vpop.eup %9676  ;;  %v2503_v17 = vmul.f32 %v9675_v10, %v11437_v33  ;;  %9702 = vrcp.f32 %v6016_v7  ;;  %v11440_v7 = vunpack.i.l.bf16 %v10695_v45  ;;  %v865_v51 = vrot.slane %v864_v6, 4 }
0x10fa   :  { %v6476_v25 = vadd.f32 %v7494_v18, %v6465_v21  ;;  %v9679_v30 = vpop.eup %9678  ;;  %v1330_v59 = vsel %vm861_vm12, %v1326_v9, 0.0  ;;  %9704 = vrcp.f32 %v6015_v39  ;;  %v2502_v37 = vmul.f32 %v9677_v46, %v11438_v14 }
0x10fb   :  { %v9681_v19 = vpop.eup %9680  ;;  %v2972_v38 = vmul.f32 %v9679_v30, %v11439_v20  ;;  %v1332_v27 = vadd.f32 %v1331_v4, %v1330_v59  ;;  %v2507_v9 = vsel %vm861_vm12, %v2503_v17, 0.0  ;;  %v2039_v52 = vadd.f32 %v2038_v50, %v2037_v2 }
0x10fc   :  { %v7495_v5 = vmul.f32 -1.442695, %v6476_v25  ;;  %v9683_v44 = vpop.eup %9682  ;;  %v2971_v10 = vmul.f32 %v9681_v19, %v11440_v7  ;;  %v2506_v26 = vsel %vm861_vm12, %v2502_v37, 0.0  ;;  %v11441_v46 = vunpack.i.h.bf16 %v10701_v60 }
0x10fd   :  { %v6467_v11 = vpop.xlane.xlu0 %6466  ;;  %v9685_v8 = vpop.eup %9684  ;;  %v2976_v21 = vsel %vm861_vm12, %v2972_v38, 0.0  ;;  %v1333_v25 = vrot.slane %v1332_v27, 4  ;;  %v2508_v30 = vadd.f32 %v2507_v9, %v2506_v26  ;;  %v11442_v4 = vunpack.i.l.bf16 %v10701_v60 }
0x10fe   :  { %9706 = vpow2.f32 %v7495_v5  ;;  %v6477_v23 = vadd.f32 %v7494_v18, %v6467_v11  ;;  %v9687_v29 = vpop.eup %9686  ;;  %v3441_v18 = vmul.f32 %v9683_v44, %v11441_v46  ;;  %v2975_v45 = vsel %vm861_vm12, %v2971_v10, 0.0 }
0x10ff   :  { %v9689_v39 = vpop.eup %9688  ;;  %v3440_v59 = vmul.f32 %v9685_v8, %v11442_v4  ;;  %v11443_v33 = vunpack.i.h.bf16 %v10703_v22  ;;  %v866_v19 = vadd.f32 %v865_v51, %v864_v6  ;;  %v2040_v50 = vrot.slane %v2039_v52, 4 }
0x1100   :  { %v7496_v40 = vmul.f32 -1.442695, %v6477_v23  ;;  %v9691_v3 = vpop.eup %9690  ;;  %v2977_v2 = vadd.f32 %v2976_v21, %v2975_v45  ;;  %v3445_v37 = vsel %vm861_vm12, %v3441_v18, 0.0  ;;  %v11444_v20 = vunpack.i.l.bf16 %v10703_v22 }
0x1101   :  { %v9693_v55 = vpop.eup %9692  ;;  %v3910_v17 = vmul.f32 %v9687_v29, %v11443_v33  ;;  %v4379_v23 = vmul.f32 %v9691_v3, %v11012_v48  ;;  %v1334_v8 = vadd.f32 %v1333_v25, %v1332_v27  ;;  %v2509_v9 = vrot.slane %v2508_v30, 4 }
0x1102   :  { %9708 = vpow2.f32 %v7496_v40  ;;  %v9695_v5 = vpop.eup %9694  ;;  %v3909_v38 = vmul.f32 %v9689_v39, %v11444_v20  ;;  %v4378_v7 = vmul.f32 %v9693_v55, %v11015_v13  ;;  %v3444_v10 = vsel %vm861_vm12, %v3440_v59, 0.0 }
0x1103   :  { %v9697_v14 = vpop.eup %9696  ;;  %v3914_v40 = vsel %vm861_vm12, %v3910_v17, 0.0  ;;  %v11445_v29 = vunpack.i.h.bf16 %v10707_v12  ;;  %v867_v26 = vrot.slane %v866_v19, 2  ;;  %v2041_v21 = vadd.f32 %v2040_v50, %v2039_v52 }
0x1104   :  { %v9699_v60 = vpop.eup %9698  ;;  %v3446_v46 = vadd.f32 %v3445_v37, %v3444_v10  ;;  %v3913_v18 = vsel %vm861_vm12, %v3909_v38, 0.0  ;;  %v4383_v3 = vsel %vm861_vm12, %v4379_v23, 0.0  ;;  %v11446_v25 = vunpack.i.l.bf16 %v10707_v12 }
0x1105   :  { %v6444_v11 = vpop.permute.xlu0 %6443  ;;  %v9701_v6 = vpop.eup %9700  ;;  %v5090_v51 = vmul.f32 %v9695_v5, %v11445_v29  ;;  %v5559_v45 = vmul.f32 %v9699_v60, %v9210_v15  ;;  %v1335_v59 = vrot.slane %v1334_v8, 2  ;;  %v3915_v33 = vadd.f32 %v3914_v40, %v3913_v18 }
0x1106   :  { %v6450_v44 = vmul.f32 %v6444_v11, %v11152_v56  ;;  %v9703_v39 = vpop.eup %9702  ;;  %v2978_v56 = vrot.slane %v2977_v2, 4  ;;  %v5089_v55 = vmul.f32 %v9697_v14, %v11446_v25  ;;  %v4382_v52 = vsel %vm861_vm12, %v4378_v7, 0.0 }
0x1107   :  { %v9705_v27 = vpop.eup %9704  ;;  %v5094_v17 = vsel %vm861_vm12, %v5090_v51, 0.0  ;;  %v11447_v5 = vunpack.i.l.bf16 %v10709_v31  ;;  %v6028_v11 = vmul.f32 %v9703_v39, %v9215_v63  ;;  %v2042_v14 = vrot.slane %v2041_v21, 2  ;;  %v11275_v39 = vpop.permute.xlu1 %9239 }
0x1108   :  { %v6452_v22 = vadd.f32 %v6450_v44, %v11122_v34  ;;  %v2510_v34 = vadd.f32 %v2509_v9, %v2508_v30  ;;  %v2979_v37 = vadd.f32 %v2978_v56, %v2977_v2  ;;  %v3447_v20 = vrot.slane %v3446_v46, 4 }
0x1109   :  { %v5558_v50 = vmul.f32 %v9701_v6, %v11447_v5  ;;  %v4384_v15 = vadd.f32 %v4383_v3, %v4382_v52  ;;  %v5093_v38 = vsel %vm861_vm12, %v5089_v55, 0.0  ;;  %v6027_v30 = vmul.f32 %v9705_v27, %v9214_v36 }
0x110a   :  { %6986 = vst [vmem:[%s10329_s7] sm:$0xff] %v6452_v22  ;;  %v5563_v23 = vsel %vm861_vm12, %v5559_v45, 0.0  ;;  %v1336_v60 = vadd.f32 %v1335_v59, %v1334_v8  ;;  %v3916_v31 = vrot.slane %v3915_v33, 4  ;;  %v5095_v9 = vadd.f32 %v5094_v17, %v5093_v38 }
0x110b   :  { %v9707_v4 = vpop.eup %9706  ;;  %v2511_v7 = vrot.slane %v2510_v34, 2  ;;  %v5562_v63 = vsel %vm861_vm12, %v5558_v50, 0.0  ;;  %v6032_v2 = vsel %vm861_vm12, %v6028_v11, 0.0  ;;  %v868_v10 = vadd.f32 %v867_v26, %v866_v19  ;;  %v11277_v5 = vpop.permute.xlu1 %9244 }
0x110c   :  { %v6484_v12 = vadd.f32 1.0, %v9707_v4  ;;  %v3448_v40 = vadd.f32 %v3447_v20, %v3446_v46  ;;  %v4385_v29 = vrot.slane %v4384_v15, 4  ;;  %v5564_v51 = vadd.f32 %v5563_v23, %v5562_v63 }
0x110d   :  { %v2043_v22 = vadd.f32 %v2042_v14, %v2041_v21  ;;  %v2980_v32 = vrot.slane %v2979_v37, 2  ;;  %v6031_v36 = vsel %vm861_vm12, %v6027_v30, 0.0  ;;  %v3917_v8 = vadd.f32 %v3916_v31, %v3915_v33 }
0x110e   :  { %9710 = vrcp.f32 %v6484_v12  ;;  %v5096_v56 = vrot.slane %v5095_v9, 4  ;;  %v6033_v27 = vadd.f32 %v6032_v2, %v6031_v36  ;;  %v1337_v18 = vrot.slane %v1336_v60, 1 }
0x110f   :  { %v9709_v44 = vpop.eup %9708  ;;  %v2512_v3 = vadd.f32 %v2511_v7, %v2510_v34  ;;  %v3449_v25 = vrot.slane %v3448_v40, 2  ;;  %v4386_v55 = vadd.f32 %v4385_v29, %v4384_v15  ;;  %v5565_v45 = vrot.slane %v5564_v51, 4 }
0x1110   :  { %v6485_v6 = vadd.f32 1.0, %v9709_v44  ;;  %v869_v4 = vrot.slane %v868_v10, 1  ;;  %v2044_v19 = vrot.slane %v2043_v22, 1  ;;  %v2981_v26 = vadd.f32 %v2980_v32, %v2979_v37 }
0x1111   :  { %v3918_v46 = vrot.slane %v3917_v8, 2  ;;  %v5097_v59 = vadd.f32 %v5096_v56, %v5095_v9  ;;  %v6034_v21 = vrot.slane %v6033_v27, 4  ;;  %v1338_v52 = vadd.f32 %v1337_v18, %v1336_v60 }
0x1112   :  { %9712 = vrcp.f32 %v6485_v6  ;;  %v2513_v17 = vrot.slane %v2512_v3, 1  ;;  %v3450_v50 = vadd.f32 %v3449_v25, %v3448_v40  ;;  %v4387_v11 = vrot.slane %v4386_v55, 2 }
0x1113   :  { %v5566_v33 = vadd.f32 %v5565_v45, %v5564_v51  ;;  %v870_v12 = vadd.f32 %v869_v4, %v868_v10  ;;  %v2045_v14 = vadd.f32 %v2044_v19, %v2043_v22  ;;  %v2982_v20 = vrot.slane %v2981_v26, 1 }
0x1114   :  { %v3919_v38 = vadd.f32 %v3918_v46, %v3917_v8  ;;  %v5098_v15 = vrot.slane %v5097_v59, 2  ;;  %v6035_v30 = vadd.f32 %v6034_v21, %v6033_v27  ;;  %v9246_v37 = vunpack.i.l.bf16 %v11277_v5 }
0x1115   :  { %v1339_v23 = vadd.f32 %v1338_v52, %v870_v12  ;;  %v2514_v44 = vadd.f32 %v2513_v17, %v2512_v3  ;;  %v3451_v31 = vrot.slane %v3450_v50, 1  ;;  %v4388_v9 = vadd.f32 %v4387_v11, %v4386_v55 }
0x1116   :  { %v5567_v60 = vrot.slane %v5566_v33, 2  ;;  %v9247_v7 = vunpack.i.h.bf16 %v11277_v5  ;;  %v2983_v2 = vadd.f32 %v2982_v20, %v2981_v26  ;;  %v3920_v40 = vrot.slane %v3919_v38, 1 }
0x1117   :  { %v2046_v63 = vadd.f32 %v2045_v14, %v1339_v23  ;;  %v5099_v29 = vadd.f32 %v5098_v15, %v5097_v59  ;;  %v6036_v51 = vrot.slane %v6035_v30, 2  ;;  %v3452_v36 = vadd.f32 %v3451_v31, %v3450_v50  ;;  %v7502_v31 = vld [vmem:[%s11448_s0] ss:$0 sm:$0xff] }
0x1118   :  { %v4389_v8 = vrot.slane %v4388_v9, 1  ;;  %v5568_v56 = vadd.f32 %v5567_v60, %v5566_v33  ;;  %v3921_v55 = vadd.f32 %v3920_v40, %v3919_v38 }
0x1119   :  { %v2515_v32 = vadd.f32 %v2514_v44, %v2046_v63  ;;  %v5100_v45 = vrot.slane %v5099_v29, 1  ;;  %v6037_v4 = vadd.f32 %v6036_v51, %v6035_v30  ;;  %v7497_v30 = vld [vmem:[#allocation14 + $0xb] ss:$0 sm:$0xff] }
0x111a   :  { %v4390_v46 = vadd.f32 %v4389_v8, %v4388_v9  ;;  %v5569_v59 = vrot.slane %v5568_v56, 1 }
0x111b   :  { %v9711_v34 = vpop.eup %9710  ;;  %v2984_v3 = vadd.f32 %v2983_v2, %v2515_v32  ;;  %v5101_v17 = vadd.f32 %v5100_v45, %v5099_v29  ;;  %v6038_v50 = vrot.slane %v6037_v4, 1  ;;  %v7498_v2 = vld [vmem:[#allocation16 + $0xb] ss:$0 sm:$0xff] }
0x111c   :  { %v6496_v6 = vmul.f32 %v9711_v34, %v9246_v37  ;;  %v5570_v12 = vadd.f32 %v5569_v59, %v5568_v56 }
0x111d   :  { %v3453_v26 = vadd.f32 %v3452_v36, %v2984_v3  ;;  %v6039_v34 = vadd.f32 %v6038_v50, %v6037_v4 }
0x111e   :  { %v6500_v18 = vsel %vm861_vm12, %v6496_v6, 0.0 }
0x111f   :  { %v9713_v10 = vpop.eup %9712  ;;  %v3922_v52 = vadd.f32 %v3921_v55, %v3453_v26  ;;  %v7391_v55 = vld [vmem:[#allocation2] ss:$0 sm:$0xff] }
0x1120   :  { %v6497_v22 = vmul.f32 %v9713_v10, %v9247_v7  ;;  %v4760_v45 = vadd.f32 %v7391_v55, %v11092_v0  ;;  %v4761_v4 = vadd.f32 %v7391_v55, %v11088_v35 }
0x1121   :  { %v4391_v33 = vadd.f32 %v4390_v46, %v3922_v52  ;;  %v11449_v46 = vmov 0  }
0x1122   :  { %v6501_v27 = vsel %vm861_vm12, %v6497_v22, 0.0  ;;  %v7393_v26 = vmul.f32 -1.442695, %v4761_v4 }
0x1123   :  { %v6502_v25 = vadd.f32 %v6501_v27, %v6500_v18  ;;  %v5102_v20 = vadd.f32 %v5101_v17, %v4391_v33 }
0x1125   :  { %v6503_v19 = vrot.slane %v6502_v25, 4  ;;  %v5571_v15 = vadd.f32 %v5570_v12, %v5102_v20  ;;  %v7003_v20 = vsel %vm7001_vm0, %v10587_v49, 0.0 }
0x1127   :  { %v6504_v21 = vadd.f32 %v6503_v19, %v6502_v25  ;;  %v6040_v38 = vadd.f32 %v6039_v34, %v5571_v15  ;;  %v7392_v19 = vmul.f32 -1.442695, %v4760_v45  ;;  %v7002_v15 = vsel %vm7001_vm0, %v10577_v41, 0.0 }
0x1129   :  { %v6505_v11 = vrot.slane %v6504_v21, 2  ;;  %9714 = vpow2.f32 %v7392_v19 }
0x112a   :  { %9716 = vpow2.f32 %v7393_v26 }
0x112b   :  { %v6506_v14 = vadd.f32 %v6505_v11, %v6504_v21 }
0x112d   :  { %v6507_v23 = vrot.slane %v6506_v14, 1 }
0x112f   :  { %v6508_v44 = vadd.f32 %v6507_v23, %v6506_v14  ;;  %v7004_v23 = vadd.f32 %v7003_v20, %v7002_v15 }
0x1131   :  { %v11288_v60 = vadd.f32 %v6508_v44, %v6040_v38  ;;  %v7005_v44 = vrot.slane %v7004_v23, 4 }
0x1132   :  { %v9027_v9 = vpop.f32.mrf.mxu1  ;;  %v9062_v6 = vpop.f32.mrf.mxu0 }
0x1133   :  { %v6607_v63 = vadd.f32 %v9027_v9, %v7497_v30  ;;  %v6759_v10 = vadd.f32 %v9062_v6, %v7502_v31 }
0x1134   :  { %v6601_v40 = vpop.f32.mrf.mxu1  ;;  %v6753_v29 = vpop.f32.mrf.mxu0 }
0x1135   :  { %v6611_v51 = vmax.f32 %v6607_v63, 0.0  ;;  %v6602_v22 = vadd.f32 %v7497_v30, %v6601_v40  ;;  %v6754_v32 = vadd.f32 %v7502_v31, %v6753_v29  ;;  %v6763_v27 = vmax.f32 %v6759_v10, 0.0 }
0x1136   :  { %v9715_v59 = vpop.eup %9714  ;;  %v7006_v31 = vadd.f32 %v7005_v44, %v7004_v23 }
0x1137   :  { %v6621_v36 = vmul.f32 %v7498_v2, %v6611_v51  ;;  %v6610_v8 = vmax.f32 %v6602_v22, 0.0  ;;  %v6762_v56 = vmax.f32 %v6754_v32, 0.0  ;;  %v9717_v21 = vpop.eup %9716  ;;  %v4768_v52 = vadd.f32 1.0, %v9715_v59  ;;  %v7499_v22 = vld [vmem:[#allocation17 + $0xb] ss:$0 sm:$0xff] }
0x1138   :  { %v4769_v17 = vadd.f32 1.0, %v9717_v21  ;;  %v7007_v6 = vrot.slane %v7006_v31, 2  ;;  %v11450_v51 = vmov 7  }
0x1139   :  { %v6620_v18 = vmul.f32 %v7498_v2, %v6610_v8  ;;  %9071 = vmatprep.mubr.msk.f32.mxu1 %vm6775_vm15, %v6762_v56  ;;  %v6625_v3 = vsel %vm981_vm2, %v6621_v36, 0.0  ;;  %9718 = vrcp.f32 %v4768_v52 }
0x113a   :  { %9072 = vmatmul.mubr.msk.f32.vlgmr.msra.gmra.mxu1 %vm6775_vm15, %v6763_v27  ;;  %6626 = vadd.xlane.f32.xlu1 %v6625_v3  ;;  %9720 = vrcp.f32 %v4769_v17  ;;  %v7008_v2 = vadd.f32 %v7007_v6, %v7006_v31  ;;  %v2457_v31 = vmul.f32 %v10740_v57, %v10771_v16  ;;  %v11458_v57 = vld [vmem:[#allocation54_spill] sm:$0xff] }
0x113b   :  { %v6622_v25 = vsel %vm981_vm2, %v6620_v18, 0.0 }
0x113c   :  { %v7009_v40 = vrot.slane %v7008_v2, 1 }
0x113e   :  { %6623 = vadd.xlane.f32.xlu1 %v6622_v25  ;;  %v7010_v29 = vadd.f32 %v7009_v40, %v7008_v2  ;;  %v11454_v2 = vld [vmem:[#allocation52_spill] sm:$0xff] }
0x1146   :  { %v9719_v50 = vpop.eup %9718 }
0x1147   :  { %v9721_v11 = vpop.eup %9720  ;;  %v4774_v0 = vmul.f32 %v9719_v50, %v11015_v13  ;;  %v6860_v13 = vld [vmem:[#allocation28 + $0x8] sm:$0xff] }
0x1148   :  { %v4775_v35 = vmul.f32 %v9721_v11, %v11012_v48  ;;  %9074 = vmatprep.subr.mxu0 %v6860_v13  ;;  %v6859_v48 = vld [vmem:[#allocation28] sm:$0xff] }
0x1149   :  { %v4778_v33 = vsel %vm861_vm12, %v4774_v0, 0.0  ;;  %9075 = vmatpush3.msra.mxu0 %v6860_v13 }
0x114a   :  { %v4779_v12 = vsel %vm861_vm12, %v4775_v35, 0.0  ;;  %9076 = vmatprep.subr.mxu0 %v6859_v48  ;;  %v7503_v35 = vld [vmem:[#allocation26] ss:$0 sm:$0xff] }
0x114b   :  { %v4780_v14 = vadd.f32 %v4779_v12, %v4778_v33  ;;  %9077 = vmatpush3.msra.mxu0 %v6859_v48 }
0x114d   :  { %v4781_v34 = vrot.slane %v4780_v14, 4 }
0x114f   :  { %6447 = vperm.xlu1 %9237, %v10653_v47   ;;  %v4782_v38 = vadd.f32 %v4781_v34, %v4780_v14 }
0x1151   :  { %v4783_v30 = vrot.slane %v4782_v38, 2 }
0x1153   :  { %9249 = vset.pattern.permute.xlu1 %v11449_v46  ;;  %v4784_v9 = vadd.f32 %v4783_v30, %v4782_v38  ;;  %v1279_v38 = vmul.f32 %v10736_v53, %v10527_v24  ;;  %v11451_v30 = vmov 11  }
0x1155   :  { %v4785_v63 = vrot.slane %v4784_v9, 1 }
0x1157   :  { %v4786_v10 = vadd.f32 %v4785_v63, %v4784_v9  ;;  %v2926_v9 = vmul.f32 %v10742_v58, %v10841_v1  ;;  %v11453_v63 = vld [vmem:[#allocation58_spill] sm:$0xff]  ;;  %v11460_v58 = vld [vmem:[#allocation55_spill] sm:$0xff] }
0x1173   :  { %6990 = vadd.xlane.f32.xlu1 %v10587_v49 }
0x1184   :  { %816 = vperm.xlu1 %9249, %v10653_v47  }
0x1188   :  { %7038 = vperm.xlu1 %9249, %v11288_v60  }
0x118c   :  { %7060 = vperm.xlu1 %9249, %v4786_v10   ;;  %v3864_v10 = vmul.f32 %v11454_v2, %v11453_v63 }
0x1190   :  { %9250 = vset.pattern.permute.xlu1 %v11450_v51 }
0x1191   :  { %7069 = vperm.xlu1 %9250, %v7010_v29   ;;  %v11455_v29 = vld [vmem:[#allocation59_spill] sm:$0xff] }
0x1195   :  { %9251 = vset.pattern.permute.xlu1 %v11449_v46 }
0x11c3   :  { %v6627_v32 = vpop.xlane.xlu1 %6626 }
0x11c4   :  { %v6637_v36 = vadd.f32 %v7499_v22, %v6627_v32 }
0x11c6   :  { %v7501_v8 = vmul.f32 -1.442695, %v6637_v36  ;;  %v11459_v36 = vld [vmem:[#allocation61_spill] sm:$0xff] }
0x11c7   :  { %v6624_v56 = vpop.xlane.xlu1 %6623  ;;  %v5513_v1 = vmul.f32 %v11460_v58, %v11459_v36 }
0x11c8   :  { %9722 = vpow2.f32 %v7501_v8  ;;  %v6636_v47 = vadd.f32 %v7499_v22, %v6624_v56  ;;  %v11457_v22 = vld [vmem:[#allocation60_spill] sm:$0xff]  ;;  %v11461_v56 = vld [vmem:[#allocation62_spill] sm:$0xff] }
0x11c9   :  { %v5044_v16 = vmul.f32 %v11458_v57, %v11457_v22 }
0x11ca   :  { %v7500_v27 = vmul.f32 -1.442695, %v6636_v47  ;;  %v11462_v47 = vld [vmem:[#allocation56_spill] sm:$0xff] }
0x11cb   :  { %v6448_v0 = vpop.permute.xlu1 %6447 }
0x11cc   :  { %9724 = vpow2.f32 %v7500_v27 }
0x11d5   :  { %v9723_v18 = vpop.eup %9722 }
0x11d6   :  { %v6645_v60 = vadd.f32 1.0, %v9723_v18  ;;  %v6451_v18 = vmul.f32 %v6448_v0, %v11157_v61 }
0x11d8   :  { %9726 = vrcp.f32 %v6645_v60 }
0x11d9   :  { %v9725_v3 = vpop.eup %9724 }
0x11da   :  { %v6644_v25 = vadd.f32 1.0, %v9725_v3 }
0x11dc   :  { %9728 = vrcp.f32 %v6644_v25  ;;  %v6989_v25 = vpop.xlane.xlu0 %6988 }
0x11e5   :  { %v9727_v55 = vpop.eup %9726 }
0x11e6   :  { %v6651_v45 = vmul.f32 %v9727_v55, %v9247_v7 }
0x11e8   :  { %v6655_v46 = vsel %vm861_vm12, %v6651_v45, 0.0 }
0x11e9   :  { %v9729_v4 = vpop.eup %9728 }
0x11ea   :  { %v6650_v19 = vmul.f32 %v9729_v4, %v9246_v37  ;;  %v11463_v4 = vld [vmem:[#allocation57_spill] sm:$0xff] }
0x11ec   :  { %v6654_v26 = vsel %vm861_vm12, %v6650_v19, 0.0  ;;  %v1725_v19 = vrot.slane %v11463_v4, 4 }
0x11ed   :  { %v6656_v59 = vadd.f32 %v6655_v46, %v6654_v26 }
0x11ef   :  { %v6657_v21 = vrot.slane %v6656_v59, 4 }
0x11f1   :  { %v6658_v52 = vadd.f32 %v6657_v21, %v6656_v59  ;;  %v1726_v59 = vadd.f32 %v1725_v19, %v11463_v4 }
0x11f3   :  { %v6659_v17 = vrot.slane %v6658_v52, 2 }
0x11f5   :  { %v6660_v50 = vadd.f32 %v6659_v17, %v6658_v52  ;;  %v1727_v17 = vrot.slane %v1726_v59, 2 }
0x11f7   :  { %v6661_v11 = vrot.slane %v6660_v50, 1  ;;  %v1728_v61 = vadd.f32 %v1727_v17, %v1726_v59 }
0x11f9   :  { %v6662_v33 = vadd.f32 %v6661_v11, %v6660_v50  ;;  %v11464_v11 = vlaneseq }
0x11fa   :  { %v9073_v12 = vpop.f32.mrf.mxu1 }
0x11fb   :  { %v6663_v7 = vadd.f32 %v6662_v33, %v11205_v54  ;;  %v6854_v14 = vadd.f32 %v9073_v12, %v7503_v35  ;;  %v1988_v54 = vmul.f32 %v10738_v28, %v10663_v62  ;;  %v11456_v62 = vld [vmem:[#allocation53_spill] sm:$0xff]  ;;  %v1729_v12 = vrot.slane %v1728_v61, 1 }
0x11fc   :  { %v6848_v20 = vpop.f32.mrf.mxu1  ;;  %v6991_v5 = vpop.xlane.xlu1 %6990  ;;  %v4333_v28 = vmul.f32 %v11456_v62, %v11455_v29  ;;  %v9242_v29 = vunpack.i.h.bf16 %v11275_v39 }
0x11fd   :  { %v6849_v37 = vadd.f32 %v7503_v35, %v6848_v20  ;;  %7047 = vperm.xlu1 %9251, %v6663_v7   ;;  %v6858_v15 = vmax.f32 %v6854_v14, 0.0  ;;  %v6992_v55 = vadd.f32 %v6991_v5, %v6989_v25  ;;  %v11343_v35 = vshrl.u32 %v11464_v11, 7 }
0x11ff   :  { %v6857_v34 = vmax.f32 %v6849_v37, 0.0  ;;  %v6993_v45 = vrot.slane %v6992_v55, 4  ;;  %vm7034_vm1 = vcmp.eq.s32.totalorder %v11343_v35, 0  ;;  %vm7043_vm2 = vcmp.eq.s32.totalorder %v11343_v35, 1 }
0x1200   :  { %v817_v23 = vpop.permute.xlu1 %816  ;;  %vm7052_vm3 = vcmp.eq.s32.totalorder %v11343_v35, 2  ;;  %vm7056_vm4 = vcmp.eq.s32.totalorder %v11343_v35, 3  ;;  %vm7065_vm5 = vcmp.eq.s32.totalorder %v11343_v35, 4  ;;  %vm7074_vm6 = vcmp.eq.s32.totalorder %v11343_v35, 5 }
0x1201   :  { %v820_v44 = vmul.f32 %v817_v23, %v10484_v43  ;;  %9078 = vmatprep.mubr.msk.f32.mxu0 %vm1603_vm7, %v6857_v34  ;;  %9253 = vset.pattern.permute.xlu1 %v11451_v30  ;;  %v11452_v43 = vld [vmem:[#allocation51_spill] sm:$0xff]  ;;  %v6994_v26 = vadd.f32 %v6993_v45, %v6992_v55  ;;  %v1730_v34 = vadd.f32 %v1729_v12, %v1728_v61  ;;  %vm7087_vm11 = vcmp.eq.s32.totalorder %v11343_v35, 7 }
0x1202   :  { %9079 = vmatmul.mubr.msk.f32.vlgmr.msra.gmra.mxu0 %vm1603_vm7, %v6858_v15  ;;  %v3395_v53 = vmul.f32 %v11452_v43, %v10885_v42  ;;  %v5982_v42 = vmul.f32 %v11462_v47, %v11461_v56  ;;  %vm7078_vm7 = vcmp.eq.s32.totalorder %v11343_v35, 6 }
0x1203   :  { %v1281_v13 = vadd.f32 %v1279_v38, %v820_v44  ;;  %v6995_v21 = vrot.slane %v6994_v26, 2  ;;  %v7083_v38 = vpop.permute.xlu0 %7082 }
0x1204   :  { %v7039_v46 = vpop.permute.xlu1 %7038 }
0x1205   :  { %v1990_v48 = vadd.f32 %v1988_v54, %v1281_v13  ;;  %v6996_v50 = vadd.f32 %v6995_v21, %v6994_v26  ;;  %v7041_v14 = vsel %vm7034_vm1, %v7039_v46, 0.0  ;;  %v7506_v54 = vld [vmem:[%s10324_s28] ss:$0 sm:$0xff] }
0x1207   :  { %v2459_v24 = vadd.f32 %v2457_v31, %v1990_v48  ;;  %v6997_v0 = vrot.slane %v6996_v50, 1 }
0x1208   :  { %v7061_v52 = vpop.permute.xlu1 %7060 }
0x1209   :  { %v2928_v6 = vadd.f32 %v2926_v9, %v2459_v24  ;;  %v6998_v7 = vadd.f32 %v6997_v0, %v6996_v50 }
0x120b   :  { %v3397_v40 = vadd.f32 %v3395_v53, %v2928_v6 }
0x120c   :  { %v7070_v33 = vpop.permute.xlu1 %7069 }
0x120d   :  { %v3866_v51 = vadd.f32 %v3864_v10, %v3397_v40  ;;  %v7023_v10 = vsel %vm7021_vm8, %v10587_v49, 0.0  ;;  %v7022_v40 = vsel %vm7021_vm8, %v10577_v41, 0.0 }
0x120e   :  { %v7024_v62 = vadd.f32 %v7023_v10, %v7022_v40 }
0x120f   :  { %v4335_v32 = vadd.f32 %v4333_v28, %v3866_v51  ;;  %v9241_v51 = vunpack.i.l.bf16 %v11275_v39 }
0x1210   :  { %v7025_v36 = vrot.slane %v7024_v62, 4 }
0x1211   :  { %v5046_v8 = vadd.f32 %v5044_v16, %v4335_v32 }
0x1213   :  { %v5515_v27 = vadd.f32 %v5513_v1, %v5046_v8  ;;  %v7026_v1 = vadd.f32 %v7025_v36, %v7024_v62 }
0x1215   :  { %v5984_v60 = vadd.f32 %v5982_v42, %v5515_v27  ;;  %v7027_v49 = vrot.slane %v7026_v1, 2  ;;  %v7033_v42 = vadd.s32 8, %v11343_v35 }
0x1217   :  { %v6453_v3 = vadd.f32 %v6451_v18, %v5984_v60  ;;  %v7028_v8 = vadd.f32 %v7027_v49, %v7026_v1  ;;  %vm7092_vm10 = vcmp.eq.s32.totalorder %v7033_v42, 8 }
0x1219   :  { %6987 = vst [vmem:[%s10329_s7 + $0x8] sm:$0xff] %v6453_v3  ;;  %v7029_v41 = vrot.slane %v7028_v8, 1 }
0x121b   :  { %v7030_v56 = vadd.f32 %v7029_v41, %v7028_v8 }
0x1278   :  { %v7048_v20 = vpop.permute.xlu1 %7047 }
0x1279   :  { %v7050_v5 = vsel %vm7043_vm2, %v7048_v20, %v7041_v14 }
0x127a   :  { %v7054_v37 = vsel %vm7052_vm3, %v6998_v7, %v7050_v5 }
0x127b   :  { %v7063_v15 = vsel %vm7056_vm4, %v7061_v52, %v7054_v37 }
0x127c   :  { %v7072_v23 = vsel %vm7065_vm5, %v7070_v33, %v7063_v15 }
0x127d   :  { %v7076_v44 = vsel %vm7074_vm6, %v1730_v34, %v7072_v23 }
0x127e   :  { %v7085_v30 = vsel %vm7078_vm7, %v7083_v38, %v7076_v44 }
0x12c2   :  { %v9080_v13 = vpop.f32.mrf.mxu0 }
0x12c3   :  { %v6946_v31 = vadd.f32 %v9080_v13, %v7506_v54 }
0x12c4   :  { %v6940_v48 = vpop.f32.mrf.mxu0 }
0x12c5   :  { %v7510_v9 = vmul.f32 -1.442695, %v6946_v31  ;;  %v6941_v24 = vadd.f32 %v7506_v54, %v6940_v48 }
0x12c7   :  { %9730 = vpow2.f32 %v7510_v9  ;;  %v7509_v43 = vmul.f32 -1.442695, %v6941_v24 }
0x12c9   :  { %9732 = vpow2.f32 %v7509_v43 }
0x12d4   :  { %v9731_v53 = vpop.eup %9730 }
0x12d5   :  { %v6956_v6 = vadd.f32 1.0, %v9731_v53 }
0x12d6   :  { %v9733_v63 = vpop.eup %9732 }
0x12d7   :  { %9734 = vrcp.f32 %v6956_v6  ;;  %v6955_v2 = vadd.f32 1.0, %v9733_v63 }
0x12d9   :  { %9736 = vrcp.f32 %v6955_v2 }
0x12e4   :  { %v9735_v28 = vpop.eup %9734 }
0x12e5   :  { %v6970_v22 = vmul.f32 %v9735_v28, %v9242_v29 }
0x12e6   :  { %v9737_v57 = vpop.eup %9736 }
0x12e7   :  { %v6975_v16 = vsel %vm6971_vm9, %v6970_v22, 0.0  ;;  %v6969_v32 = vmul.f32 %v9737_v57, %v9241_v51 }
0x12e8   :  { %6976 = vadd.xlane.f32.xlu1 %v6975_v16 }
0x12e9   :  { %v6972_v58 = vsel %vm6971_vm9, %v6969_v32, 0.0 }
0x12ec   :  { %6973 = vadd.xlane.f32.xlu1 %v6972_v58 }
0x12fd   :  { %7095 = vperm.xlu1 %9253, %v7030_v56  }
0x1371   :  { %v6977_v47 = vpop.xlane.xlu1 %6976 }
0x1375   :  { %v6974_v39 = vpop.xlane.xlu1 %6973 }
0x1376   :  { %v6978_v27 = vadd.f32 %v6977_v47, %v6974_v39 }
0x1378   :  { %v6979_v18 = vrot.slane %v6978_v27, 4 }
0x1379   :  { %v7096_v60 = vpop.permute.xlu1 %7095 }
0x137a   :  { %v6980_v3 = vadd.f32 %v6979_v18, %v6978_v27  ;;  %v7099_v25 = vsel %vm7092_vm10, %v7096_v60, 0.0 }
0x137b   :  { %7101 = vst [vmem:[%s10339_s23 + $0x8] sm:$0xff] %v7099_v25 }
0x137c   :  { %v6981_v55 = vrot.slane %v6980_v3, 2 }
0x137e   :  { %v6982_v45 = vadd.f32 %v6981_v55, %v6980_v3 }
0x1380   :  { %v6983_v4 = vrot.slane %v6982_v45, 1 }
0x1382   :  { %v6984_v19 = vadd.f32 %v6983_v4, %v6982_v45 }
0x1384   :  { %v7089_v26 = vsel %vm7087_vm11, %v6984_v19, %v7085_v30 }
0x1385   :  { %7100 = vst [vmem:[%s10339_s23] sm:$0xff] %v7089_v26 }
0x1386   :  { %7114 = vsyncpa [#allocation4], 1 }
0x1387   :  { %7115 = vsyncpa [#allocation6], 1 }
0x1388   :  { %7116 = vsyncpa [#allocation9], 1 }
0x1389   :  { %7117 = vsyncpa [#allocation12], 1 }
0x138a   :  { %7118 = vsyncpa [#allocation15], 1 }
0x138b   :  { %7119 = vsyncpa [#allocation18], 1 }
0x138c   :  { %7120 = vsyncpa [#allocation21], 1 }
0x138d   :  { %7121 = vsyncpa [#allocation24], 1 }
0x138e   :  { %7122 = vsyncpa [#allocation27], 1 }

</bundles_post_ra>
